<compile_context>
chip_gen: v5e
topology: v5e:2x2
jax: 0.10.0
libtpu: 0.0.40
codegen_flags: <defaults>
</compile_context>

<pallas_src>
import jax
import jax.numpy as jnp
import numpy as np
from jax.experimental import pallas as pl
from jax.experimental.pallas import tpu as pltpu

# ---------------- model configuration (matches Siren __init__ args) ---------
IN_FEATURES = 2
HIDDEN_FEATURES = 32
HIDDEN_LAYERS = 2          # hidden SineLayers after the first one
OUT_FEATURES = 1
FIRST_OMEGA_0 = 30.0
HIDDEN_OMEGA_0 = 30.0

H = HIDDEN_FEATURES

# Tile over the points dimension (lane axis).  N is padded to a multiple of
# 2*TM so the grid is even and >= 2 (keeps both v7x TensorCores busy).
TM = 2048

# ---------------- bounded-range sine ----------------------------------------
# sin(x) for |x| up to a few thousand rad (SIREN args are < ~52 rad):
#   n = round(x / pi)  (round-half-up via floor)
#   r = x - n*pi       (two-step Cody-Waite, pi = PI_HI + PI_LO, PI_HI has
#                       only 8 significant bits so n*PI_HI is exact)
#   sin(x) = (-1)^n * sin(r),   sin(r) via degree-13 odd polynomial, |r|<=pi/2
_INV_PI = np.float32(1.0 / np.pi)
_PI_HI = np.float32(3.140625)                 # 11.001001b -> exact products
_PI_LO = np.float32(np.pi - 3.140625)
_C3 = np.float32(-1.0 / 6.0)
_C5 = np.float32(1.0 / 120.0)
_C7 = np.float32(-1.0 / 5040.0)
_C9 = np.float32(1.0 / 362880.0)
_C11 = np.float32(-1.0 / 39916800.0)
_C13 = np.float32(1.0 / 6227020800.0)


def _fast_sin(x):
    n = jnp.floor(x * _INV_PI + jnp.float32(0.5))
    r = x - n * _PI_HI
    r = r - n * _PI_LO
    r2 = r * r
    p = _C13
    p = p * r2 + _C11
    p = p * r2 + _C9
    p = p * r2 + _C7
    p = p * r2 + _C5
    p = p * r2 + _C3
    s = r + r * (r2 * p)
    # sign = (-1)^n, computed in f32 (n even -> +1, n odd -> -1)
    parity = n - jnp.float32(2.0) * jnp.floor(n * jnp.float32(0.5))
    sign = jnp.float32(1.0) - jnp.float32(2.0) * parity
    return s * sign


# ---------------- kernel -----------------------------------------------------
def _siren_kernel(x_ref, w0_ref, w1_ref, b1_ref, w2_ref, b2_ref,
                  wf_ref, bf_ref, out_ref):
    """One lane-dense block of TM coordinate points through the full MLP.

    x_ref  : (IN_FEATURES + 1, TM)  feature-major coords with trailing ones row
    w0_ref : (H, IN_FEATURES + 1)   omega0-folded W0 with omega0*b0 as last col
    w1_ref, w2_ref : (H, H)         omega-folded hidden weights
    b1_ref, b2_ref : (H, 1)         omega-folded hidden biases
    wf_ref : (OUT_FEATURES, H)      final linear weight
    bf_ref : (OUT_FEATURES, 1)      final linear bias
    out_ref: (OUT_FEATURES, TM)     lane-dense output block
    """
    x = x_ref[...]

    # omega_0 already folded into weights/biases -> sine layers are sin(W@h+b)
    h = _fast_sin(jnp.dot(w0_ref[...], x, preferred_element_type=jnp.float32))
    h = _fast_sin(jnp.dot(w1_ref[...], h, preferred_element_type=jnp.float32)
                  + b1_ref[...])
    h = _fast_sin(jnp.dot(w2_ref[...], h, preferred_element_type=jnp.float32)
                  + b2_ref[...])
    out = jnp.dot(wf_ref[...], h, preferred_element_type=jnp.float32) + bf_ref[...]
    out_ref[...] = out.astype(out_ref.dtype)


def _siren_pallas(coords_aug, w0a, w1, b1, w2, b2, wf, bf):
    """coords_aug: (IN_FEATURES+1, N_pad) feature-major + ones row.
    Returns (OUT_FEATURES, N_pad)."""
    n_pad = coords_aug.shape[1]
    const = lambda i: (0, 0)
    return pl.pallas_call(
        _siren_kernel,
        out_shape=jax.ShapeDtypeStruct((OUT_FEATURES, n_pad), coords_aug.dtype),
        grid_spec=pltpu.PrefetchScalarGridSpec(
            num_scalar_prefetch=0,
            grid=(n_pad // TM,),
            in_specs=[
                pl.BlockSpec((IN_FEATURES + 1, TM), lambda i: (0, i)),
                pl.BlockSpec((H, IN_FEATURES + 1), const),   # w0 (+ folded b0)
                pl.BlockSpec((H, H), const),                 # w1
                pl.BlockSpec((H, 1), const),                 # b1
                pl.BlockSpec((H, H), const),                 # w2
                pl.BlockSpec((H, 1), const),                 # b2
                pl.BlockSpec((OUT_FEATURES, H), const),      # wf
                pl.BlockSpec((OUT_FEATURES, 1), const),      # bf
            ],
            out_specs=pl.BlockSpec((OUT_FEATURES, TM), lambda i: (0, i)),
        ),
        compiler_params=pltpu.CompilerParams(
            dimension_semantics=("parallel",)),
    )(coords_aug, w0a, w1, b1, w2, b2, wf, bf)


@jax.jit
def siren_forward(coords, folded):
    """Equivalent of Siren.forward: returns (output, coords).

    coords: (N, IN_FEATURES).  Builds the feature-major, ones-augmented,
    padded input block in a single fused XLA relayout (no separate HBM
    transpose pass), runs the lane-dense kernel, strips padding and reshapes
    the (OUT, N) result back to (N, OUT).
    """
    w0a, w1, b1, w2, b2, wf, bf = folded
    n = coords.shape[0]
    n_pad = ((n + 2 * TM - 1) // (2 * TM)) * (2 * TM)   # even grid, >= 2 steps

    # (IN+1, N_pad): rows [0, IN) are coords^T, last row is ones (bias column).
    aug = jnp.ones((IN_FEATURES + 1, n_pad), coords.dtype)
    aug = aug.at[:IN_FEATURES, :n].set(jnp.transpose(coords))

    out_fm = _siren_pallas(aug, w0a, w1, b1, w2, b2, wf, bf)   # (OUT, N_pad)
    out = jnp.transpose(out_fm[:, :n])                          # (N, OUT), free
    return out, coords


# ---------------- parameters (PyTorch layout + init ranges) ------------------
def _uniform(key, shape, bound):
    return jax.random.uniform(key, shape, jnp.float32, minval=-bound, maxval=bound)


def init_siren_params(key):
    """PyTorch-layout params: weight (out, in), bias (out,), torch init ranges."""
    keys = jax.random.split(key, 8)
    hw_bound = float(np.sqrt(6.0 / HIDDEN_FEATURES) / HIDDEN_OMEGA_0)

    # first SineLayer: weight ~ U(-1/in, 1/in); bias = default Linear init
    w0 = _uniform(keys[0], (HIDDEN_FEATURES, IN_FEATURES), 1.0 / IN_FEATURES)
    b0 = _uniform(keys[1], (HIDDEN_FEATURES,), 1.0 / np.sqrt(IN_FEATURES))
    # hidden SineLayers: weight ~ U(-sqrt(6/in)/omega, +)
    w1 = _uniform(keys[2], (HIDDEN_FEATURES, HIDDEN_FEATURES), hw_bound)
    b1 = _uniform(keys[3], (HIDDEN_FEATURES,), 1.0 / np.sqrt(HIDDEN_FEATURES))
    w2 = _uniform(keys[4], (HIDDEN_FEATURES, HIDDEN_FEATURES), hw_bound)
    b2 = _uniform(keys[5], (HIDDEN_FEATURES,), 1.0 / np.sqrt(HIDDEN_FEATURES))
    # final linear
    wf = _uniform(keys[6], (OUT_FEATURES, HIDDEN_FEATURES), hw_bound)
    bf = _uniform(keys[7], (OUT_FEATURES,), 1.0 / np.sqrt(HIDDEN_FEATURES))
    return ((w0, b0), (w1, b1), (w2, b2), (wf, bf))


def fold_siren_params(params):
    """One-time init transform: fold omega_0 into weights/biases, fold b0 into
    W0 as an extra column (used with the ones row of the input block), and
    reshape biases to (rows, 1) columns for the feature-major kernel."""
    (w0, b0), (w1, b1), (w2, b2), (wf, bf) = params
    w0a = jnp.concatenate(
        [FIRST_OMEGA_0 * w0, (FIRST_OMEGA_0 * b0)[:, None]], axis=1)  # (H, IN+1)
    return (w0a.astype(jnp.float32),
            (HIDDEN_OMEGA_0 * w1).astype(jnp.float32),
            (HIDDEN_OMEGA_0 * b1)[:, None].astype(jnp.float32),
            (HIDDEN_OMEGA_0 * w2).astype(jnp.float32),
            (HIDDEN_OMEGA_0 * b2)[:, None].astype(jnp.float32),
            wf.astype(jnp.float32),
            bf[:, None].astype(jnp.float32))


def siren_reference(coords, params):
    """Pure-JAX reference of the original (un-folded) forward semantics."""
    (w0, b0), (w1, b1), (w2, b2), (wf, bf) = params
    h = jnp.sin(FIRST_OMEGA_0 * (coords @ w0.T + b0))
    h = jnp.sin(HIDDEN_OMEGA_0 * (h @ w1.T + b1))
    h = jnp.sin(HIDDEN_OMEGA_0 * (h @ w2.T + b2))
    return h @ wf.T + bf


if __name__ == "__main__":
    key = jax.random.PRNGKey(0)
    pkey, xkey = jax.random.split(key)

    params = init_siren_params(pkey)
    folded = fold_siren_params(params)   # one-time omega folding / bias packing

    # coords in [-1, 1], e.g. a 64x64 grid of 2-D coordinates -> 4096 points
    # (n_pad = 4096 = 2 * TM -> grid of 2, no padding waste, both v7x TCs busy)
    n_points = 4096
    coords = jax.random.uniform(xkey, (n_points, IN_FEATURES),
                                dtype=jnp.float32, minval=-1.0, maxval=1.0)

    out, coords_out = siren_forward(coords, folded)
    out = jax.block_until_ready(out)

    ref = siren_reference(coords, params)
    np.testing.assert_allclose(np.asarray(out), np.asarray(ref),
                               rtol=1e-4, atol=1e-4)
    assert out.shape == (n_points, OUT_FEATURES)
    assert coords_out.shape == coords.shape

    # TODO(synk): PyTorch's forward marks coords with requires_grad_(True) for
    # downstream autograd; gradient tracking is implicit in JAX and not part
    # of this forward kernel.
    print("KERNEL_OK")
</pallas_src>

<mosaic_0001>
module attributes {stable_mosaic.version = 11 : i64} {
  func.func @_siren_kernel(%arg0: i32, %arg1: memref<3x2048xf32, #tpu.memory_space<vmem>>, %arg2: memref<32x3xf32, #tpu.memory_space<vmem>>, %arg3: memref<32x32xf32, #tpu.memory_space<vmem>>, %arg4: memref<32x1xf32, #tpu.memory_space<vmem>>, %arg5: memref<32x32xf32, #tpu.memory_space<vmem>>, %arg6: memref<32x1xf32, #tpu.memory_space<vmem>>, %arg7: memref<1x32xf32, #tpu.memory_space<vmem>>, %arg8: memref<1x1xf32, #tpu.memory_space<vmem>>, %arg9: memref<1x2048xf32, #tpu.memory_space<vmem>>) attributes {dimension_semantics = [#tpu.dimension_semantics<parallel>], iteration_bounds = array<i64: 2>, scalar_prefetch = 0 : i64, scratch_operands = 0 : i64, tpu.core_type = #tpu.core_type<tc>, window_params = [{transform_indices = @transform_0, window_bounds = array<i64: 3, 2048>}, {pipeline_mode = #tpu.pipeline_mode<synchronous>, transform_indices = @transform_1, window_bounds = array<i64: 32, 3>}, {pipeline_mode = #tpu.pipeline_mode<synchronous>, transform_indices = @transform_2, window_bounds = array<i64: 32, 32>}, {pipeline_mode = #tpu.pipeline_mode<synchronous>, transform_indices = @transform_3, window_bounds = array<i64: 32, 1>}, {pipeline_mode = #tpu.pipeline_mode<synchronous>, transform_indices = @transform_4, window_bounds = array<i64: 32, 32>}, {pipeline_mode = #tpu.pipeline_mode<synchronous>, transform_indices = @transform_5, window_bounds = array<i64: 32, 1>}, {pipeline_mode = #tpu.pipeline_mode<synchronous>, transform_indices = @transform_6, window_bounds = array<i64: 1, 32>}, {pipeline_mode = #tpu.pipeline_mode<synchronous>, transform_indices = @transform_7, window_bounds = array<i64: 1, 1>}, {transform_indices = @transform_8, window_bounds = array<i64: 1, 2048>}]} {
    %c0 = arith.constant 0 : index
    %c0_0 = arith.constant 0 : index
    %0 = vector.load %arg1[%c0, %c0_0] : memref<3x2048xf32, #tpu.memory_space<vmem>>, vector<3x2048xf32>
    %c0_1 = arith.constant 0 : index
    %c0_2 = arith.constant 0 : index
    %1 = vector.load %arg2[%c0_1, %c0_2] : memref<32x3xf32, #tpu.memory_space<vmem>>, vector<32x3xf32>
    %cst = arith.constant dense<0.000000e+00> : vector<32x2048xf32>
    %2 = tpu.matmul %1, %0, %cst {dimension_numbers = #tpu.dot_dimension_numbers<[1], [0], [0], [1], [0, 0, 1, 1], [], []>} : vector<32x3xf32>, vector<3x2048xf32>, vector<32x2048xf32> -> vector<32x2048xf32>
    %cst_3 = arith.constant 0.318309873 : f32
    %3 = vector.broadcast %cst_3 : f32 to vector<32x2048xf32>
    %4 = arith.mulf %2, %3 : vector<32x2048xf32>
    %cst_4 = arith.constant 5.000000e-01 : f32
    %5 = vector.broadcast %cst_4 : f32 to vector<32x2048xf32>
    %6 = arith.addf %4, %5 : vector<32x2048xf32>
    %7 = math.floor %6 : vector<32x2048xf32>
    %cst_5 = arith.constant 3.140625 : f32
    %8 = vector.broadcast %cst_5 : f32 to vector<32x2048xf32>
    %9 = arith.mulf %7, %8 : vector<32x2048xf32>
    %10 = arith.subf %2, %9 : vector<32x2048xf32>
    %cst_6 = arith.constant 9.67653584E-4 : f32
    %11 = vector.broadcast %cst_6 : f32 to vector<32x2048xf32>
    %12 = arith.mulf %7, %11 : vector<32x2048xf32>
    %13 = arith.subf %10, %12 : vector<32x2048xf32>
    %14 = arith.mulf %13, %13 : vector<32x2048xf32>
    %cst_7 = arith.constant 1.60590444E-10 : f32
    %15 = vector.broadcast %cst_7 : f32 to vector<32x2048xf32>
    %16 = arith.mulf %15, %14 : vector<32x2048xf32>
    %cst_8 = arith.constant -2.50521079E-8 : f32
    %17 = vector.broadcast %cst_8 : f32 to vector<32x2048xf32>
    %18 = arith.addf %16, %17 : vector<32x2048xf32>
    %19 = arith.mulf %18, %14 : vector<32x2048xf32>
    %cst_9 = arith.constant 2.75573188E-6 : f32
    %20 = vector.broadcast %cst_9 : f32 to vector<32x2048xf32>
    %21 = arith.addf %19, %20 : vector<32x2048xf32>
    %22 = arith.mulf %21, %14 : vector<32x2048xf32>
    %cst_10 = arith.constant -1.98412701E-4 : f32
    %23 = vector.broadcast %cst_10 : f32 to vector<32x2048xf32>
    %24 = arith.addf %22, %23 : vector<32x2048xf32>
    %25 = arith.mulf %24, %14 : vector<32x2048xf32>
    %cst_11 = arith.constant 0.00833333377 : f32
    %26 = vector.broadcast %cst_11 : f32 to vector<32x2048xf32>
    %27 = arith.addf %25, %26 : vector<32x2048xf32>
    %28 = arith.mulf %27, %14 : vector<32x2048xf32>
    %cst_12 = arith.constant -0.166666672 : f32
    %29 = vector.broadcast %cst_12 : f32 to vector<32x2048xf32>
    %30 = arith.addf %28, %29 : vector<32x2048xf32>
    %31 = arith.mulf %14, %30 : vector<32x2048xf32>
    %32 = arith.mulf %13, %31 : vector<32x2048xf32>
    %33 = arith.addf %13, %32 : vector<32x2048xf32>
    %cst_13 = arith.constant 5.000000e-01 : f32
    %34 = vector.broadcast %cst_13 : f32 to vector<32x2048xf32>
    %35 = arith.mulf %7, %34 : vector<32x2048xf32>
    %36 = math.floor %35 : vector<32x2048xf32>
    %cst_14 = arith.constant 2.000000e+00 : f32
    %37 = vector.broadcast %cst_14 : f32 to vector<32x2048xf32>
    %38 = arith.mulf %37, %36 : vector<32x2048xf32>
    %39 = arith.subf %7, %38 : vector<32x2048xf32>
    %cst_15 = arith.constant 2.000000e+00 : f32
    %40 = vector.broadcast %cst_15 : f32 to vector<32x2048xf32>
    %41 = arith.mulf %40, %39 : vector<32x2048xf32>
    %cst_16 = arith.constant 1.000000e+00 : f32
    %42 = vector.broadcast %cst_16 : f32 to vector<32x2048xf32>
    %43 = arith.subf %42, %41 : vector<32x2048xf32>
    %44 = arith.mulf %33, %43 : vector<32x2048xf32>
    %c0_17 = arith.constant 0 : index
    %c0_18 = arith.constant 0 : index
    %45 = vector.load %arg3[%c0_17, %c0_18] : memref<32x32xf32, #tpu.memory_space<vmem>>, vector<32x32xf32>
    %cst_19 = arith.constant dense<0.000000e+00> : vector<32x2048xf32>
    %46 = tpu.matmul %45, %44, %cst_19 {dimension_numbers = #tpu.dot_dimension_numbers<[1], [0], [0], [1], [0, 0, 1, 1], [], []>} : vector<32x32xf32>, vector<32x2048xf32>, vector<32x2048xf32> -> vector<32x2048xf32>
    %c0_20 = arith.constant 0 : index
    %c0_21 = arith.constant 0 : index
    %47 = vector.load %arg4[%c0_20, %c0_21] : memref<32x1xf32, #tpu.memory_space<vmem>>, vector<32x1xf32>
    %48 = vector.broadcast %47 : vector<32x1xf32> to vector<32x2048xf32>
    %49 = arith.addf %46, %48 : vector<32x2048xf32>
    %cst_22 = arith.constant 0.318309873 : f32
    %50 = vector.broadcast %cst_22 : f32 to vector<32x2048xf32>
    %51 = arith.mulf %49, %50 : vector<32x2048xf32>
    %cst_23 = arith.constant 5.000000e-01 : f32
    %52 = vector.broadcast %cst_23 : f32 to vector<32x2048xf32>
    %53 = arith.addf %51, %52 : vector<32x2048xf32>
    %54 = math.floor %53 : vector<32x2048xf32>
    %cst_24 = arith.constant 3.140625 : f32
    %55 = vector.broadcast %cst_24 : f32 to vector<32x2048xf32>
    %56 = arith.mulf %54, %55 : vector<32x2048xf32>
    %57 = arith.subf %49, %56 : vector<32x2048xf32>
    %cst_25 = arith.constant 9.67653584E-4 : f32
    %58 = vector.broadcast %cst_25 : f32 to vector<32x2048xf32>
    %59 = arith.mulf %54, %58 : vector<32x2048xf32>
    %60 = arith.subf %57, %59 : vector<32x2048xf32>
    %61 = arith.mulf %60, %60 : vector<32x2048xf32>
    %cst_26 = arith.constant 1.60590444E-10 : f32
    %62 = vector.broadcast %cst_26 : f32 to vector<32x2048xf32>
    %63 = arith.mulf %62, %61 : vector<32x2048xf32>
    %cst_27 = arith.constant -2.50521079E-8 : f32
    %64 = vector.broadcast %cst_27 : f32 to vector<32x2048xf32>
    %65 = arith.addf %63, %64 : vector<32x2048xf32>
    %66 = arith.mulf %65, %61 : vector<32x2048xf32>
    %cst_28 = arith.constant 2.75573188E-6 : f32
    %67 = vector.broadcast %cst_28 : f32 to vector<32x2048xf32>
    %68 = arith.addf %66, %67 : vector<32x2048xf32>
    %69 = arith.mulf %68, %61 : vector<32x2048xf32>
    %cst_29 = arith.constant -1.98412701E-4 : f32
    %70 = vector.broadcast %cst_29 : f32 to vector<32x2048xf32>
    %71 = arith.addf %69, %70 : vector<32x2048xf32>
    %72 = arith.mulf %71, %61 : vector<32x2048xf32>
    %cst_30 = arith.constant 0.00833333377 : f32
    %73 = vector.broadcast %cst_30 : f32 to vector<32x2048xf32>
    %74 = arith.addf %72, %73 : vector<32x2048xf32>
    %75 = arith.mulf %74, %61 : vector<32x2048xf32>
    %cst_31 = arith.constant -0.166666672 : f32
    %76 = vector.broadcast %cst_31 : f32 to vector<32x2048xf32>
    %77 = arith.addf %75, %76 : vector<32x2048xf32>
    %78 = arith.mulf %61, %77 : vector<32x2048xf32>
    %79 = arith.mulf %60, %78 : vector<32x2048xf32>
    %80 = arith.addf %60, %79 : vector<32x2048xf32>
    %cst_32 = arith.constant 5.000000e-01 : f32
    %81 = vector.broadcast %cst_32 : f32 to vector<32x2048xf32>
    %82 = arith.mulf %54, %81 : vector<32x2048xf32>
    %83 = math.floor %82 : vector<32x2048xf32>
    %cst_33 = arith.constant 2.000000e+00 : f32
    %84 = vector.broadcast %cst_33 : f32 to vector<32x2048xf32>
    %85 = arith.mulf %84, %83 : vector<32x2048xf32>
    %86 = arith.subf %54, %85 : vector<32x2048xf32>
    %cst_34 = arith.constant 2.000000e+00 : f32
    %87 = vector.broadcast %cst_34 : f32 to vector<32x2048xf32>
    %88 = arith.mulf %87, %86 : vector<32x2048xf32>
    %cst_35 = arith.constant 1.000000e+00 : f32
    %89 = vector.broadcast %cst_35 : f32 to vector<32x2048xf32>
    %90 = arith.subf %89, %88 : vector<32x2048xf32>
    %91 = arith.mulf %80, %90 : vector<32x2048xf32>
    %c0_36 = arith.constant 0 : index
    %c0_37 = arith.constant 0 : index
    %92 = vector.load %arg5[%c0_36, %c0_37] : memref<32x32xf32, #tpu.memory_space<vmem>>, vector<32x32xf32>
    %cst_38 = arith.constant dense<0.000000e+00> : vector<32x2048xf32>
    %93 = tpu.matmul %92, %91, %cst_38 {dimension_numbers = #tpu.dot_dimension_numbers<[1], [0], [0], [1], [0, 0, 1, 1], [], []>} : vector<32x32xf32>, vector<32x2048xf32>, vector<32x2048xf32> -> vector<32x2048xf32>
    %c0_39 = arith.constant 0 : index
    %c0_40 = arith.constant 0 : index
    %94 = vector.load %arg6[%c0_39, %c0_40] : memref<32x1xf32, #tpu.memory_space<vmem>>, vector<32x1xf32>
    %95 = vector.broadcast %94 : vector<32x1xf32> to vector<32x2048xf32>
    %96 = arith.addf %93, %95 : vector<32x2048xf32>
    %cst_41 = arith.constant 0.318309873 : f32
    %97 = vector.broadcast %cst_41 : f32 to vector<32x2048xf32>
    %98 = arith.mulf %96, %97 : vector<32x2048xf32>
    %cst_42 = arith.constant 5.000000e-01 : f32
    %99 = vector.broadcast %cst_42 : f32 to vector<32x2048xf32>
    %100 = arith.addf %98, %99 : vector<32x2048xf32>
    %101 = math.floor %100 : vector<32x2048xf32>
    %cst_43 = arith.constant 3.140625 : f32
    %102 = vector.broadcast %cst_43 : f32 to vector<32x2048xf32>
    %103 = arith.mulf %101, %102 : vector<32x2048xf32>
    %104 = arith.subf %96, %103 : vector<32x2048xf32>
    %cst_44 = arith.constant 9.67653584E-4 : f32
    %105 = vector.broadcast %cst_44 : f32 to vector<32x2048xf32>
    %106 = arith.mulf %101, %105 : vector<32x2048xf32>
    %107 = arith.subf %104, %106 : vector<32x2048xf32>
    %108 = arith.mulf %107, %107 : vector<32x2048xf32>
    %cst_45 = arith.constant 1.60590444E-10 : f32
    %109 = vector.broadcast %cst_45 : f32 to vector<32x2048xf32>
    %110 = arith.mulf %109, %108 : vector<32x2048xf32>
    %cst_46 = arith.constant -2.50521079E-8 : f32
    %111 = vector.broadcast %cst_46 : f32 to vector<32x2048xf32>
    %112 = arith.addf %110, %111 : vector<32x2048xf32>
    %113 = arith.mulf %112, %108 : vector<32x2048xf32>
    %cst_47 = arith.constant 2.75573188E-6 : f32
    %114 = vector.broadcast %cst_47 : f32 to vector<32x2048xf32>
    %115 = arith.addf %113, %114 : vector<32x2048xf32>
    %116 = arith.mulf %115, %108 : vector<32x2048xf32>
    %cst_48 = arith.constant -1.98412701E-4 : f32
    %117 = vector.broadcast %cst_48 : f32 to vector<32x2048xf32>
    %118 = arith.addf %116, %117 : vector<32x2048xf32>
    %119 = arith.mulf %118, %108 : vector<32x2048xf32>
    %cst_49 = arith.constant 0.00833333377 : f32
    %120 = vector.broadcast %cst_49 : f32 to vector<32x2048xf32>
    %121 = arith.addf %119, %120 : vector<32x2048xf32>
    %122 = arith.mulf %121, %108 : vector<32x2048xf32>
    %cst_50 = arith.constant -0.166666672 : f32
    %123 = vector.broadcast %cst_50 : f32 to vector<32x2048xf32>
    %124 = arith.addf %122, %123 : vector<32x2048xf32>
    %125 = arith.mulf %108, %124 : vector<32x2048xf32>
    %126 = arith.mulf %107, %125 : vector<32x2048xf32>
    %127 = arith.addf %107, %126 : vector<32x2048xf32>
    %cst_51 = arith.constant 5.000000e-01 : f32
    %128 = vector.broadcast %cst_51 : f32 to vector<32x2048xf32>
    %129 = arith.mulf %101, %128 : vector<32x2048xf32>
    %130 = math.floor %129 : vector<32x2048xf32>
    %cst_52 = arith.constant 2.000000e+00 : f32
    %131 = vector.broadcast %cst_52 : f32 to vector<32x2048xf32>
    %132 = arith.mulf %131, %130 : vector<32x2048xf32>
    %133 = arith.subf %101, %132 : vector<32x2048xf32>
    %cst_53 = arith.constant 2.000000e+00 : f32
    %134 = vector.broadcast %cst_53 : f32 to vector<32x2048xf32>
    %135 = arith.mulf %134, %133 : vector<32x2048xf32>
    %cst_54 = arith.constant 1.000000e+00 : f32
    %136 = vector.broadcast %cst_54 : f32 to vector<32x2048xf32>
    %137 = arith.subf %136, %135 : vector<32x2048xf32>
    %138 = arith.mulf %127, %137 : vector<32x2048xf32>
    %c0_55 = arith.constant 0 : index
    %c0_56 = arith.constant 0 : index
    %139 = vector.load %arg7[%c0_55, %c0_56] : memref<1x32xf32, #tpu.memory_space<vmem>>, vector<1x32xf32>
    %cst_57 = arith.constant dense<0.000000e+00> : vector<1x2048xf32>
    %140 = tpu.matmul %139, %138, %cst_57 {dimension_numbers = #tpu.dot_dimension_numbers<[1], [0], [0], [1], [0, 0, 1, 1], [], []>} : vector<1x32xf32>, vector<32x2048xf32>, vector<1x2048xf32> -> vector<1x2048xf32>
    %c0_58 = arith.constant 0 : index
    %c0_59 = arith.constant 0 : index
    %141 = vector.load %arg8[%c0_58, %c0_59] : memref<1x1xf32, #tpu.memory_space<vmem>>, vector<1x1xf32>
    %142 = vector.broadcast %141 : vector<1x1xf32> to vector<1x2048xf32>
    %143 = arith.addf %140, %142 : vector<1x2048xf32>
    %c0_60 = arith.constant 0 : index
    %c0_61 = arith.constant 0 : index
    %144 = vector.load %arg9[%c0_60, %c0_61] : memref<1x2048xf32, #tpu.memory_space<vmem>>, vector<1x2048xf32>
    tpu.vector_store %arg9[%c0_60, %c0_61], %143 {strides = array<i32>} : memref<1x2048xf32, #tpu.memory_space<vmem>>, vector<1x2048xf32>,
    return
  }
  func.func @transform_0(%arg0: i32) -> (i32, i32) {
    %c0_i32 = arith.constant 0 : i32
    %c0_i32_0 = arith.constant 0 : i32
    return %c0_i32, %arg0 : i32, i32
  }
  func.func @transform_1(%arg0: i32) -> (i32, i32) {
    %c0_i32 = arith.constant 0 : i32
    %c0_i32_0 = arith.constant 0 : i32
    %c0_i32_1 = arith.constant 0 : i32
    return %c0_i32, %c0_i32_0 : i32, i32
  }
  func.func @transform_2(%arg0: i32) -> (i32, i32) {
    %c0_i32 = arith.constant 0 : i32
    %c0_i32_0 = arith.constant 0 : i32
    %c0_i32_1 = arith.constant 0 : i32
    return %c0_i32, %c0_i32_0 : i32, i32
  }
  func.func @transform_3(%arg0: i32) -> (i32, i32) {
    %c0_i32 = arith.constant 0 : i32
    %c0_i32_0 = arith.constant 0 : i32
    %c0_i32_1 = arith.constant 0 : i32
    return %c0_i32, %c0_i32_0 : i32, i32
  }
  func.func @transform_4(%arg0: i32) -> (i32, i32) {
    %c0_i32 = arith.constant 0 : i32
    %c0_i32_0 = arith.constant 0 : i32
    %c0_i32_1 = arith.constant 0 : i32
    return %c0_i32, %c0_i32_0 : i32, i32
  }
  func.func @transform_5(%arg0: i32) -> (i32, i32) {
    %c0_i32 = arith.constant 0 : i32
    %c0_i32_0 = arith.constant 0 : i32
    %c0_i32_1 = arith.constant 0 : i32
    return %c0_i32, %c0_i32_0 : i32, i32
  }
  func.func @transform_6(%arg0: i32) -> (i32, i32) {
    %c0_i32 = arith.constant 0 : i32
    %c0_i32_0 = arith.constant 0 : i32
    %c0_i32_1 = arith.constant 0 : i32
    return %c0_i32, %c0_i32_0 : i32, i32
  }
  func.func @transform_7(%arg0: i32) -> (i32, i32) {
    %c0_i32 = arith.constant 0 : i32
    %c0_i32_0 = arith.constant 0 : i32
    %c0_i32_1 = arith.constant 0 : i32
    return %c0_i32, %c0_i32_0 : i32, i32
  }
  func.func @transform_8(%arg0: i32) -> (i32, i32) {
    %c0_i32 = arith.constant 0 : i32
    %c0_i32_0 = arith.constant 0 : i32
    return %c0_i32, %arg0 : i32, i32
  }
}

</mosaic_0001>

<bundles_post_ra>
// kernel: siren_forward.1
= control target key start
LH: loop header
LB: loop body
LE: loop exit
PB: predicated region body
PF: predicated region fallthrough
CT: control target
= control target key end

     0   :  { %s13852_s0 = inlined_call_operand.vmem [shape: f32[3,4096], index: 0, kind: input, shape index: {}]   ;;  %s13853_s1 = inlined_call_operand.vmem [shape: f32[32,3], index: 1, kind: input, shape index: {}]   ;;  %s13854_s2 = inlined_call_operand.vmem [shape: f32[32,32], index: 2, kind: input, shape index: {}]   ;;  %s13855_s3 = inlined_call_operand.vmem [shape: f32[32,1], index: 3, kind: input, shape index: {}]   ;;  %s13856_s4 = inlined_call_operand.vmem [shape: f32[32,32], index: 4, kind: input, shape index: {}]   ;;  %s13857_s5 = inlined_call_operand.vmem [shape: f32[32,1], index: 5, kind: input, shape index: {}]   ;;  %s13858_s6 = inlined_call_operand.vmem [shape: f32[1,32], index: 6, kind: input, shape index: {}]   ;;  %s13859_s7 = inlined_call_operand.<no memory space> [shape: f32[1,1], index: 7, kind: input, shape index: {}]   ;;  %s13860_s8 = inlined_call_operand.hbm [shape: f32[1,4096], index: 8, kind: output, shape index: {}]  }
   0x1   :  { %v13_v0 = vstv %s13859_s7 }
   0x2   :  { %14 = vst [vmem:[#allocation2] sm:$0x1] %v13_v0 }
   0x3   :  { %15 = vsyncpa [#allocation4], 0 }
   0x4   :  { %17 = vsyncpa [#allocation4 + $0x1], 0  ;;  %s8121_s29 = smov 0   ;;  %s8123_s30 = smov 0  }
   0x5   :  { %s8125_s9 = smov 0   ;;  %s8127_s10 = smov 0  }
   0x6 LB: > { %s7711_s7 = sadd.s32 4294967295, %s8070_s10   ;;  %s7712_s11 = sadd.s32 4294967294, %s8070_s10   ;;  %s8070_s10 = sphi %s8127_s10, %s15175_s10   ;;  %s8066_s9 = sphi %s8125_s9, %s15174_s9   ;;  %s8062_s30 = sphi %s8123_s30, %s15173_s30   ;;  %s8058_s29 = sphi %s8121_s29, %s15172_s29  }
   0x7   : > { %s8144_s12 = sadd.s32 1, %s8070_s10   ;;  %s203_s13 = sadd.s32 1, %s8066_s9 }
   0x8   : > { %s200_s14 = ssub.s32 %s8070_s10, %s8144_s12  ;;  %p213_p0 = scmp.ne.s32.totalorder %s8066_s9, %s8062_s30 }
   0x9   : > { %p201_p1 = scmp.eq.s32.totalorder %s200_s14, 0  ;;  %p214_p2 = scmp.eq.s32.totalorder %s7711_s7, 1 }
   0xa   : > { %p219_p3 = scmp.ne.s32.totalorder %s8062_s30, %s8058_s29  ;;  %p220_p4 = scmp.eq.s32.totalorder %s7712_s11, 1 }
   0xb   : > { %s8154_s15 = scalar_select %p201_p1, %s8066_s9, %s203_s13  }
   0xc   : > { %p8156_p5 = por %p214_p2, %p213_p0  ;;  %p8160_p6 = por %p220_p4, %p219_p3 }
   0xd   : > { %p7715_p7 = scmp.ge.s32.totalorder %s8070_s10, 1  ;;  %p268_p8 = scmp.lt.s32.totalorder %s8070_s10, 3 }
   0xf   : > { %p269_p9 = pnand %p7715_p7, %p268_p8 }
  0x11   : > { %272 = sbr.rel (%p269_p9) target bundleno = 1727 (0x6bf), region = 52 }
  0x16   : > { %s8166_s18 = sshll.u32 %s7711_s7, 4  ;;  %vm369_vm0 = vcmask 1042432   ;;  %v8176_v7 = vld [vmem:[%s13853_s1] sm:$0xff]  ;;  %vm356_vm1 = vcmask 23552   ;;  %v8197_v18 = vld [vmem:[%s13853_s1 + $0x8] sm:$0xff]  ;;  %v8210_v19 = vld [vmem:[%s13853_s1 + $0x10] sm:$0xff] }
  0x17   : > { %p303_p10 = scmp.lt.s32.totalorder %s8166_s18, 31  ;;  %v8223_v20 = vld [vmem:[%s13853_s1 + $0x18] sm:$0xff]  ;;  %vm2686_vm2 = vcmask 261120   ;;  %vm7620_vm3 = vcmask 1046534   ;;  %s299_s14 = sand.u32 1, %s8062_s30   ;;  %vm7614_vm4 = vcmask 1042434  }
  0x18   : > { %vm7618_vm5 = vcmask 1044484   ;;  %vm7622_vm6 = vcmask 1045508   ;;  %vm7612_vm7 = vcmask 1040384   ;;  %vm7616_vm8 = vcmask 1041408   ;;  %s8028_s11 = scalar_lea.hbm %s13860_s8, 32 }
  0x19   : > { %s304_s19 = scalar_select %p303_p10, %s8166_s18, 31  ;;  %vm7624_vm9 = vcmask 1043456  }
  0x1b   : > { %s7718_s20 = sshll.u32 %s304_s19, 2  ;;  %s7716_s19 = sshll.u32 %s299_s14, 4 }
  0x1c   : > { %s306_s23 = scalar_lea.vmem %s13852_s0, %s7718_s20  ;;  %s13807_s20 = scalar_lea.vmem [#allocation3], %s7716_s19 }
  0x1d   : > { %v309_v1 = vld [vmem:[%s306_s23] sm:$0x77]  ;;  %v310_v2 = vld [vmem:[%s306_s23 + $0x8] sm:$0x77]  ;;  %v312_v3 = vld [vmem:[%s306_s23 + $0x18] sm:$0x77] }
  0x1e   : > { %329 = vst [vmem:[#allocation1] ss:$2 sm:$0xff] %v309_v1  ;;  %v311_v4 = vld [vmem:[%s306_s23 + $0x10] sm:$0x77]  ;;  %v313_v5 = vld [vmem:[%s306_s23 + $0x20] sm:$0x77] }
  0x1f   : > { %331 = vst [vmem:[#allocation1 + $0x10] ss:$2 sm:$0xff] %v310_v2  ;;  %v314_v6 = vld [vmem:[%s306_s23 + $0x28] sm:$0x77]  ;;  %v316_v8 = vld [vmem:[%s306_s23 + $0x38] sm:$0x77] }
  0x20   : > { %335 = vst [vmem:[#allocation1 + $0x30] ss:$2 sm:$0xff] %v312_v3  ;;  %v315_v12 = vld [vmem:[%s306_s23 + $0x30] sm:$0x77]  ;;  %s7648_s23 = scalar_lea.hbm %s13860_s8, %s8166_s18  ;;  %s7650_s24 = sshll.u32 %s13807_s20, 4  ;;  %s7651_s24 = int_to_ptr.vmem [resolvable:$true] %s7650_s24 }
  0x21   : > { %333 = vst [vmem:[#allocation1 + $0x20] ss:$2 sm:$0xff] %v311_v4  ;;  %s7652_s25 = sshll.u32 %s7648_s23, 4  ;;  %s7638_s18 = scalar_lea.sflag [#allocation4], %s299_s14  ;;  %s7653_s25 = int_to_ptr.hbm [resolvable:$true] %s7652_s25 }
  0x22   : > { %s8022_s26 = sshra.s32 %s7653_s25, 4  ;;  %s8023_s26 = int_to_ptr.hbm [resolvable:$true] %s8022_s26 }
  0x23   : > { %s8024_s27 = scalar_lea.hbm %s8023_s26, 16  ;;  %p8029_p0 = scmp.lt.s32.totalorder %s8023_s26, %s13860_s8 }
  0x24   : > { %p8025_p11 = scmp.ne.s32.totalorder %s8023_s26, %s8024_s27  ;;  %p8030_p1 = scmp.lt.s32.totalorder %s8028_s11, %s8024_s27 }
  0x25   : > { %v336_v9 = vld.sshfl [vmem:[#allocation1] sm:$0xff pattern:$0x75316420]  ;;  %v337_v10 = vld.sshfl [vmem:[#allocation1 + $0x8] sm:$0xff pattern:$0x75316420] }
  0x26   : > { %7719 = vmatpush.msk.msra.mxu0 %vm369_vm0, %v336_v9  ;;  %344 = vst [vmem:[#allocation1] ss:$2 sm:$0xff] %v313_v5  ;;  %7724 = vmatpush.msk.msra.mxu1 %vm369_vm0, %v337_v10  ;;  %v338_v11 = vld.sshfl [vmem:[#allocation1 + $0x10] sm:$0xff pattern:$0x75316420]  ;;  %p8026_p12 = pnand %p8025_p11, %p8156_p5  ;;  %p8031_p2 = por %p8030_p1, %p8029_p0 }
  0x27   : > { %7729 = vmatpush.msk.msra.mxu2 %vm369_vm0, %v338_v11  ;;  %v339_v13 = vld.sshfl [vmem:[#allocation1 + $0x18] sm:$0xff pattern:$0x75316420]  ;;  %7720 = vmatmul.msk.f32.vlgmr.msra.gmra.mxu0 %vm356_vm1, %v8176_v7  ;;  %v342_v14 = vld.sshfl [vmem:[#allocation1 + $0x30] sm:$0xff pattern:$0x75316420] }
  0x28   : > { %345 = vst [vmem:[#allocation1 + $0x10] ss:$2 sm:$0xff] %v314_v6  ;;  %7734 = vmatpush.msk.msra.mxu3 %vm369_vm0, %v339_v13  ;;  %7725 = vmatmul.msk.f32.vlgmr.msra.gmra.mxu1 %vm356_vm1, %v8176_v7  ;;  %v343_v15 = vld.sshfl [vmem:[#allocation1 + $0x38] sm:$0xff pattern:$0x75316420]  ;;  %p8027_p13 = pneg %p8026_p12 }
  0x29   : > { %7730 = vmatmul.msk.f32.vlgmr.msra.gmra.mxu2 %vm356_vm1, %v8176_v7  ;;  %7735 = vmatmul.msk.f32.vlgmr.msra.gmra.mxu3 %vm356_vm1, %v8176_v7  ;;  %347 = vst [vmem:[#allocation1 + $0x30] ss:$2 sm:$0xff] %v316_v8  ;;  %v340_v16 = vld.sshfl [vmem:[#allocation1 + $0x20] sm:$0xff pattern:$0x75316420] }
  0x2a   : > { %7749 = vmatpush.msk.msrb.mxu2 %vm369_vm0, %v342_v14  ;;  %7754 = vmatpush.msk.msrb.mxu3 %vm369_vm0, %v343_v15  ;;  %v341_v17 = vld.sshfl [vmem:[#allocation1 + $0x28] sm:$0xff pattern:$0x75316420]  ;;  %p8032_p3 = pnand %p8031_p2, %p8027_p13 }
  0x2b   : > { %7739 = vmatpush.msk.msrb.mxu0 %vm369_vm0, %v340_v16  ;;  %346 = vst [vmem:[#allocation1 + $0x20] ss:$2 sm:$0xff] %v315_v12  ;;  %7744 = vmatpush.msk.msrb.mxu1 %vm369_vm0, %v341_v17 }
  0x2d   : > { %v348_v23 = vld.sshfl [vmem:[#allocation1] sm:$0xff pattern:$0x75316420]  ;;  %v349_v24 = vld.sshfl [vmem:[#allocation1 + $0x8] sm:$0xff pattern:$0x75316420] }
  0x2e   : > { %7759 = vmatpush.msk.msra.mxu0 %vm369_vm0, %v348_v23  ;;  %7764 = vmatpush.msk.msra.mxu1 %vm369_vm0, %v349_v24 }
  0x2f   : > { %7721 = vmatmul.msk.f32.gmra.mxu0 %vm356_vm1, %v8197_v18  ;;  %v350_v21 = vld.sshfl [vmem:[#allocation1 + $0x10] sm:$0xff pattern:$0x75316420]  ;;  %v351_v22 = vld.sshfl [vmem:[#allocation1 + $0x18] sm:$0xff pattern:$0x75316420] }
  0x30   : > { %7726 = vmatmul.msk.f32.gmra.mxu1 %vm356_vm1, %v8197_v18  ;;  %7769 = vmatpush.msk.msra.mxu2 %vm369_vm0, %v350_v21  ;;  %v354_v25 = vld.sshfl [vmem:[#allocation1 + $0x30] sm:$0xff pattern:$0x75316420]  ;;  %v355_v26 = vld.sshfl [vmem:[#allocation1 + $0x38] sm:$0xff pattern:$0x75316420] }
  0x31   : > { %7731 = vmatmul.msk.f32.gmra.mxu2 %vm356_vm1, %v8197_v18  ;;  %7736 = vmatmul.msk.f32.gmra.mxu3 %vm356_vm1, %v8197_v18 }
  0x32   : > { %7774 = vmatpush.msk.msra.mxu3 %vm369_vm0, %v351_v22  ;;  %v352_v27 = vld.sshfl [vmem:[#allocation1 + $0x20] sm:$0xff pattern:$0x75316420]  ;;  %v353_v28 = vld.sshfl [vmem:[#allocation1 + $0x28] sm:$0xff pattern:$0x75316420] }
  0x37   : > { %7722 = vmatmul.msk.f32.gmra.mxu0 %vm356_vm1, %v8210_v19 }
  0x38   : > { %7727 = vmatmul.msk.f32.gmra.mxu1 %vm356_vm1, %v8210_v19 }
  0x39   : > { %7732 = vmatmul.msk.f32.gmra.mxu2 %vm356_vm1, %v8210_v19  ;;  %7737 = vmatmul.msk.f32.gmra.mxu3 %vm356_vm1, %v8210_v19 }
  0x3f   : > { %7723 = vmatmul.msk.f32.gmra.mxu0 %vm356_vm1, %v8223_v20 }
  0x40   : > { %7728 = vmatmul.msk.f32.gmra.mxu1 %vm356_vm1, %v8223_v20 }
  0x41   : > { %7733 = vmatmul.msk.f32.gmra.mxu2 %vm356_vm1, %v8223_v20  ;;  %7738 = vmatmul.msk.f32.gmra.mxu3 %vm356_vm1, %v8223_v20 }
  0x47   : > { %7740 = vmatmul.msk.f32.vlgmr.msrb.gmra.mxu0 %vm356_vm1, %v8176_v7 }
  0x48   : > { %7745 = vmatmul.msk.f32.vlgmr.msrb.gmra.mxu1 %vm356_vm1, %v8176_v7  ;;  %7779 = vmatpush.msk.msrb.mxu0 %vm369_vm0, %v352_v27 }
  0x49   : > { %7750 = vmatmul.msk.f32.vlgmr.msrb.gmra.mxu2 %vm356_vm1, %v8176_v7  ;;  %7755 = vmatmul.msk.f32.vlgmr.msrb.gmra.mxu3 %vm356_vm1, %v8176_v7 }
  0x4a   : > { %7789 = vmatpush.msk.msrb.mxu2 %vm369_vm0, %v354_v25  ;;  %7794 = vmatpush.msk.msrb.mxu3 %vm369_vm0, %v355_v26 }
  0x4b   : > { %7784 = vmatpush.msk.msrb.mxu1 %vm369_vm0, %v353_v28 }
  0x4f   : > { %7741 = vmatmul.msk.f32.gmra.mxu0 %vm356_vm1, %v8197_v18 }
  0x50   : > { %7746 = vmatmul.msk.f32.gmra.mxu1 %vm356_vm1, %v8197_v18 }
  0x51   : > { %7751 = vmatmul.msk.f32.gmra.mxu2 %vm356_vm1, %v8197_v18  ;;  %7756 = vmatmul.msk.f32.gmra.mxu3 %vm356_vm1, %v8197_v18 }
  0x57   : > { %7742 = vmatmul.msk.f32.gmra.mxu0 %vm356_vm1, %v8210_v19 }
  0x58   : > { %7747 = vmatmul.msk.f32.gmra.mxu1 %vm356_vm1, %v8210_v19 }
  0x59   : > { %7752 = vmatmul.msk.f32.gmra.mxu2 %vm356_vm1, %v8210_v19  ;;  %7757 = vmatmul.msk.f32.gmra.mxu3 %vm356_vm1, %v8210_v19 }
  0x5f   : > { %7743 = vmatmul.msk.f32.gmra.mxu0 %vm356_vm1, %v8223_v20 }
  0x60   : > { %7748 = vmatmul.msk.f32.gmra.mxu1 %vm356_vm1, %v8223_v20 }
  0x61   : > { %7753 = vmatmul.msk.f32.gmra.mxu2 %vm356_vm1, %v8223_v20  ;;  %7758 = vmatmul.msk.f32.gmra.mxu3 %vm356_vm1, %v8223_v20 }
  0x67   : > { %7760 = vmatmul.msk.f32.vlgmr.msra.gmra.mxu0 %vm356_vm1, %v8176_v7 }
  0x68   : > { %7765 = vmatmul.msk.f32.vlgmr.msra.gmra.mxu1 %vm356_vm1, %v8176_v7 }
  0x69   : > { %7770 = vmatmul.msk.f32.vlgmr.msra.gmra.mxu2 %vm356_vm1, %v8176_v7  ;;  %7775 = vmatmul.msk.f32.vlgmr.msra.gmra.mxu3 %vm356_vm1, %v8176_v7 }
  0x6f   : > { %7761 = vmatmul.msk.f32.gmra.mxu0 %vm356_vm1, %v8197_v18 }
  0x70   : > { %7766 = vmatmul.msk.f32.gmra.mxu1 %vm356_vm1, %v8197_v18 }
  0x71   : > { %7771 = vmatmul.msk.f32.gmra.mxu2 %vm356_vm1, %v8197_v18  ;;  %7776 = vmatmul.msk.f32.gmra.mxu3 %vm356_vm1, %v8197_v18 }
  0x77   : > { %7762 = vmatmul.msk.f32.gmra.mxu0 %vm356_vm1, %v8210_v19 }
  0x78   : > { %7767 = vmatmul.msk.f32.gmra.mxu1 %vm356_vm1, %v8210_v19 }
  0x79   : > { %7772 = vmatmul.msk.f32.gmra.mxu2 %vm356_vm1, %v8210_v19  ;;  %7777 = vmatmul.msk.f32.gmra.mxu3 %vm356_vm1, %v8210_v19 }
  0x7f   : > { %7763 = vmatmul.msk.f32.gmra.mxu0 %vm356_vm1, %v8223_v20 }
  0x80   : > { %7768 = vmatmul.msk.f32.gmra.mxu1 %vm356_vm1, %v8223_v20 }
  0x81   : > { %7773 = vmatmul.msk.f32.gmra.mxu2 %vm356_vm1, %v8223_v20  ;;  %7778 = vmatmul.msk.f32.gmra.mxu3 %vm356_vm1, %v8223_v20 }
  0x87   : > { %7780 = vmatmul.msk.f32.vlgmr.msrb.gmra.mxu0 %vm356_vm1, %v8176_v7 }
  0x88   : > { %7785 = vmatmul.msk.f32.vlgmr.msrb.gmra.mxu1 %vm356_vm1, %v8176_v7 }
  0x89   : > { %7790 = vmatmul.msk.f32.vlgmr.msrb.gmra.mxu2 %vm356_vm1, %v8176_v7  ;;  %7795 = vmatmul.msk.f32.vlgmr.msrb.gmra.mxu3 %vm356_vm1, %v8176_v7 }
  0x8f   : > { %7781 = vmatmul.msk.f32.gmra.mxu0 %vm356_vm1, %v8197_v18 }
  0x90   : > { %7786 = vmatmul.msk.f32.gmra.mxu1 %vm356_vm1, %v8197_v18 }
  0x91   : > { %7791 = vmatmul.msk.f32.gmra.mxu2 %vm356_vm1, %v8197_v18  ;;  %7796 = vmatmul.msk.f32.gmra.mxu3 %vm356_vm1, %v8197_v18 }
  0x97   : > { %7782 = vmatmul.msk.f32.gmra.mxu0 %vm356_vm1, %v8210_v19 }
  0x98   : > { %7787 = vmatmul.msk.f32.gmra.mxu1 %vm356_vm1, %v8210_v19 }
  0x99   : > { %7792 = vmatmul.msk.f32.gmra.mxu2 %vm356_vm1, %v8210_v19  ;;  %7797 = vmatmul.msk.f32.gmra.mxu3 %vm356_vm1, %v8210_v19 }
  0x9f   : > { %7783 = vmatmul.msk.f32.gmra.mxu0 %vm356_vm1, %v8223_v20 }
  0xa0   : > { %7788 = vmatmul.msk.f32.gmra.mxu1 %vm356_vm1, %v8223_v20 }
  0xa1   : > { %7793 = vmatmul.msk.f32.gmra.mxu2 %vm356_vm1, %v8223_v20  ;;  %7798 = vmatmul.msk.f32.gmra.mxu3 %vm356_vm1, %v8223_v20 }
  0xa4   : > { %v419_v29 = vpop.f32.mrf.mxu0 }
  0xa5   : > { %v866_v30 = vmul.f32 0.31830987, %v419_v29  ;;  %v448_v31 = vpop.f32.mrf.mxu1 }
  0xa6   : > { %v867_v32 = vmul.f32 0.31830987, %v448_v31 }
  0xa7   : > { %v930_v33 = vadd.f32 0.5, %v866_v30 }
  0xa8   : > { %v931_v34 = vadd.f32 0.5, %v867_v32 }
  0xa9   : > { %v8337_v35 = vfloor.f32 %v930_v33 }
  0xaa   : > { %v8339_v36 = vfloor.f32 %v931_v34 }
  0xab   : > { %v1058_v39 = vmul.f32 3.140625, %v8337_v35  ;;  %v1186_v52 = vmul.f32 0.0009676536, %v8337_v35 }
  0xac   : > { %v477_v37 = vpop.f32.mrf.mxu2  ;;  %v506_v38 = vpop.f32.mrf.mxu3  ;;  %v1059_v46 = vmul.f32 3.140625, %v8339_v36  ;;  %v1187_v58 = vmul.f32 0.0009676536, %v8339_v36 }
  0xad   : > { %v868_v40 = vmul.f32 0.31830987, %v477_v37  ;;  %v869_v41 = vmul.f32 0.31830987, %v506_v38  ;;  %v422_v42 = vpop.f32.mrf.mxu0  ;;  %v451_v43 = vpop.f32.mrf.mxu1  ;;  %v1122_v51 = vsub.f32 %v419_v29, %v1058_v39 }
  0xae   : > { %v882_v44 = vmul.f32 0.31830987, %v422_v42  ;;  %v883_v45 = vmul.f32 0.31830987, %v451_v43  ;;  %v1123_v57 = vsub.f32 %v448_v31, %v1059_v46 }
  0xaf   : > { %v932_v47 = vadd.f32 0.5, %v868_v40  ;;  %v933_v48 = vadd.f32 0.5, %v869_v41  ;;  %v8356_v62 = vsub.f32 %v1122_v51, %v1186_v52 }
  0xb0   : > { %v946_v49 = vadd.f32 0.5, %v882_v44  ;;  %v947_v50 = vadd.f32 0.5, %v883_v45  ;;  %v8365_v8 = vsub.f32 %v1123_v57, %v1187_v58 }
  0xb1   : > { %v8344_v53 = vfloor.f32 %v932_v47  ;;  %v8346_v54 = vfloor.f32 %v933_v48  ;;  %14427 = vst [vmem:[#allocation8_spill] sm:$0xff] %v8356_v62  ;;  %v8383_v27 = vmul.f32 %v8356_v62, %v8356_v62 }
  0xb2   : > { %v8348_v55 = vfloor.f32 %v946_v49  ;;  %v8350_v56 = vfloor.f32 %v947_v50  ;;  %14428 = vst [vmem:[#allocation9_spill] sm:$0xff] %v8365_v8  ;;  %v8387_v28 = vmul.f32 %v8365_v8, %v8365_v8 }
  0xb3   : > { %14425 = vst [vmem:[#allocation6_spill] sm:$0xff] %v8344_v53  ;;  %v1060_v59 = vmul.f32 3.140625, %v8344_v53  ;;  %v1061_v63 = vmul.f32 3.140625, %v8346_v54  ;;  %v1188_v9 = vmul.f32 0.0009676536, %v8344_v53 }
  0xb4   : > { %14426 = vst [vmem:[#allocation7_spill] sm:$0xff] %v8346_v54  ;;  %v480_v60 = vpop.f32.mrf.mxu2  ;;  %v8354_v61 = vpop.f32.mrf.mxu3  ;;  %v1074_v4 = vmul.f32 3.140625, %v8348_v55  ;;  %v1075_v5 = vmul.f32 3.140625, %v8350_v56  ;;  %v1202_v13 = vmul.f32 0.0009676536, %v8348_v55 }
  0xb5   : > { %v884_v0 = vmul.f32 0.31830987, %v480_v60  ;;  %v885_v1 = vmul.f32 0.31830987, %v8354_v61  ;;  %v425_v2 = vpop.f32.mrf.mxu0  ;;  %v8360_v3 = vpop.f32.mrf.mxu1  ;;  %v1124_v12 = vsub.f32 %v477_v37, %v1060_v59  ;;  %v1125_v16 = vsub.f32 %v506_v38, %v1061_v63 }
  0xb6   : > { %v898_v6 = vmul.f32 0.31830987, %v425_v2  ;;  %v899_v7 = vmul.f32 0.31830987, %v8360_v3  ;;  %v1203_v17 = vmul.f32 0.0009676536, %v8350_v56  ;;  %v1138_v20 = vsub.f32 %v422_v42, %v1074_v4 }
  0xb7   : > { %v948_v10 = vadd.f32 0.5, %v884_v0  ;;  %v949_v11 = vadd.f32 0.5, %v885_v1  ;;  %v1139_v21 = vsub.f32 %v451_v43, %v1075_v5  ;;  %v1189_v24 = vmul.f32 0.0009676536, %v8346_v54 }
  0xb8   : > { %v962_v14 = vadd.f32 0.5, %v898_v6  ;;  %v963_v15 = vadd.f32 0.5, %v899_v7  ;;  %v8389_v29 = vsub.f32 %v1124_v12, %v1188_v9  ;;  %v8400_v41 = vsub.f32 %v1138_v20, %v1202_v13 }
  0xb9   : > { %v8370_v18 = vfloor.f32 %v948_v10  ;;  %v8372_v19 = vfloor.f32 %v949_v11  ;;  %v8396_v33 = vsub.f32 %v1125_v16, %v1189_v24  ;;  %v8402_v42 = vsub.f32 %v1139_v21, %v1203_v17 }
  0xba   : > { %v8374_v22 = vfloor.f32 %v962_v14  ;;  %v8376_v23 = vfloor.f32 %v963_v15  ;;  %14431 = vst [vmem:[#allocation12_spill] sm:$0xff] %v8389_v29  ;;  %v8415_v63 = vmul.f32 %v8389_v29, %v8389_v29 }
  0xbb   : > { %14429 = vst [vmem:[#allocation10_spill] sm:$0xff] %v8370_v18  ;;  %v1076_v25 = vmul.f32 3.140625, %v8370_v18  ;;  %v1077_v26 = vmul.f32 3.140625, %v8372_v19  ;;  %v1204_v45 = vmul.f32 0.0009676536, %v8370_v18 }
  0xbc   : > { %14430 = vst [vmem:[#allocation11_spill] sm:$0xff] %v8372_v19  ;;  %v1090_v30 = vmul.f32 3.140625, %v8374_v22  ;;  %v8392_v31 = vpop.f32.mrf.mxu2  ;;  %v8394_v32 = vpop.f32.mrf.mxu3  ;;  %v1091_v37 = vmul.f32 3.140625, %v8376_v23  ;;  %v1205_v47 = vmul.f32 0.0009676536, %v8372_v19 }
  0xbd   : > { %14432 = vst [vmem:[#allocation13_spill] sm:$0xff] %v8396_v33  ;;  %v1140_v34 = vsub.f32 %v480_v60, %v1076_v25  ;;  %v900_v38 = vmul.f32 0.31830987, %v8392_v31  ;;  %v428_v39 = vpop.f32.mrf.mxu0  ;;  %v457_v40 = vpop.f32.mrf.mxu1  ;;  %v1141_v46 = vsub.f32 %v8354_v61, %v1077_v26  ;;  %v901_v48 = vmul.f32 0.31830987, %v8394_v32 }
  0xbe   : > { %v914_v43 = vmul.f32 0.31830987, %v428_v39  ;;  %v915_v44 = vmul.f32 0.31830987, %v457_v40  ;;  %v1154_v49 = vsub.f32 %v425_v2, %v1090_v30  ;;  %v1218_v50 = vmul.f32 0.0009676536, %v8374_v22 }
  0xbf   : > { %v8409_v57 = vsub.f32 %v1140_v34, %v1204_v45  ;;  %v1155_v58 = vsub.f32 %v8360_v3, %v1091_v37  ;;  %v1219_v59 = vmul.f32 0.0009676536, %v8376_v23  ;;  %v964_v60 = vadd.f32 0.5, %v900_v38  ;;  %14434 = vst [vmem:[#allocation15_spill] sm:$0xff] %v8415_v63 }
  0xc0   : > { %v978_v51 = vadd.f32 0.5, %v914_v43  ;;  %v979_v52 = vadd.f32 0.5, %v915_v44  ;;  %v8419_v61 = vmul.f32 %v8396_v33, %v8396_v33  ;;  %v8427_v2 = vmul.f32 %v8400_v41, %v8400_v41 }
  0xc1   : > { %14433 = vst [vmem:[#allocation14_spill] sm:$0xff] %v8409_v57  ;;  %v8431_v3 = vmul.f32 %v8402_v42, %v8402_v42  ;;  %v8433_v4 = vsub.f32 %v1141_v46, %v1205_v47  ;;  %v965_v5 = vadd.f32 0.5, %v901_v48  ;;  %v8435_v6 = vsub.f32 %v1154_v49, %v1218_v50 }
  0xc2   : > { %14435 = vst [vmem:[#allocation16_spill] sm:$0xff] %v8419_v61  ;;  %v8421_v0 = vfloor.f32 %v978_v51  ;;  %v8423_v1 = vfloor.f32 %v979_v52  ;;  %v8442_v13 = vmul.f32 %v8409_v57, %v8409_v57  ;;  %v8444_v14 = vsub.f32 %v1155_v58, %v1219_v59 }
  0xc3   : > { %14436 = vst [vmem:[#allocation17_spill] sm:$0xff] %v8433_v4  ;;  %v8446_v15 = vfloor.f32 %v964_v60  ;;  %v8455_v30 = vmul.f32 %v8433_v4, %v8433_v4  ;;  %v8457_v34 = vfloor.f32 %v965_v5 }
  0xc4   : > { %v1106_v7 = vmul.f32 3.140625, %v8421_v0  ;;  %v1234_v9 = vmul.f32 0.0009676536, %v8421_v0  ;;  %v1107_v10 = vmul.f32 3.140625, %v8423_v1  ;;  %v486_v11 = vpop.f32.mrf.mxu2  ;;  %v515_v12 = vpop.f32.mrf.mxu3  ;;  %14437 = vst [vmem:[#allocation18_spill] sm:$0xff] %v8442_v13  ;;  %v8484_v58 = vmul.f32 %v8444_v14, %v8444_v14 }
  0xc5   : > { %14438 = vst [vmem:[#allocation19_spill] sm:$0xff] %v8446_v15  ;;  %v1235_v16 = vmul.f32 0.0009676536, %v8423_v1  ;;  %v8449_v17 = vpop.f32.mrf.mxu0  ;;  %v8451_v20 = vpop.f32.mrf.mxu1  ;;  %v916_v25 = vmul.f32 0.31830987, %v486_v11  ;;  %v1093_v60 = vmul.f32 3.140625, %v8457_v34 }
  0xc6   : > { %v1170_v21 = vsub.f32 %v428_v39, %v1106_v7  ;;  %v1171_v24 = vsub.f32 %v457_v40, %v1107_v10  ;;  %v917_v26 = vmul.f32 0.31830987, %v515_v12  ;;  %14439 = vst [vmem:[#allocation20_spill] sm:$0xff] %v8455_v30  ;;  %v870_v37 = vmul.f32 0.31830987, %v8449_v17 }
  0xc7   : > { %14440 = vst [vmem:[#allocation21_spill] sm:$0xff] %v8457_v34  ;;  %v871_v38 = vmul.f32 0.31830987, %v8451_v20  ;;  %v980_v45 = vadd.f32 0.5, %v916_v25  ;;  %v8467_v39 = vmul.f32 %v8435_v6, %v8435_v6  ;;  %v1092_v40 = vmul.f32 3.140625, %v8446_v15 }
  0xc8   : > { %v8461_v43 = vsub.f32 %v1170_v21, %v1234_v9  ;;  %v8463_v44 = vsub.f32 %v1171_v24, %v1235_v16  ;;  %v981_v46 = vadd.f32 0.5, %v917_v26  ;;  %v934_v47 = vadd.f32 0.5, %v870_v37 }
  0xc9   : > { %v935_v48 = vadd.f32 0.5, %v871_v38  ;;  %v8478_v51 = vfloor.f32 %v980_v45  ;;  %v1220_v59 = vmul.f32 0.0009676536, %v8446_v15  ;;  %v1221_v5 = vmul.f32 0.0009676536, %v8457_v34 }
  0xca   : > { %v8472_v49 = vmul.f32 %v8461_v43, %v8461_v43  ;;  %v8476_v50 = vmul.f32 %v8463_v44, %v8463_v44  ;;  %v8480_v52 = vfloor.f32 %v981_v46  ;;  %v8492_v16 = vfloor.f32 %v934_v47 }
  0xcb   : > { %v1108_v10 = vmul.f32 3.140625, %v8478_v51  ;;  %v1156_v21 = vsub.f32 %v8392_v31, %v1092_v40  ;;  %v8496_v24 = vmul.f32 0.5, %v8421_v0  ;;  %v8499_v26 = vfloor.f32 %v935_v48 }
  0xcc   : > { %14441 = vst [vmem:[#allocation22_spill] sm:$0xff] %v8480_v52  ;;  %v1426_v7 = vmul.f32 1.6059044e-10, %v8472_v49  ;;  %v1427_v9 = vmul.f32 1.6059044e-10, %v8476_v50  ;;  %v1109_v25 = vmul.f32 3.140625, %v8480_v52  ;;  %v8501_v37 = vpop.f32.mrf.mxu2  ;;  %v8504_v29 = vpop.f32.mrf.mxu3  ;;  %v1157_v47 = vsub.f32 %v8394_v32, %v1093_v60 }
  0xcd   : > { %14442 = vst [vmem:[#allocation23_spill] sm:$0xff] %v8492_v16  ;;  %v1172_v46 = vsub.f32 %v486_v11, %v1108_v10  ;;  %v1236_v33 = vmul.f32 0.0009676536, %v8478_v51  ;;  %v8508_v31 = vmul.f32 0.5, %v8423_v1  ;;  %v1237_v4 = vmul.f32 0.0009676536, %v8480_v52 }
  0xce   : > { %14443 = vst [vmem:[#allocation24_spill] sm:$0xff] %v8499_v26  ;;  %v1490_v38 = vadd.f32 -2.5052108e-08, %v1426_v7  ;;  %v1491_v45 = vadd.f32 -2.5052108e-08, %v1427_v9  ;;  %v1173_v40 = vsub.f32 %v515_v12, %v1109_v25  ;;  %v1062_v11 = vmul.f32 3.140625, %v8492_v16 }
  0xcf   : > { %v8513_v54 = vsub.f32 %v1172_v46, %v1236_v33  ;;  %v1063_v9 = vmul.f32 3.140625, %v8499_v26  ;;  %v872_v32 = vmul.f32 0.31830987, %v8501_v37  ;;  %v873_v60 = vmul.f32 0.31830987, %v8504_v29 }
  0xd0   : > { %v1554_v48 = vmul.f32 %v1490_v38, %v8472_v49  ;;  %v1555_v57 = vmul.f32 %v1491_v45, %v8476_v50  ;;  %v8516_v7 = vsub.f32 %v1173_v40, %v1237_v4  ;;  %v8521_v10 = vsub.f32 %v1156_v21, %v1220_v59 }
  0xd1   : > { %v8525_v38 = vmul.f32 %v8513_v54, %v8513_v54  ;;  %v1190_v4 = vmul.f32 0.0009676536, %v8492_v16  ;;  %v936_v45 = vadd.f32 0.5, %v872_v32  ;;  %v937_v46 = vadd.f32 0.5, %v873_v60 }
  0xd2   : > { %14444 = vst [vmem:[#allocation25_spill] sm:$0xff] %v8521_v10  ;;  %v1618_v12 = vadd.f32 2.7557319e-06, %v1554_v48  ;;  %v1619_v25 = vadd.f32 2.7557319e-06, %v1555_v57  ;;  %v8529_v33 = vmul.f32 %v8516_v7, %v8516_v7  ;;  %v1126_v57 = vsub.f32 %v8449_v17, %v1062_v11 }
  0xd3   : > { %v1428_v59 = vmul.f32 1.6059044e-10, %v8525_v38  ;;  %v1127_v48 = vsub.f32 %v8451_v20, %v1063_v9  ;;  %v1191_v53 = vmul.f32 0.0009676536, %v8499_v26  ;;  %v8539_v63 = vfloor.f32 %v936_v45  ;;  %v8554_v9 = vpop.f32.mrf.mxu1 }
  0xd4   : > { %v1682_v40 = vmul.f32 %v1618_v12, %v8472_v49  ;;  %v1683_v61 = vmul.f32 %v1619_v25, %v8476_v50  ;;  %v1429_v21 = vmul.f32 1.6059044e-10, %v8529_v33  ;;  %v8541_v19 = vsub.f32 %v1157_v47, %v1221_v5  ;;  %v8543_v12 = vpop.f32.mrf.mxu0  ;;  %v8556_v45 = vpop.f32.mrf.mxu2 }
  0xd5   : > { %14445 = vst [vmem:[#allocation26_spill] sm:$0xff] %v8539_v63  ;;  %v1492_v16 = vadd.f32 -2.5052108e-08, %v1428_v59  ;;  %v8547_v25 = vmul.f32 %v8521_v10, %v8521_v10  ;;  %v8550_v17 = vmul.f32 0.5, %v8478_v51  ;;  %v8552_v20 = vfloor.f32 %v937_v46 }
  0xd6   : > { %14446 = vst [vmem:[#allocation27_spill] sm:$0xff] %v8541_v19  ;;  %v1746_v32 = vadd.f32 -0.0001984127, %v1682_v40  ;;  %v1747_v60 = vadd.f32 -0.0001984127, %v1683_v61  ;;  %v8561_v40 = vsub.f32 %v1126_v57, %v1190_v4  ;;  %v8564_v26 = vsub.f32 %v1127_v48, %v1191_v53 }
  0xd7   : > { %v1493_v11 = vadd.f32 -2.5052108e-08, %v1429_v21  ;;  %14447 = vst [vmem:[#allocation28_spill] sm:$0xff] %v8552_v20  ;;  %v1556_v47 = vmul.f32 %v1492_v16, %v8525_v38  ;;  %v1064_v21 = vmul.f32 3.140625, %v8539_v63  ;;  %v886_v46 = vmul.f32 0.31830987, %v8543_v12 }
  0xd8   : > { %v1810_v5 = vmul.f32 %v1746_v32, %v8472_v49  ;;  %v1811_v61 = vmul.f32 %v1747_v60, %v8476_v50  ;;  %14448 = vst [vmem:[#allocation29_spill] sm:$0xff] %v8561_v40  ;;  %v8570_v10 = vmul.f32 %v8541_v19, %v8541_v19  ;;  %v8573_v16 = vmul.f32 0.5, %v8480_v52 }
  0xd9   : > { %v1557_v59 = vmul.f32 %v1493_v11, %v8529_v33  ;;  %14449 = vst [vmem:[#allocation30_spill] sm:$0xff] %v8564_v26  ;;  %v1620_v8 = vadd.f32 2.7557319e-06, %v1556_v47  ;;  %v1065_v4 = vmul.f32 3.140625, %v8552_v20  ;;  %v950_v57 = vadd.f32 0.5, %v886_v46 }
  0xda   : > { %14450 = vst [vmem:[#allocation31_spill] sm:$0xff] %v8570_v10  ;;  %v1874_v30 = vadd.f32 0.008333334, %v1810_v5  ;;  %v1875_v32 = vadd.f32 0.008333334, %v1811_v61  ;;  %v8580_v11 = vmul.f32 %v8561_v40, %v8561_v40  ;;  %v8583_v5 = vpop.f32.mrf.mxu3 }
  0xdb   : > { %v1621_v60 = vadd.f32 2.7557319e-06, %v1557_v59  ;;  %v1684_v48 = vmul.f32 %v1620_v8, %v8525_v38  ;;  %v887_v19 = vmul.f32 0.31830987, %v8554_v9  ;;  %v8589_v59 = vmul.f32 %v8564_v26, %v8564_v26 }
  0xdc   : > { %v1938_v53 = vmul.f32 %v1874_v30, %v8472_v49  ;;  %14451 = vst [vmem:[#allocation32_spill] sm:$0xff] %v8580_v11  ;;  %v1939_v61 = vmul.f32 %v1875_v32, %v8476_v50  ;;  %v8591_v46 = vfloor.f32 %v950_v57  ;;  %v1128_v8 = vsub.f32 %v8501_v37, %v1064_v21 }
  0xdd   : > { %v1685_v47 = vmul.f32 %v1621_v60, %v8529_v33  ;;  %14452 = vst [vmem:[#allocation33_spill] sm:$0xff] %v8589_v59  ;;  %v1748_v30 = vadd.f32 -0.0001984127, %v1684_v48  ;;  %v1192_v40 = vmul.f32 0.0009676536, %v8539_v63  ;;  %v1129_v13 = vsub.f32 %v8504_v29, %v1065_v4  ;;  %v8601_v48 = vpop.f32.mrf.mxu0  ;;  %v8607_v29 = vpop.f32.mrf.mxu1 }
  0xde   : > { %14453 = vst [vmem:[#allocation34_spill] sm:$0xff] %v8591_v46  ;;  %v1078_v32 = vmul.f32 3.140625, %v8591_v46  ;;  %v951_v62 = vadd.f32 0.5, %v887_v19  ;;  %v2002_v60 = vadd.f32 -0.16666667, %v1938_v53  ;;  %v8609_v4 = vpop.f32.mrf.mxu2 }
  0xdf   : > { %v1749_v18 = vadd.f32 -0.0001984127, %v1685_v47  ;;  %v1812_v34 = vmul.f32 %v1748_v30, %v8525_v38  ;;  %v1193_v26 = vmul.f32 0.0009676536, %v8552_v20  ;;  %v888_v57 = vmul.f32 0.31830987, %v8556_v45 }
  0xe0   : > { %v2003_v37 = vadd.f32 -0.16666667, %v1939_v61  ;;  %v8604_v63 = vfloor.f32 %v951_v62  ;;  %v889_v47 = vmul.f32 0.31830987, %v8583_v5  ;;  %v1142_v53 = vsub.f32 %v8543_v12, %v1078_v32 }
  0xe1   : > { %v1813_v21 = vmul.f32 %v1749_v18, %v8529_v33  ;;  %v1876_v19 = vadd.f32 0.008333334, %v1812_v34  ;;  %v1206_v30 = vmul.f32 0.0009676536, %v8591_v46  ;;  %v952_v11 = vadd.f32 0.5, %v888_v57 }
  0xe2   : > { %14454 = vst [vmem:[#allocation35_spill] sm:$0xff] %v8604_v63  ;;  %v8613_v59 = vsub.f32 %v1128_v8, %v1192_v40  ;;  %v8615_v61 = vsub.f32 %v1129_v13, %v1193_v26  ;;  %v1079_v62 = vmul.f32 3.140625, %v8604_v63  ;;  %v953_v52 = vadd.f32 0.5, %v889_v47 }
  0xe3   : > { %v1877_v20 = vadd.f32 0.008333334, %v1813_v21  ;;  %v1940_v18 = vmul.f32 %v1876_v19, %v8525_v38  ;;  %v8619_v10 = vfloor.f32 %v952_v11  ;;  %v902_v15 = vmul.f32 0.31830987, %v8601_v48  ;;  %v8632_v11 = vpop.f32.mrf.mxu3 }
  0xe4   : > { %14455 = vst [vmem:[#allocation36_spill] sm:$0xff] %v8613_v59  ;;  %v2066_v34 = vmul.f32 %v2002_v60, %v8472_v49  ;;  %v2067_v12 = vmul.f32 %v2003_v37, %v8476_v50  ;;  %v903_v32 = vmul.f32 0.31830987, %v8607_v29  ;;  %v8627_v26 = vsub.f32 %v1142_v53, %v1206_v30 }
  0xe5   : > { %14456 = vst [vmem:[#allocation37_spill] sm:$0xff] %v8615_v61  ;;  %v1941_v13 = vmul.f32 %v1877_v20, %v8529_v33  ;;  %v1207_v8 = vmul.f32 0.0009676536, %v8604_v63  ;;  %v8630_v57 = vfloor.f32 %v953_v52  ;;  %v2004_v21 = vadd.f32 -0.16666667, %v1940_v18  ;;  %v544_v40 = vpop.f32.mrf.mxu0 }
  0xe6   : > { %14457 = vst [vmem:[#allocation38_spill] sm:$0xff] %v8619_v10  ;;  %v1143_v47 = vsub.f32 %v8554_v9, %v1079_v62  ;;  %v966_v49 = vadd.f32 0.5, %v902_v15  ;;  %v967_v60 = vadd.f32 0.5, %v903_v32  ;;  %v8637_v50 = vmul.f32 %v8613_v59, %v8613_v59  ;;  %v602_v59 = vpop.f32.mrf.mxu2 }
  0xe7   : > { %14458 = vst [vmem:[#allocation39_spill] sm:$0xff] %v8627_v26  ;;  %v8641_v20 = vmul.f32 %v8615_v61, %v8615_v61  ;;  %v1080_v37 = vmul.f32 3.140625, %v8619_v10  ;;  %v1081_v52 = vmul.f32 3.140625, %v8630_v57  ;;  %v8646_v19 = vmul.f32 %v2066_v34, %v8461_v43 }
  0xe8   : > { %14459 = vst [vmem:[#allocation40_spill] sm:$0xff] %v8630_v57  ;;  %v8649_v53 = vmul.f32 %v2067_v12, %v8463_v44  ;;  %v8651_v15 = vfloor.f32 %v966_v49  ;;  %v8653_v9 = vfloor.f32 %v967_v60  ;;  %v2005_v30 = vadd.f32 -0.16666667, %v1941_v13  ;;  %v573_v60 = vpop.f32.mrf.mxu1 }
  0xe9   : > { %14460 = vst [vmem:[#allocation41_spill] sm:$0xff] %v8637_v50  ;;  %v8657_v62 = vmul.f32 %v8627_v26, %v8627_v26  ;;  %v1208_v18 = vmul.f32 0.0009676536, %v8619_v10  ;;  %v904_v32 = vmul.f32 0.31830987, %v8609_v4  ;;  %v2068_v34 = vmul.f32 %v2004_v21, %v8525_v38 }
  0xea   : > { %14461 = vst [vmem:[#allocation42_spill] sm:$0xff] %v8641_v20  ;;  %v8662_v61 = vsub.f32 %v1143_v47, %v1207_v8  ;;  %v1094_v12 = vmul.f32 3.140625, %v8651_v15  ;;  %v1095_v49 = vmul.f32 3.140625, %v8653_v9  ;;  %v1144_v13 = vsub.f32 %v8556_v45, %v1080_v37 }
  0xeb   : > { %14462 = vst [vmem:[#allocation43_spill] sm:$0xff] %v8651_v15  ;;  %v1145_v20 = vsub.f32 %v8583_v5, %v1081_v52  ;;  %v1222_v50 = vmul.f32 0.0009676536, %v8651_v15  ;;  %v968_v10 = vadd.f32 0.5, %v904_v32  ;;  %v1223_v63 = vmul.f32 0.0009676536, %v8653_v9  ;;  %v8683_v15 = vpop.f32.mrf.mxu3 }
  0xec   : > { %14463 = vst [vmem:[#allocation44_spill] sm:$0xff] %v8653_v9  ;;  %v1158_v26 = vsub.f32 %v8601_v48, %v1094_v12  ;;  %v905_v38 = vmul.f32 0.31830987, %v8632_v11  ;;  %v918_v8 = vmul.f32 0.31830987, %v544_v40  ;;  %v1159_v21 = vsub.f32 %v8607_v29, %v1095_v49 }
  0xed   : > { %14464 = vst [vmem:[#allocation45_spill] sm:$0xff] %v8657_v62  ;;  %v8673_v47 = vfloor.f32 %v968_v10  ;;  %v919_v46 = vmul.f32 0.31830987, %v573_v60  ;;  %v920_v62 = vmul.f32 0.31830987, %v602_v59  ;;  %v2069_v45 = vmul.f32 %v2005_v30, %v8529_v33 }
  0xee   : > { %14465 = vst [vmem:[#allocation46_spill] sm:$0xff] %v8662_v61  ;;  %v8678_v5 = vmul.f32 %v8662_v61, %v8662_v61  ;;  %v1209_v37 = vmul.f32 0.0009676536, %v8630_v57  ;;  %v982_v48 = vadd.f32 0.5, %v918_v8  ;;  %v8681_v52 = vsub.f32 %v1144_v13, %v1208_v18 }
  0xef   : > { %14466 = vst [vmem:[#allocation47_spill] sm:$0xff] %v8673_v47  ;;  %v969_v32 = vadd.f32 0.5, %v905_v38  ;;  %v983_v12 = vadd.f32 0.5, %v919_v46  ;;  %v984_v9 = vadd.f32 0.5, %v920_v62  ;;  %v8686_v10 = vmul.f32 %v2068_v34, %v8513_v54 }
  0xf0   : > { %14467 = vst [vmem:[#allocation48_spill] sm:$0xff] %v8678_v5  ;;  %v8688_v29 = vsub.f32 %v1145_v20, %v1209_v37  ;;  %v8690_v33 = vsub.f32 %v1158_v26, %v1222_v50  ;;  %v8692_v30 = vfloor.f32 %v982_v48  ;;  %v8694_v49 = vsub.f32 %v1159_v21, %v1223_v63  ;;  %v8721_v48 = vpop.f32.mrf.mxu0 }
  0xf1   : > { %14468 = vst [vmem:[#allocation49_spill] sm:$0xff] %v8681_v52  ;;  %v1096_v8 = vmul.f32 3.140625, %v8673_v47  ;;  %v8697_v18 = vfloor.f32 %v983_v12  ;;  %v8699_v13 = vfloor.f32 %v984_v9  ;;  %v8702_v46 = vmul.f32 %v2069_v45, %v8516_v7  ;;  %v8723_v12 = vpop.f32.mrf.mxu1 }
  0xf2   : > { %14469 = vst [vmem:[#allocation50_spill] sm:$0xff] %v8688_v29  ;;  %v1110_v62 = vmul.f32 3.140625, %v8692_v30  ;;  %v1238_v20 = vmul.f32 0.0009676536, %v8692_v30  ;;  %v921_v26 = vmul.f32 0.31830987, %v8683_v15  ;;  %v8709_v50 = vmul.f32 %v8681_v52, %v8681_v52 }
  0xf3   : > { %14470 = vst [vmem:[#allocation51_spill] sm:$0xff] %v8690_v33  ;;  %v8711_v63 = vfloor.f32 %v969_v32  ;;  %v1111_v34 = vmul.f32 3.140625, %v8697_v18  ;;  %v1239_v9 = vmul.f32 0.0009676536, %v8697_v18  ;;  %v8717_v38 = vmul.f32 %v8688_v29, %v8688_v29 }
  0xf4   : > { %14471 = vst [vmem:[#allocation52_spill] sm:$0xff] %v8692_v30  ;;  %v1224_v21 = vmul.f32 0.0009676536, %v8673_v47  ;;  %v1174_v45 = vsub.f32 %v544_v40, %v1110_v62  ;;  %v1112_v37 = vmul.f32 3.140625, %v8699_v13  ;;  %v8727_v32 = vmul.f32 %v8690_v33, %v8690_v33 }
  0xf5   : > { %14472 = vst [vmem:[#allocation53_spill] sm:$0xff] %v8694_v49  ;;  %v8731_v52 = vmul.f32 %v8694_v49, %v8694_v49  ;;  %v1160_v29 = vsub.f32 %v8609_v4, %v1096_v8  ;;  %v1175_v57 = vsub.f32 %v573_v60, %v1111_v34  ;;  %v1240_v62 = vmul.f32 0.0009676536, %v8699_v13 }
  0xf6   : > { %14473 = vst [vmem:[#allocation54_spill] sm:$0xff] %v8697_v18  ;;  %v1176_v40 = vsub.f32 %v602_v59, %v1112_v37  ;;  %v1097_v61 = vmul.f32 3.140625, %v8711_v63  ;;  %v874_v33 = vmul.f32 0.31830987, %v8721_v48  ;;  %v875_v5 = vmul.f32 0.31830987, %v8723_v12 }
  0xf7   : > { %14474 = vst [vmem:[#allocation55_spill] sm:$0xff] %v8702_v46  ;;  %v8738_v47 = vsub.f32 %v1175_v57, %v1239_v9  ;;  %v1225_v49 = vmul.f32 0.0009676536, %v8711_v63  ;;  %v8757_v9 = vsub.f32 %v1160_v29, %v1224_v21 }
  0xf8   : > { %14475 = vst [vmem:[#allocation56_spill] sm:$0xff] %v8709_v50  ;;  %v985_v50 = vadd.f32 0.5, %v921_v26  ;;  %v8747_v60 = vsub.f32 %v1176_v40, %v1240_v62  ;;  %v938_v57 = vadd.f32 0.5, %v874_v33  ;;  %v14480_v26 = vfloor.f32 %v8496_v24 }
  0xf9   : > { %14476 = vst [vmem:[#allocation57_spill] sm:$0xff] %v8711_v63  ;;  %v8753_v8 = vmul.f32 %v8738_v47, %v8738_v47  ;;  %v1161_v40 = vsub.f32 %v8632_v11, %v1097_v61  ;;  %v8774_v63 = vmul.f32 0.5, %v8692_v30  ;;  %v8783_v11 = vmul.f32 %v8757_v9, %v8757_v9 }
  0xfa   : > { %14477 = vst [vmem:[#allocation58_spill] sm:$0xff] %v8717_v38  ;;  %v8734_v38 = vsub.f32 %v1174_v45, %v1238_v20  ;;  %v8749_v59 = vfloor.f32 %v985_v50  ;;  %v939_v20 = vadd.f32 0.5, %v875_v5  ;;  %v2386_v34 = vmul.f32 2.0, %v14480_v26 }
  0xfb   : > { %14478 = vst [vmem:[#allocation59_spill] sm:$0xff] %v8727_v32  ;;  %v8762_v37 = vmul.f32 %v8747_v60, %v8747_v60  ;;  %v1431_v62 = vmul.f32 1.6059044e-10, %v8753_v8  ;;  %v8768_v5 = vfloor.f32 %v938_v57  ;;  %v8777_v32 = vmul.f32 0.5, %v8697_v18 }
  0xfc   : > { %14479 = vst [vmem:[#allocation60_spill] sm:$0xff] %v8731_v52  ;;  %v8745_v4 = vmul.f32 %v8734_v38, %v8734_v38  ;;  %v1113_v50 = vmul.f32 3.140625, %v8749_v59  ;;  %v1241_v33 = vmul.f32 0.0009676536, %v8749_v59  ;;  %v2450_v26 = vsub.f32 %v8421_v0, %v2386_v34 }
  0xfd   : > { %14481 = vst [vmem:[#allocation61_spill] sm:$0xff] %v8757_v9  ;;  %v1432_v29 = vmul.f32 1.6059044e-10, %v8762_v37  ;;  %v1495_v52 = vadd.f32 -2.5052108e-08, %v1431_v62  ;;  %v8779_v61 = vfloor.f32 %v939_v20  ;;  %v2194_v34 = vadd.f32 %v8646_v19, %v8461_v43 }
  0xfe   : > { %v1430_v45 = vmul.f32 1.6059044e-10, %v8745_v4  ;;  %14482 = vst [vmem:[#allocation62_spill] sm:$0xff] %v8768_v5  ;;  %v1177_v21 = vsub.f32 %v8683_v15, %v1113_v50  ;;  %v8788_v15 = vsub.f32 %v1161_v40, %v1225_v49  ;;  %v2514_v50 = vmul.f32 2.0, %v2450_v26 }
  0xff   : > { %14483 = vst [vmem:[#allocation63_spill] sm:$0xff] %v8774_v63  ;;  %v1559_v0 = vmul.f32 %v1495_v52, %v8753_v8  ;;  %v8801_v49 = vmul.f32 3.140625, %v8779_v61 }
 0x100   : > { %v1494_v24 = vadd.f32 -2.5052108e-08, %v1430_v45  ;;  %14484 = vst [vmem:[#allocation64_spill] sm:$0xff] %v8777_v32  ;;  %v1496_v45 = vadd.f32 -2.5052108e-08, %v1432_v29  ;;  %v8786_v46 = vsub.f32 %v1177_v21, %v1241_v33  ;;  %v2578_v52 = vsub.f32 1.0, %v2514_v50 }
 0x101   : > { %14485 = vst [vmem:[#allocation65_spill] sm:$0xff] %v8779_v61  ;;  %v1623_v29 = vadd.f32 2.7557319e-06, %v1559_v0  ;;  %v1194_v33 = vmul.f32 0.0009676536, %v8768_v5  ;;  %v14487_v21 = vfloor.f32 %v8508_v31  ;;  %v2195_v0 = vadd.f32 %v8649_v53, %v8463_v44 }
 0x102   : > { %14486 = vst [vmem:[#allocation66_spill] sm:$0xff] %v8783_v11  ;;  %v1558_v57 = vmul.f32 %v1494_v24, %v8745_v4  ;;  %v1560_v20 = vmul.f32 %v1496_v45, %v8762_v37  ;;  %v8796_v9 = vmul.f32 %v8786_v46, %v8786_v46  ;;  %v1066_v24 = vmul.f32 3.140625, %v8768_v5 }
 0x103   : > { %v2387_v26 = vmul.f32 2.0, %v14487_v21  ;;  %v1195_v45 = vmul.f32 0.0009676536, %v8779_v61  ;;  %v2642_v11 = vmul.f32 %v2578_v52, %v2194_v34  ;;  %v1410_v32 = vmul.f32 1.6059044e-10, %v8467_v39 }
 0x104   : > { %v1622_v62 = vadd.f32 2.7557319e-06, %v1558_v57  ;;  %v1624_v43 = vadd.f32 2.7557319e-06, %v1560_v20  ;;  %v1433_v19 = vmul.f32 1.6059044e-10, %v8796_v9  ;;  %v1687_v57 = vmul.f32 %v1623_v29, %v8753_v8 }
 0x105   : > { %2711 = vmatpush.msra.mxu0 %v2642_v11  ;;  %v2242_v31 = vmul.f32 0.5, %v8374_v22  ;;  %v2243_v29 = vmul.f32 0.5, %v8376_v23  ;;  %v1130_v30 = vsub.f32 %v8721_v48, %v1066_v24 }
 0x106   : > { %v1686_v40 = vmul.f32 %v1622_v62, %v8745_v4  ;;  %v1688_v18 = vmul.f32 %v1624_v43, %v8762_v37  ;;  %v1497_v50 = vadd.f32 -2.5052108e-08, %v1433_v19  ;;  %v2451_v62 = vsub.f32 %v8423_v1, %v2387_v26 }
 0x107   : > { %v1751_v20 = vadd.f32 -0.0001984127, %v1687_v57  ;;  %v2306_v43 = vfloor.f32 %v2242_v31  ;;  %v1411_v1 = vmul.f32 1.6059044e-10, %v8484_v58  ;;  %v1131_v31 = vsub.f32 %v8723_v12, %v8801_v49 }
 0x108   : > { %v1750_v5 = vadd.f32 -0.0001984127, %v1686_v40  ;;  %v1752_v34 = vadd.f32 -0.0001984127, %v1688_v18  ;;  %v1561_v52 = vmul.f32 %v1497_v50, %v8796_v9  ;;  %v2515_v44 = vmul.f32 2.0, %v2451_v62 }
 0x109   : > { %v1815_v53 = vmul.f32 %v1751_v20, %v8753_v8  ;;  %v1474_v40 = vadd.f32 -2.5052108e-08, %v1410_v32  ;;  %v1475_v18 = vadd.f32 -2.5052108e-08, %v1411_v1  ;;  %v2370_v20 = vmul.f32 2.0, %v2306_v43  ;;  %v8842_v1 = vpop.f32.mrf.mxu2 }
 0x10a   : > { %v1814_v21 = vmul.f32 %v1750_v5, %v8745_v4  ;;  %v1816_v11 = vmul.f32 %v1752_v34, %v8762_v37  ;;  %v1625_v26 = vadd.f32 2.7557319e-06, %v1561_v52  ;;  %v2579_v57 = vsub.f32 1.0, %v2515_v44 }
 0x10b   : > { %v1879_v61 = vadd.f32 0.008333334, %v1815_v53  ;;  %v1538_v5 = vmul.f32 %v1474_v40, %v8467_v39  ;;  %v1539_v34 = vmul.f32 %v1475_v18, %v8484_v58  ;;  %v2307_v44 = vfloor.f32 %v2243_v29 }
 0x10c   : > { %v1878_v19 = vadd.f32 0.008333334, %v1814_v21  ;;  %v1880_v63 = vadd.f32 0.008333334, %v1816_v11  ;;  %v1689_v50 = vmul.f32 %v1625_v26, %v8796_v9  ;;  %v2643_v62 = vmul.f32 %v2579_v57, %v2195_v0  ;;  %v8848_v11 = vpop.f32.mrf.mxu3 }
 0x10d   : > { %v1602_v21 = vadd.f32 2.7557319e-06, %v1538_v5  ;;  %v1943_v52 = vmul.f32 %v1879_v61, %v8753_v8  ;;  %v8831_v53 = vmul.f32 0.5, %v8699_v13  ;;  %v8833_v0 = vsub.f32 %v1130_v30, %v1194_v33 }
 0x10e   : > { %v1942_v32 = vmul.f32 %v1878_v19, %v8745_v4  ;;  %v1944_v48 = vmul.f32 %v1880_v63, %v8762_v37  ;;  %v1753_v24 = vadd.f32 -0.0001984127, %v1689_v50  ;;  %2740 = vmatpush.msra.mxu1 %v2643_v62  ;;  %v1603_v43 = vadd.f32 2.7557319e-06, %v1539_v34 }
 0x10f   : > { %14488 = vst [vmem:[#allocation67_spill] sm:$0xff] %v8833_v0  ;;  %v1666_v40 = vmul.f32 %v1602_v21, %v8467_v39  ;;  %v8838_v12 = vmul.f32 %v8788_v15, %v8788_v15  ;;  %v2434_v61 = vsub.f32 %v8374_v22, %v2370_v20  ;;  %v2371_v63 = vmul.f32 2.0, %v2307_v44 }
 0x110   : > { %v1817_v49 = vmul.f32 %v1753_v24, %v8796_v9  ;;  %v2006_v29 = vadd.f32 -0.16666667, %v1942_v32  ;;  %v8845_v19 = vmul.f32 0.5, %v8749_v59  ;;  %v1667_v33 = vmul.f32 %v1603_v43, %v8484_v58 }
 0x111   : > { %v1730_v30 = vadd.f32 -0.0001984127, %v1666_v40  ;;  %v2007_v26 = vadd.f32 -0.16666667, %v1943_v52  ;;  %v2008_v57 = vadd.f32 -0.16666667, %v1944_v48  ;;  %v8850_v18 = vsub.f32 %v1131_v31, %v1195_v45 }
 0x112   : > { %v1881_v5 = vadd.f32 0.008333334, %v1817_v49  ;;  %v8854_v22 = vmul.f32 %v8833_v0, %v8833_v0  ;;  %v1731_v62 = vadd.f32 -0.0001984127, %v1667_v33  ;;  %v876_v20 = vmul.f32 0.31830987, %v8842_v1 }
 0x113   : > { %14489 = vst [vmem:[#allocation68_spill] sm:$0xff] %v8850_v18  ;;  %v1794_v50 = vmul.f32 %v1730_v30, %v8467_v39  ;;  %v2498_v21 = vmul.f32 2.0, %v2434_v61  ;;  %v2435_v34 = vsub.f32 %v8376_v23, %v2371_v63  ;;  %v877_v52 = vmul.f32 0.31830987, %v8848_v11 }
 0x114   : > { %14490 = vst [vmem:[#allocation69_spill] sm:$0xff] %v8854_v22  ;;  %v1945_v32 = vmul.f32 %v1881_v5, %v8796_v9  ;;  %v1795_v45 = vmul.f32 %v1731_v62, %v8484_v58  ;;  %v940_v31 = vadd.f32 0.5, %v876_v20  ;;  %v1394_v24 = vmul.f32 1.6059044e-10, %v8427_v2 }
 0x115   : > { %v1858_v48 = vadd.f32 0.008333334, %v1794_v50  ;;  %v2070_v44 = vmul.f32 %v2006_v29, %v8745_v4  ;;  %v2071_v40 = vmul.f32 %v2007_v26, %v8753_v8  ;;  %v2072_v43 = vmul.f32 %v2008_v57, %v8762_v37 }
 0x116   : > { %v941_v49 = vadd.f32 0.5, %v877_v52  ;;  %v1859_v61 = vadd.f32 0.008333334, %v1795_v45  ;;  %v1458_v33 = vadd.f32 -2.5052108e-08, %v1394_v24  ;;  %v2226_v23 = vmul.f32 0.5, %v8348_v55 }
 0x117   : > { %v1922_v30 = vmul.f32 %v1858_v48, %v8467_v39  ;;  %v8870_v63 = vmul.f32 %v8850_v18, %v8850_v18  ;;  %v2562_v5 = vsub.f32 1.0, %v2498_v21  ;;  %v8872_v50 = vfloor.f32 %v940_v31 }
 0x118   : > { %v1395_v4 = vmul.f32 1.6059044e-10, %v8431_v3  ;;  %v2009_v29 = vadd.f32 -0.16666667, %v1945_v32  ;;  %v1923_v37 = vmul.f32 %v1859_v61, %v8484_v58  ;;  %v2499_v26 = vmul.f32 2.0, %v2435_v34 }
 0x119   : > { %14491 = vst [vmem:[#allocation70_spill] sm:$0xff] %v8870_v63  ;;  %v1986_v8 = vadd.f32 -0.16666667, %v1922_v30  ;;  %v8877_v57 = vmul.f32 %v2070_v44, %v8734_v38  ;;  %v8880_v62 = vmul.f32 %v2071_v40, %v8738_v47  ;;  %v8882_v20 = vfloor.f32 %v941_v49 }
 0x11a   : > { %14492 = vst [vmem:[#allocation71_spill] sm:$0xff] %v8872_v50  ;;  %v1522_v52 = vmul.f32 %v1458_v33, %v8427_v2  ;;  %v8886_v21 = vmul.f32 %v2072_v43, %v8747_v60  ;;  %v1987_v32 = vadd.f32 -0.16666667, %v1923_v37  ;;  %v2290_v45 = vfloor.f32 %v2226_v23 }
 0x11b   : > { %14493 = vst [vmem:[#allocation72_spill] sm:$0xff] %v8882_v20  ;;  %v2050_v48 = vmul.f32 %v1986_v8, %v8467_v39  ;;  %v1068_v31 = vmul.f32 3.140625, %v8872_v50  ;;  %v1459_v24 = vadd.f32 -2.5052108e-08, %v1395_v4  ;;  %v2227_v44 = vmul.f32 0.5, %v8350_v56  ;;  %v8897_v8 = vpop.f32.mrf.mxu0 }
 0x11c   : > { %v1586_v34 = vadd.f32 2.7557319e-06, %v1522_v52  ;;  %v2073_v40 = vmul.f32 %v2009_v29, %v8796_v9  ;;  %v2051_v30 = vmul.f32 %v1987_v32, %v8484_v58  ;;  %v2563_v61 = vsub.f32 1.0, %v2499_v26  ;;  %v8903_v52 = vpop.f32.mrf.mxu1 }
 0x11d   : > { %v2114_v49 = vmul.f32 %v2050_v48, %v8435_v6  ;;  %v1069_v43 = vmul.f32 3.140625, %v8882_v20  ;;  %v1523_v39 = vmul.f32 %v1459_v24, %v8431_v3  ;;  %v2291_v23 = vfloor.f32 %v2227_v44 }
 0x11e   : > { %v1650_v33 = vmul.f32 %v1586_v34, %v8427_v2  ;;  %v2115_v37 = vmul.f32 %v2051_v30, %v8444_v14  ;;  %v1196_v9 = vmul.f32 0.0009676536, %v8872_v50  ;;  %v1197_v29 = vmul.f32 0.0009676536, %v8882_v20 }
 0x11f   : > { %v2178_v4 = vadd.f32 %v2114_v49, %v8435_v6  ;;  %v1132_v58 = vsub.f32 %v8842_v1, %v1068_v31  ;;  %v2354_v48 = vmul.f32 2.0, %v2290_v45  ;;  %v1587_v32 = vadd.f32 2.7557319e-06, %v1523_v39 }
 0x120   : > { %v1714_v26 = vadd.f32 -0.0001984127, %v1650_v33  ;;  %v2179_v24 = vadd.f32 %v2115_v37, %v8444_v14  ;;  %v2355_v44 = vmul.f32 2.0, %v2291_v23  ;;  %v890_v18 = vmul.f32 0.31830987, %v8897_v8 }
 0x121   : > { %v2626_v34 = vmul.f32 %v2562_v5, %v2178_v4  ;;  %v1133_v6 = vsub.f32 %v8848_v11, %v1069_v43  ;;  %v1651_v30 = vmul.f32 %v1587_v32, %v8431_v3  ;;  %v891_v20 = vmul.f32 0.31830987, %v8903_v52 }
 0x122   : > { %v1778_v49 = vmul.f32 %v1714_v26, %v8427_v2  ;;  %v2627_v50 = vmul.f32 %v2563_v61, %v2179_v24  ;;  %v954_v1 = vadd.f32 0.5, %v890_v18  ;;  %v1378_v45 = vmul.f32 1.6059044e-10, %v8383_v27 }
 0x123   : > { %2712 = vmatpush.msra.mxu0 %v2626_v34  ;;  %v2210_v5 = vmul.f32 0.5, %v8337_v35  ;;  %v2418_v14 = vsub.f32 %v8348_v55, %v2354_v48  ;;  %v1715_v33 = vadd.f32 -0.0001984127, %v1651_v30  ;;  %v955_v39 = vadd.f32 0.5, %v891_v20 }
 0x124   : > { %v1842_v31 = vadd.f32 0.008333334, %v1778_v49  ;;  %2741 = vmatpush.msra.mxu1 %v2627_v50  ;;  %v2419_v11 = vsub.f32 %v8350_v56, %v2355_v44  ;;  %v8916_v43 = vfloor.f32 %v954_v1  ;;  %v1442_v23 = vadd.f32 -2.5052108e-08, %v1378_v45 }
 0x125   : > { %v2274_v4 = vfloor.f32 %v2210_v5  ;;  %v8918_v37 = vsub.f32 %v1132_v58, %v1196_v9  ;;  %v1779_v61 = vmul.f32 %v1715_v33, %v8431_v3  ;;  %v1379_v26 = vmul.f32 1.6059044e-10, %v8387_v28 }
 0x126   : > { %14494 = vst [vmem:[#allocation73_spill] sm:$0xff] %v8916_v43  ;;  %v1906_v18 = vmul.f32 %v1842_v31, %v8427_v2  ;;  %v8924_v32 = vmul.f32 %v2073_v40, %v8786_v46  ;;  %v8926_v55 = vsub.f32 %v1133_v6, %v1197_v29  ;;  %v8928_v50 = vfloor.f32 %v955_v39 }
 0x127   : > { %14495 = vst [vmem:[#allocation74_spill] sm:$0xff] %v8918_v37  ;;  %v1506_v56 = vmul.f32 %v1442_v23, %v8383_v27  ;;  %v1843_v48 = vadd.f32 0.008333334, %v1779_v61  ;;  %v1082_v9 = vmul.f32 3.140625, %v8916_v43  ;;  %v2211_v58 = vmul.f32 0.5, %v8339_v36 }
 0x128   : > { %14496 = vst [vmem:[#allocation75_spill] sm:$0xff] %v8926_v55  ;;  %v1970_v20 = vadd.f32 -0.16666667, %v1906_v18  ;;  %v2482_v34 = vmul.f32 2.0, %v2418_v14  ;;  %v2483_v24 = vmul.f32 2.0, %v2419_v11  ;;  %v2338_v49 = vmul.f32 2.0, %v2274_v4 }
 0x129   : > { %14497 = vst [vmem:[#allocation76_spill] sm:$0xff] %v8928_v50  ;;  %v1570_v44 = vadd.f32 2.7557319e-06, %v1506_v56  ;;  %v8935_v40 = vmul.f32 %v8918_v37, %v8918_v37  ;;  %v1907_v6 = vmul.f32 %v1843_v48, %v8431_v3  ;;  %v1443_v30 = vadd.f32 -2.5052108e-08, %v1379_v26  ;;  %v14524_v37 = vld [vmem:[#allocation17_spill] sm:$0xff] }
 0x12a   : > { %v2034_v29 = vmul.f32 %v1970_v20, %v8427_v2  ;;  %v1210_v1 = vmul.f32 0.0009676536, %v8916_v43  ;;  %v8941_v45 = vmul.f32 3.140625, %v8928_v50  ;;  %v2275_v31 = vfloor.f32 %v2211_v58 }
 0x12b   : > { %14498 = vst [vmem:[#allocation77_spill] sm:$0xff] %v8935_v40  ;;  %v1634_v5 = vmul.f32 %v1570_v44, %v8383_v27  ;;  %v1971_v33 = vadd.f32 -0.16666667, %v1907_v6  ;;  %v1146_v39 = vsub.f32 %v8897_v8, %v1082_v9  ;;  %v1507_v11 = vmul.f32 %v1443_v30, %v8387_v28 }
 0x12c   : > { %v2098_v14 = vmul.f32 %v2034_v29, %v8400_v41  ;;  %v2546_v23 = vsub.f32 1.0, %v2482_v34  ;;  %v2547_v2 = vsub.f32 1.0, %v2483_v24  ;;  %v2402_v18 = vsub.f32 %v8337_v35, %v2338_v49 }
 0x12d   : > { %v1698_v4 = vadd.f32 -0.0001984127, %v1634_v5  ;;  %v2035_v26 = vmul.f32 %v1971_v33, %v8431_v3  ;;  %v1571_v56 = vadd.f32 2.7557319e-06, %v1507_v11  ;;  %v2339_v20 = vmul.f32 2.0, %v2275_v31 }
 0x12e   : > { %v2162_v61 = vadd.f32 %v2098_v14, %v8400_v41  ;;  %v1147_v48 = vsub.f32 %v8903_v52, %v8941_v45  ;;  %v8953_v58 = vmul.f32 0.0009676536, %v8928_v50  ;;  %v2324_v9 = vfloor.f32 %v8550_v17 }
 0x12f   : > { %v1762_v8 = vmul.f32 %v1698_v4, %v8383_v27  ;;  %v2099_v24 = vmul.f32 %v2035_v26, %v8402_v42  ;;  %v8958_v35 = vsub.f32 %v1146_v39, %v1210_v1  ;;  %v1635_v41 = vmul.f32 %v1571_v56, %v8387_v28  ;;  %v14502_v26 = vld [vmem:[#allocation31_spill] sm:$0xff] }
 0x130   : > { %v2610_v34 = vmul.f32 %v2546_v23, %v2162_v61  ;;  %v2466_v44 = vmul.f32 2.0, %v2402_v18  ;;  %v2388_v49 = vmul.f32 2.0, %v2324_v9  ;;  %v2325_v29 = vfloor.f32 %v8573_v16  ;;  %v14500_v23 = vld [vmem:[#allocation19_spill] sm:$0xff]  ;;  %v14501_v61 = vld [vmem:[#allocation22_spill] sm:$0xff] }
 0x131   : > { %14499 = vst [vmem:[#allocation78_spill] sm:$0xff] %v8958_v35  ;;  %v1826_v3 = vadd.f32 0.008333334, %v1762_v8  ;;  %v2163_v6 = vadd.f32 %v2099_v24, %v8402_v42  ;;  %v1699_v30 = vadd.f32 -0.0001984127, %v1635_v41  ;;  %v2403_v5 = vsub.f32 %v8339_v36, %v2339_v20  ;;  %v14503_v8 = vld [vmem:[#allocation55_spill] sm:$0xff] }
 0x132   : > { %2713 = vmatpush.msra.mxu0 %v2610_v34  ;;  %v1412_v17 = vmul.f32 1.6059044e-10, %v8547_v25  ;;  %v2196_v1 = vadd.f32 %v8686_v10, %v8513_v54  ;;  %v2452_v14 = vsub.f32 %v8478_v51, %v2388_v49  ;;  %v2389_v33 = vmul.f32 2.0, %v2325_v29  ;;  %v14504_v10 = vld [vmem:[#allocation21_spill] sm:$0xff] }
 0x133   : > { %v1890_v31 = vmul.f32 %v1826_v3, %v8383_v27  ;;  %v2611_v39 = vmul.f32 %v2547_v2, %v2163_v6  ;;  %v1763_v11 = vmul.f32 %v1699_v30, %v8387_v28  ;;  %v2244_v4 = vmul.f32 0.5, %v14500_v23  ;;  %v14505_v30 = vld [vmem:[#allocation8_spill] sm:$0xff] }
 0x134   : > { %v1476_v16 = vadd.f32 -2.5052108e-08, %v1412_v17  ;;  %v2516_v18 = vmul.f32 2.0, %v2452_v14  ;;  %v2453_v36 = vsub.f32 %v14501_v61, %v2389_v33  ;;  %v1413_v56 = vmul.f32 1.6059044e-10, %v14502_v26 }
 0x135   : > { %v1954_v42 = vadd.f32 -0.16666667, %v1890_v31  ;;  %2742 = vmatpush.msra.mxu1 %v2611_v39  ;;  %v1827_v20 = vadd.f32 0.008333334, %v1763_v11  ;;  %v2197_v54 = vadd.f32 %v14503_v8, %v8516_v7  ;;  %v2245_v2 = vmul.f32 0.5, %v14504_v10  ;;  %v14506_v8 = vld [vmem:[#allocation18_spill] sm:$0xff] }
 0x136   : > { %v1540_v51 = vmul.f32 %v1476_v16, %v8547_v25  ;;  %v2580_v34 = vsub.f32 1.0, %v2516_v18  ;;  %v2517_v24 = vmul.f32 2.0, %v2453_v36  ;;  %v1477_v41 = vadd.f32 -2.5052108e-08, %v1413_v56  ;;  %v8990_v56 = vld [vmem:[%s13854_s2] sm:$0xff] }
 0x137   : > { %v2018_v9 = vmul.f32 %v1954_v42, %v8383_v27  ;;  %v2530_v3 = vsub.f32 1.0, %v2466_v44  ;;  %v1891_v49 = vmul.f32 %v1827_v20, %v8387_v28  ;;  %v2308_v6 = vfloor.f32 %v2244_v4  ;;  %v2663_v27 = vld [vmem:[%s13855_s3 + $0x8] sm:$0xff] }
 0x138   : > { %v1604_v29 = vadd.f32 2.7557319e-06, %v1540_v51  ;;  %v2644_v31 = vmul.f32 %v2580_v34, %v2196_v1  ;;  %v2581_v14 = vsub.f32 1.0, %v2517_v24  ;;  %v1541_v7 = vmul.f32 %v1477_v41, %v14502_v26  ;;  %v14507_v51 = vld [vmem:[#allocation10_spill] sm:$0xff] }
 0x139   : > { %v2082_v17 = vmul.f32 %v2018_v9, %v14505_v30  ;;  %v1955_v33 = vadd.f32 -0.16666667, %v1891_v49  ;;  %v2467_v39 = vmul.f32 2.0, %v2403_v5  ;;  %v2309_v16 = vfloor.f32 %v2245_v2  ;;  %v14508_v2 = vld [vmem:[#allocation9_spill] sm:$0xff] }
 0x13a   : > { %v1668_v11 = vmul.f32 %v1604_v29, %v8547_v25  ;;  %2769 = vmatpush.msra.mxu2 %v2644_v31  ;;  %v2645_v42 = vmul.f32 %v2581_v14, %v2197_v54  ;;  %v1605_v4 = vadd.f32 2.7557319e-06, %v1541_v7  ;;  %v2372_v61 = vmul.f32 2.0, %v2308_v6  ;;  %v14509_v6 = vld [vmem:[#allocation20_spill] sm:$0xff] }
 0x13b   : > { %v2146_v44 = vadd.f32 %v2082_v17, %v14505_v30  ;;  %v2019_v18 = vmul.f32 %v1955_v33, %v8387_v28  ;;  %v8072_v36 = vmov 0   ;;  %v1396_v54 = vmul.f32 1.6059044e-10, %v14506_v8  ;;  %v8998_v17 = vpop.f32.mrf.mxu2  ;;  %v14510_v33 = vld [vmem:[#allocation11_spill] sm:$0xff] }
 0x13c   : > { %v1732_v1 = vadd.f32 -0.0001984127, %v1668_v11  ;;  %7988 = vset.pattern.permute.xlu1 %v8072_v36  ;;  %7987 = vset.pattern.permute.xlu0 %v8072_v36  ;;  %v1669_v20 = vmul.f32 %v1605_v4, %v14502_v26  ;;  %v2228_v28 = vmul.f32 0.5, %v14507_v51  ;;  %v2531_v34 = vsub.f32 1.0, %v2467_v39 }
 0x13d   : > { %v2594_v5 = vmul.f32 %v2530_v3, %v2146_v44  ;;  %2798 = vmatpush.msra.mxu3 %v2645_v42  ;;  %2673 = vperm.xlu1 %7988, %v2663_v27   ;;  %v2083_v9 = vmul.f32 %v2019_v18, %v14508_v2  ;;  %v2373_v41 = vmul.f32 2.0, %v2309_v16  ;;  %v1460_v49 = vadd.f32 -2.5052108e-08, %v1396_v54 }
 0x13e   : > { %v1796_v24 = vmul.f32 %v1732_v1, %v8547_v25  ;;  %7989 = vset.pattern.permute.xlu2 %v8072_v36  ;;  %v1733_v3 = vadd.f32 -0.0001984127, %v1669_v20  ;;  %v2292_v29 = vfloor.f32 %v2228_v28  ;;  %v1397_v30 = vmul.f32 1.6059044e-10, %v14509_v6 }
 0x13f   : > { %2714 = vmatpush.msra.mxu0 %v2594_v5  ;;  %v2147_v31 = vadd.f32 %v2083_v9, %v14508_v2  ;;  %v2436_v7 = vsub.f32 %v14500_v23, %v2372_v61  ;;  %v2229_v39 = vmul.f32 0.5, %v14510_v33  ;;  %v1524_v16 = vmul.f32 %v1460_v49, %v14506_v8 }
 0x140   : > { %7799 = vmatmul.msk.f32.vlgmr.msra.gmra.mxu0 %vm2686_vm2, %v8990_v56  ;;  %v1860_v14 = vadd.f32 0.008333334, %v1796_v24  ;;  %v1797_v11 = vmul.f32 %v1733_v3, %v14502_v26  ;;  %v2356_v27 = vmul.f32 2.0, %v2292_v29  ;;  %v1461_v44 = vadd.f32 -2.5052108e-08, %v1397_v30 }
 0x141   : > { %v2595_v42 = vmul.f32 %v2531_v34, %v2147_v31  ;;  %v2293_v18 = vfloor.f32 %v2229_v39  ;;  %v892_v1 = vmul.f32 0.31830987, %v8998_v17  ;;  %v2437_v5 = vsub.f32 %v14504_v10, %v2373_v41  ;;  %v9026_v41 = vpop.f32.mrf.mxu3  ;;  %v14515_v31 = vld [vmem:[#allocation25_spill] sm:$0xff] }
 0x142   : > { %v1924_v4 = vmul.f32 %v1860_v14, %v8547_v25  ;;  %v1861_v36 = vadd.f32 0.008333334, %v1797_v11  ;;  %v1588_v20 = vadd.f32 2.7557319e-06, %v1524_v16  ;;  %v1525_v23 = vmul.f32 %v1461_v44, %v14509_v6 }
 0x143   : > { %v9013_v61 = vmul.f32 %v8926_v55, %v8926_v55  ;;  %v9019_v54 = vsub.f32 %v1147_v48, %v8953_v58  ;;  %2743 = vmatpush.msra.mxu1 %v2595_v42  ;;  %v2420_v2 = vsub.f32 %v14507_v51, %v2356_v27  ;;  %v2357_v24 = vmul.f32 2.0, %v2293_v18  ;;  %v14517_v18 = vld [vmem:[#allocation15_spill] sm:$0xff] }
 0x144   : > { %v1988_v28 = vadd.f32 -0.16666667, %v1924_v4  ;;  %7803 = vmatmul.msk.f32.vlgmr.msra.gmra.mxu1 %vm2686_vm2, %v8990_v56  ;;  %v1925_v10 = vmul.f32 %v1861_v36, %v14502_v26  ;;  %v1652_v9 = vmul.f32 %v1588_v20, %v14506_v8  ;;  %v1589_v34 = vadd.f32 2.7557319e-06, %v1525_v23  ;;  %v14518_v36 = vld [vmem:[#allocation27_spill] sm:$0xff] }
 0x145   : > { %14511 = vst [vmem:[#allocation19_spill] sm:$0xff] %v9013_v61  ;;  %v9030_v52 = vmul.f32 %v8958_v35, %v8958_v35  ;;  %v2500_v48 = vmul.f32 2.0, %v2436_v7  ;;  %v956_v58 = vadd.f32 0.5, %v892_v1  ;;  %v2501_v3 = vmul.f32 2.0, %v2437_v5 }
 0x146   : > { %14512 = vst [vmem:[#allocation22_spill] sm:$0xff] %v9019_v54  ;;  %v2052_v45 = vmul.f32 %v1988_v28, %v8547_v25  ;;  %v1989_v51 = vadd.f32 -0.16666667, %v1925_v10  ;;  %v1716_v49 = vadd.f32 -0.0001984127, %v1652_v9  ;;  %v1653_v29 = vmul.f32 %v1589_v34, %v14509_v6 }
 0x147   : > { %14513 = vst [vmem:[#allocation31_spill] sm:$0xff] %v9030_v52  ;;  %v9036_v30 = vmul.f32 %v9019_v54, %v9019_v54  ;;  %v9039_v39 = vmul.f32 2.0, %v2420_v2  ;;  %v893_v11 = vmul.f32 0.31830987, %v9026_v41  ;;  %v2421_v27 = vsub.f32 %v14510_v33, %v2357_v24  ;;  %v2662_v33 = vld [vmem:[%s13855_s3] sm:$0xff] }
 0x148   : > { %v2116_v14 = vmul.f32 %v2052_v45, %v14515_v31  ;;  %v2053_v16 = vmul.f32 %v1989_v51, %v14502_v26  ;;  %v1780_v25 = vmul.f32 %v1716_v49, %v14506_v8  ;;  %v1717_v7 = vadd.f32 -0.0001984127, %v1653_v29  ;;  %v9054_v26 = vld [vmem:[%s13854_s2 + $0x8] sm:$0xff]  ;;  %2668 = vperm.xlu1 %7988, %v2662_v33  }
 0x149   : > { %14514 = vst [vmem:[#allocation55_spill] sm:$0xff] %v9036_v30  ;;  %v2564_v42 = vsub.f32 1.0, %v2500_v48  ;;  %v9046_v4 = vfloor.f32 %v956_v58  ;;  %v1380_v1 = vmul.f32 1.6059044e-10, %v14517_v18  ;;  %v2565_v20 = vsub.f32 1.0, %v2501_v3  ;;  %7800 = vmatmul.msk.f32.gmra.mxu0 %vm2686_vm2, %v9054_v26  ;;  %v14519_v49 = vld [vmem:[#allocation6_spill] sm:$0xff] }
 0x14a   : > { %v2180_v44 = vadd.f32 %v2116_v14, %v14515_v31  ;;  %v2117_v5 = vmul.f32 %v2053_v16, %v14518_v36  ;;  %v1844_v23 = vadd.f32 0.008333334, %v1780_v25  ;;  %v1781_v28 = vmul.f32 %v1717_v7, %v14509_v6  ;;  %v14520_v31 = vld [vmem:[#allocation16_spill] sm:$0xff] }
 0x14b   : > { %14516 = vst [vmem:[#allocation21_spill] sm:$0xff] %v9046_v4  ;;  %v2548_v10 = vsub.f32 1.0, %v9039_v39  ;;  %v957_v9 = vadd.f32 0.5, %v893_v11  ;;  %v1444_v34 = vadd.f32 -2.5052108e-08, %v1380_v1  ;;  %v2485_v58 = vmul.f32 2.0, %v2421_v27  ;;  %v9070_v39 = vpop.f32.mrf.mxu0 }
 0x14c   : > { %v2628_v2 = vmul.f32 %v2564_v42, %v2180_v44  ;;  %v2181_v24 = vadd.f32 %v2117_v5, %v14518_v36  ;;  %v1908_v45 = vmul.f32 %v1844_v23, %v14506_v8  ;;  %v1845_v48 = vadd.f32 0.008333334, %v1781_v28  ;;  %7804 = vmatmul.msk.f32.gmra.mxu1 %vm2686_vm2, %v9054_v26  ;;  %v14521_v1 = vld [vmem:[#allocation7_spill] sm:$0xff]  ;;  %v9075_v5 = vpop.f32.mrf.mxu1 }
 0x14d   : > { %v1084_v51 = vmul.f32 3.140625, %v9046_v4  ;;  %v1508_v3 = vmul.f32 %v1444_v34, %v14517_v18  ;;  %v2212_v29 = vmul.f32 0.5, %v14519_v49  ;;  %v1381_v14 = vmul.f32 1.6059044e-10, %v14520_v31 }
 0x14e   : > { %2770 = vmatpush.msra.mxu2 %v2628_v2  ;;  %v2629_v11 = vmul.f32 %v2565_v20, %v2181_v24  ;;  %v1972_v16 = vadd.f32 -0.16666667, %v1908_v45  ;;  %v1909_v25 = vmul.f32 %v1845_v48, %v14509_v6  ;;  %v1212_v7 = vmul.f32 0.0009676536, %v9046_v4  ;;  %v14523_v48 = vld [vmem:[#allocation14_spill] sm:$0xff] }
 0x14f   : > { %v1572_v27 = vadd.f32 2.7557319e-06, %v1508_v3  ;;  %v2276_v44 = vfloor.f32 %v2212_v29  ;;  %v1445_v42 = vadd.f32 -2.5052108e-08, %v1381_v14  ;;  %v2213_v36 = vmul.f32 0.5, %v14521_v1 }
 0x150   : > { %2799 = vmatpush.msra.mxu3 %v2629_v11  ;;  %v2036_v23 = vmul.f32 %v1972_v16, %v14506_v8  ;;  %v1973_v28 = vadd.f32 -0.16666667, %v1909_v25  ;;  %v9078_v33 = vfloor.f32 %v957_v9  ;;  %v906_v20 = vmul.f32 0.31830987, %v9070_v39 }
 0x151   : > { %v1636_v2 = vmul.f32 %v1572_v27, %v14517_v18  ;;  %v2340_v34 = vmul.f32 2.0, %v2276_v44  ;;  %v1509_v24 = vmul.f32 %v1445_v42, %v14520_v31  ;;  %v2277_v45 = vfloor.f32 %v2213_v36 }
 0x152   : > { %14522 = vst [vmem:[#allocation8_spill] sm:$0xff] %v9078_v33  ;;  %v2100_v3 = vmul.f32 %v2036_v23, %v14523_v48  ;;  %v2037_v29 = vmul.f32 %v1973_v28, %v14509_v6  ;;  %v970_v14 = vadd.f32 0.5, %v906_v20  ;;  %v907_v11 = vmul.f32 0.31830987, %v9075_v5  ;;  %v9094_v20 = vpop.f32.mrf.mxu2 }
 0x153   : > { %v1148_v8 = vsub.f32 %v8998_v17, %v1084_v51  ;;  %v1700_v16 = vadd.f32 -0.0001984127, %v1636_v2  ;;  %v1573_v9 = vadd.f32 2.7557319e-06, %v1509_v24  ;;  %v2341_v25 = vmul.f32 2.0, %v2277_v45  ;;  %v9099_v45 = vpop.f32.mrf.mxu3 }
 0x154   : > { %v2164_v55 = vadd.f32 %v2100_v3, %v14523_v48  ;;  %v2101_v27 = vmul.f32 %v2037_v29, %v14524_v37  ;;  %v9089_v44 = vfloor.f32 %v970_v14  ;;  %v971_v42 = vadd.f32 0.5, %v907_v11 }
 0x155   : > { %v2549_v36 = vsub.f32 1.0, %v2485_v58  ;;  %v1085_v23 = vmul.f32 3.140625, %v9078_v33  ;;  %v1764_v6 = vmul.f32 %v1700_v16, %v14517_v18  ;;  %v1637_v28 = vmul.f32 %v1573_v9, %v14520_v31 }
 0x156   : > { %14525 = vst [vmem:[#allocation18_spill] sm:$0xff] %v9089_v44  ;;  %v2612_v17 = vmul.f32 %v2548_v10, %v2164_v55  ;;  %v2165_v51 = vadd.f32 %v2101_v27, %v14524_v37  ;;  %v2404_v2 = vsub.f32 %v14519_v49, %v2340_v34  ;;  %v2405_v24 = vsub.f32 %v14521_v1, %v2341_v25  ;;  %v660_v1 = vpop.f32.mrf.mxu0 }
 0x157   : > { %v9101_v48 = vsub.f32 %v1148_v8, %v1212_v7  ;;  %v1828_v58 = vadd.f32 0.008333334, %v1764_v6  ;;  %v1701_v3 = vadd.f32 -0.0001984127, %v1637_v28  ;;  %v1098_v29 = vmul.f32 3.140625, %v9089_v44 }
 0x158   : > { %2771 = vmatpush.msra.mxu2 %v2612_v17  ;;  %v2613_v14 = vmul.f32 %v2549_v36, %v2165_v51  ;;  %v1213_v11 = vmul.f32 0.0009676536, %v9078_v33  ;;  %v9105_v16 = vfloor.f32 %v971_v42  ;;  %v908_v37 = vmul.f32 0.31830987, %v9094_v20 }
 0x159   : > { %14526 = vst [vmem:[#allocation10_spill] sm:$0xff] %v9101_v48  ;;  %v1149_v55 = vsub.f32 %v9026_v41, %v1085_v23  ;;  %v1892_v10 = vmul.f32 %v1828_v58, %v14517_v18  ;;  %v1765_v49 = vmul.f32 %v1701_v3, %v14520_v31  ;;  %v909_v7 = vmul.f32 0.31830987, %v9099_v45 }
 0x15a   : > { %14527 = vst [vmem:[#allocation9_spill] sm:$0xff] %v9105_v16  ;;  %2800 = vmatpush.msra.mxu3 %v2613_v14  ;;  %v2468_v34 = vmul.f32 2.0, %v2404_v2  ;;  %v2469_v8 = vmul.f32 2.0, %v2405_v24  ;;  %v1226_v9 = vmul.f32 0.0009676536, %v9089_v44  ;;  %v972_v25 = vadd.f32 0.5, %v908_v37 }
 0x15b   : > { %v1956_v27 = vadd.f32 -0.16666667, %v1892_v10  ;;  %v1829_v42 = vadd.f32 0.008333334, %v1765_v49  ;;  %v1162_v36 = vsub.f32 %v9070_v39, %v1098_v29  ;;  %v973_v6 = vadd.f32 0.5, %v909_v7  ;;  %v14532_v37 = vld [vmem:[#allocation12_spill] sm:$0xff] }
 0x15c   : > { %v9116_v41 = vmul.f32 %v9101_v48, %v9101_v48  ;;  %v1099_v23 = vmul.f32 3.140625, %v9105_v16  ;;  %v9119_v28 = vfloor.f32 %v972_v25  ;;  %v922_v17 = vmul.f32 0.31830987, %v660_v1 }
 0x15d   : > { %v9121_v51 = vsub.f32 %v1149_v55, %v1213_v11  ;;  %v2020_v2 = vmul.f32 %v1956_v27, %v14517_v18  ;;  %v1893_v24 = vmul.f32 %v1829_v42, %v14520_v31  ;;  %v9125_v58 = vfloor.f32 %v973_v6  ;;  %v689_v27 = vpop.f32.mrf.mxu1  ;;  %v14535_v42 = vld [vmem:[#allocation45_spill] sm:$0xff] }
 0x15e   : > { %14528 = vst [vmem:[#allocation20_spill] sm:$0xff] %v9116_v41  ;;  %v2532_v3 = vsub.f32 1.0, %v2468_v34  ;;  %v2533_v39 = vsub.f32 1.0, %v2469_v8  ;;  %v1100_v29 = vmul.f32 3.140625, %v9119_v28  ;;  %v986_v14 = vadd.f32 0.5, %v922_v17 }
 0x15f   : > { %14529 = vst [vmem:[#allocation11_spill] sm:$0xff] %v9119_v28  ;;  %v2084_v10 = vmul.f32 %v2020_v2, %v14532_v37  ;;  %v1957_v49 = vadd.f32 -0.16666667, %v1893_v24  ;;  %v9129_v7 = vsub.f32 %v1162_v36, %v1226_v9  ;;  %v1101_v25 = vmul.f32 3.140625, %v9125_v58 }
 0x160   : > { %14530 = vst [vmem:[#allocation25_spill] sm:$0xff] %v9121_v51  ;;  %v1163_v11 = vsub.f32 %v9075_v5, %v1099_v23  ;;  %v1227_v18 = vmul.f32 0.0009676536, %v9105_v16  ;;  %v9134_v55 = vfloor.f32 %v986_v14  ;;  %v1398_v34 = vmul.f32 1.6059044e-10, %v14535_v42  ;;  %v14536_v14 = vld [vmem:[#allocation13_spill] sm:$0xff] }
 0x161   : > { %14531 = vst [vmem:[#allocation15_spill] sm:$0xff] %v9125_v58  ;;  %v2148_v8 = vadd.f32 %v2084_v10, %v14532_v37  ;;  %v2021_v6 = vmul.f32 %v1957_v49, %v14520_v31  ;;  %v1164_v17 = vsub.f32 %v9094_v20, %v1100_v29  ;;  %v923_v2 = vmul.f32 0.31830987, %v689_v27  ;;  %v14537_v10 = vld [vmem:[#allocation59_spill] sm:$0xff]  ;;  %v14538_v49 = vld [vmem:[#allocation60_spill] sm:$0xff] }
 0x162   : > { %14533 = vst [vmem:[#allocation27_spill] sm:$0xff] %v9129_v7  ;;  %v1228_v9 = vmul.f32 0.0009676536, %v9119_v28  ;;  %v1165_v36 = vsub.f32 %v9099_v45, %v1101_v25  ;;  %v1114_v5 = vmul.f32 3.140625, %v9134_v55  ;;  %v1242_v23 = vmul.f32 0.0009676536, %v9134_v55 }
 0x163   : > { %14534 = vst [vmem:[#allocation6_spill] sm:$0xff] %v9134_v55  ;;  %v2596_v24 = vmul.f32 %v2532_v3, %v2148_v8  ;;  %v2085_v48 = vmul.f32 %v2021_v6, %v14536_v14  ;;  %v1229_v61 = vmul.f32 0.0009676536, %v9125_v58  ;;  %v987_v40 = vadd.f32 0.5, %v923_v2  ;;  %v9158_v3 = vld [vmem:[%s13854_s2 + $0x10] sm:$0xff]  ;;  %v718_v8 = vpop.f32.mrf.mxu2  ;;  %v9242_v28 = vld [vmem:[%s13854_s2 + $0x18] sm:$0xff] }
 0x164   : > { %v1178_v37 = vsub.f32 %v660_v1, %v1114_v5  ;;  %v1414_v31 = vmul.f32 1.6059044e-10, %v14537_v10  ;;  %v1415_v20 = vmul.f32 1.6059044e-10, %v14538_v49  ;;  %v1462_v29 = vadd.f32 -2.5052108e-08, %v1398_v34  ;;  %7801 = vmatmul.msk.f32.gmra.mxu0 %vm2686_vm2, %v9158_v3  ;;  %7805 = vmatmul.msk.f32.gmra.mxu1 %vm2686_vm2, %v9158_v3 }
 0x165   : > { %2772 = vmatpush.msra.mxu2 %v2596_v24  ;;  %v2149_v33 = vadd.f32 %v2085_v48, %v14536_v14  ;;  %v9149_v45 = vsub.f32 %v1163_v11, %v1227_v18  ;;  %v9151_v25 = vsub.f32 %v1164_v17, %v1228_v9  ;;  %v9153_v4 = vfloor.f32 %v987_v40  ;;  %v2665_v1 = vld [vmem:[%s13855_s3 + $0x18] sm:$0xff]  ;;  %v9237_v58 = vpop.f32.mrf.mxu1 }
 0x166   : > { %7807 = vmatmul.msk.f32.vlgmr.msra.gmra.mxu2 %vm2686_vm2, %v8990_v56  ;;  %v9165_v48 = vsub.f32 %v1165_v36, %v1229_v61  ;;  %v9167_v11 = vsub.f32 %v1178_v37, %v1242_v23  ;;  %v924_v40 = vmul.f32 0.31830987, %v718_v8  ;;  %v1478_v18 = vadd.f32 -2.5052108e-08, %v1414_v31  ;;  %2683 = vperm.xlu0 %7987, %v2665_v1  }
 0x167   : > { %14539 = vst [vmem:[#allocation16_spill] sm:$0xff] %v9149_v45  ;;  %v2597_v34 = vmul.f32 %v2533_v39, %v2149_v33  ;;  %v1115_v6 = vmul.f32 3.140625, %v9153_v4  ;;  %v1243_v17 = vmul.f32 0.0009676536, %v9153_v4  ;;  %v1479_v2 = vadd.f32 -2.5052108e-08, %v1415_v20  ;;  %v747_v20 = vpop.f32.mrf.mxu3 }
 0x168   : > { %14540 = vst [vmem:[#allocation7_spill] sm:$0xff] %v9151_v25  ;;  %v9177_v61 = vmul.f32 %v9121_v51, %v9121_v51  ;;  %v9181_v9 = vmul.f32 %v9167_v11, %v9167_v11  ;;  %v988_v36 = vadd.f32 0.5, %v924_v40  ;;  %v1526_v33 = vmul.f32 %v1462_v29, %v14535_v42 }
 0x169   : > { %14541 = vst [vmem:[#allocation14_spill] sm:$0xff] %v9153_v4  ;;  %2801 = vmatpush.msra.mxu3 %v2597_v34  ;;  %v9186_v39 = vmul.f32 %v9129_v7, %v9129_v7  ;;  %v9190_v5 = vmul.f32 %v9149_v45, %v9149_v45  ;;  %v9193_v23 = vmul.f32 0.5, %v9134_v55  ;;  %v1179_v24 = vsub.f32 %v689_v27, %v1115_v6  ;;  %v14554_v45 = vld [vmem:[#allocation43_spill] sm:$0xff] }
 0x16a   : > { %14542 = vst [vmem:[#allocation17_spill] sm:$0xff] %v9165_v48  ;;  %7811 = vmatmul.msk.f32.vlgmr.msra.gmra.mxu3 %vm2686_vm2, %v8990_v56  ;;  %v9199_v14 = vmul.f32 %v9151_v25, %v9151_v25  ;;  %v1434_v37 = vmul.f32 1.6059044e-10, %v9181_v9  ;;  %v9202_v31 = vfloor.f32 %v988_v36  ;;  %v1542_v29 = vmul.f32 %v1478_v18, %v14537_v10 }
 0x16b   : > { %14543 = vst [vmem:[#allocation12_spill] sm:$0xff] %v9177_v61  ;;  %v9207_v1 = vmul.f32 %v9165_v48, %v9165_v48  ;;  %v9209_v40 = vsub.f32 %v1179_v24, %v1243_v17  ;;  %v925_v27 = vmul.f32 0.31830987, %v747_v20  ;;  %v1543_v56 = vmul.f32 %v1479_v2, %v14538_v49  ;;  %v14551_v48 = vld [vmem:[#allocation34_spill] sm:$0xff]  ;;  %v14552_v17 = vld [vmem:[#allocation48_spill] sm:$0xff] }
 0x16c   : > { %14544 = vst [vmem:[#allocation45_spill] sm:$0xff] %v9186_v39  ;;  %v1498_v34 = vadd.f32 -2.5052108e-08, %v1434_v37  ;;  %v9213_v6 = vmul.f32 0.5, %v9153_v4  ;;  %v1116_v51 = vmul.f32 3.140625, %v9202_v31  ;;  %v9223_v61 = vmul.f32 0.5, %v14551_v48  ;;  %7802 = vmatmul.msk.f32.gmra.mxu0 %vm2686_vm2, %v9242_v28  ;;  %7806 = vmatmul.msk.f32.gmra.mxu1 %vm2686_vm2, %v9242_v28 }
 0x16d   : > { %14545 = vst [vmem:[#allocation13_spill] sm:$0xff] %v9190_v5  ;;  %v9216_v36 = vadd.f32 2.7557319e-06, %v1526_v33  ;;  %v9220_v18 = vmul.f32 %v9209_v40, %v9209_v40  ;;  %v989_v25 = vadd.f32 0.5, %v925_v27  ;;  %v9226_v24 = vmul.f32 1.6059044e-10, %v14552_v17  ;;  %v9235_v27 = vpop.f32.mrf.mxu0 }
 0x16e   : > { %14546 = vst [vmem:[#allocation59_spill] sm:$0xff] %v9193_v23  ;;  %v1562_v2 = vmul.f32 %v1498_v34, %v9181_v9  ;;  %7808 = vmatmul.msk.f32.gmra.mxu2 %vm2686_vm2, %v9054_v26  ;;  %v1180_v37 = vsub.f32 %v718_v8, %v1116_v51  ;;  %v1244_v33 = vmul.f32 0.0009676536, %v9202_v31  ;;  %v1606_v0 = vadd.f32 2.7557319e-06, %v1542_v29  ;;  %v14553_v34 = vld [vmem:[#allocation63_spill] sm:$0xff] }
 0x16f   : > { %14547 = vst [vmem:[#allocation60_spill] sm:$0xff] %v9199_v14  ;;  %v1435_v41 = vmul.f32 1.6059044e-10, %v9220_v18  ;;  %v2326_v14 = vfloor.f32 %v14553_v34  ;;  %v2664_v51 = vld [vmem:[%s13855_s3 + $0x10] sm:$0xff]  ;;  %v1607_v8 = vadd.f32 2.7557319e-06, %v1543_v56 }
 0x170   : > { %14548 = vst [vmem:[#allocation79_spill] sm:$0xff] %v9202_v31  ;;  %v1626_v29 = vadd.f32 2.7557319e-06, %v1562_v2  ;;  %v9248_v54 = vsub.f32 %v1180_v37, %v1244_v33  ;;  %v879_v63 = vmul.f32 0.31830987, %v9237_v58  ;;  %2678 = vperm.xlu0 %7987, %v2664_v51   ;;  %v2246_v22 = vmul.f32 0.5, %v14554_v45 }
 0x171   : > { %14549 = vst [vmem:[#allocation80_spill] sm:$0xff] %v9207_v1  ;;  %v9233_v1 = vfloor.f32 %v989_v25  ;;  %v878_v25 = vmul.f32 0.31830987, %v9235_v27  ;;  %v1499_v35 = vadd.f32 -2.5052108e-08, %v1435_v41  ;;  %v14555_v56 = vld [vmem:[#allocation44_spill] sm:$0xff] }
 0x172   : > { %14550 = vst [vmem:[#allocation81_spill] sm:$0xff] %v9213_v6  ;;  %v9259_v2 = vmul.f32 0.5, %v14555_v56  ;;  %v1690_v37 = vmul.f32 %v1626_v29, %v9181_v9  ;;  %7812 = vmatmul.msk.f32.gmra.mxu3 %vm2686_vm2, %v9054_v26  ;;  %v9266_v33 = vmul.f32 %v9248_v54, %v9248_v54  ;;  %v943_v4 = vadd.f32 0.5, %v879_v63  ;;  %v14558_v5 = vld [vmem:[#allocation52_spill] sm:$0xff] }
 0x173   : > { %v1117_v34 = vmul.f32 3.140625, %v9233_v1  ;;  %v1245_v50 = vmul.f32 0.0009676536, %v9233_v1  ;;  %v942_v41 = vadd.f32 0.5, %v878_v25  ;;  %v1563_v7 = vmul.f32 %v1499_v35, %v9220_v18  ;;  %v14559_v39 = vld [vmem:[#allocation64_spill] sm:$0xff] }
 0x174   : > { %v2390_v55 = vmul.f32 2.0, %v2326_v14  ;;  %v1754_v6 = vadd.f32 -0.0001984127, %v1690_v37  ;;  %v1436_v23 = vmul.f32 1.6059044e-10, %v9266_v33  ;;  %v9272_v29 = vmul.f32 0.5, %v9202_v31 }
 0x175   : > { %v1181_v51 = vsub.f32 %v747_v20, %v1117_v34  ;;  %v9274_v16 = vfloor.f32 %v942_v41  ;;  %v1627_v44 = vadd.f32 2.7557319e-06, %v1563_v7  ;;  %v2327_v25 = vfloor.f32 %v14559_v39 }
 0x176   : > { %14556 = vst [vmem:[#allocation34_spill] sm:$0xff] %v9272_v29  ;;  %v2454_v30 = vsub.f32 %v14558_v5, %v2390_v55  ;;  %v1818_v35 = vmul.f32 %v1754_v6, %v9181_v9  ;;  %v1500_v20 = vadd.f32 -2.5052108e-08, %v1436_v23  ;;  %7809 = vmatmul.msk.f32.gmra.mxu2 %vm2686_vm2, %v9158_v3  ;;  %v1670_v63 = vmul.f32 %v1606_v0, %v14537_v10 }
 0x177   : > { %14557 = vst [vmem:[#allocation48_spill] sm:$0xff] %v9274_v16  ;;  %v9276_v43 = vsub.f32 %v1181_v51, %v1245_v50  ;;  %v2310_v14 = vfloor.f32 %v2246_v22  ;;  %v1691_v34 = vmul.f32 %v1627_v44, %v9220_v18  ;;  %v9289_v50 = vfloor.f32 %v943_v4 }
 0x178   : > { %v1671_v55 = vmul.f32 %v1607_v8, %v14538_v49  ;;  %v1882_v39 = vadd.f32 0.008333334, %v1818_v35  ;;  %v1564_v5 = vmul.f32 %v1500_v20, %v9266_v33  ;;  %v2198_v23 = vadd.f32 %v8877_v57, %v8734_v38 }
 0x179   : > { %v9287_v7 = vmul.f32 %v9276_v43, %v9276_v43  ;;  %14560 = vst [vmem:[#allocation63_spill] sm:$0xff] %v9289_v50  ;;  %v2518_v6 = vmul.f32 2.0, %v2454_v30  ;;  %v1755_v37 = vadd.f32 -0.0001984127, %v1691_v34  ;;  %v1070_v22 = vmul.f32 3.140625, %v9274_v16  ;;  %v14561_v30 = vld [vmem:[#allocation54_spill] sm:$0xff] }
 0x17a   : > { %v2391_v44 = vmul.f32 2.0, %v2327_v25  ;;  %v1628_v41 = vadd.f32 2.7557319e-06, %v1564_v5  ;;  %v1198_v51 = vmul.f32 0.0009676536, %v9274_v16  ;;  %7813 = vmatmul.msk.f32.gmra.mxu3 %vm2686_vm2, %v9158_v3  ;;  %v2199_v8 = vadd.f32 %v8880_v62, %v8738_v47 }
 0x17b   : > { %v1437_v0 = vmul.f32 1.6059044e-10, %v9287_v7  ;;  %v2582_v4 = vsub.f32 1.0, %v2518_v6  ;;  %v1819_v35 = vmul.f32 %v1755_v37, %v9220_v18  ;;  %v1071_v57 = vmul.f32 3.140625, %v9289_v50 }
 0x17c   : > { %v2455_v20 = vsub.f32 %v14561_v30, %v2391_v44  ;;  %v1946_v34 = vmul.f32 %v1882_v39, %v9181_v9  ;;  %v1692_v25 = vmul.f32 %v1628_v41, %v9266_v33  ;;  %v1199_v5 = vmul.f32 0.0009676536, %v9289_v50 }
 0x17d   : > { %v1501_v38 = vadd.f32 -2.5052108e-08, %v1437_v0  ;;  %v2646_v16 = vmul.f32 %v2582_v4, %v2198_v23  ;;  %v1883_v31 = vadd.f32 0.008333334, %v1819_v35  ;;  %v1134_v29 = vsub.f32 %v9235_v27, %v1070_v22 }
 0x17e   : > { %v2519_v47 = vmul.f32 2.0, %v2455_v20  ;;  %v1756_v62 = vadd.f32 -0.0001984127, %v1692_v25  ;;  %v1734_v37 = vadd.f32 -0.0001984127, %v1670_v63  ;;  %v2374_v0 = vmul.f32 2.0, %v2310_v14  ;;  %7810 = vmatmul.msk.f32.gmra.mxu2 %vm2686_vm2, %v9242_v28 }
 0x17f   : > { %v1565_v6 = vmul.f32 %v1501_v38, %v9287_v7  ;;  %2827 = vmatpush.msrb.mxu0 %v2646_v16  ;;  %v2311_v52 = vfloor.f32 %v9259_v2  ;;  %v1135_v44 = vsub.f32 %v9237_v58, %v1071_v57  ;;  %v1735_v23 = vadd.f32 -0.0001984127, %v1671_v55  ;;  %v9317_v16 = vpop.f32.mrf.mxu2 }
 0x180   : > { %v2583_v41 = vsub.f32 1.0, %v2519_v47  ;;  %v2010_v4 = vadd.f32 -0.16666667, %v1946_v34  ;;  %v1947_v35 = vmul.f32 %v1883_v31, %v9220_v18  ;;  %v1820_v27 = vmul.f32 %v1756_v62, %v9266_v33 }
 0x181   : > { %v1629_v39 = vadd.f32 2.7557319e-06, %v1565_v6  ;;  %v1798_v22 = vmul.f32 %v1734_v37, %v14537_v10  ;;  %v9320_v2 = vsub.f32 %v1134_v29, %v1198_v51  ;;  %v1799_v38 = vmul.f32 %v1735_v23, %v14538_v49 }
 0x182   : > { %v2647_v14 = vmul.f32 %v2583_v41, %v2199_v8  ;;  %v1884_v30 = vadd.f32 0.008333334, %v1820_v27  ;;  %v2438_v55 = vsub.f32 %v14554_v45, %v2374_v0  ;;  %v2375_v57 = vmul.f32 2.0, %v2311_v52  ;;  %7814 = vmatmul.msk.f32.gmra.mxu3 %vm2686_vm2, %v9242_v28 }
 0x183   : > { %v1693_v63 = vmul.f32 %v1629_v39, %v9287_v7  ;;  %14562 = vst [vmem:[#allocation43_spill] sm:$0xff] %v9320_v2  ;;  %v1862_v58 = vadd.f32 0.008333334, %v1798_v22  ;;  %v9326_v20 = vsub.f32 %v1135_v44, %v1199_v5  ;;  %v1863_v34 = vadd.f32 0.008333334, %v1799_v38 }
 0x184   : > { %2856 = vmatpush.msrb.mxu1 %v2647_v14  ;;  %v880_v25 = vmul.f32 0.31830987, %v9317_v16  ;;  %v2074_v29 = vmul.f32 %v2010_v4, %v9181_v9  ;;  %v2011_v51 = vadd.f32 -0.16666667, %v1947_v35  ;;  %v1948_v8 = vmul.f32 %v1884_v30, %v9266_v33  ;;  %v9344_v4 = vpop.f32.mrf.mxu3  ;;  %v14567_v30 = vld [vmem:[#allocation51_spill] sm:$0xff] }
 0x185   : > { %v1757_v31 = vadd.f32 -0.0001984127, %v1693_v63  ;;  %14563 = vst [vmem:[#allocation44_spill] sm:$0xff] %v9326_v20  ;;  %v1926_v6 = vmul.f32 %v1862_v58, %v14537_v10  ;;  %v1927_v52 = vmul.f32 %v1863_v34, %v14538_v49  ;;  %v2439_v47 = vsub.f32 %v14555_v56, %v2375_v57 }
 0x186   : > { %v944_v62 = vadd.f32 0.5, %v880_v25  ;;  %v9336_v5 = vmul.f32 0.5, %v9233_v1  ;;  %v2502_v0 = vmul.f32 2.0, %v2438_v55  ;;  %v1654_v9 = vmul.f32 %v9216_v36, %v14535_v42  ;;  %14564 = vst [vmem:[#allocation52_spill] sm:$0xff] %v9344_v4  ;;  %v14568_v25 = vld [vmem:[#allocation53_spill] sm:$0xff] }
 0x187   : > { %v1821_v45 = vmul.f32 %v1757_v31, %v9287_v7  ;;  %v1990_v37 = vadd.f32 -0.16666667, %v1926_v6  ;;  %v2012_v39 = vadd.f32 -0.16666667, %v1948_v8  ;;  %v9342_v41 = vmul.f32 %v9320_v2, %v9320_v2  ;;  %v14622_v2 = vld [vmem:[#allocation59_spill] sm:$0xff] }
 0x188   : > { %v1991_v23 = vadd.f32 -0.16666667, %v1927_v52  ;;  %v9348_v56 = vmul.f32 %v9326_v20, %v9326_v20  ;;  %v9351_v27 = vfloor.f32 %v944_v62  ;;  %v1718_v22 = vadd.f32 -0.0001984127, %v1654_v9  ;;  %v770_v9 = vpop.f32.mrf.mxu0 }
 0x189   : > { %v1885_v44 = vadd.f32 0.008333334, %v1821_v45  ;;  %v2054_v35 = vmul.f32 %v1990_v37, %v14537_v10  ;;  %v9354_v36 = vmul.f32 %v2074_v29, %v9167_v11  ;;  %v2075_v63 = vmul.f32 %v2011_v51, %v9220_v18 }
 0x18a   : > { %14565 = vst [vmem:[#allocation64_spill] sm:$0xff] %v9348_v56  ;;  %v2055_v14 = vmul.f32 %v1991_v23, %v14538_v49  ;;  %v2503_v38 = vmul.f32 2.0, %v2439_v47  ;;  %v2566_v55 = vsub.f32 1.0, %v2502_v0  ;;  %v881_v57 = vmul.f32 0.31830987, %v9344_v4 }
 0x18b   : > { %14566 = vst [vmem:[#allocation54_spill] sm:$0xff] %v9351_v27  ;;  %v2118_v58 = vmul.f32 %v2054_v35, %v14567_v30  ;;  %v1782_v31 = vmul.f32 %v1718_v22, %v14535_v42  ;;  %v2076_v10 = vmul.f32 %v2012_v39, %v9266_v33  ;;  %v1949_v34 = vmul.f32 %v1885_v44, %v9287_v7  ;;  %v799_v39 = vpop.f32.mrf.mxu1 }
 0x18c   : > { %v2119_v8 = vmul.f32 %v2055_v14, %v14568_v25  ;;  %v2294_v29 = vfloor.f32 %v9223_v61  ;;  %v1072_v49 = vmul.f32 3.140625, %v9351_v27  ;;  %v1463_v6 = vadd.f32 -2.5052108e-08, %v9226_v24 }
 0x18d   : > { %v2182_v18 = vadd.f32 %v2118_v58, %v14567_v30  ;;  %v1846_v51 = vadd.f32 0.008333334, %v1782_v31  ;;  %v9369_v45 = vmul.f32 %v2075_v63, %v9209_v40  ;;  %v2567_v47 = vsub.f32 1.0, %v2503_v38  ;;  %v14569_v38 = vld [vmem:[#allocation35_spill] sm:$0xff] }
 0x18e   : > { %v2183_v52 = vadd.f32 %v2119_v8, %v14568_v25  ;;  %v2358_v33 = vmul.f32 2.0, %v2294_v29  ;;  %v1200_v37 = vmul.f32 0.0009676536, %v9351_v27  ;;  %v945_v0 = vadd.f32 0.5, %v881_v57  ;;  %v14570_v31 = vld [vmem:[#allocation23_spill] sm:$0xff] }
 0x18f   : > { %v2630_v62 = vmul.f32 %v2566_v55, %v2182_v18  ;;  %v1910_v61 = vmul.f32 %v1846_v51, %v14535_v42  ;;  %v9375_v44 = vmul.f32 %v2076_v10, %v9248_v54  ;;  %v2013_v23 = vadd.f32 -0.16666667, %v1949_v34 }
 0x190   : > { %v2631_v24 = vmul.f32 %v2567_v47, %v2183_v52  ;;  %v2422_v35 = vsub.f32 %v14551_v48, %v2358_v33  ;;  %v1136_v22 = vsub.f32 %v9317_v16, %v1072_v49  ;;  %v1527_v14 = vmul.f32 %v1463_v6, %v14552_v17  ;;  %v14572_v49 = vld [vmem:[#allocation32_spill] sm:$0xff]  ;;  %v14573_v6 = vld [vmem:[#allocation39_spill] sm:$0xff] }
 0x191   : > { %2828 = vmatpush.msrb.mxu0 %v2630_v62  ;;  %v1974_v63 = vadd.f32 -0.16666667, %v1910_v61  ;;  %v2231_v30 = vmul.f32 0.5, %v14569_v38  ;;  %v894_v55 = vmul.f32 0.31830987, %v770_v9  ;;  %v2214_v25 = vmul.f32 0.5, %v14570_v31 }
 0x192   : > { %2857 = vmatpush.msrb.mxu1 %v2631_v24  ;;  %v2486_v58 = vmul.f32 2.0, %v2422_v35  ;;  %v895_v57 = vmul.f32 0.31830987, %v799_v39  ;;  %v9382_v10 = vfloor.f32 %v945_v0  ;;  %v1591_v8 = vadd.f32 2.7557319e-06, %v1527_v14 }
 0x193   : > { %v2038_v34 = vmul.f32 %v1974_v63, %v14535_v42  ;;  %v2295_v48 = vfloor.f32 %v2231_v30  ;;  %v2077_v29 = vmul.f32 %v2013_v23, %v9287_v7  ;;  %v958_v16 = vadd.f32 0.5, %v894_v55  ;;  %v14575_v23 = vld [vmem:[#allocation33_spill] sm:$0xff] }
 0x194   : > { %14571 = vst [vmem:[#allocation51_spill] sm:$0xff] %v9382_v10  ;;  %v959_v18 = vadd.f32 0.5, %v895_v57  ;;  %v1382_v51 = vmul.f32 1.6059044e-10, %v14572_v49  ;;  %v2550_v47 = vsub.f32 1.0, %v2486_v58  ;;  %v1655_v33 = vmul.f32 %v1591_v8, %v14552_v17 }
 0x195   : > { %v2102_v52 = vmul.f32 %v2038_v34, %v14573_v6  ;;  %v2359_v62 = vmul.f32 2.0, %v2295_v48  ;;  %v9389_v61 = vfloor.f32 %v958_v16  ;;  %v2278_v42 = vfloor.f32 %v2214_v25 }
 0x196   : > { %v9391_v0 = vfloor.f32 %v959_v18  ;;  %v1446_v24 = vadd.f32 -2.5052108e-08, %v1382_v51  ;;  %v1719_v63 = vadd.f32 -0.0001984127, %v1655_v33  ;;  %v1383_v14 = vmul.f32 1.6059044e-10, %v14575_v23 }
 0x197   : > { %v2166_v35 = vadd.f32 %v2102_v52, %v14573_v6  ;;  %v2423_v7 = vsub.f32 %v14569_v38, %v2359_v62  ;;  %v1086_v30 = vmul.f32 3.140625, %v9389_v61  ;;  %v1214_v58 = vmul.f32 0.0009676536, %v9389_v61  ;;  %v14577_v62 = vld [vmem:[#allocation24_spill] sm:$0xff] }
 0x198   : > { %14574 = vst [vmem:[#allocation53_spill] sm:$0xff] %v9391_v0  ;;  %v1087_v55 = vmul.f32 3.140625, %v9391_v0  ;;  %v1215_v57 = vmul.f32 0.0009676536, %v9391_v0  ;;  %v1783_v8 = vmul.f32 %v1719_v63, %v14552_v17  ;;  %v1510_v25 = vmul.f32 %v1446_v24, %v14572_v49 }
 0x199   : > { %v2614_v34 = vmul.f32 %v2550_v47, %v2166_v35  ;;  %v2487_v48 = vmul.f32 2.0, %v2423_v7  ;;  %v1150_v16 = vsub.f32 %v770_v9, %v1086_v30  ;;  %v2342_v51 = vmul.f32 2.0, %v2278_v42 }
 0x19a   : > { %v1151_v18 = vsub.f32 %v799_v39, %v1087_v55  ;;  %v1447_v38 = vadd.f32 -2.5052108e-08, %v1383_v14  ;;  %v9402_v6 = vsub.f32 %v1136_v22, %v1200_v37  ;;  %v1847_v52 = vadd.f32 0.008333334, %v1783_v8 }
 0x19b   : > { %2829 = vmatpush.msrb.mxu0 %v2614_v34  ;;  %v1574_v33 = vadd.f32 2.7557319e-06, %v1510_v25  ;;  %v2215_v27 = vmul.f32 0.5, %v14577_v62  ;;  %v9406_v20 = vmul.f32 %v2077_v29, %v9276_v43  ;;  %v9409_v47 = vmul.f32 3.140625, %v9382_v10 }
 0x19c   : > { %14576 = vst [vmem:[#allocation35_spill] sm:$0xff] %v9402_v6  ;;  %v2406_v35 = vsub.f32 %v14570_v31, %v2342_v51  ;;  %v1511_v9 = vmul.f32 %v1447_v38, %v14575_v23  ;;  %v1911_v39 = vmul.f32 %v1847_v52, %v14552_v17  ;;  %v2551_v24 = vsub.f32 1.0, %v2487_v48  ;;  %v14581_v38 = vld [vmem:[#allocation66_spill] sm:$0xff]  ;;  %v14582_v52 = vld [vmem:[#allocation47_spill] sm:$0xff]  ;;  %v14619_v6 = vld [vmem:[#allocation73_spill] sm:$0xff] }
 0x19d   : > { %14578 = vst [vmem:[#allocation23_spill] sm:$0xff] %v9409_v47  ;;  %v1638_v37 = vmul.f32 %v1574_v33, %v14572_v49  ;;  %v2279_v22 = vfloor.f32 %v2215_v27  ;;  %v9415_v42 = vsub.f32 %v1150_v16, %v1214_v58  ;;  %v9417_v63 = vsub.f32 %v1151_v18, %v1215_v57  ;;  %v14621_v47 = vld [vmem:[#allocation9_spill] sm:$0xff] }
 0x19e   : > { %v9419_v7 = vmul.f32 2.0, %v2406_v35  ;;  %v1575_v29 = vadd.f32 2.7557319e-06, %v1511_v9  ;;  %v1975_v14 = vadd.f32 -0.16666667, %v1911_v39  ;;  %v2328_v31 = vfloor.f32 %v8831_v53  ;;  %v14583_v35 = vld [vmem:[#allocation46_spill] sm:$0xff] }
 0x19f   : > { %14579 = vst [vmem:[#allocation32_spill] sm:$0xff] %v9415_v42  ;;  %v1702_v30 = vadd.f32 -0.0001984127, %v1638_v37  ;;  %v2343_v55 = vmul.f32 2.0, %v2279_v22  ;;  %v2200_v48 = vadd.f32 %v8886_v21, %v8747_v60  ;;  %v2329_v27 = vfloor.f32 %v8845_v19 }
 0x1a0   : > { %14580 = vst [vmem:[#allocation39_spill] sm:$0xff] %v9417_v63  ;;  %v2534_v34 = vsub.f32 1.0, %v9419_v7  ;;  %v1639_v8 = vmul.f32 %v1575_v29, %v14575_v23  ;;  %v2039_v58 = vmul.f32 %v1975_v14, %v14552_v17  ;;  %v2392_v16 = vmul.f32 2.0, %v2328_v31 }
 0x1a1   : > { %v1766_v57 = vmul.f32 %v1702_v30, %v14572_v49  ;;  %v2407_v25 = vsub.f32 %v14577_v62, %v2343_v55  ;;  %v2393_v51 = vmul.f32 2.0, %v2329_v27  ;;  %v1416_v53 = vmul.f32 1.6059044e-10, %v14581_v38 }
 0x1a2   : > { %v1703_v18 = vadd.f32 -0.0001984127, %v1639_v8  ;;  %v2248_v33 = vmul.f32 0.5, %v14582_v52  ;;  %v2103_v9 = vmul.f32 %v2039_v58, %v14583_v35  ;;  %v2456_v60 = vsub.f32 %v8699_v13, %v2392_v16 }
 0x1a3   : > { %v1830_v39 = vadd.f32 0.008333334, %v1766_v57  ;;  %v2201_v19 = vadd.f32 %v8924_v32, %v8786_v46  ;;  %v2457_v17 = vsub.f32 %v8749_v59, %v2393_v51  ;;  %v1480_v62 = vadd.f32 -2.5052108e-08, %v1416_v53 }
 0x1a4   : > { %v1767_v21 = vmul.f32 %v1703_v18, %v14575_v23  ;;  %v2312_v37 = vfloor.f32 %v2248_v33  ;;  %v2167_v22 = vadd.f32 %v2103_v9, %v14583_v35  ;;  %v2471_v14 = vmul.f32 2.0, %v2407_v25  ;;  %v14584_v33 = vld [vmem:[#allocation57_spill] sm:$0xff] }
 0x1a5   : > { %v1894_v29 = vmul.f32 %v1830_v39, %v14572_v49  ;;  %v2520_v30 = vmul.f32 2.0, %v2456_v60  ;;  %v2521_v31 = vmul.f32 2.0, %v2457_v17  ;;  %v1544_v8 = vmul.f32 %v1480_v62, %v14581_v38 }
 0x1a6   : > { %v1831_v55 = vadd.f32 0.008333334, %v1767_v21  ;;  %v2376_v13 = vmul.f32 2.0, %v2312_v37  ;;  %v2615_v27 = vmul.f32 %v2551_v24, %v2167_v22  ;;  %v1417_v32 = vmul.f32 1.6059044e-10, %v8838_v12  ;;  %v14585_v21 = vld [vmem:[#allocation29_spill] sm:$0xff] }
 0x1a7   : > { %v1958_v58 = vadd.f32 -0.16666667, %v1894_v29  ;;  %v2584_v46 = vsub.f32 1.0, %v2520_v30  ;;  %v2585_v57 = vsub.f32 1.0, %v2521_v31  ;;  %v1608_v16 = vadd.f32 2.7557319e-06, %v1544_v8 }
 0x1a8   : > { %v1895_v59 = vmul.f32 %v1831_v55, %v14575_v23  ;;  %v2440_v18 = vsub.f32 %v14582_v52, %v2376_v13  ;;  %2858 = vmatpush.msrb.mxu1 %v2615_v27  ;;  %v1481_v53 = vadd.f32 -2.5052108e-08, %v1417_v32  ;;  %v2249_v35 = vmul.f32 0.5, %v14584_v33  ;;  %v14586_v22 = vld [vmem:[#allocation56_spill] sm:$0xff]  ;;  %v14587_v30 = vld [vmem:[#allocation38_spill] sm:$0xff] }
 0x1a9   : > { %v2022_v25 = vmul.f32 %v1958_v58, %v14572_v49  ;;  %v2648_v51 = vmul.f32 %v2584_v46, %v2200_v48  ;;  %v2535_v39 = vsub.f32 1.0, %v2471_v14  ;;  %v2649_v24 = vmul.f32 %v2585_v57, %v2201_v19  ;;  %v14588_v13 = vld [vmem:[#allocation30_spill] sm:$0xff] }
 0x1aa   : > { %v1959_v9 = vadd.f32 -0.16666667, %v1895_v59  ;;  %v1672_v60 = vmul.f32 %v1608_v16, %v14581_v38  ;;  %v1545_v62 = vmul.f32 %v1481_v53, %v8838_v12  ;;  %v2313_v37 = vfloor.f32 %v2249_v35  ;;  %v14589_v32 = vld [vmem:[#allocation58_spill] sm:$0xff] }
 0x1ab   : > { %v2086_v17 = vmul.f32 %v2022_v25, %v14585_v21  ;;  %2885 = vmatpush.msrb.mxu2 %v2648_v51  ;;  %v1400_v52 = vmul.f32 1.6059044e-10, %v14586_v22  ;;  %2914 = vmatpush.msrb.mxu3 %v2649_v24  ;;  %v9451_v48 = vmul.f32 2.0, %v2440_v18  ;;  %v2232_v55 = vmul.f32 0.5, %v14587_v30 }
 0x1ac   : > { %v2023_v29 = vmul.f32 %v1959_v9, %v14575_v23  ;;  %v1736_v49 = vadd.f32 -0.0001984127, %v1672_v60  ;;  %v1609_v14 = vadd.f32 2.7557319e-06, %v1545_v62  ;;  %v2377_v31 = vmul.f32 2.0, %v2313_v37 }
 0x1ad   : > { %v2150_v19 = vadd.f32 %v2086_v17, %v14585_v21  ;;  %v1464_v8 = vadd.f32 -2.5052108e-08, %v1400_v52  ;;  %v2296_v46 = vfloor.f32 %v2232_v55  ;;  %v1401_v59 = vmul.f32 1.6059044e-10, %v14589_v32  ;;  %v14590_v21 = vld [vmem:[#allocation40_spill] sm:$0xff]  ;;  %v828_v55 = vpop.f32.mrf.mxu2 }
 0x1ae   : > { %v2087_v27 = vmul.f32 %v2023_v29, %v14588_v13  ;;  %v1800_v58 = vmul.f32 %v1736_v49, %v14581_v38  ;;  %v1673_v57 = vmul.f32 %v1609_v14, %v8838_v12  ;;  %v2441_v16 = vsub.f32 %v14584_v33, %v2377_v31 }
 0x1af   : > { %v2598_v23 = vmul.f32 %v2534_v34, %v2150_v19  ;;  %v1528_v18 = vmul.f32 %v1464_v8, %v14586_v22  ;;  %v2360_v53 = vmul.f32 2.0, %v2296_v46  ;;  %v1465_v35 = vadd.f32 -2.5052108e-08, %v1401_v59  ;;  %v9470_v34 = vld [vmem:[%s13854_s2] sm:$0xff]  ;;  %v9488_v8 = vpop.f32.mrf.mxu3 }
 0x1b0   : > { %v2151_v25 = vadd.f32 %v2087_v27, %v14588_v13  ;;  %v1864_v51 = vadd.f32 0.008333334, %v1800_v58  ;;  %v1737_v9 = vadd.f32 -0.0001984127, %v1673_v57  ;;  %v9464_v24 = vmul.f32 2.0, %v2441_v16 }
 0x1b1   : > { %2830 = vmatpush.msrb.mxu0 %v2598_v23  ;;  %v1592_v60 = vadd.f32 2.7557319e-06, %v1528_v18  ;;  %v2233_v17 = vmul.f32 0.5, %v14590_v21  ;;  %v2424_v62 = vsub.f32 %v14587_v30, %v2360_v53  ;;  %v1529_v37 = vmul.f32 %v1465_v35, %v14589_v32  ;;  %v14592_v53 = vld [vmem:[#allocation61_spill] sm:$0xff] }
 0x1b2   : > { %v2599_v7 = vmul.f32 %v2535_v39, %v2151_v25  ;;  %7815 = vmatmul.msk.f32.vlgmr.msrb.gmra.mxu0 %vm2686_vm2, %v9470_v34  ;;  %v1928_v33 = vmul.f32 %v1864_v51, %v14581_v38  ;;  %v9479_v52 = vmul.f32 %v9415_v42, %v9415_v42  ;;  %v1801_v39 = vmul.f32 %v1737_v9, %v8838_v12 }
 0x1b3   : > { %v1656_v29 = vmul.f32 %v1592_v60, %v14586_v22  ;;  %v2297_v49 = vfloor.f32 %v2233_v17  ;;  %v9485_v19 = vmul.f32 %v9417_v63, %v9417_v63  ;;  %v2568_v30 = vsub.f32 1.0, %v9451_v48  ;;  %v14593_v60 = vld [vmem:[#allocation41_spill] sm:$0xff] }
 0x1b4   : > { %2859 = vmatpush.msrb.mxu1 %v2599_v7  ;;  %v1992_v14 = vadd.f32 -0.16666667, %v1928_v33  ;;  %v1593_v31 = vadd.f32 2.7557319e-06, %v1529_v37  ;;  %v1865_v13 = vadd.f32 0.008333334, %v1801_v39  ;;  %v2330_v42 = vfloor.f32 %v14622_v2 }
 0x1b5   : > { %14591 = vst [vmem:[#allocation33_spill] sm:$0xff] %v9485_v19  ;;  %7819 = vmatmul.msk.f32.vlgmr.msrb.gmra.mxu1 %vm2686_vm2, %v9470_v34  ;;  %v2569_v27 = vsub.f32 1.0, %v9464_v24  ;;  %v1720_v58 = vadd.f32 -0.0001984127, %v1656_v29  ;;  %v2361_v46 = vmul.f32 2.0, %v2297_v49  ;;  %v9494_v23 = vmul.f32 2.0, %v2424_v62 }
 0x1b6   : > { %v2056_v59 = vmul.f32 %v1992_v14, %v14581_v38  ;;  %v1657_v57 = vmul.f32 %v1593_v31, %v14589_v32  ;;  %v896_v16 = vmul.f32 0.31830987, %v828_v55  ;;  %v1929_v48 = vmul.f32 %v1865_v13, %v8838_v12  ;;  %v14594_v62 = vld [vmem:[#allocation26_spill] sm:$0xff] }
 0x1b7   : > { %v1784_v18 = vmul.f32 %v1720_v58, %v14586_v22  ;;  %v2425_v25 = vsub.f32 %v14590_v21, %v2361_v46  ;;  %v897_v51 = vmul.f32 0.31830987, %v9488_v8  ;;  %v1384_v17 = vmul.f32 1.6059044e-10, %v14593_v60  ;;  %v14597_v58 = vld [vmem:[#allocation28_spill] sm:$0xff] }
 0x1b8   : > { %v2120_v35 = vmul.f32 %v2056_v59, %v14592_v53  ;;  %v1721_v9 = vadd.f32 -0.0001984127, %v1657_v57  ;;  %v960_v24 = vadd.f32 0.5, %v896_v16  ;;  %v1993_v38 = vadd.f32 -0.16666667, %v1929_v48 }
 0x1b9   : > { %v1848_v7 = vadd.f32 0.008333334, %v1784_v18  ;;  %v961_v33 = vadd.f32 0.5, %v897_v51  ;;  %v2216_v37 = vmul.f32 0.5, %v14594_v62  ;;  %v1448_v21 = vadd.f32 -2.5052108e-08, %v1384_v17 }
 0x1ba   : > { %v2184_v39 = vadd.f32 %v2120_v35, %v14592_v53  ;;  %v1785_v29 = vmul.f32 %v1721_v9, %v14589_v32  ;;  %v9506_v49 = vfloor.f32 %v960_v24  ;;  %7816 = vmatmul.msk.f32.gmra.mxu0 %vm2686_vm2, %v9054_v26  ;;  %v2057_v14 = vmul.f32 %v1993_v38, %v8838_v12  ;;  %v9522_v12 = vld [vmem:[%s13854_s2 + $0x8] sm:$0xff] }
 0x1bb   : > { %v1912_v31 = vmul.f32 %v1848_v7, %v14586_v22  ;;  %v9512_v13 = vfloor.f32 %v961_v33  ;;  %v2217_v46 = vmul.f32 0.5, %v14597_v58  ;;  %v2489_v16 = vmul.f32 2.0, %v2425_v25  ;;  %v14598_v7 = vld [vmem:[#allocation42_spill] sm:$0xff] }
 0x1bc   : > { %14595 = vst [vmem:[#allocation24_spill] sm:$0xff] %v9506_v49  ;;  %v2632_v59 = vmul.f32 %v2568_v30, %v2184_v39  ;;  %v1849_v57 = vadd.f32 0.008333334, %v1785_v29  ;;  %v1088_v48 = vmul.f32 3.140625, %v9506_v49  ;;  %v2121_v18 = vmul.f32 %v2057_v14, %v8788_v15 }
 0x1bd   : > { %14596 = vst [vmem:[#allocation66_spill] sm:$0xff] %v9512_v13  ;;  %v1976_v51 = vadd.f32 -0.16666667, %v1912_v31  ;;  %v1216_v53 = vmul.f32 0.0009676536, %v9506_v49  ;;  %v1089_v26 = vmul.f32 3.140625, %v9512_v13  ;;  %7820 = vmatmul.msk.f32.gmra.mxu1 %vm2686_vm2, %v9522_v12  ;;  %v1512_v35 = vmul.f32 %v1448_v21, %v14593_v60 }
 0x1be   : > { %2886 = vmatpush.msrb.mxu2 %v2632_v59  ;;  %v1913_v30 = vmul.f32 %v1849_v57, %v14589_v32  ;;  %v1152_v25 = vsub.f32 %v828_v55, %v1088_v48  ;;  %v2280_v9 = vfloor.f32 %v2216_v37  ;;  %v2185_v24 = vadd.f32 %v2121_v18, %v8788_v15  ;;  %v9535_v59 = vpop.f32.mrf.mxu0  ;;  %v14600_v57 = vld [vmem:[#allocation49_spill] sm:$0xff] }
 0x1bf   : > { %v2040_v17 = vmul.f32 %v1976_v51, %v14586_v22  ;;  %v1153_v38 = vsub.f32 %v9488_v8, %v1089_v26  ;;  %v1385_v33 = vmul.f32 1.6059044e-10, %v14598_v7  ;;  %v2552_v39 = vsub.f32 1.0, %v9494_v23  ;;  %v9541_v51 = vpop.f32.mrf.mxu1 }
 0x1c0   : > { %v1977_v29 = vadd.f32 -0.16666667, %v1913_v30  ;;  %v9533_v14 = vsub.f32 %v1152_v25, %v1216_v53  ;;  %v1576_v31 = vadd.f32 2.7557319e-06, %v1512_v35  ;;  %v2633_v55 = vmul.f32 %v2569_v27, %v2185_v24  ;;  %v14602_v30 = vld [vmem:[#allocation50_spill] sm:$0xff] }
 0x1c1   : > { %v2104_v21 = vmul.f32 %v2040_v17, %v14600_v57  ;;  %v1217_v37 = vmul.f32 0.0009676536, %v9512_v13  ;;  %v1449_v15 = vadd.f32 -2.5052108e-08, %v1385_v33  ;;  %v2553_v48 = vsub.f32 1.0, %v2489_v16 }
 0x1c2   : > { %14599 = vst [vmem:[#allocation47_spill] sm:$0xff] %v9533_v14  ;;  %v2041_v22 = vmul.f32 %v1977_v29, %v14589_v32  ;;  %v1640_v8 = vmul.f32 %v1576_v31, %v14593_v60  ;;  %v2344_v18 = vmul.f32 2.0, %v2280_v9  ;;  %7817 = vmatmul.msk.f32.gmra.mxu0 %vm2686_vm2, %v9158_v3  ;;  %2915 = vmatpush.msrb.mxu3 %v2633_v55  ;;  %v2281_v26 = vfloor.f32 %v2217_v46  ;;  %v831_v9 = vpop.f32.mrf.mxu2 }
 0x1c3   : > { %v2168_v23 = vadd.f32 %v2104_v21, %v14600_v57  ;;  %v9546_v27 = vsub.f32 %v1153_v38, %v1217_v37  ;;  %v1513_v53 = vmul.f32 %v1449_v15, %v14598_v7  ;;  %v9552_v32 = vmul.f32 %v9533_v14, %v9533_v14  ;;  %v860_v38 = vpop.f32.mrf.mxu3 }
 0x1c4   : > { %v2105_v25 = vmul.f32 %v2041_v22, %v14602_v30  ;;  %v1704_v16 = vadd.f32 -0.0001984127, %v1640_v8  ;;  %v910_v35 = vmul.f32 0.31830987, %v9535_v59  ;;  %v2345_v33 = vmul.f32 2.0, %v2281_v26 }
 0x1c5   : > { %14601 = vst [vmem:[#allocation46_spill] sm:$0xff] %v9546_v27  ;;  %v2616_v24 = vmul.f32 %v2552_v39, %v2168_v23  ;;  %v1577_v17 = vadd.f32 2.7557319e-06, %v1513_v53  ;;  %v911_v29 = vmul.f32 0.31830987, %v9541_v51  ;;  %7821 = vmatmul.msk.f32.gmra.mxu1 %vm2686_vm2, %v9158_v3  ;;  %v2408_v55 = vsub.f32 %v14594_v62, %v2344_v18 }
 0x1c6   : > { %14603 = vst [vmem:[#allocation57_spill] sm:$0xff] %v9552_v32  ;;  %v2169_v46 = vadd.f32 %v2105_v25, %v14602_v30  ;;  %v1768_v31 = vmul.f32 %v1704_v16, %v14593_v60  ;;  %v974_v57 = vadd.f32 0.5, %v910_v35  ;;  %v2409_v39 = vsub.f32 %v14597_v58, %v2345_v33 }
 0x1c7   : > { %2887 = vmatpush.msrb.mxu2 %v2616_v24  ;;  %v1641_v21 = vmul.f32 %v1577_v17, %v14598_v7  ;;  %v975_v37 = vadd.f32 0.5, %v911_v29  ;;  %v912_v15 = vmul.f32 0.31830987, %v831_v9  ;;  %v913_v53 = vmul.f32 0.31830987, %v860_v38 }
 0x1c8   : > { %v2617_v22 = vmul.f32 %v2553_v48, %v2169_v46  ;;  %v1832_v8 = vadd.f32 0.008333334, %v1768_v31  ;;  %v9563_v23 = vfloor.f32 %v974_v57  ;;  %v9567_v3 = vmul.f32 %v9546_v27, %v9546_v27  ;;  %v776_v48 = vpop.f32.mrf.mxu0 }
 0x1c9   : > { %v1705_v26 = vadd.f32 -0.0001984127, %v1641_v21  ;;  %v9569_v30 = vfloor.f32 %v975_v37  ;;  %v976_v62 = vadd.f32 0.5, %v912_v15  ;;  %v2472_v25 = vmul.f32 2.0, %v2408_v55 }
 0x1ca   : > { %14604 = vst [vmem:[#allocation29_spill] sm:$0xff] %v9567_v3  ;;  %2916 = vmatpush.msrb.mxu3 %v2617_v22  ;;  %v1896_v18 = vmul.f32 %v1832_v8, %v14593_v60  ;;  %v1102_v58 = vmul.f32 3.140625, %v9563_v23  ;;  %v977_v16 = vadd.f32 0.5, %v913_v53  ;;  %7818 = vmatmul.msk.f32.gmra.mxu0 %vm2686_vm2, %v9242_v28  ;;  %v9576_v24 = vmul.f32 2.0, %v2409_v39  ;;  %v14607_v53 = vld [vmem:[#allocation31_spill] sm:$0xff] }
 0x1cb   : > { %v1769_v35 = vmul.f32 %v1705_v26, %v14598_v7  ;;  %v1230_v17 = vmul.f32 0.0009676536, %v9563_v23  ;;  %v1103_v33 = vmul.f32 3.140625, %v9569_v30  ;;  %v9581_v31 = vfloor.f32 %v976_v62 }
 0x1cc   : > { %v1960_v29 = vadd.f32 -0.16666667, %v1896_v18  ;;  %v1166_v46 = vsub.f32 %v9535_v59, %v1102_v58  ;;  %v9583_v55 = vfloor.f32 %v977_v16  ;;  %v1231_v37 = vmul.f32 0.0009676536, %v9569_v30  ;;  %v14609_v58 = vld [vmem:[#allocation36_spill] sm:$0xff] }
 0x1cd   : > { %14605 = vst [vmem:[#allocation56_spill] sm:$0xff] %v9581_v31  ;;  %v1833_v57 = vadd.f32 0.008333334, %v1769_v35  ;;  %v1167_v21 = vsub.f32 %v9541_v51, %v1103_v33  ;;  %v926_v15 = vmul.f32 0.31830987, %v776_v48  ;;  %7822 = vmatmul.msk.f32.gmra.mxu1 %vm2686_vm2, %v9242_v28  ;;  %v2536_v22 = vsub.f32 1.0, %v2472_v25 }
 0x1ce   : > { %14606 = vst [vmem:[#allocation38_spill] sm:$0xff] %v9583_v55  ;;  %v2024_v39 = vmul.f32 %v1960_v29, %v14593_v60  ;;  %v1104_v8 = vmul.f32 3.140625, %v9581_v31  ;;  %v1402_v59 = vmul.f32 1.6059044e-10, %v14607_v53  ;;  %v2537_v62 = vsub.f32 1.0, %v9576_v24 }
 0x1cf   : > { %v1897_v26 = vmul.f32 %v1833_v57, %v14598_v7  ;;  %v9594_v18 = vsub.f32 %v1166_v46, %v1230_v17  ;;  %v1105_v51 = vmul.f32 3.140625, %v9583_v55  ;;  %v1232_v28 = vmul.f32 0.0009676536, %v9581_v31  ;;  %v805_v17 = vpop.f32.mrf.mxu1 }
 0x1d0   : > { %v2088_v16 = vmul.f32 %v2024_v39, %v14609_v58  ;;  %v1168_v35 = vsub.f32 %v831_v9, %v1104_v8  ;;  %v990_v33 = vadd.f32 0.5, %v926_v15  ;;  %v9599_v25 = vsub.f32 %v1167_v21, %v1231_v37  ;;  %v14613_v15 = vld [vmem:[#allocation45_spill] sm:$0xff] }
 0x1d1   : > { %14608 = vst [vmem:[#allocation30_spill] sm:$0xff] %v9594_v18  ;;  %v1961_v60 = vadd.f32 -0.16666667, %v1897_v26  ;;  %v1169_v29 = vsub.f32 %v860_v38, %v1105_v51  ;;  %v1233_v27 = vmul.f32 0.0009676536, %v9583_v55  ;;  %v9613_v38 = vmul.f32 %v9594_v18, %v9594_v18 }
 0x1d2   : > { %14610 = vst [vmem:[#allocation58_spill] sm:$0xff] %v9599_v25  ;;  %v2152_v57 = vadd.f32 %v2088_v16, %v14609_v58  ;;  %v9603_v14 = vsub.f32 %v1168_v35, %v1232_v28  ;;  %v9605_v24 = vfloor.f32 %v990_v33  ;;  %v1466_v46 = vadd.f32 -2.5052108e-08, %v1402_v59  ;;  %v14614_v58 = vld [vmem:[#allocation37_spill] sm:$0xff] }
 0x1d3   : > { %v2025_v39 = vmul.f32 %v1961_v60, %v14598_v7  ;;  %v9608_v9 = vsub.f32 %v1169_v29, %v1233_v27  ;;  %v927_v8 = vmul.f32 0.31830987, %v805_v17  ;;  %v1418_v26 = vmul.f32 1.6059044e-10, %v14613_v15  ;;  %v14615_v27 = vld [vmem:[#allocation55_spill] sm:$0xff]  ;;  %v14617_v60 = vld [vmem:[#allocation13_spill] sm:$0xff] }
 0x1d4   : > { %14611 = vst [vmem:[#allocation40_spill] sm:$0xff] %v9603_v14  ;;  %v2600_v21 = vmul.f32 %v2536_v22, %v2152_v57  ;;  %v1118_v37 = vmul.f32 3.140625, %v9605_v24  ;;  %v1246_v51 = vmul.f32 0.0009676536, %v9605_v24  ;;  %v9620_v59 = vmul.f32 %v9599_v25, %v9599_v25 }
 0x1d5   : > { %14612 = vst [vmem:[#allocation61_spill] sm:$0xff] %v9608_v9  ;;  %v2089_v16 = vmul.f32 %v2025_v39, %v14614_v58  ;;  %v991_v7 = vadd.f32 0.5, %v927_v8  ;;  %v1403_v35 = vmul.f32 1.6059044e-10, %v14615_v27  ;;  %v9625_v22 = vmul.f32 %v9603_v14, %v9603_v14  ;;  %v834_v14 = vpop.f32.mrf.mxu2 }
 0x1d6   : > { %2888 = vmatpush.msrb.mxu2 %v2600_v21  ;;  %v1182_v28 = vsub.f32 %v776_v48, %v1118_v37  ;;  %v1482_v33 = vadd.f32 -2.5052108e-08, %v1418_v26  ;;  %v1419_v29 = vmul.f32 1.6059044e-10, %v14617_v60  ;;  %v9633_v39 = vmul.f32 %v9608_v9, %v9608_v9  ;;  %v4960_v21 = vld [vmem:[%s13857_s5 + $0x8] sm:$0xff] }
 0x1d7   : > { %14616 = vst [vmem:[#allocation41_spill] sm:$0xff] %v9625_v22  ;;  %v2153_v57 = vadd.f32 %v2089_v16, %v14614_v58  ;;  %7823 = vmatmul.msk.f32.vlgmr.msrb.gmra.mxu2 %vm2686_vm2, %v9470_v34  ;;  %v9635_v8 = vfloor.f32 %v991_v7  ;;  %v1530_v48 = vmul.f32 %v1466_v46, %v14607_v53  ;;  %4970 = vperm.xlu0 %7987, %v4960_v21   ;;  %v928_v37 = vmul.f32 0.31830987, %v834_v14 }
 0x1d8   : > { %14618 = vst [vmem:[#allocation26_spill] sm:$0xff] %v9633_v39  ;;  %v9641_v26 = vsub.f32 %v1182_v28, %v1246_v51  ;;  %v1546_v58 = vmul.f32 %v1482_v33, %v14613_v15  ;;  %v1483_v16 = vadd.f32 -2.5052108e-08, %v1419_v29  ;;  %v9647_v49 = vmul.f32 0.5, %v14619_v6 }
 0x1d9   : > { %v2601_v13 = vmul.f32 %v2537_v62, %v2153_v57  ;;  %v1119_v9 = vmul.f32 3.140625, %v9635_v8  ;;  %v1247_v7 = vmul.f32 0.0009676536, %v9635_v8  ;;  %v992_v46 = vadd.f32 0.5, %v928_v37  ;;  %v863_v37 = vpop.f32.mrf.mxu3 }
 0x1da   : > { %v9651_v3 = vmul.f32 %v9641_v26, %v9641_v26  ;;  %v1610_v51 = vadd.f32 2.7557319e-06, %v1546_v58  ;;  %v1547_v28 = vmul.f32 %v1483_v16, %v14617_v60  ;;  %v9655_v33 = vmul.f32 0.5, %v9605_v24 }
 0x1db   : > { %2917 = vmatpush.msrb.mxu3 %v2601_v13  ;;  %v1183_v62 = vsub.f32 %v805_v17, %v1119_v9  ;;  %v9658_v29 = vmul.f32 0.5, %v9635_v8  ;;  %v9660_v57 = vadd.f32 -2.5052108e-08, %v1403_v35  ;;  %v9665_v10 = vfloor.f32 %v992_v46  ;;  %v14620_v17 = vld [vmem:[#allocation18_spill] sm:$0xff] }
 0x1dc   : > { %7827 = vmatmul.msk.f32.vlgmr.msrb.gmra.mxu3 %vm2686_vm2, %v9470_v34  ;;  %v1438_v21 = vmul.f32 1.6059044e-10, %v9651_v3  ;;  %v1674_v58 = vmul.f32 %v1610_v51, %v14613_v15  ;;  %v1611_v13 = vadd.f32 2.7557319e-06, %v1547_v28  ;;  %v929_v4 = vmul.f32 0.31830987, %v863_v37 }
 0x1dd   : > { %v9668_v16 = vsub.f32 %v1183_v62, %v1247_v7  ;;  %v2250_v9 = vmul.f32 0.5, %v14620_v17  ;;  %v9672_v32 = vmul.f32 0.5, %v14621_v47  ;;  %v1120_v55 = vmul.f32 3.140625, %v9665_v10 }
 0x1de   : > { %v1502_v35 = vadd.f32 -2.5052108e-08, %v1438_v21  ;;  %v1594_v39 = vadd.f32 2.7557319e-06, %v1530_v48  ;;  %v1248_v7 = vmul.f32 0.0009676536, %v9665_v10  ;;  %v1675_v22 = vmul.f32 %v1611_v13, %v14617_v60 }
 0x1df   : > { %v9678_v46 = vmul.f32 %v9668_v16, %v9668_v16  ;;  %7824 = vmatmul.msk.f32.gmra.mxu2 %vm2686_vm2, %v9522_v12  ;;  %v993_v51 = vadd.f32 0.5, %v929_v4  ;;  %v1738_v28 = vadd.f32 -0.0001984127, %v1674_v58  ;;  %v1184_v63 = vsub.f32 %v834_v14, %v1120_v55  ;;  %v14623_v58 = vld [vmem:[#allocation81_spill] sm:$0xff] }
 0x1e0   : > { %v1566_v62 = vmul.f32 %v1502_v35, %v9651_v3  ;;  %v2314_v21 = vfloor.f32 %v2250_v9  ;;  %v2315_v50 = vfloor.f32 %v9672_v32  ;;  %v2202_v4 = vadd.f32 %v9354_v36, %v9167_v11 }
 0x1e1   : > { %v1439_v48 = vmul.f32 1.6059044e-10, %v9678_v46  ;;  %v9686_v31 = vfloor.f32 %v993_v51  ;;  %v9690_v18 = vsub.f32 %v1184_v63, %v1248_v7  ;;  %v2331_v35 = vfloor.f32 %v14623_v58  ;;  %v14625_v58 = vld [vmem:[#allocation14_spill] sm:$0xff] }
 0x1e2   : > { %v1630_v25 = vadd.f32 2.7557319e-06, %v1566_v62  ;;  %v2203_v9 = vadd.f32 %v9369_v45, %v9209_v40  ;;  %v2394_v11 = vmul.f32 2.0, %v2330_v42  ;;  %v1802_v51 = vmul.f32 %v1738_v28, %v14613_v15  ;;  %v14624_v45 = vld [vmem:[#allocation6_spill] sm:$0xff] }
 0x1e3   : > { %v1503_v14 = vadd.f32 -2.5052108e-08, %v1439_v48  ;;  %v1121_v55 = vmul.f32 3.140625, %v9686_v31  ;;  %v1249_v13 = vmul.f32 0.0009676536, %v9686_v31  ;;  %v9704_v63 = vmul.f32 %v9690_v18, %v9690_v18  ;;  %v9716_v42 = vld [vmem:[%s13854_s2 + $0x10] sm:$0xff] }
 0x1e4   : > { %v1694_v2 = vmul.f32 %v1630_v25, %v9651_v3  ;;  %7828 = vmatmul.msk.f32.gmra.mxu3 %vm2686_vm2, %v9522_v12  ;;  %v2395_v36 = vmul.f32 2.0, %v2331_v35  ;;  %v2378_v62 = vmul.f32 2.0, %v2314_v21  ;;  %v2458_v25 = vsub.f32 %v14624_v45, %v2394_v11 }
 0x1e5   : > { %v1567_v32 = vmul.f32 %v1503_v14, %v9678_v46  ;;  %v1185_v7 = vsub.f32 %v863_v37, %v1121_v55  ;;  %v1440_v40 = vmul.f32 1.6059044e-10, %v9704_v63  ;;  %v1866_v37 = vadd.f32 0.008333334, %v1802_v51 }
 0x1e6   : > { %v1758_v48 = vadd.f32 -0.0001984127, %v1694_v2  ;;  %v2459_v0 = vsub.f32 %v14625_v58, %v2395_v36  ;;  %v2442_v28 = vsub.f32 %v14620_v17, %v2378_v62  ;;  %v2522_v14 = vmul.f32 2.0, %v2458_v25 }
 0x1e7   : > { %v1631_v19 = vadd.f32 2.7557319e-06, %v1567_v32  ;;  %v9711_v56 = vsub.f32 %v1185_v7, %v1249_v13  ;;  %7825 = vmatmul.msk.f32.gmra.mxu2 %vm2686_vm2, %v9716_v42  ;;  %v1504_v35 = vadd.f32 -2.5052108e-08, %v1440_v40  ;;  %v1930_v11 = vmul.f32 %v1866_v37, %v14613_v15  ;;  %v4959_v37 = vld [vmem:[%s13857_s5] sm:$0xff] }
 0x1e8   : > { %v1822_v21 = vmul.f32 %v1758_v48, %v9651_v3  ;;  %v2523_v55 = vmul.f32 2.0, %v2459_v0  ;;  %v2506_v36 = vmul.f32 2.0, %v2442_v28  ;;  %v2586_v51 = vsub.f32 1.0, %v2522_v14  ;;  %4965 = vperm.xlu1 %7988, %v4959_v37  }
 0x1e9   : > { %v1695_v2 = vmul.f32 %v1631_v19, %v9678_v46  ;;  %v9725_v13 = vmul.f32 %v9711_v56, %v9711_v56  ;;  %v1568_v7 = vmul.f32 %v1504_v35, %v9704_v63  ;;  %v1994_v48 = vadd.f32 -0.16666667, %v1930_v11 }
 0x1ea   : > { %v1886_v32 = vadd.f32 0.008333334, %v1822_v21  ;;  %v2587_v45 = vsub.f32 1.0, %v2523_v55  ;;  %v1658_v0 = vmul.f32 %v1594_v39, %v14607_v53  ;;  %v2650_v25 = vmul.f32 %v2586_v51, %v2202_v4 }
 0x1eb   : > { %v1759_v17 = vadd.f32 -0.0001984127, %v1695_v2  ;;  %v1441_v62 = vmul.f32 1.6059044e-10, %v9725_v13  ;;  %v1632_v40 = vadd.f32 2.7557319e-06, %v1568_v7  ;;  %v2058_v35 = vmul.f32 %v1994_v48, %v14613_v15 }
 0x1ec   : > { %v1950_v19 = vmul.f32 %v1886_v32, %v9651_v3  ;;  %7829 = vmatmul.msk.f32.gmra.mxu3 %vm2686_vm2, %v9716_v42  ;;  %v2651_v58 = vmul.f32 %v2587_v45, %v2203_v9  ;;  %v1531_v39 = vmul.f32 %v9660_v57, %v14615_v27  ;;  %2943 = vmatpush.msra.mxu0 %v2650_v25  ;;  %v2570_v55 = vsub.f32 1.0, %v2506_v36  ;;  %v14626_v32 = vld [vmem:[#allocation27_spill] sm:$0xff] }
 0x1ed   : > { %v1823_v28 = vmul.f32 %v1759_v17, %v9678_v46  ;;  %v1505_v21 = vadd.f32 -2.5052108e-08, %v1441_v62  ;;  %v1696_v14 = vmul.f32 %v1632_v40, %v9704_v63  ;;  %v1739_v4 = vadd.f32 -0.0001984127, %v1675_v22  ;;  %v9747_v15 = vld [vmem:[%s13854_s2 + $0x18] sm:$0xff] }
 0x1ee   : > { %2972 = vmatpush.msra.mxu1 %v2651_v58  ;;  %v2379_v9 = vmul.f32 2.0, %v2315_v50  ;;  %v2122_v7 = vmul.f32 %v2058_v35, %v14626_v32  ;;  %v1722_v51 = vadd.f32 -0.0001984127, %v1658_v0  ;;  %v2014_v57 = vadd.f32 -0.16666667, %v1950_v19 }
 0x1ef   : > { %v1887_v2 = vadd.f32 0.008333334, %v1823_v28  ;;  %v1569_v11 = vmul.f32 %v1505_v21, %v9725_v13  ;;  %7826 = vmatmul.msk.f32.gmra.mxu2 %vm2686_vm2, %v9747_v15  ;;  %v1760_v45 = vadd.f32 -0.0001984127, %v1696_v14  ;;  %v1803_v36 = vmul.f32 %v1739_v4, %v14617_v60 }
 0x1f0   : > { %v2443_v50 = vsub.f32 %v14621_v47, %v2379_v9  ;;  %v2186_v62 = vadd.f32 %v2122_v7, %v14626_v32  ;;  %v1786_v48 = vmul.f32 %v1722_v51, %v14607_v53  ;;  %v9758_v40 = vmul.f32 0.5, %v9665_v10 }
 0x1f1   : > { %v1951_v22 = vmul.f32 %v1887_v2, %v9678_v46  ;;  %v1633_v17 = vadd.f32 2.7557319e-06, %v1569_v11  ;;  %v1824_v0 = vmul.f32 %v1760_v45, %v9704_v63  ;;  %v9761_v25 = vmul.f32 0.5, %v9686_v31 }
 0x1f2   : > { %v1867_v19 = vadd.f32 0.008333334, %v1803_v36  ;;  %v2634_v37 = vmul.f32 %v2570_v55, %v2186_v62  ;;  %v2507_v47 = vmul.f32 2.0, %v2443_v50  ;;  %v1850_v28 = vadd.f32 0.008333334, %v1786_v48 }
 0x1f3   : > { %v1697_v58 = vmul.f32 %v1633_v17, %v9725_v13  ;;  %v2078_v21 = vmul.f32 %v2014_v57, %v9651_v3  ;;  %v1888_v35 = vadd.f32 0.008333334, %v1824_v0  ;;  %v14627_v4 = vfloor.f32 %v9647_v49  ;;  %v14628_v57 = vld [vmem:[#allocation76_spill] sm:$0xff] }
 0x1f4   : > { %v1931_v14 = vmul.f32 %v1867_v19, %v14617_v60  ;;  %7830 = vmatmul.msk.f32.gmra.mxu3 %vm2686_vm2, %v9747_v15  ;;  %v2015_v2 = vadd.f32 -0.16666667, %v1951_v22  ;;  %2944 = vmatpush.msra.mxu0 %v2634_v37  ;;  %v1914_v32 = vmul.f32 %v1850_v28, %v14607_v53  ;;  %v1595_v7 = vadd.f32 2.7557319e-06, %v1531_v39  ;;  %v14629_v37 = vld [vmem:[#allocation69_spill] sm:$0xff] }
 0x1f5   : > { %v2362_v9 = vmul.f32 2.0, %v14627_v4  ;;  %v1761_v11 = vadd.f32 -0.0001984127, %v1697_v58  ;;  %v1952_v55 = vmul.f32 %v1888_v35, %v9704_v63  ;;  %v2235_v45 = vmul.f32 0.5, %v14628_v57 }
 0x1f6   : > { %v1995_v51 = vadd.f32 -0.16666667, %v1931_v14  ;;  %v2571_v49 = vsub.f32 1.0, %v2507_v47  ;;  %v1978_v50 = vadd.f32 -0.16666667, %v1914_v32  ;;  %v1659_v17 = vmul.f32 %v1595_v7, %v14615_v27  ;;  %v14630_v14 = vld [vmem:[#allocation16_spill] sm:$0xff] }
 0x1f7   : > { %v2426_v3 = vsub.f32 %v14619_v6, %v2362_v9  ;;  %v1825_v36 = vmul.f32 %v1761_v11, %v9725_v13  ;;  %v2016_v62 = vadd.f32 -0.16666667, %v1952_v55  ;;  %v2299_v0 = vfloor.f32 %v2235_v45  ;;  %v14631_v11 = vld [vmem:[#allocation78_spill] sm:$0xff] }
 0x1f8   : > { %v2059_v22 = vmul.f32 %v1995_v51, %v14617_v60  ;;  %v2042_v39 = vmul.f32 %v1978_v50, %v14607_v53  ;;  %v1723_v58 = vadd.f32 -0.0001984127, %v1659_v17  ;;  %v1386_v28 = vmul.f32 1.6059044e-10, %v14629_v37 }
 0x1f9   : > { %v2490_v48 = vmul.f32 2.0, %v2426_v3  ;;  %v1889_v19 = vadd.f32 0.008333334, %v1825_v36  ;;  %v2079_v6 = vmul.f32 %v2015_v2, %v9678_v46  ;;  %v2080_v35 = vmul.f32 %v2016_v62, %v9704_v63  ;;  %v14632_v3 = vld [vmem:[#allocation62_spill] sm:$0xff] }
 0x1fa   : > { %v2123_v47 = vmul.f32 %v2059_v22, %v14630_v14  ;;  %v2363_v4 = vmul.f32 2.0, %v2299_v0  ;;  %v2106_v32 = vmul.f32 %v2042_v39, %v14631_v11  ;;  %v1787_v60 = vmul.f32 %v1723_v58, %v14615_v27  ;;  %v14633_v22 = vld [vmem:[#allocation70_spill] sm:$0xff] }
 0x1fb   : > { %v1953_v9 = vmul.f32 %v1889_v19, %v9725_v13  ;;  %v1450_v7 = vadd.f32 -2.5052108e-08, %v1386_v28  ;;  %v2554_v53 = vsub.f32 1.0, %v2490_v48  ;;  %v2218_v45 = vmul.f32 0.5, %v14632_v3 }
 0x1fc   : > { %v2187_v55 = vadd.f32 %v2123_v47, %v14630_v14  ;;  %v2427_v51 = vsub.f32 %v14628_v57, %v2363_v4  ;;  %v2170_v63 = vadd.f32 %v2106_v32, %v14631_v11  ;;  %v1851_v2 = vadd.f32 0.008333334, %v1787_v60  ;;  %v14634_v47 = vld [vmem:[#allocation65_spill] sm:$0xff] }
 0x1fd   : > { %v2017_v46 = vadd.f32 -0.16666667, %v1953_v9  ;;  %v1514_v36 = vmul.f32 %v1450_v7, %v14629_v37  ;;  %v2282_v62 = vfloor.f32 %v2218_v45  ;;  %v1387_v0 = vmul.f32 1.6059044e-10, %v14633_v22  ;;  %v14635_v7 = vld [vmem:[#allocation34_spill] sm:$0xff] }
 0x1fe   : > { %v2635_v50 = vmul.f32 %v2571_v49, %v2187_v55  ;;  %v2491_v17 = vmul.f32 2.0, %v2427_v51  ;;  %v9792_v19 = vmul.f32 %v2078_v21, %v9641_v26  ;;  %v2618_v39 = vmul.f32 %v2554_v53, %v2170_v63 }
 0x1ff   : > { %v1915_v48 = vmul.f32 %v1851_v2, %v14615_v27  ;;  %v1578_v57 = vadd.f32 2.7557319e-06, %v1514_v36  ;;  %v9796_v58 = vmul.f32 %v2079_v6, %v9668_v16  ;;  %v2346_v28 = vmul.f32 2.0, %v2282_v62  ;;  %v14636_v36 = vld [vmem:[#allocation22_spill] sm:$0xff] }
 0x200   : > { %2973 = vmatpush.msra.mxu1 %v2635_v50  ;;  %v1451_v14 = vadd.f32 -2.5052108e-08, %v1387_v0  ;;  %v2219_v4 = vmul.f32 0.5, %v14634_v47  ;;  %v9800_v49 = vmul.f32 %v2080_v35, %v9690_v18  ;;  %v9803_v9 = vmul.f32 %v2017_v46, %v9725_v13  ;;  %2945 = vmatpush.msra.mxu0 %v2618_v39  ;;  %v14637_v0 = vld [vmem:[#allocation60_spill] sm:$0xff] }
 0x201   : > { %v1979_v21 = vadd.f32 -0.16666667, %v1915_v48  ;;  %v1642_v11 = vmul.f32 %v1578_v57, %v14629_v37  ;;  %v2555_v32 = vsub.f32 1.0, %v2491_v17  ;;  %v2332_v55 = vfloor.f32 %v14635_v7  ;;  %v14638_v57 = vld [vmem:[#allocation79_spill] sm:$0xff] }
 0x202   : > { %v1515_v60 = vmul.f32 %v1451_v14, %v14633_v22  ;;  %v2283_v6 = vfloor.f32 %v2219_v4  ;;  %v2204_v35 = vadd.f32 %v9375_v44, %v9248_v54  ;;  %v2333_v45 = vfloor.f32 %v9336_v5 }
 0x203   : > { %v2043_v53 = vmul.f32 %v1979_v21, %v14615_v27  ;;  %v1706_v51 = vadd.f32 -0.0001984127, %v1642_v11  ;;  %v2410_v13 = vsub.f32 %v14632_v3, %v2346_v28  ;;  %v2396_v2 = vmul.f32 2.0, %v2332_v55 }
 0x204   : > { %v1579_v46 = vadd.f32 2.7557319e-06, %v1515_v60  ;;  %v2347_v63 = vmul.f32 2.0, %v2283_v6  ;;  %v2397_v62 = vmul.f32 2.0, %v2333_v45  ;;  %v1420_v39 = vmul.f32 1.6059044e-10, %v14637_v0 }
 0x205   : > { %v2107_v50 = vmul.f32 %v2043_v53, %v14636_v36  ;;  %v1770_v17 = vmul.f32 %v1706_v51, %v14629_v37  ;;  %v2460_v54 = vsub.f32 %v14638_v57, %v2396_v2  ;;  %v2205_v5 = vadd.f32 %v9406_v20, %v9276_v43  ;;  %v14639_v60 = vld [vmem:[#allocation11_spill] sm:$0xff] }
 0x206   : > { %v1643_v27 = vmul.f32 %v1579_v46, %v14633_v22  ;;  %v2411_v48 = vsub.f32 %v14634_v47, %v2347_v63  ;;  %v2461_v28 = vsub.f32 %v9233_v1, %v2397_v62  ;;  %v1484_v14 = vadd.f32 -2.5052108e-08, %v1420_v39 }
 0x207   : > { %v2171_v44 = vadd.f32 %v2107_v50, %v14636_v36  ;;  %v1834_v3 = vadd.f32 0.008333334, %v1770_v17  ;;  %v2474_v4 = vmul.f32 2.0, %v2410_v13  ;;  %v2524_v11 = vmul.f32 2.0, %v2460_v54  ;;  %v14640_v13 = vld [vmem:[#allocation15_spill] sm:$0xff] }
 0x208   : > { %v1707_v21 = vadd.f32 -0.0001984127, %v1643_v27  ;;  %v2252_v6 = vmul.f32 0.5, %v14639_v60  ;;  %v2525_v47 = vmul.f32 2.0, %v2461_v28  ;;  %v1548_v53 = vmul.f32 %v1484_v14, %v14637_v0  ;;  %v14642_v28 = vld [vmem:[#allocation20_spill] sm:$0xff] }
 0x209   : > { %v2619_v7 = vmul.f32 %v2555_v32, %v2171_v44  ;;  %v1898_v55 = vmul.f32 %v1834_v3, %v14629_v37  ;;  %v2475_v43 = vmul.f32 2.0, %v2411_v48  ;;  %v2588_v20 = vsub.f32 1.0, %v2524_v11  ;;  %v14641_v32 = vld [vmem:[#allocation80_spill] sm:$0xff] }
 0x20a   : > { %v1771_v51 = vmul.f32 %v1707_v21, %v14633_v22  ;;  %v2316_v45 = vfloor.f32 %v2252_v6  ;;  %v2589_v1 = vsub.f32 1.0, %v2525_v47  ;;  %v1612_v63 = vadd.f32 2.7557319e-06, %v1548_v53  ;;  %v14643_v21 = vld [vmem:[#allocation67_spill] sm:$0xff] }
 0x20b   : > { %2974 = vmatpush.msra.mxu1 %v2619_v7  ;;  %v1962_v46 = vadd.f32 -0.16666667, %v1898_v55  ;;  %v2253_v2 = vmul.f32 0.5, %v14640_v13  ;;  %v2652_v50 = vmul.f32 %v2588_v20, %v2204_v35  ;;  %v1421_v62 = vmul.f32 1.6059044e-10, %v14641_v32  ;;  %v14644_v7 = vld [vmem:[#allocation21_spill] sm:$0xff] }
 0x20c   : > { %v1835_v36 = vadd.f32 0.008333334, %v1771_v51  ;;  %v2380_v17 = vmul.f32 2.0, %v2316_v45  ;;  %v2653_v27 = vmul.f32 %v2589_v1, %v2205_v5  ;;  %v1676_v57 = vmul.f32 %v1612_v63, %v14637_v0 }
 0x20d   : > { %v2026_v39 = vmul.f32 %v1962_v46, %v14629_v37  ;;  %v2317_v54 = vfloor.f32 %v2253_v2  ;;  %3001 = vmatpush.msra.mxu2 %v2652_v50  ;;  %v1485_v3 = vadd.f32 -2.5052108e-08, %v1421_v62  ;;  %v1404_v14 = vmul.f32 1.6059044e-10, %v14642_v28  ;;  %v14645_v62 = vld [vmem:[#allocation68_spill] sm:$0xff] }
 0x20e   : > { %v1899_v48 = vmul.f32 %v1835_v36, %v14633_v22  ;;  %v2444_v44 = vsub.f32 %v14639_v60, %v2380_v17  ;;  %3030 = vmatpush.msra.mxu3 %v2653_v27  ;;  %v1740_v35 = vadd.f32 -0.0001984127, %v1676_v57  ;;  %v2236_v55 = vmul.f32 0.5, %v14644_v7 }
 0x20f   : > { %v2090_v11 = vmul.f32 %v2026_v39, %v14643_v21  ;;  %v2381_v6 = vmul.f32 2.0, %v2317_v54  ;;  %v2538_v37 = vsub.f32 1.0, %v2474_v4  ;;  %v1549_v47 = vmul.f32 %v1485_v3, %v14641_v32  ;;  %v14646_v54 = vld [vmem:[#allocation12_spill] sm:$0xff] }
 0x210   : > { %v1963_v5 = vadd.f32 -0.16666667, %v1899_v48  ;;  %v1468_v53 = vadd.f32 -2.5052108e-08, %v1404_v14  ;;  %v1804_v20 = vmul.f32 %v1740_v35, %v14637_v0  ;;  %v2508_v60 = vmul.f32 2.0, %v2444_v44 }
 0x211   : > { %v2154_v51 = vadd.f32 %v2090_v11, %v14643_v21  ;;  %v2445_v45 = vsub.f32 %v14640_v13, %v2381_v6  ;;  %v9842_v46 = vmul.f32 %v9803_v9, %v9711_v56  ;;  %v1613_v63 = vadd.f32 2.7557319e-06, %v1549_v47 }
 0x212   : > { %v2027_v1 = vmul.f32 %v1963_v5, %v14633_v22  ;;  %v1532_v4 = vmul.f32 %v1468_v53, %v14642_v28  ;;  %v2539_v36 = vsub.f32 1.0, %v2475_v43  ;;  %v1868_v50 = vadd.f32 0.008333334, %v1804_v20  ;;  %v14647_v22 = vld [vmem:[#allocation8_spill] sm:$0xff] }
 0x213   : > { %v2602_v2 = vmul.f32 %v2538_v37, %v2154_v51  ;;  %v2300_v17 = vfloor.f32 %v2236_v55  ;;  %v1677_v27 = vmul.f32 %v1613_v63, %v14641_v32  ;;  %v1405_v13 = vmul.f32 1.6059044e-10, %v14646_v54  ;;  %v14648_v37 = vld [vmem:[#allocation77_spill] sm:$0xff] }
 0x214   : > { %v2091_v39 = vmul.f32 %v2027_v1, %v14645_v62  ;;  %v1596_v57 = vadd.f32 2.7557319e-06, %v1532_v4  ;;  %v1932_v9 = vmul.f32 %v1868_v50, %v14637_v0  ;;  %v2572_v48 = vsub.f32 1.0, %v2508_v60 }
 0x215   : > { %2946 = vmatpush.msra.mxu0 %v2602_v2  ;;  %v9850_v44 = vmul.f32 2.0, %v2445_v45  ;;  %v2237_v3 = vmul.f32 0.5, %v14647_v22  ;;  %v1741_v43 = vadd.f32 -0.0001984127, %v1677_v27  ;;  %v1469_v11 = vadd.f32 -2.5052108e-08, %v1405_v13 }
 0x216   : > { %v2155_v14 = vadd.f32 %v2091_v39, %v14645_v62  ;;  %7831 = vmatmul.msk.f32.vlgmr.msra.gmra.mxu0 %vm2686_vm2, %v9470_v34  ;;  %v1660_v21 = vmul.f32 %v1596_v57, %v14642_v28  ;;  %v1996_v35 = vadd.f32 -0.16666667, %v1932_v9  ;;  %v2364_v6 = vmul.f32 2.0, %v2300_v17  ;;  %v14649_v17 = vld [vmem:[#allocation71_spill] sm:$0xff] }
 0x217   : > { %v2301_v55 = vfloor.f32 %v2237_v3  ;;  %v1388_v5 = vmul.f32 1.6059044e-10, %v14648_v37  ;;  %v1805_v53 = vmul.f32 %v1741_v43, %v14641_v32  ;;  %v1533_v20 = vmul.f32 %v1469_v11, %v14646_v54  ;;  %v14651_v57 = vld [vmem:[#allocation19_spill] sm:$0xff] }
 0x218   : > { %v2603_v47 = vmul.f32 %v2539_v36, %v2155_v14  ;;  %v1724_v51 = vadd.f32 -0.0001984127, %v1660_v21  ;;  %v2060_v60 = vmul.f32 %v1996_v35, %v14637_v0  ;;  %v2573_v45 = vsub.f32 1.0, %v9850_v44  ;;  %v14650_v36 = vld [vmem:[#allocation7_spill] sm:$0xff] }
 0x219   : > { %v2365_v1 = vmul.f32 2.0, %v2301_v55  ;;  %v1452_v63 = vadd.f32 -2.5052108e-08, %v1388_v5  ;;  %v1869_v4 = vadd.f32 0.008333334, %v1805_v53  ;;  %v2220_v62 = vmul.f32 0.5, %v14649_v17 }
 0x21a   : > { %2975 = vmatpush.msra.mxu1 %v2603_v47  ;;  %v1788_v2 = vmul.f32 %v1724_v51, %v14642_v28  ;;  %v1597_v50 = vadd.f32 2.7557319e-06, %v1533_v20  ;;  %v2124_v39 = vmul.f32 %v2060_v60, %v14650_v36  ;;  %v2428_v27 = vsub.f32 %v14644_v7, %v2364_v6 }
 0x21b   : > { %7835 = vmatmul.msk.f32.vlgmr.msra.gmra.mxu1 %vm2686_vm2, %v9470_v34  ;;  %v1516_v0 = vmul.f32 %v1452_v63, %v14648_v37  ;;  %v1389_v13 = vmul.f32 1.6059044e-10, %v14651_v57  ;;  %v1933_v9 = vmul.f32 %v1869_v4, %v14641_v32  ;;  %v2284_v14 = vfloor.f32 %v2220_v62 }
 0x21c   : > { %v1852_v44 = vadd.f32 0.008333334, %v1788_v2  ;;  %v1661_v3 = vmul.f32 %v1597_v50, %v14646_v54  ;;  %v2188_v43 = vadd.f32 %v2124_v39, %v14650_v36  ;;  %v2429_v21 = vsub.f32 %v14647_v22, %v2365_v1  ;;  %v14652_v50 = vld [vmem:[#allocation72_spill] sm:$0xff]  ;;  %v14653_v36 = vld [vmem:[#allocation17_spill] sm:$0xff] }
 0x21d   : > { %v1580_v11 = vadd.f32 2.7557319e-06, %v1516_v0  ;;  %v1453_v34 = vadd.f32 -2.5052108e-08, %v1389_v13  ;;  %v1997_v35 = vadd.f32 -0.16666667, %v1933_v9 }
 0x21e   : > { %v1916_v55 = vmul.f32 %v1852_v44, %v14642_v28  ;;  %v1725_v7 = vadd.f32 -0.0001984127, %v1661_v3  ;;  %v2348_v6 = vmul.f32 2.0, %v2284_v14  ;;  %7832 = vmatmul.msk.f32.gmra.mxu0 %vm2686_vm2, %v9522_v12  ;;  %v2636_v5 = vmul.f32 %v2572_v48, %v2188_v43  ;;  %v14654_v3 = vld [vmem:[#allocation10_spill] sm:$0xff] }
 0x21f   : > { %v2492_v47 = vmul.f32 2.0, %v2428_v27  ;;  %v1644_v53 = vmul.f32 %v1580_v11, %v14648_v37  ;;  %v1517_v51 = vmul.f32 %v1453_v34, %v14651_v57  ;;  %v2061_v20 = vmul.f32 %v1997_v35, %v14641_v32 }
 0x220   : > { %v1980_v60 = vadd.f32 -0.16666667, %v1916_v55  ;;  %v1789_v22 = vmul.f32 %v1725_v7, %v14646_v54  ;;  %v2412_v1 = vsub.f32 %v14649_v17, %v2348_v6  ;;  %3002 = vmatpush.msra.mxu2 %v2636_v5  ;;  %v2493_v63 = vmul.f32 2.0, %v2429_v21 }
 0x221   : > { %v1708_v4 = vadd.f32 -0.0001984127, %v1644_v53  ;;  %v1581_v2 = vadd.f32 2.7557319e-06, %v1517_v51  ;;  %v2221_v62 = vmul.f32 0.5, %v14652_v50  ;;  %v2125_v48 = vmul.f32 %v2061_v20, %v14653_v36 }
 0x222   : > { %v2044_v39 = vmul.f32 %v1980_v60, %v14642_v28  ;;  %v1853_v27 = vadd.f32 0.008333334, %v1789_v22  ;;  %v9885_v0 = vmul.f32 2.0, %v2412_v1  ;;  %v1390_v17 = vmul.f32 1.6059044e-10, %v9342_v41 }
 0x223   : > { %v1772_v32 = vmul.f32 %v1708_v4, %v14648_v37  ;;  %v1645_v13 = vmul.f32 %v1581_v2, %v14651_v57  ;;  %v2285_v9 = vfloor.f32 %v2221_v62  ;;  %7836 = vmatmul.msk.f32.gmra.mxu1 %vm2686_vm2, %v9522_v12  ;;  %v2189_v44 = vadd.f32 %v2125_v48, %v14653_v36  ;;  %v14655_v62 = vld [vmem:[#allocation25_spill] sm:$0xff] }
 0x224   : > { %v2108_v14 = vmul.f32 %v2044_v39, %v14654_v3  ;;  %v2556_v43 = vsub.f32 1.0, %v2492_v47  ;;  %v1917_v28 = vmul.f32 %v1853_v27, %v14646_v54  ;;  %v2557_v21 = vsub.f32 1.0, %v2493_v63 }
 0x225   : > { %v1836_v11 = vadd.f32 0.008333334, %v1772_v32  ;;  %v1709_v34 = vadd.f32 -0.0001984127, %v1645_v13  ;;  %v2349_v35 = vmul.f32 2.0, %v2285_v9  ;;  %v2637_v55 = vmul.f32 %v2573_v45, %v2189_v44  ;;  %v14656_v32 = vld [vmem:[#allocation74_spill] sm:$0xff] }
 0x226   : > { %v2172_v7 = vadd.f32 %v2108_v14, %v14654_v3  ;;  %v1981_v6 = vadd.f32 -0.16666667, %v1917_v28  ;;  %v2540_v5 = vsub.f32 1.0, %v9885_v0  ;;  %7833 = vmatmul.msk.f32.gmra.mxu0 %vm2686_vm2, %v9716_v42  ;;  %v9902_v51 = vadd.f32 -2.5052108e-08, %v1390_v17 }
 0x227   : > { %v1900_v12 = vmul.f32 %v1836_v11, %v14648_v37  ;;  %v1773_v53 = vmul.f32 %v1709_v34, %v14651_v57  ;;  %v2413_v47 = vsub.f32 %v14652_v50, %v2349_v35  ;;  %3031 = vmatpush.msra.mxu3 %v2637_v55  ;;  %v2206_v60 = vadd.f32 %v9792_v19, %v9641_v26 }
 0x228   : > { %v2620_v20 = vmul.f32 %v2556_v43, %v2172_v7  ;;  %v2045_v45 = vmul.f32 %v1981_v6, %v14646_v54  ;;  %v2334_v22 = vfloor.f32 %v9655_v33  ;;  %v2207_v2 = vadd.f32 %v9796_v58, %v9668_v16  ;;  %v14657_v6 = vld [vmem:[#allocation75_spill] sm:$0xff] }
 0x229   : > { %v1964_v1 = vadd.f32 -0.16666667, %v1900_v12  ;;  %v1837_v63 = vadd.f32 0.008333334, %v1773_v53  ;;  %v2477_v4 = vmul.f32 2.0, %v2413_v47  ;;  %v2335_v48 = vfloor.f32 %v9658_v29 }
 0x22a   : > { %3003 = vmatpush.msra.mxu2 %v2620_v20  ;;  %v2109_v50 = vmul.f32 %v2045_v45, %v14655_v62  ;;  %v2398_v36 = vmul.f32 2.0, %v2334_v22  ;;  %v1422_v39 = vmul.f32 1.6059044e-10, %v9613_v38  ;;  %v2254_v33 = vmul.f32 0.5, %v9563_v23 }
 0x22b   : > { %v2028_v54 = vmul.f32 %v1964_v1, %v14648_v37  ;;  %v1901_v26 = vmul.f32 %v1837_v63, %v14651_v57  ;;  %v2541_v19 = vsub.f32 1.0, %v2477_v4  ;;  %7837 = vmatmul.msk.f32.gmra.mxu1 %vm2686_vm2, %v9716_v42  ;;  %v2399_v27 = vmul.f32 2.0, %v2335_v48 }
 0x22c   : > { %v2173_v16 = vadd.f32 %v2109_v50, %v14655_v62  ;;  %v2462_v58 = vsub.f32 %v9605_v24, %v2398_v36  ;;  %v1486_v0 = vadd.f32 -2.5052108e-08, %v1422_v39  ;;  %v2318_v9 = vfloor.f32 %v2254_v33 }
 0x22d   : > { %v2092_v29 = vmul.f32 %v2028_v54, %v14656_v32  ;;  %v1965_v13 = vadd.f32 -0.16666667, %v1901_v26  ;;  %v1423_v37 = vmul.f32 1.6059044e-10, %v9620_v59  ;;  %v2463_v3 = vsub.f32 %v9635_v8, %v2399_v27  ;;  %v14658_v54 = vld [vmem:[#allocation64_spill] sm:$0xff]  ;;  %v14659_v27 = vld [vmem:[#allocation33_spill] sm:$0xff] }
 0x22e   : > { %v2621_v17 = vmul.f32 %v2557_v21, %v2173_v16  ;;  %7834 = vmatmul.msk.f32.gmra.mxu0 %vm2686_vm2, %v9747_v15  ;;  %v2526_v44 = vmul.f32 2.0, %v2462_v58  ;;  %v1550_v14 = vmul.f32 %v1486_v0, %v9613_v38  ;;  %v2382_v28 = vmul.f32 2.0, %v2318_v9 }
 0x22f   : > { %v2156_v43 = vadd.f32 %v2092_v29, %v14656_v32  ;;  %v2029_v24 = vmul.f32 %v1965_v13, %v14651_v57  ;;  %v1487_v11 = vadd.f32 -2.5052108e-08, %v1423_v37  ;;  %v2527_v35 = vmul.f32 2.0, %v2463_v3  ;;  %v14660_v29 = vld [vmem:[#allocation53_spill] sm:$0xff] }
 0x230   : > { %3032 = vmatpush.msra.mxu3 %v2621_v17  ;;  %v2590_v34 = vsub.f32 1.0, %v2526_v44  ;;  %v1614_v55 = vadd.f32 2.7557319e-06, %v1550_v14  ;;  %v2255_v21 = vmul.f32 0.5, %v9569_v30  ;;  %v2446_v53 = vsub.f32 %v9563_v23, %v2382_v28  ;;  %v9942_v23 = vld [vmem:[%s13854_s2] sm:$0xff] }
 0x231   : > { %v2604_v7 = vmul.f32 %v2540_v5, %v2156_v43  ;;  %v2093_v12 = vmul.f32 %v2029_v24, %v14657_v6  ;;  %v1551_v8 = vmul.f32 %v1487_v11, %v9620_v59  ;;  %v2591_v20 = vsub.f32 1.0, %v2527_v35 }
 0x232   : > { %v2654_v47 = vmul.f32 %v2590_v34, %v2206_v60  ;;  %v1678_v45 = vmul.f32 %v1614_v55, %v9613_v38  ;;  %v2319_v57 = vfloor.f32 %v2255_v21  ;;  %v9936_v1 = vmul.f32 2.0, %v2446_v53  ;;  %v14661_v53 = vld [vmem:[#allocation48_spill] sm:$0xff] }
 0x233   : > { %3004 = vmatpush.msra.mxu2 %v2604_v7  ;;  %v2157_v22 = vadd.f32 %v2093_v12, %v14657_v6  ;;  %7838 = vmatmul.msk.f32.gmra.mxu1 %vm2686_vm2, %v9747_v15  ;;  %v1615_v5 = vadd.f32 2.7557319e-06, %v1551_v8  ;;  %v1406_v63 = vmul.f32 1.6059044e-10, %v9479_v52  ;;  %v2655_v60 = vmul.f32 %v2591_v20, %v2207_v2  ;;  %v9968_v7 = vld [vmem:[%s13854_s2 + $0x8] sm:$0xff] }
 0x234   : > { %7839 = vmatmul.msk.f32.vlgmr.msra.gmra.mxu2 %vm2686_vm2, %v9942_v23  ;;  %3059 = vmatpush.msrb.mxu0 %v2654_v47  ;;  %v1742_v4 = vadd.f32 -0.0001984127, %v1678_v45  ;;  %v2383_v62 = vmul.f32 2.0, %v2319_v57  ;;  %v2238_v50 = vmul.f32 0.5, %v9389_v61  ;;  %v1391_v26 = vmul.f32 1.6059044e-10, %v14658_v54 }
 0x235   : > { %v2605_v36 = vmul.f32 %v2541_v19, %v2157_v22  ;;  %v1679_v48 = vmul.f32 %v1615_v5, %v9620_v59  ;;  %v1470_v39 = vadd.f32 -2.5052108e-08, %v1406_v63  ;;  %3088 = vmatpush.msrb.mxu1 %v2655_v60  ;;  %v1407_v0 = vmul.f32 1.6059044e-10, %v14659_v27 }
 0x236   : > { %v1806_v33 = vmul.f32 %v1742_v4, %v9613_v38  ;;  %v2447_v16 = vsub.f32 %v9569_v30, %v2383_v62  ;;  %v2302_v58 = vfloor.f32 %v2238_v50  ;;  %v2239_v13 = vmul.f32 0.5, %v14660_v29 }
 0x237   : > { %3033 = vmatpush.msra.mxu3 %v2605_v36  ;;  %v1743_v2 = vadd.f32 -0.0001984127, %v1679_v48  ;;  %v1534_v32 = vmul.f32 %v1470_v39, %v9479_v52  ;;  %v1518_v19 = vmul.f32 %v9902_v51, %v9342_v41  ;;  %v2574_v37 = vsub.f32 1.0, %v9936_v1  ;;  %v14662_v36 = vld [vmem:[#allocation30_spill] sm:$0xff] }
 0x238   : > { %7843 = vmatmul.msk.f32.vlgmr.msra.gmra.mxu3 %vm2686_vm2, %v9942_v23  ;;  %v1870_v9 = vadd.f32 0.008333334, %v1806_v33  ;;  %v2366_v17 = vmul.f32 2.0, %v2302_v58  ;;  %v1471_v30 = vadd.f32 -2.5052108e-08, %v1407_v0  ;;  %v2303_v14 = vfloor.f32 %v2239_v13 }
 0x239   : > { %v1807_v44 = vmul.f32 %v1743_v2, %v9620_v59  ;;  %v1598_v3 = vadd.f32 2.7557319e-06, %v1534_v32  ;;  %v1582_v43 = vadd.f32 2.7557319e-06, %v1518_v19  ;;  %v2511_v28 = vmul.f32 2.0, %v2447_v16 }
 0x23a   : > { %v1934_v24 = vmul.f32 %v1870_v9, %v9613_v38  ;;  %v2430_v11 = vsub.f32 %v9389_v61, %v2366_v17  ;;  %v1535_v51 = vmul.f32 %v1471_v30, %v14659_v27  ;;  %v2367_v55 = vmul.f32 2.0, %v2303_v14  ;;  %v14663_v9 = vld [vmem:[#allocation58_spill] sm:$0xff] }
 0x23b   : > { %v1871_v34 = vadd.f32 0.008333334, %v1807_v44  ;;  %v1662_v35 = vmul.f32 %v1598_v3, %v9479_v52  ;;  %v1646_v21 = vmul.f32 %v1582_v43, %v9342_v41  ;;  %v2222_v8 = vmul.f32 0.5, %v14661_v53  ;;  %v14664_v44 = vld [vmem:[#allocation63_spill] sm:$0xff] }
 0x23c   : > { %7840 = vmatmul.msk.f32.gmra.mxu2 %vm2686_vm2, %v9968_v7  ;;  %v1998_v6 = vadd.f32 -0.16666667, %v1934_v24  ;;  %v9972_v12 = vmul.f32 2.0, %v2430_v11  ;;  %v1599_v61 = vadd.f32 2.7557319e-06, %v1535_v51  ;;  %v2431_v45 = vsub.f32 %v14660_v29, %v2367_v55 }
 0x23d   : > { %v1935_v47 = vmul.f32 %v1871_v34, %v9620_v59  ;;  %v1726_v20 = vadd.f32 -0.0001984127, %v1662_v35  ;;  %v1710_v57 = vadd.f32 -0.0001984127, %v1646_v21  ;;  %v2575_v1 = vsub.f32 1.0, %v2511_v28 }
 0x23e   : > { %v2062_v22 = vmul.f32 %v1998_v6, %v9613_v38  ;;  %v1663_v5 = vmul.f32 %v1599_v61, %v14659_v27  ;;  %v2286_v63 = vfloor.f32 %v2222_v8  ;;  %v2558_v62 = vsub.f32 1.0, %v9972_v12 }
 0x23f   : > { %v1999_v60 = vadd.f32 -0.16666667, %v1935_v47  ;;  %v1790_v4 = vmul.f32 %v1726_v20, %v9479_v52  ;;  %v1774_v50 = vmul.f32 %v1710_v57, %v9342_v41  ;;  %v1455_v16 = vadd.f32 -2.5052108e-08, %v1391_v26  ;;  %v14665_v57 = vld [vmem:[#allocation32_spill] sm:$0xff] }
 0x240   : > { %7844 = vmatmul.msk.f32.gmra.mxu3 %vm2686_vm2, %v9968_v7  ;;  %v2126_v48 = vmul.f32 %v2062_v22, %v14662_v36  ;;  %v1727_v39 = vadd.f32 -0.0001984127, %v1663_v5  ;;  %v2350_v33 = vmul.f32 2.0, %v2286_v63  ;;  %v9986_v0 = vmul.f32 2.0, %v2431_v45  ;;  %v14666_v5 = vld [vmem:[#allocation43_spill] sm:$0xff] }
 0x241   : > { %v2063_v38 = vmul.f32 %v1999_v60, %v9620_v59  ;;  %v1854_v58 = vadd.f32 0.008333334, %v1790_v4  ;;  %v1838_v2 = vadd.f32 0.008333334, %v1774_v50  ;;  %v1519_v19 = vmul.f32 %v1455_v16, %v14658_v54  ;;  %v14667_v4 = vld [vmem:[#allocation41_spill] sm:$0xff] }
 0x242   : > { %v2190_v32 = vadd.f32 %v2126_v48, %v14662_v36  ;;  %v1791_v29 = vmul.f32 %v1727_v39, %v14659_v27  ;;  %v2414_v13 = vsub.f32 %v14661_v53, %v2350_v33  ;;  %v2223_v59 = vmul.f32 0.5, %v14664_v44  ;;  %v14668_v48 = vld [vmem:[#allocation39_spill] sm:$0xff] }
 0x243   : > { %v2127_v17 = vmul.f32 %v2063_v38, %v14663_v9  ;;  %v1918_v30 = vmul.f32 %v1854_v58, %v9479_v52  ;;  %v1902_v26 = vmul.f32 %v1838_v2, %v9342_v41  ;;  %v1583_v24 = vadd.f32 2.7557319e-06, %v1519_v19 }
 0x244   : > { %7841 = vmatmul.msk.f32.gmra.mxu2 %vm2686_vm2, %v9716_v42  ;;  %v2638_v3 = vmul.f32 %v2574_v37, %v2190_v32  ;;  %v1855_v14 = vadd.f32 0.008333334, %v1791_v29  ;;  %v2478_v43 = vmul.f32 2.0, %v2414_v13  ;;  %v2287_v34 = vfloor.f32 %v2223_v59  ;;  %v14669_v13 = vld [vmem:[#allocation56_spill] sm:$0xff] }
 0x245   : > { %v2191_v28 = vadd.f32 %v2127_v17, %v14663_v9  ;;  %v1982_v11 = vadd.f32 -0.16666667, %v1918_v30  ;;  %v1966_v51 = vadd.f32 -0.16666667, %v1902_v26  ;;  %v2559_v55 = vsub.f32 1.0, %v9986_v0  ;;  %v14670_v9 = vld [vmem:[#allocation26_spill] sm:$0xff] }
 0x246   : > { %3060 = vmatpush.msrb.mxu0 %v2638_v3  ;;  %v1919_v35 = vmul.f32 %v1855_v14, %v14659_v27  ;;  %v2542_v21 = vsub.f32 1.0, %v2478_v43  ;;  %v1647_v6 = vmul.f32 %v1583_v24, %v14658_v54  ;;  %v2351_v53 = vmul.f32 2.0, %v2287_v34 }
 0x247   : > { %v2639_v12 = vmul.f32 %v2575_v1, %v2191_v28  ;;  %v2046_v61 = vmul.f32 %v1982_v11, %v9479_v52  ;;  %v2030_v37 = vmul.f32 %v1966_v51, %v9342_v41  ;;  %v2208_v20 = vadd.f32 %v9800_v49, %v9690_v18  ;;  %v14672_v51 = vld [vmem:[#allocation57_spill] sm:$0xff] }
 0x248   : > { %7845 = vmatmul.msk.f32.gmra.mxu3 %vm2686_vm2, %v9716_v42  ;;  %v1983_v8 = vadd.f32 -0.16666667, %v1919_v35  ;;  %v1711_v47 = vadd.f32 -0.0001984127, %v1647_v6  ;;  %v2336_v45 = vfloor.f32 %v9758_v40  ;;  %v2415_v52 = vsub.f32 %v14664_v44, %v2351_v53  ;;  %v14674_v35 = vld [vmem:[#allocation52_spill] sm:$0xff] }
 0x249   : > { %3089 = vmatpush.msrb.mxu1 %v2639_v12  ;;  %v2110_v22 = vmul.f32 %v2046_v61, %v14665_v57  ;;  %v2094_v1 = vmul.f32 %v2030_v37, %v14666_v5  ;;  %v2337_v41 = vfloor.f32 %v9761_v25  ;;  %v1424_v50 = vmul.f32 1.6059044e-10, %v14667_v4  ;;  %v14676_v37 = vld [vmem:[#allocation44_spill] sm:$0xff] }
 0x24a   : > { %v2047_v63 = vmul.f32 %v1983_v8, %v14659_v27  ;;  %v1775_v42 = vmul.f32 %v1711_v47, %v14658_v54  ;;  %v2400_v60 = vmul.f32 2.0, %v2336_v45  ;;  %v2209_v49 = vadd.f32 %v9842_v46, %v9711_v56 }
 0x24b   : > { %v2174_v18 = vadd.f32 %v2110_v22, %v14665_v57  ;;  %v2158_v40 = vadd.f32 %v2094_v1, %v14666_v5  ;;  %v2401_v36 = vmul.f32 2.0, %v2337_v41  ;;  %v1488_v33 = vadd.f32 -2.5052108e-08, %v1424_v50  ;;  %v14677_v22 = vld [vmem:[#allocation29_spill] sm:$0xff] }
 0x24c   : > { %v2111_v39 = vmul.f32 %v2047_v63, %v14668_v48  ;;  %7842 = vmatmul.msk.f32.gmra.mxu2 %vm2686_vm2, %v9747_v15  ;;  %v1839_v25 = vadd.f32 0.008333334, %v1775_v42  ;;  %v2464_v27 = vsub.f32 %v9665_v10, %v2400_v60  ;;  %v2479_v58 = vmul.f32 2.0, %v2415_v52  ;;  %v14671_v10 = vld [vmem:[#allocation38_spill] sm:$0xff]  ;;  %v14678_v63 = vld [vmem:[#allocation24_spill] sm:$0xff]  ;;  %v14679_v60 = vld [vmem:[#allocation35_spill] sm:$0xff] }
 0x24d   : > { %v2622_v16 = vmul.f32 %v2558_v62, %v2174_v18  ;;  %v2606_v38 = vmul.f32 %v2542_v21, %v2158_v40  ;;  %v2465_v0 = vsub.f32 %v9686_v31, %v2401_v36  ;;  %v1552_v46 = vmul.f32 %v1488_v33, %v14667_v4  ;;  %v14675_v21 = vld [vmem:[#allocation51_spill] sm:$0xff] }
 0x24e   : > { %v2175_v2 = vadd.f32 %v2111_v39, %v14668_v48  ;;  %v1903_v32 = vmul.f32 %v1839_v25, %v14658_v54  ;;  %v2528_v56 = vmul.f32 2.0, %v2464_v27  ;;  %v2256_v19 = vmul.f32 0.5, %v14669_v13 }
 0x24f   : > { %3061 = vmatpush.msrb.mxu0 %v2622_v16  ;;  %v2529_v29 = vmul.f32 2.0, %v2465_v0  ;;  %v1425_v17 = vmul.f32 1.6059044e-10, %v14670_v9  ;;  %v2257_v30 = vmul.f32 0.5, %v14671_v10  ;;  %v1616_v44 = vadd.f32 2.7557319e-06, %v1552_v46 }
 0x250   : > { %v2623_v62 = vmul.f32 %v2559_v55, %v2175_v2  ;;  %7846 = vmatmul.msk.f32.gmra.mxu3 %vm2686_vm2, %v9747_v15  ;;  %v1967_v31 = vadd.f32 -0.16666667, %v1903_v32  ;;  %v2592_v26 = vsub.f32 1.0, %v2528_v56  ;;  %v2320_v3 = vfloor.f32 %v2256_v19  ;;  %v14673_v15 = vld [vmem:[#allocation23_spill] sm:$0xff]  ;;  %v14680_v2 = vld [vmem:[#allocation66_spill] sm:$0xff] }
 0x251   : > { %3062 = vmatpush.msrb.mxu0 %v2606_v38  ;;  %v2593_v59 = vsub.f32 1.0, %v2529_v29  ;;  %v1489_v14 = vadd.f32 -2.5052108e-08, %v1425_v17  ;;  %v2321_v43 = vfloor.f32 %v2257_v30  ;;  %v1680_v11 = vmul.f32 %v1616_v44, %v14667_v4 }
 0x252   : > { %3090 = vmatpush.msrb.mxu1 %v2623_v62  ;;  %v2031_v24 = vmul.f32 %v1967_v31, %v14658_v54  ;;  %v2656_v28 = vmul.f32 %v2592_v26, %v2208_v20  ;;  %7847 = vmatmul.msk.f32.vlgmr.msrb.gmra.mxu0 %vm2686_vm2, %v9942_v23  ;;  %v1408_v34 = vmul.f32 1.6059044e-10, %v14672_v51  ;;  %v1137_v55 = vsub.f32 %v14674_v35, %v14673_v15  ;;  %v14682_v15 = vld [vmem:[#allocation40_spill] sm:$0xff] }
 0x253   : > { %v1201_v6 = vmul.f32 0.0009676536, %v14675_v21  ;;  %v2657_v12 = vmul.f32 %v2593_v59, %v2209_v49  ;;  %v1553_v61 = vmul.f32 %v1489_v14, %v14670_v9  ;;  %v1744_v54 = vadd.f32 -0.0001984127, %v1680_v11  ;;  %v14681_v11 = vld [vmem:[#allocation54_spill] sm:$0xff] }
 0x254   : > { %v2095_v53 = vmul.f32 %v2031_v24, %v14676_v37  ;;  %3117 = vmatpush.msrb.mxu2 %v2656_v28  ;;  %v2384_v8 = vmul.f32 2.0, %v2320_v3  ;;  %v1472_v47 = vadd.f32 -2.5052108e-08, %v1408_v34  ;;  %v2543_v20 = vsub.f32 1.0, %v2479_v58 }
 0x255   : > { %3146 = vmatpush.msrb.mxu3 %v2657_v12  ;;  %v1617_v45 = vadd.f32 2.7557319e-06, %v1553_v61  ;;  %v2385_v57 = vmul.f32 2.0, %v2321_v43  ;;  %v1409_v5 = vmul.f32 1.6059044e-10, %v14677_v22  ;;  %v1808_v52 = vmul.f32 %v1744_v54, %v14667_v4 }
 0x256   : > { %v2159_v1 = vadd.f32 %v2095_v53, %v14676_v37  ;;  %v1536_v41 = vmul.f32 %v1472_v47, %v14672_v51  ;;  %v2240_v42 = vmul.f32 0.5, %v14678_v63  ;;  %v10050_v50 = vmul.f32 %v14679_v60, %v14679_v60 }
 0x257   : > { %v10052_v18 = vsub.f32 %v1137_v55, %v1201_v6  ;;  %v1681_v40 = vmul.f32 %v1617_v45, %v14670_v9  ;;  %v1473_v49 = vadd.f32 -2.5052108e-08, %v1409_v5  ;;  %v1872_v48 = vadd.f32 0.008333334, %v1808_v52  ;;  %v10086_v45 = vld [vmem:[%s13854_s2 + $0x10] sm:$0xff] }
 0x258   : > { %v2607_v36 = vmul.f32 %v2543_v20, %v2159_v1  ;;  %v2448_v39 = vsub.f32 %v14669_v13, %v2384_v8  ;;  %v1600_v25 = vadd.f32 2.7557319e-06, %v1536_v41  ;;  %v2449_v33 = vsub.f32 %v14671_v10, %v2385_v57 }
 0x259   : > { %v1745_v27 = vadd.f32 -0.0001984127, %v1681_v40  ;;  %v1537_v16 = vmul.f32 %v1473_v49, %v14677_v22  ;;  %v1936_v38 = vmul.f32 %v1872_v48, %v14667_v4  ;;  %v2304_v0 = vfloor.f32 %v2240_v42  ;;  %v14683_v49 = vld [vmem:[#allocation61_spill] sm:$0xff] }
 0x25a   : > { %3091 = vmatpush.msrb.mxu1 %v2607_v36  ;;  %v1664_v58 = vmul.f32 %v1600_v25, %v14672_v51  ;;  %v2241_v32 = vmul.f32 0.5, %v14680_v2  ;;  %7848 = vmatmul.msk.f32.gmra.mxu0 %vm2686_vm2, %v9968_v7  ;;  %v1392_v29 = vmul.f32 1.6059044e-10, %v10050_v50  ;;  %v10069_v13 = vmul.f32 %v10052_v18, %v10052_v18 }
 0x25b   : > { %7851 = vmatmul.msk.f32.vlgmr.msrb.gmra.mxu1 %vm2686_vm2, %v9942_v23  ;;  %v1809_v56 = vmul.f32 %v1745_v27, %v14670_v9  ;;  %v1601_v46 = vadd.f32 2.7557319e-06, %v1537_v16  ;;  %v2000_v19 = vadd.f32 -0.16666667, %v1936_v38  ;;  %v2512_v17 = vmul.f32 2.0, %v2448_v39 }
 0x25c   : > { %v1728_v10 = vadd.f32 -0.0001984127, %v1664_v58  ;;  %v2305_v31 = vfloor.f32 %v2241_v32  ;;  %v1456_v26 = vadd.f32 -2.5052108e-08, %v1392_v29  ;;  %v2513_v59 = vmul.f32 2.0, %v2449_v33 }
 0x25d   : > { %v1873_v30 = vadd.f32 0.008333334, %v1809_v56  ;;  %v1665_v62 = vmul.f32 %v1601_v46, %v14677_v22  ;;  %v2064_v44 = vmul.f32 %v2000_v19, %v14667_v4  ;;  %v2368_v14 = vmul.f32 2.0, %v2304_v0  ;;  %v14684_v56 = vld [vmem:[#allocation47_spill] sm:$0xff] }
 0x25e   : > { %v1792_v3 = vmul.f32 %v1728_v10, %v14672_v51  ;;  %v1520_v28 = vmul.f32 %v1456_v26, %v10050_v50  ;;  %v2224_v34 = vmul.f32 0.5, %v14681_v11  ;;  %v2576_v55 = vsub.f32 1.0, %v2512_v17 }
 0x25f   : > { %v1937_v43 = vmul.f32 %v1873_v30, %v14670_v9  ;;  %v1729_v24 = vadd.f32 -0.0001984127, %v1665_v62  ;;  %v2128_v35 = vmul.f32 %v2064_v44, %v14682_v15  ;;  %v1393_v12 = vmul.f32 1.6059044e-10, %v10069_v13  ;;  %v10111_v44 = vld [vmem:[%s13854_s2 + $0x18] sm:$0xff] }
 0x260   : > { %v1856_v6 = vadd.f32 0.008333334, %v1792_v3  ;;  %v2369_v37 = vmul.f32 2.0, %v2305_v31  ;;  %v1584_v53 = vadd.f32 2.7557319e-06, %v1520_v28  ;;  %v2432_v47 = vsub.f32 %v14678_v63, %v2368_v14 }
 0x261   : > { %v2001_v61 = vadd.f32 -0.16666667, %v1937_v43  ;;  %v1793_v4 = vmul.f32 %v1729_v24, %v14677_v22  ;;  %v2192_v54 = vadd.f32 %v2128_v35, %v14682_v15  ;;  %v1457_v20 = vadd.f32 -2.5052108e-08, %v1393_v12 }
 0x262   : > { %v1920_v8 = vmul.f32 %v1856_v6, %v14672_v51  ;;  %7849 = vmatmul.msk.f32.gmra.mxu0 %vm2686_vm2, %v10086_v45  ;;  %v1648_v1 = vmul.f32 %v1584_v53, %v10050_v50  ;;  %v2288_v52 = vfloor.f32 %v2224_v34  ;;  %v2577_v63 = vsub.f32 1.0, %v2513_v59  ;;  %v14685_v59 = vld [vmem:[#allocation46_spill] sm:$0xff]  ;;  %v2745_v53 = vpop.f32.mrf.mxu1 }
 0x263   : > { %v2065_v57 = vmul.f32 %v2001_v61, %v14670_v9  ;;  %v1857_v5 = vadd.f32 0.008333334, %v1793_v4  ;;  %7852 = vmatmul.msk.f32.gmra.mxu1 %vm2686_vm2, %v9968_v7  ;;  %v2640_v41 = vmul.f32 %v2576_v55, %v2192_v54  ;;  %v1521_v40 = vmul.f32 %v1457_v20, %v10069_v13  ;;  %v2716_v55 = vpop.f32.mrf.mxu0 }
 0x264   : > { %v1984_v42 = vadd.f32 -0.16666667, %v1920_v8  ;;  %v2433_v39 = vsub.f32 %v14680_v2, %v2369_v37  ;;  %v1712_v25 = vadd.f32 -0.0001984127, %v1648_v1  ;;  %v2496_v27 = vmul.f32 2.0, %v2432_v47  ;;  %v10104_v2 = vpop.permute.xlu1 %2673 }
 0x265   : > { %v2129_v36 = vmul.f32 %v2065_v57, %v14683_v49  ;;  %v1921_v48 = vmul.f32 %v1857_v5, %v14677_v22  ;;  %3118 = vmatpush.msrb.mxu2 %v2640_v41  ;;  %v1585_v33 = vadd.f32 2.7557319e-06, %v1521_v40  ;;  %v2225_v16 = vmul.f32 0.5, %v14675_v21 }
 0x266   : > { %v2048_v9 = vmul.f32 %v1984_v42, %v14672_v51  ;;  %v1776_v0 = vmul.f32 %v1712_v25, %v10050_v50  ;;  %v2352_v32 = vmul.f32 2.0, %v2288_v52  ;;  %v2497_v10 = vmul.f32 2.0, %v2433_v39  ;;  %v10140_v25 = vpop.permute.xlu0 %2683 }
 0x267   : > { %v2193_v38 = vadd.f32 %v2129_v36, %v14683_v49  ;;  %v1985_v58 = vadd.f32 -0.16666667, %v1921_v48  ;;  %v1649_v29 = vmul.f32 %v1585_v33, %v10069_v13  ;;  %v2289_v19 = vfloor.f32 %v2225_v16  ;;  %v2803_v33 = vpop.f32.mrf.mxu3 }
 0x268   : > { %v2112_v46 = vmul.f32 %v2048_v9, %v14684_v56  ;;  %v1840_v30 = vadd.f32 0.008333334, %v1776_v0  ;;  %v2560_v31 = vsub.f32 1.0, %v2496_v27  ;;  %v2561_v15 = vsub.f32 1.0, %v2497_v10  ;;  %v2774_v27 = vpop.f32.mrf.mxu2 }
 0x269   : > { %v2641_v17 = vmul.f32 %v2577_v63, %v2193_v38  ;;  %v2049_v51 = vmul.f32 %v1985_v58, %v14677_v22  ;;  %v1713_v26 = vadd.f32 -0.0001984127, %v1649_v29  ;;  %v2416_v22 = vsub.f32 %v14681_v11, %v2352_v32 }
 0x26a   : > { %v2176_v62 = vadd.f32 %v2112_v46, %v14684_v56  ;;  %7850 = vmatmul.msk.f32.gmra.mxu0 %vm2686_vm2, %v10111_v44  ;;  %v1904_v14 = vmul.f32 %v1840_v30, %v10050_v50  ;;  %v2353_v28 = vmul.f32 2.0, %v2289_v19  ;;  %v2748_v36 = vpop.f32.mrf.mxu1 }
 0x26b   : > { %3147 = vmatpush.msrb.mxu3 %v2641_v17  ;;  %v2113_v3 = vmul.f32 %v2049_v51, %v14685_v59  ;;  %7853 = vmatmul.msk.f32.gmra.mxu1 %vm2686_vm2, %v10086_v45  ;;  %v1777_v24 = vmul.f32 %v1713_v26, %v10069_v13  ;;  %v2480_v4 = vmul.f32 2.0, %v2416_v22  ;;  %v10152_v58 = vadd.f32 %v2748_v36, %v10104_v2 }
 0x26c   : > { %v2624_v43 = vmul.f32 %v2560_v31, %v2176_v62  ;;  %v1968_v35 = vadd.f32 -0.16666667, %v1904_v14  ;;  %v2417_v37 = vsub.f32 %v14675_v21, %v2353_v28  ;;  %v10126_v47 = vpop.permute.xlu1 %2668  ;;  %v2719_v21 = vpop.f32.mrf.mxu0 }
 0x26d   : > { %v2177_v34 = vadd.f32 %v2113_v3, %v14685_v59  ;;  %v1841_v6 = vadd.f32 0.008333334, %v1777_v24  ;;  %v2544_v57 = vsub.f32 1.0, %v2480_v4  ;;  %v2717_v52 = vadd.f32 %v2716_v55, %v10126_v47 }
 0x26e   : > { %3119 = vmatpush.msrb.mxu2 %v2624_v43  ;;  %v2032_v61 = vmul.f32 %v1968_v35, %v10050_v50  ;;  %v2481_v5 = vmul.f32 2.0, %v2417_v37  ;;  %v2746_v63 = vadd.f32 %v2745_v53, %v10126_v47  ;;  %v10147_v16 = vadd.f32 %v2719_v21, %v10104_v2  ;;  %v10169_v51 = vpop.permute.xlu0 %2678 }
 0x26f   : > { %v2625_v12 = vmul.f32 %v2561_v15, %v2177_v34  ;;  %v1905_v11 = vmul.f32 %v1841_v6, %v10069_v13  ;;  %v10158_v32 = vadd.f32 %v2774_v27, %v10126_v47  ;;  %v10163_v19 = vadd.f32 %v2803_v33, %v10126_v47  ;;  %v2806_v24 = vpop.f32.mrf.mxu3 }
 0x270   : > { %v2096_v54 = vmul.f32 %v2032_v61, %v14679_v60  ;;  %v2545_v40 = vsub.f32 1.0, %v2481_v5  ;;  %v3179_v46 = vmul.f32 0.31830987, %v10147_v16  ;;  %v2777_v43 = vpop.f32.mrf.mxu2  ;;  %v10191_v61 = vadd.f32 %v2806_v24, %v10104_v2 }
 0x271   : > { %3148 = vmatpush.msrb.mxu3 %v2625_v12  ;;  %v1969_v8 = vadd.f32 -0.16666667, %v1905_v11  ;;  %v3165_v62 = vmul.f32 0.31830987, %v10158_v32  ;;  %v3166_v14 = vmul.f32 0.31830987, %v10163_v19  ;;  %v10188_v12 = vadd.f32 %v2777_v43, %v10104_v2 }
 0x272   : > { %v2160_v20 = vadd.f32 %v2096_v54, %v14679_v60  ;;  %v3163_v60 = vmul.f32 0.31830987, %v2717_v52  ;;  %v3243_v31 = vadd.f32 0.5, %v3179_v46 }
 0x273   : > { %7854 = vmatmul.msk.f32.gmra.mxu1 %vm2686_vm2, %v10111_v44  ;;  %v2033_v50 = vmul.f32 %v1969_v8, %v10069_v13  ;;  %v3164_v13 = vmul.f32 0.31830987, %v2746_v63  ;;  %v3229_v35 = vadd.f32 0.5, %v3165_v62 }
 0x274   : > { %v2608_v1 = vmul.f32 %v2544_v57, %v2160_v20  ;;  %v3227_v48 = vadd.f32 0.5, %v3163_v60  ;;  %v2722_v39 = vpop.f32.mrf.mxu0  ;;  %v10185_v6 = vfloor.f32 %v3243_v31 }
 0x275   : > { %v2097_v41 = vmul.f32 %v2033_v50, %v10052_v18  ;;  %v3228_v9 = vadd.f32 0.5, %v3164_v13  ;;  %v10176_v22 = vadd.f32 %v2722_v39, %v10169_v51  ;;  %v10209_v5 = vfloor.f32 %v3229_v35 }
 0x276   : > { %3120 = vmatpush.msrb.mxu2 %v2608_v1  ;;  %v3371_v21 = vmul.f32 3.140625, %v10185_v6  ;;  %v3499_v13 = vmul.f32 0.0009676536, %v10185_v6 }
 0x277   : > { %v2161_v42 = vadd.f32 %v2097_v41, %v10052_v18  ;;  %7855 = vmatmul.msk.f32.vlgmr.msrb.gmra.mxu2 %vm2686_vm2, %v9942_v23  ;;  %v10144_v18 = vfloor.f32 %v3227_v48  ;;  %v10149_v38 = vfloor.f32 %v3228_v9  ;;  %v3195_v53 = vmul.f32 0.31830987, %v10176_v22  ;;  %14688 = vst [vmem:[#allocation49_spill] sm:$0xff] %v10209_v5  ;;  %v2809_v46 = vpop.f32.mrf.mxu3 }
 0x278   : > { %v3181_v41 = vmul.f32 0.31830987, %v10188_v12  ;;  %v3357_v27 = vmul.f32 3.140625, %v10209_v5  ;;  %v3485_v33 = vmul.f32 0.0009676536, %v10209_v5 }
 0x279   : > { %v2609_v49 = vmul.f32 %v2545_v40, %v2161_v42  ;;  %v3355_v0 = vmul.f32 3.140625, %v10144_v18  ;;  %v3356_v29 = vmul.f32 3.140625, %v10149_v38  ;;  %v3483_v30 = vmul.f32 0.0009676536, %v10144_v18 }
 0x27a   : > { %v3484_v3 = vmul.f32 0.0009676536, %v10149_v38  ;;  %v3421_v43 = vsub.f32 %v10158_v32, %v3357_v27 }
 0x27b   : > { %3149 = vmatpush.msrb.mxu3 %v2609_v49  ;;  %v3419_v10 = vsub.f32 %v2717_v52, %v3355_v0  ;;  %v3420_v59 = vsub.f32 %v2746_v63, %v3356_v29  ;;  %v3182_v63 = vmul.f32 0.31830987, %v10191_v61  ;;  %v3259_v49 = vadd.f32 0.5, %v3195_v53 }
 0x27c   : > { %7859 = vmatmul.msk.f32.vlgmr.msrb.gmra.mxu3 %vm2686_vm2, %v9942_v23  ;;  %v2751_v23 = vpop.f32.mrf.mxu1  ;;  %v2725_v56 = vpop.f32.mrf.mxu0  ;;  %v3435_v29 = vsub.f32 %v10147_v16, %v3371_v21 }
 0x27d   : > { %v2726_v17 = vadd.f32 %v2725_v56, %v10140_v25  ;;  %v10180_v15 = vsub.f32 %v3419_v10, %v3483_v30  ;;  %v10183_v55 = vadd.f32 %v2751_v23, %v10169_v51  ;;  %v10195_v37 = vsub.f32 %v3420_v59, %v3484_v3  ;;  %v2780_v56 = vpop.f32.mrf.mxu2 }
 0x27e   : > { %v10245_v16 = vadd.f32 %v2780_v56, %v10169_v51  ;;  %v10248_v3 = vadd.f32 %v2809_v46, %v10169_v51  ;;  %v10254_v35 = vsub.f32 %v3435_v29, %v3499_v13 }
 0x27f   : > { %7856 = vmatmul.msk.f32.gmra.mxu2 %vm2686_vm2, %v9968_v7  ;;  %v3211_v26 = vmul.f32 0.31830987, %v2726_v17  ;;  %14686 = vst [vmem:[#allocation28_spill] sm:$0xff] %v10180_v15  ;;  %v10207_v50 = vmul.f32 %v10180_v15, %v10180_v15  ;;  %v3196_v1 = vmul.f32 0.31830987, %v10183_v55  ;;  %v10217_v40 = vmul.f32 %v10195_v37, %v10195_v37 }
 0x280   : > { %14687 = vst [vmem:[#allocation42_spill] sm:$0xff] %v10195_v37  ;;  %v3197_v21 = vmul.f32 0.31830987, %v10245_v16 }
 0x281   : > { %v3275_v34 = vadd.f32 0.5, %v3211_v26  ;;  %v3260_v23 = vadd.f32 0.5, %v3196_v1 }
 0x283   : > { %v10193_v4 = vfloor.f32 %v3275_v34 }
 0x284   : > { %7860 = vmatmul.msk.f32.gmra.mxu3 %vm2686_vm2, %v9968_v7  ;;  %v3180_v7 = vmul.f32 0.31830987, %v10152_v58  ;;  %v2754_v11 = vpop.f32.mrf.mxu1 }
 0x285   : > { %v2755_v54 = vadd.f32 %v2754_v11, %v10140_v25  ;;  %v3403_v20 = vmul.f32 3.140625, %v10193_v4  ;;  %v3531_v57 = vmul.f32 0.0009676536, %v10193_v4  ;;  %v2783_v46 = vpop.f32.mrf.mxu2 }
 0x286   : > { %v3244_v28 = vadd.f32 0.5, %v3180_v7  ;;  %v3246_v7 = vadd.f32 0.5, %v3182_v63  ;;  %v10272_v63 = vsub.f32 %v3421_v43, %v3485_v33 }
 0x287   : > { %7857 = vmatmul.msk.f32.gmra.mxu2 %vm2686_vm2, %v10086_v45  ;;  %v3212_v52 = vmul.f32 0.31830987, %v2755_v54  ;;  %v3467_v42 = vsub.f32 %v2726_v17, %v3403_v20  ;;  %v3245_v17 = vadd.f32 0.5, %v3181_v41  ;;  %v3198_v41 = vmul.f32 0.31830987, %v10248_v3 }
 0x288   : > { %v10201_v8 = vfloor.f32 %v3244_v28  ;;  %v10252_v28 = vfloor.f32 %v3260_v23  ;;  %14692 = vst [vmem:[#allocation45_spill] sm:$0xff] %v10272_v63 }
 0x289   : > { %v3276_v36 = vadd.f32 0.5, %v3212_v52  ;;  %v10224_v9 = vsub.f32 %v3467_v42, %v3531_v57  ;;  %v10256_v11 = vfloor.f32 %v3245_v17 }
 0x28a   : > { %v3372_v48 = vmul.f32 3.140625, %v10201_v8  ;;  %v3500_v39 = vmul.f32 0.0009676536, %v10201_v8  ;;  %v3388_v42 = vmul.f32 3.140625, %v10252_v28 }
 0x28b   : > { %v10230_v0 = vfloor.f32 %v3276_v36  ;;  %v10235_v10 = vmul.f32 %v10224_v9, %v10224_v9  ;;  %14690 = vst [vmem:[#allocation31_spill] sm:$0xff] %v10256_v11  ;;  %v10284_v36 = vmul.f32 %v10254_v35, %v10254_v35  ;;  %v3373_v13 = vmul.f32 3.140625, %v10256_v11 }
 0x28c   : > { %7861 = vmatmul.msk.f32.gmra.mxu3 %vm2686_vm2, %v10086_v45  ;;  %v3230_v45 = vadd.f32 0.5, %v3166_v14  ;;  %v3436_v26 = vsub.f32 %v10152_v58, %v3372_v48  ;;  %v2832_v14 = vpop.f32.mrf.mxu0  ;;  %v10258_v58 = vfloor.f32 %v3246_v7  ;;  %v2861_v53 = vpop.f32.mrf.mxu1  ;;  %v3261_v7 = vadd.f32 0.5, %v3197_v21 }
 0x28d   : > { %v3404_v62 = vmul.f32 3.140625, %v10230_v0  ;;  %v3532_v31 = vmul.f32 0.0009676536, %v10230_v0  ;;  %v3723_v59 = vmul.f32 1.6059044e-10, %v10235_v10  ;;  %v10265_v32 = vadd.f32 %v2832_v14, %v10126_v47 }
 0x28e   : > { %v10219_v60 = vfloor.f32 %v3230_v45  ;;  %14691 = vst [vmem:[#allocation36_spill] sm:$0xff] %v10258_v58  ;;  %v10267_v52 = vsub.f32 %v3436_v26, %v3500_v39  ;;  %v3374_v48 = vmul.f32 3.140625, %v10258_v58 }
 0x28f   : > { %7858 = vmatmul.msk.f32.gmra.mxu2 %vm2686_vm2, %v10111_v44  ;;  %v3468_v34 = vsub.f32 %v2755_v54, %v3404_v62  ;;  %v3787_v45 = vadd.f32 -2.5052108e-08, %v3723_v59  ;;  %v3167_v56 = vmul.f32 0.31830987, %v10265_v32  ;;  %v3452_v62 = vsub.f32 %v10183_v55, %v3388_v42 }
 0x290   : > { %14689 = vst [vmem:[#allocation50_spill] sm:$0xff] %v10219_v60  ;;  %v3358_v30 = vmul.f32 3.140625, %v10219_v60  ;;  %v3486_v24 = vmul.f32 0.0009676536, %v10219_v60  ;;  %v3437_v59 = vsub.f32 %v10188_v12, %v3373_v13  ;;  %v3438_v14 = vsub.f32 %v10191_v61, %v3374_v48 }
 0x291   : > { %v10262_v1 = vsub.f32 %v3468_v34, %v3532_v31  ;;  %v3851_v54 = vmul.f32 %v3787_v45, %v10235_v10  ;;  %v3516_v31 = vmul.f32 0.0009676536, %v10252_v28  ;;  %v2784_v34 = vadd.f32 %v2783_v46, %v10140_v25 }
 0x292   : > { %v3422_v20 = vsub.f32 %v10163_v19, %v3358_v30  ;;  %v3262_v30 = vadd.f32 0.5, %v3198_v41  ;;  %v3501_v45 = vmul.f32 0.0009676536, %v10256_v11  ;;  %v3502_v55 = vmul.f32 0.0009676536, %v10258_v58 }
 0x293   : > { %v10277_v19 = vmul.f32 %v10262_v1, %v10262_v1  ;;  %v3915_v39 = vadd.f32 2.7557319e-06, %v3851_v54  ;;  %v3213_v21 = vmul.f32 0.31830987, %v2784_v34  ;;  %v10312_v12 = vmul.f32 %v10267_v52, %v10267_v52 }
 0x294   : > { %7862 = vmatmul.msk.f32.gmra.mxu3 %vm2686_vm2, %v10111_v44  ;;  %v10238_v44 = vfloor.f32 %v3259_v49  ;;  %v10280_v49 = vadd.f32 %v2861_v53, %v10126_v47  ;;  %v10292_v29 = vsub.f32 %v3422_v20, %v3486_v24  ;;  %v3231_v20 = vadd.f32 0.5, %v3167_v56 }
 0x295   : > { %v3724_v23 = vmul.f32 1.6059044e-10, %v10277_v19  ;;  %v3979_v17 = vmul.f32 %v3915_v39, %v10235_v10  ;;  %v10308_v54 = vfloor.f32 %v3262_v30  ;;  %v10315_v13 = vsub.f32 %v3452_v62, %v3516_v31  ;;  %v2812_v31 = vpop.f32.mrf.mxu3 }
 0x296   : > { %v3387_v57 = vmul.f32 3.140625, %v10238_v44  ;;  %v3515_v33 = vmul.f32 0.0009676536, %v10238_v44  ;;  %14693 = vst [vmem:[#allocation37_spill] sm:$0xff] %v10292_v29  ;;  %v10317_v48 = vsub.f32 %v3437_v59, %v3501_v45  ;;  %v10319_v39 = vsub.f32 %v3438_v14, %v3502_v55 }
 0x297   : > { %v3788_v26 = vadd.f32 -2.5052108e-08, %v3724_v23  ;;  %v4043_v43 = vadd.f32 -0.0001984127, %v3979_v17  ;;  %14695 = vst [vmem:[#allocation13_spill] sm:$0xff] %v10308_v54  ;;  %v10327_v23 = vmul.f32 %v10292_v29, %v10292_v29  ;;  %v10330_v46 = vfloor.f32 %v3231_v20 }
 0x298   : > { %v3451_v27 = vsub.f32 %v10176_v22, %v3387_v57  ;;  %v3168_v22 = vmul.f32 0.31830987, %v10280_v49  ;;  %v10306_v57 = vfloor.f32 %v3261_v7  ;;  %14696 = vst [vmem:[#allocation73_spill] sm:$0xff] %v10317_v48  ;;  %v3390_v30 = vmul.f32 3.140625, %v10308_v54 }
 0x299   : > { %v3852_v53 = vmul.f32 %v3788_v26, %v10277_v19  ;;  %v4107_v61 = vmul.f32 %v4043_v43, %v10235_v10  ;;  %14697 = vst [vmem:[#allocation18_spill] sm:$0xff] %v10319_v39  ;;  %v2813_v14 = vadd.f32 %v2812_v31, %v10140_v25  ;;  %v10345_v43 = vmul.f32 %v10315_v13, %v10315_v13 }
 0x29a   : > { %v10301_v24 = vsub.f32 %v3451_v27, %v3515_v33  ;;  %14694 = vst [vmem:[#allocation55_spill] sm:$0xff] %v10306_v57  ;;  %v3232_v42 = vadd.f32 0.5, %v3168_v22  ;;  %v3277_v27 = vadd.f32 0.5, %v3213_v21  ;;  %v10323_v33 = vmul.f32 %v10272_v63, %v10272_v63 }
 0x29b   : > { %v3916_v41 = vadd.f32 2.7557319e-06, %v3852_v53  ;;  %14699 = vst [vmem:[#allocation59_spill] sm:$0xff] %v10327_v23  ;;  %v3389_v7 = vmul.f32 3.140625, %v10306_v57  ;;  %v4171_v26 = vadd.f32 0.008333334, %v4107_v61  ;;  %v10349_v45 = vmul.f32 %v10317_v48, %v10317_v48 }
 0x29c   : > { %14698 = vst [vmem:[#allocation9_spill] sm:$0xff] %v10323_v33  ;;  %v10334_v17 = vmul.f32 %v10301_v24, %v10301_v24  ;;  %v10338_v62 = vfloor.f32 %v3277_v27  ;;  %v10340_v59 = vfloor.f32 %v3232_v42  ;;  %v10353_v53 = vmul.f32 %v10319_v39, %v10319_v39 }
 0x29d   : > { %v3980_v56 = vmul.f32 %v3916_v41, %v10277_v19  ;;  %14700 = vst [vmem:[#allocation81_spill] sm:$0xff] %v10330_v46  ;;  %v10357_v55 = vmul.f32 0.5, %v10193_v4  ;;  %v3359_v61 = vmul.f32 3.140625, %v10330_v46  ;;  %v3214_v41 = vmul.f32 0.31830987, %v2813_v14 }
 0x29e   : > { %14701 = vst [vmem:[#allocation6_spill] sm:$0xff] %v10338_v62  ;;  %v3405_v20 = vmul.f32 3.140625, %v10338_v62  ;;  %v3453_v42 = vsub.f32 %v10245_v16, %v3389_v7  ;;  %v3454_v27 = vsub.f32 %v10248_v3, %v3390_v30  ;;  %v3533_v31 = vmul.f32 0.0009676536, %v10338_v62  ;;  %v2835_v30 = vpop.f32.mrf.mxu0 }
 0x29f   : > { %v4044_v22 = vadd.f32 -0.0001984127, %v3980_v56  ;;  %14702 = vst [vmem:[#allocation14_spill] sm:$0xff] %v10340_v59  ;;  %v4235_v29 = vmul.f32 %v4171_v26, %v10235_v10  ;;  %v3360_v39 = vmul.f32 3.140625, %v10340_v59  ;;  %v3278_v48 = vadd.f32 0.5, %v3214_v41  ;;  %v2864_v26 = vpop.f32.mrf.mxu1 }
 0x2a0   : > { %14703 = vst [vmem:[#allocation27_spill] sm:$0xff] %v10349_v45  ;;  %v3469_v56 = vsub.f32 %v2784_v34, %v3405_v20  ;;  %v3517_v60 = vmul.f32 0.0009676536, %v10306_v57  ;;  %v3487_v23 = vmul.f32 0.0009676536, %v10330_v46  ;;  %v3423_v3 = vsub.f32 %v10265_v32, %v3359_v61  ;;  %v2919_v32 = vpop.f32.mrf.mxu3 }
 0x2a1   : > { %14704 = vst [vmem:[#allocation76_spill] sm:$0xff] %v10353_v53  ;;  %v4108_v21 = vmul.f32 %v4044_v22, %v10277_v19  ;;  %v3518_v22 = vmul.f32 0.0009676536, %v10308_v54  ;;  %v3488_v34 = vmul.f32 0.0009676536, %v10340_v59  ;;  %v10374_v7 = vfloor.f32 %v3278_v48 }
 0x2a2   : > { %v10369_v5 = vsub.f32 %v3469_v56, %v3533_v31  ;;  %v10376_v20 = vsub.f32 %v3453_v42, %v3517_v60  ;;  %v10383_v41 = vadd.f32 %v2835_v30, %v10104_v2  ;;  %v10386_v56 = vadd.f32 %v2864_v26, %v10104_v2 }
 0x2a3   : > { %v4172_v63 = vadd.f32 0.008333334, %v4108_v21  ;;  %14705 = vst [vmem:[#allocation69_spill] sm:$0xff] %v10374_v7  ;;  %v4299_v61 = vadd.f32 -0.16666667, %v4235_v29  ;;  %v10388_v31 = vsub.f32 %v3454_v27, %v3518_v22  ;;  %v3424_v48 = vsub.f32 %v10280_v49, %v3360_v39 }
 0x2a4   : > { %14706 = vst [vmem:[#allocation16_spill] sm:$0xff] %v10376_v20  ;;  %v10380_v21 = vmul.f32 %v10369_v5, %v10369_v5  ;;  %v3406_v60 = vmul.f32 3.140625, %v10374_v7  ;;  %v3183_v59 = vmul.f32 0.31830987, %v10383_v41  ;;  %v3184_v46 = vmul.f32 0.31830987, %v10386_v56 }
 0x2a5   : > { %v4236_v16 = vmul.f32 %v4172_v63, %v10277_v19  ;;  %v2890_v63 = vpop.f32.mrf.mxu2  ;;  %14707 = vst [vmem:[#allocation78_spill] sm:$0xff] %v10388_v31  ;;  %v3534_v58 = vmul.f32 0.0009676536, %v10374_v7  ;;  %v10400_v29 = vadd.f32 %v2919_v32, %v10126_v47  ;;  %v10403_v53 = vsub.f32 %v3423_v3, %v3487_v23 }
 0x2a6   : > { %v3725_v42 = vmul.f32 1.6059044e-10, %v10380_v21  ;;  %v10396_v30 = vadd.f32 %v2890_v63, %v10126_v47  ;;  %v3470_v33 = vsub.f32 %v2813_v14, %v3406_v60  ;;  %v3247_v49 = vadd.f32 0.5, %v3183_v59 }
 0x2a7   : > { %v4300_v26 = vadd.f32 -0.16666667, %v4236_v16  ;;  %v3248_v39 = vadd.f32 0.5, %v3184_v46  ;;  %14708 = vst [vmem:[#allocation62_spill] sm:$0xff] %v10403_v53  ;;  %v10405_v11 = vsub.f32 %v3424_v48, %v3488_v34  ;;  %v3170_v63 = vmul.f32 0.31830987, %v10400_v29 }
 0x2a8   : > { %v3789_v27 = vadd.f32 -2.5052108e-08, %v3725_v42  ;;  %v3169_v22 = vmul.f32 0.31830987, %v10396_v30  ;;  %v10407_v45 = vsub.f32 %v3470_v33, %v3534_v58  ;;  %v10411_v16 = vfloor.f32 %v3247_v49  ;;  %v2838_v33 = vpop.f32.mrf.mxu0  ;;  %v2922_v54 = vpop.f32.mrf.mxu3 }
 0x2a9   : > { %14709 = vst [vmem:[#allocation70_spill] sm:$0xff] %v10405_v11  ;;  %v10413_v60 = vfloor.f32 %v3248_v39  ;;  %v4363_v59 = vmul.f32 %v4299_v61, %v10235_v10  ;;  %v10417_v46 = vmul.f32 0.5, %v10230_v0  ;;  %v3234_v58 = vadd.f32 0.5, %v3170_v63 }
 0x2aa   : > { %v3853_v14 = vmul.f32 %v3789_v27, %v10380_v21  ;;  %14710 = vst [vmem:[#allocation65_spill] sm:$0xff] %v10411_v16  ;;  %v3233_v32 = vadd.f32 0.5, %v3169_v22  ;;  %v10421_v23 = vmul.f32 %v10407_v45, %v10407_v45  ;;  %v4364_v3 = vmul.f32 %v4300_v26, %v10277_v19 }
 0x2ab   : > { %14711 = vst [vmem:[#allocation34_spill] sm:$0xff] %v10413_v60  ;;  %v10426_v34 = vmul.f32 %v10376_v20, %v10376_v20  ;;  %v10430_v48 = vmul.f32 %v10388_v31, %v10388_v31  ;;  %v10434_v61 = vmul.f32 %v10403_v53, %v10403_v53  ;;  %v3375_v27 = vmul.f32 3.140625, %v10411_v16 }
 0x2ac   : > { %v3917_v10 = vadd.f32 2.7557319e-06, %v3853_v14  ;;  %v3726_v42 = vmul.f32 1.6059044e-10, %v10421_v23  ;;  %v10438_v49 = vfloor.f32 %v3233_v32  ;;  %v10442_v19 = vmul.f32 %v10405_v11, %v10405_v11 }
 0x2ad   : > { %14712 = vst [vmem:[#allocation22_spill] sm:$0xff] %v10426_v34  ;;  %v3376_v39 = vmul.f32 3.140625, %v10413_v60  ;;  %v10447_v22 = vadd.f32 %v2838_v33, %v10169_v51  ;;  %v10450_v63 = vmul.f32 %v4363_v59, %v10224_v9  ;;  %v10453_v14 = vmul.f32 0.5, %v10338_v62 }
 0x2ae   : > { %14713 = vst [vmem:[#allocation60_spill] sm:$0xff] %v10430_v48  ;;  %v3981_v26 = vmul.f32 %v3917_v10, %v10380_v21  ;;  %v3790_v53 = vadd.f32 -2.5052108e-08, %v3726_v42  ;;  %v10455_v32 = vfloor.f32 %v3234_v58  ;;  %v10458_v11 = vmul.f32 %v4364_v3, %v10262_v1  ;;  %v2893_v58 = vpop.f32.mrf.mxu2 }
 0x2af   : > { %14714 = vst [vmem:[#allocation79_spill] sm:$0xff] %v10434_v61  ;;  %v2867_v61 = vpop.f32.mrf.mxu1  ;;  %v10461_v10 = vmul.f32 0.5, %v10374_v7  ;;  %v3503_v33 = vmul.f32 0.0009676536, %v10411_v16  ;;  %v3439_v59 = vsub.f32 %v10383_v41, %v3375_v27  ;;  %v3361_v20 = vmul.f32 3.140625, %v10438_v49 }
 0x2b0   : > { %14715 = vst [vmem:[#allocation11_spill] sm:$0xff] %v10438_v49  ;;  %v3854_v31 = vmul.f32 %v3790_v53, %v10421_v23  ;;  %v3199_v42 = vmul.f32 0.31830987, %v10447_v22  ;;  %v3440_v3 = vsub.f32 %v10386_v56, %v3376_v39  ;;  %v2868_v7 = vadd.f32 %v2867_v61, %v10169_v51 }
 0x2b1   : > { %14716 = vst [vmem:[#allocation15_spill] sm:$0xff] %v10442_v19  ;;  %v4045_v19 = vadd.f32 -0.0001984127, %v3981_v26  ;;  %v3504_v26 = vmul.f32 0.0009676536, %v10413_v60  ;;  %v3362_v53 = vmul.f32 3.140625, %v10455_v32  ;;  %v10476_v62 = vadd.f32 %v2922_v54, %v10104_v2 }
 0x2b2   : > { %14717 = vst [vmem:[#allocation80_spill] sm:$0xff] %v10455_v32  ;;  %v3918_v57 = vadd.f32 2.7557319e-06, %v3854_v31  ;;  %v3489_v16 = vmul.f32 0.0009676536, %v10438_v49  ;;  %v3263_v41 = vadd.f32 0.5, %v3199_v42  ;;  %v10479_v39 = vsub.f32 %v3439_v59, %v3503_v33 }
 0x2b3   : > { %14718 = vst [vmem:[#allocation20_spill] sm:$0xff] %v10461_v10  ;;  %v4109_v48 = vmul.f32 %v4045_v19, %v10380_v21  ;;  %v3200_v34 = vmul.f32 0.31830987, %v2868_v7  ;;  %v2894_v10 = vadd.f32 %v2893_v58, %v10104_v2  ;;  %v2841_v19 = vpop.f32.mrf.mxu0  ;;  %v3425_v61 = vsub.f32 %v10396_v30, %v3361_v20 }
 0x2b4   : > { %v3982_v56 = vmul.f32 %v3918_v57, %v10421_v23  ;;  %14719 = vst [vmem:[#allocation67_spill] sm:$0xff] %v10479_v39  ;;  %v10482_v31 = vfloor.f32 %v3263_v41  ;;  %v10486_v58 = vsub.f32 %v3440_v3, %v3504_v26  ;;  %v2842_v15 = vadd.f32 %v2841_v19, %v10140_v25 }
 0x2b5   : > { %v4173_v27 = vadd.f32 0.008333334, %v4109_v48  ;;  %v3264_v60 = vadd.f32 0.5, %v3200_v34  ;;  %v3185_v42 = vmul.f32 0.31830987, %v2894_v10  ;;  %v3426_v57 = vsub.f32 %v10400_v29, %v3362_v53 }
 0x2b6   : > { %14720 = vst [vmem:[#allocation21_spill] sm:$0xff] %v10482_v31  ;;  %v3186_v48 = vmul.f32 0.31830987, %v10476_v62  ;;  %v4046_v37 = vadd.f32 -0.0001984127, %v3982_v56  ;;  %v3391_v54 = vmul.f32 3.140625, %v10482_v31  ;;  %v10497_v3 = vmul.f32 %v10479_v39, %v10479_v39 }
 0x2b7   : > { %v4237_v49 = vmul.f32 %v4173_v27, %v10380_v21  ;;  %14721 = vst [vmem:[#allocation68_spill] sm:$0xff] %v10486_v58  ;;  %v10491_v33 = vfloor.f32 %v3264_v60  ;;  %v3249_v20 = vadd.f32 0.5, %v3185_v42  ;;  %v3490_v34 = vmul.f32 0.0009676536, %v10455_v32 }
 0x2b8   : > { %v3250_v30 = vadd.f32 0.5, %v3186_v48  ;;  %v4110_v41 = vmul.f32 %v4046_v37, %v10421_v23  ;;  %v3215_v27 = vmul.f32 0.31830987, %v2842_v15  ;;  %14723 = vst [vmem:[#allocation8_spill] sm:$0xff] %v10497_v3  ;;  %v10499_v26 = vsub.f32 %v3425_v61, %v3489_v16 }
 0x2b9   : > { %14722 = vst [vmem:[#allocation12_spill] sm:$0xff] %v10491_v33  ;;  %v4301_v59 = vadd.f32 -0.16666667, %v4237_v49  ;;  %v3392_v19 = vmul.f32 3.140625, %v10491_v33  ;;  %v10502_v56 = vfloor.f32 %v3249_v20  ;;  %v3455_v60 = vsub.f32 %v10447_v22, %v3391_v54 }
 0x2ba   : > { %14724 = vst [vmem:[#allocation77_spill] sm:$0xff] %v10499_v26  ;;  %v4174_v29 = vadd.f32 0.008333334, %v4110_v41  ;;  %v10505_v53 = vfloor.f32 %v3250_v30  ;;  %v3279_v49 = vadd.f32 0.5, %v3215_v27  ;;  %v10509_v37 = vmul.f32 %v10486_v58, %v10486_v58 }
 0x2bb   : > { %14725 = vst [vmem:[#allocation71_spill] sm:$0xff] %v10502_v56  ;;  %v10511_v42 = vsub.f32 %v3426_v57, %v3490_v34  ;;  %v3456_v48 = vsub.f32 %v2868_v7, %v3392_v19  ;;  %v3377_v16 = vmul.f32 3.140625, %v10502_v56  ;;  %v4365_v61 = vmul.f32 %v4301_v59, %v10380_v21  ;;  %v2870_v7 = vpop.f32.mrf.mxu1 }
 0x2bc   : > { %14726 = vst [vmem:[#allocation7_spill] sm:$0xff] %v10505_v53  ;;  %v4238_v20 = vmul.f32 %v4174_v29, %v10421_v23  ;;  %v3519_v41 = vmul.f32 0.0009676536, %v10482_v31  ;;  %v3378_v22 = vmul.f32 3.140625, %v10505_v53  ;;  %v10520_v54 = vmul.f32 %v10499_v26, %v10499_v26 }
 0x2bd   : > { %14727 = vst [vmem:[#allocation19_spill] sm:$0xff] %v10509_v37  ;;  %v3520_v30 = vmul.f32 0.0009676536, %v10491_v33  ;;  %v3441_v27 = vsub.f32 %v2894_v10, %v3377_v16  ;;  %v10523_v57 = vfloor.f32 %v3279_v49  ;;  %v2871_v21 = vadd.f32 %v2870_v7, %v10140_v25 }
 0x2be   : > { %14728 = vst [vmem:[#allocation72_spill] sm:$0xff] %v10511_v42  ;;  %v10525_v34 = vsub.f32 %v3455_v60, %v3519_v41  ;;  %v4619_v59 = vfloor.f32 %v10357_v55  ;;  %v4620_v19 = vfloor.f32 %v10417_v46  ;;  %v4302_v29 = vadd.f32 -0.16666667, %v4238_v20 }
 0x2bf   : > { %14729 = vst [vmem:[#allocation17_spill] sm:$0xff] %v10520_v54  ;;  %v10530_v32 = vsub.f32 %v3456_v48, %v3520_v30  ;;  %v3505_v26 = vmul.f32 0.0009676536, %v10502_v56  ;;  %v3407_v54 = vmul.f32 3.140625, %v10523_v57  ;;  %v10535_v10 = vmul.f32 %v4365_v61, %v10369_v5 }
 0x2c0   : > { %14730 = vst [vmem:[#allocation10_spill] sm:$0xff] %v10523_v57  ;;  %v10539_v60 = vmul.f32 %v10511_v42, %v10511_v42  ;;  %v3442_v49 = vsub.f32 %v10476_v62, %v3378_v22  ;;  %v3216_v16 = vmul.f32 0.31830987, %v2871_v21  ;;  %v3506_v46 = vmul.f32 0.0009676536, %v10505_v53 }
 0x2c1   : > { %14731 = vst [vmem:[#allocation25_spill] sm:$0xff] %v10525_v34  ;;  %v10542_v55 = vsub.f32 %v3441_v27, %v3505_v26  ;;  %v3471_v48 = vsub.f32 %v2842_v15, %v3407_v54  ;;  %v3535_v20 = vmul.f32 0.0009676536, %v10523_v57  ;;  %v4683_v30 = vmul.f32 2.0, %v4619_v59  ;;  %v2896_v27 = vpop.f32.mrf.mxu2  ;;  %v2925_v59 = vpop.f32.mrf.mxu3 }
 0x2c2   : > { %14732 = vst [vmem:[#allocation74_spill] sm:$0xff] %v10530_v32  ;;  %v3280_v41 = vadd.f32 0.5, %v3216_v16  ;;  %v4684_v7 = vmul.f32 2.0, %v4620_v19  ;;  %v3707_v61 = vmul.f32 1.6059044e-10, %v10334_v17  ;;  %v4366_v56 = vmul.f32 %v4302_v29, %v10421_v23 }
 0x2c3   : > { %14733 = vst [vmem:[#allocation75_spill] sm:$0xff] %v10539_v60  ;;  %v10550_v42 = vmul.f32 %v10525_v34, %v10525_v34  ;;  %v10554_v62 = vmul.f32 %v10530_v32, %v10530_v32  ;;  %v10556_v26 = vsub.f32 %v3471_v48, %v3535_v20  ;;  %v10558_v15 = vsub.f32 %v3442_v49, %v3506_v46  ;;  %v2948_v46 = vpop.f32.mrf.mxu0  ;;  %v2977_v48 = vpop.f32.mrf.mxu1 }
 0x2c4   : > { %14734 = vst [vmem:[#allocation64_spill] sm:$0xff] %v10542_v55  ;;  %v10561_v22 = vmul.f32 0.5, %v10523_v57  ;;  %v10563_v54 = vfloor.f32 %v3280_v41  ;;  %v3771_v23 = vadd.f32 -2.5052108e-08, %v3707_v61  ;;  %v10567_v19 = vmul.f32 %v10542_v55, %v10542_v55 }
 0x2c5   : > { %14735 = vst [vmem:[#allocation33_spill] sm:$0xff] %v10550_v42  ;;  %v10571_v29 = vmul.f32 %v10556_v26, %v10556_v26  ;;  %v10574_v16 = vadd.f32 %v2896_v27, %v10169_v51  ;;  %v10577_v49 = vadd.f32 %v2925_v59, %v10169_v51  ;;  %v10581_v41 = vadd.f32 %v2948_v46, %v10126_v47 }
 0x2c6   : > { %14736 = vst [vmem:[#allocation53_spill] sm:$0xff] %v10554_v62  ;;  %v3408_v20 = vmul.f32 3.140625, %v10563_v54  ;;  %v4747_v61 = vsub.f32 %v10193_v4, %v4683_v30  ;;  %v4748_v55 = vsub.f32 %v10230_v0, %v4684_v7  ;;  %v10589_v59 = vadd.f32 %v2977_v48, %v10126_v47 }
 0x2c7   : > { %14737 = vst [vmem:[#allocation48_spill] sm:$0xff] %v10558_v15  ;;  %v3727_v60 = vmul.f32 1.6059044e-10, %v10571_v29  ;;  %v3201_v53 = vmul.f32 0.31830987, %v10574_v16  ;;  %v3835_v46 = vmul.f32 %v3771_v23, %v10334_v17  ;;  %v10596_v7 = vmul.f32 %v4366_v56, %v10407_v45 }
 0x2c8   : > { %14738 = vst [vmem:[#allocation30_spill] sm:$0xff] %v10561_v22  ;;  %v3202_v27 = vmul.f32 0.31830987, %v10577_v49  ;;  %v3536_v58 = vmul.f32 0.0009676536, %v10563_v54  ;;  %v4811_v57 = vmul.f32 2.0, %v4747_v61 }
 0x2c9   : > { %14739 = vst [vmem:[#allocation58_spill] sm:$0xff] %v10563_v54  ;;  %v3171_v39 = vmul.f32 0.31830987, %v10581_v41  ;;  %v3791_v32 = vadd.f32 -2.5052108e-08, %v3727_v60  ;;  %v3265_v4 = vadd.f32 0.5, %v3201_v53 }
 0x2ca   : > { %14740 = vst [vmem:[#allocation63_spill] sm:$0xff] %v10567_v19  ;;  %v3472_v19 = vsub.f32 %v2871_v21, %v3408_v20  ;;  %v3266_v30 = vadd.f32 0.5, %v3202_v27  ;;  %v3172_v0 = vmul.f32 0.31830987, %v10589_v59  ;;  %v3899_v48 = vadd.f32 2.7557319e-06, %v3835_v46  ;;  %v2899_v46 = vpop.f32.mrf.mxu2 }
 0x2cb   : > { %14741 = vst [vmem:[#allocation32_spill] sm:$0xff] %v10596_v7  ;;  %v3235_v34 = vadd.f32 0.5, %v3171_v39  ;;  %v3855_v21 = vmul.f32 %v3791_v32, %v10571_v29  ;;  %v10601_v20 = vfloor.f32 %v3265_v4  ;;  %v4812_v56 = vmul.f32 2.0, %v4748_v55 }
 0x2cc   : > { %v10598_v37 = vsub.f32 %v3472_v19, %v3536_v58  ;;  %v10603_v3 = vfloor.f32 %v3266_v30  ;;  %v3236_v23 = vadd.f32 0.5, %v3172_v0  ;;  %v10613_v58 = vmul.f32 %v10558_v15, %v10558_v15 }
 0x2cd   : > { %14742 = vst [vmem:[#allocation43_spill] sm:$0xff] %v10601_v20  ;;  %v10609_v60 = vfloor.f32 %v3235_v34  ;;  %v3919_v39 = vadd.f32 2.7557319e-06, %v3855_v21  ;;  %v4539_v32 = vmul.f32 0.5, %v10238_v44  ;;  %v3708_v19 = vmul.f32 1.6059044e-10, %v10345_v43 }
 0x2ce   : > { %14743 = vst [vmem:[#allocation41_spill] sm:$0xff] %v10603_v3  ;;  %v10607_v53 = vmul.f32 %v10598_v37, %v10598_v37  ;;  %v3393_v61 = vmul.f32 3.140625, %v10601_v20  ;;  %v3963_v4 = vmul.f32 %v3899_v48, %v10334_v17  ;;  %v10621_v34 = vmul.f32 0.5, %v10252_v28 }
 0x2cf   : > { %14744 = vst [vmem:[#allocation39_spill] sm:$0xff] %v10609_v60  ;;  %v3983_v55 = vmul.f32 %v3919_v39, %v10571_v29  ;;  %v10625_v30 = vmul.f32 0.5, %v10563_v54  ;;  %v3394_v0 = vmul.f32 3.140625, %v10603_v3  ;;  %v4875_v21 = vsub.f32 1.0, %v4811_v57 }
 0x2d0   : > { %14745 = vst [vmem:[#allocation56_spill] sm:$0xff] %v10613_v58  ;;  %v3728_v27 = vmul.f32 1.6059044e-10, %v10607_v53  ;;  %v3363_v58 = vmul.f32 3.140625, %v10609_v60  ;;  %v10629_v62 = vfloor.f32 %v3236_v23  ;;  %v4876_v42 = vsub.f32 1.0, %v4812_v56 }
 0x2d1   : > { %14746 = vst [vmem:[#allocation26_spill] sm:$0xff] %v10625_v30  ;;  %v4047_v22 = vadd.f32 -0.0001984127, %v3983_v55  ;;  %v3521_v48 = vmul.f32 0.0009676536, %v10601_v20  ;;  %v2900_v33 = vadd.f32 %v2899_v46, %v10140_v25  ;;  %v4603_v31 = vfloor.f32 %v4539_v32 }
 0x2d2   : > { %v3792_v15 = vadd.f32 -2.5052108e-08, %v3728_v27  ;;  %14747 = vst [vmem:[#allocation38_spill] sm:$0xff] %v10629_v62  ;;  %v3457_v54 = vsub.f32 %v10574_v16, %v3393_v61  ;;  %v3522_v30 = vmul.f32 0.0009676536, %v10603_v3  ;;  %v3458_v27 = vsub.f32 %v10577_v49, %v3394_v0 }
 0x2d3   : > { %v4027_v7 = vadd.f32 -0.0001984127, %v3963_v4  ;;  %v4111_v57 = vmul.f32 %v4047_v22, %v10571_v29  ;;  %v3491_v23 = vmul.f32 0.0009676536, %v10609_v60  ;;  %v3217_v56 = vmul.f32 0.31830987, %v2900_v33  ;;  %v2928_v60 = vpop.f32.mrf.mxu3 }
 0x2d4   : > { %v3856_v39 = vmul.f32 %v3792_v15, %v10607_v53  ;;  %v3427_v20 = vsub.f32 %v10581_v41, %v3363_v58  ;;  %v3364_v46 = vmul.f32 3.140625, %v10629_v62  ;;  %v4491_v15 = vadd.f32 %v10450_v63, %v10224_v9 }
 0x2d5   : > { %v4175_v32 = vadd.f32 0.008333334, %v4111_v57  ;;  %v3281_v16 = vadd.f32 0.5, %v3217_v56  ;;  %v4492_v61 = vadd.f32 %v10458_v11, %v10262_v1  ;;  %v4091_v22 = vmul.f32 %v4027_v7, %v10334_v17 }
 0x2d6   : > { %v3920_v55 = vadd.f32 2.7557319e-06, %v3856_v39  ;;  %v10647_v4 = vsub.f32 %v3457_v54, %v3521_v48  ;;  %v4939_v0 = vmul.f32 %v4875_v21, %v4491_v15  ;;  %v4667_v39 = vmul.f32 2.0, %v4603_v31 }
 0x2d7   : > { %v4239_v41 = vmul.f32 %v4175_v32, %v10571_v29  ;;  %v10650_v58 = vfloor.f32 %v3281_v16  ;;  %v4940_v3 = vmul.f32 %v4876_v42, %v4492_v61  ;;  %v4155_v9 = vadd.f32 0.008333334, %v4091_v22  ;;  %v2951_v22 = vpop.f32.mrf.mxu0 }
 0x2d8   : > { %v3984_v49 = vmul.f32 %v3920_v55, %v10607_v53  ;;  %v3492_v57 = vmul.f32 0.0009676536, %v10629_v62  ;;  %v2929_v11 = vadd.f32 %v2928_v60, %v10140_v25  ;;  %5007 = vmatpush.msra.mxu0 %v4939_v0  ;;  %v3772_v1 = vadd.f32 -2.5052108e-08, %v3708_v19 }
 0x2d9   : > { %v10654_v7 = vsub.f32 %v3458_v27, %v3522_v30  ;;  %v10656_v54 = vsub.f32 %v3427_v20, %v3491_v23  ;;  %v3428_v31 = vsub.f32 %v10589_v59, %v3364_v46  ;;  %v3409_v21 = vmul.f32 3.140625, %v10650_v58  ;;  %5036 = vmatpush.msra.mxu1 %v4940_v3 }
 0x2da   : > { %v4048_v63 = vadd.f32 -0.0001984127, %v3984_v49  ;;  %v10662_v42 = vmul.f32 %v10647_v4, %v10647_v4  ;;  %v3218_v48 = vmul.f32 0.31830987, %v2929_v11  ;;  %v4219_v56 = vmul.f32 %v4155_v9, %v10334_v17  ;;  %v2980_v9 = vpop.f32.mrf.mxu1 }
 0x2db   : > { %14748 = vst [vmem:[#allocation57_spill] sm:$0xff] %v10656_v54  ;;  %v4731_v60 = vsub.f32 %v10238_v44, %v4667_v39  ;;  %v4303_v55 = vadd.f32 -0.16666667, %v4239_v41  ;;  %v3473_v19 = vsub.f32 %v2900_v33, %v3409_v21  ;;  %v3537_v30 = vmul.f32 0.0009676536, %v10650_v58 }
 0x2dc   : > { %v3836_v20 = vmul.f32 %v3772_v1, %v10345_v43  ;;  %v4112_v59 = vmul.f32 %v4048_v63, %v10607_v53  ;;  %v3282_v27 = vadd.f32 0.5, %v3218_v48  ;;  %v4283_v23 = vadd.f32 -0.16666667, %v4219_v56 }
 0x2dd   : > { %v4604_v3 = vfloor.f32 %v10621_v34  ;;  %v10672_v46 = vmul.f32 %v10654_v7, %v10654_v7  ;;  %v10676_v15 = vmul.f32 %v10656_v54, %v10656_v54  ;;  %v10678_v44 = vsub.f32 %v3473_v19, %v3537_v30 }
 0x2de   : > { %v3900_v33 = vadd.f32 2.7557319e-06, %v3836_v20  ;;  %v10680_v32 = vsub.f32 %v3428_v31, %v3492_v57  ;;  %v10683_v16 = vmul.f32 0.5, %v10650_v58  ;;  %v10685_v61 = vfloor.f32 %v3282_v27 }
 0x2df   : > { %14749 = vst [vmem:[#allocation23_spill] sm:$0xff] %v10676_v15  ;;  %v4347_v34 = vmul.f32 %v4283_v23, %v10334_v17  ;;  %v10690_v49 = vmul.f32 %v10678_v44, %v10678_v44  ;;  %v4795_v0 = vmul.f32 2.0, %v4731_v60  ;;  %v10694_v41 = vadd.f32 %v2951_v22, %v10104_v2 }
 0x2e0   : > { %14750 = vst [vmem:[#allocation52_spill] sm:$0xff] %v10680_v32  ;;  %v3964_v39 = vmul.f32 %v3900_v33, %v10345_v43  ;;  %v4367_v63 = vmul.f32 %v4303_v55, %v10571_v29  ;;  %v4176_v57 = vadd.f32 0.008333334, %v4112_v59  ;;  %v3410_v1 = vmul.f32 3.140625, %v10685_v61 }
 0x2e1   : > { %v4668_v31 = vmul.f32 2.0, %v4604_v3  ;;  %v3729_v17 = vmul.f32 1.6059044e-10, %v10690_v49  ;;  %v4411_v21 = vmul.f32 %v4347_v34, %v10301_v24  ;;  %v3691_v56 = vmul.f32 1.6059044e-10, %v10284_v36 }
 0x2e2   : > { %v4028_v48 = vadd.f32 -0.0001984127, %v3964_v39  ;;  %v3474_v60 = vsub.f32 %v2929_v11, %v3410_v1  ;;  %v3538_v19 = vmul.f32 0.0009676536, %v10685_v61  ;;  %v3187_v30 = vmul.f32 0.31830987, %v10694_v41 }
 0x2e3   : > { %v10704_v20 = vadd.f32 %v2980_v9, %v10104_v2  ;;  %v3793_v29 = vadd.f32 -2.5052108e-08, %v3729_v17  ;;  %v4475_v55 = vadd.f32 %v4411_v21, %v10301_v24  ;;  %v4859_v59 = vsub.f32 1.0, %v4795_v0 }
 0x2e4   : > { %v4092_v27 = vmul.f32 %v4028_v48, %v10345_v43  ;;  %v4240_v23 = vmul.f32 %v4176_v57, %v10607_v53  ;;  %v10709_v3 = vsub.f32 %v3474_v60, %v3538_v19  ;;  %v3251_v33 = vadd.f32 0.5, %v3187_v30 }
 0x2e5   : > { %v3188_v11 = vmul.f32 0.31830987, %v10704_v20  ;;  %v3857_v34 = vmul.f32 %v3793_v29, %v10690_v49  ;;  %v4923_v22 = vmul.f32 %v4859_v59, %v4475_v55  ;;  %v3755_v1 = vadd.f32 -2.5052108e-08, %v3691_v56 }
 0x2e6   : > { %v4156_v39 = vadd.f32 0.008333334, %v4092_v27  ;;  %v10715_v9 = vmul.f32 %v10709_v3, %v10709_v3  ;;  %v4732_v24 = vsub.f32 %v10252_v28, %v4668_v31  ;;  %v10718_v0 = vfloor.f32 %v3251_v33 }
 0x2e7   : > { %v4523_v57 = vmul.f32 0.5, %v10185_v6  ;;  %v3921_v17 = vadd.f32 2.7557319e-06, %v3857_v34  ;;  %5008 = vmatpush.msra.mxu0 %v4923_v22  ;;  %v3252_v48 = vadd.f32 0.5, %v3188_v11  ;;  %v3819_v60 = vmul.f32 %v3755_v1, %v10284_v36 }
 0x2e8   : > { %v4220_v21 = vmul.f32 %v4156_v39, %v10345_v43  ;;  %v4304_v19 = vadd.f32 -0.16666667, %v4240_v23  ;;  %v10725_v56 = vmul.f32 %v10680_v32, %v10680_v32  ;;  %v3730_v30 = vmul.f32 1.6059044e-10, %v10715_v9 }
 0x2e9   : > { %v3692_v28 = vmul.f32 1.6059044e-10, %v10312_v12  ;;  %v3985_v31 = vmul.f32 %v3921_v17, %v10690_v49  ;;  %v3883_v55 = vadd.f32 2.7557319e-06, %v3819_v60  ;;  %v4587_v59 = vfloor.f32 %v4523_v57 }
 0x2ea   : > { %14751 = vst [vmem:[#allocation51_spill] sm:$0xff] %v10725_v56  ;;  %v4284_v29 = vadd.f32 -0.16666667, %v4220_v21  ;;  %v10731_v27 = vmul.f32 %v4367_v63, %v10556_v26  ;;  %v3794_v33 = vadd.f32 -2.5052108e-08, %v3730_v30  ;;  %v4796_v11 = vmul.f32 2.0, %v4732_v24 }
 0x2eb   : > { %v3379_v23 = vmul.f32 3.140625, %v10718_v0  ;;  %v4049_v34 = vadd.f32 -0.0001984127, %v3985_v31  ;;  %v10735_v39 = vfloor.f32 %v3252_v48  ;;  %v3947_v1 = vmul.f32 %v3883_v55, %v10284_v36 }
 0x2ec   : > { %v4348_v22 = vmul.f32 %v4284_v29, %v10345_v43  ;;  %v4368_v32 = vmul.f32 %v4304_v19, %v10607_v53  ;;  %v3858_v17 = vmul.f32 %v3794_v33, %v10715_v9  ;;  %v10741_v57 = vmul.f32 0.5, %v10685_v61 }
 0x2ed   : > { %14752 = vst [vmem:[#allocation44_spill] sm:$0xff] %v10735_v39  ;;  %v3756_v63 = vadd.f32 -2.5052108e-08, %v3692_v28  ;;  %v4113_v21 = vmul.f32 %v4049_v34, %v10690_v49  ;;  %v4011_v60 = vadd.f32 -0.0001984127, %v3947_v1  ;;  %v4651_v30 = vmul.f32 2.0, %v4587_v59 }
 0x2ee   : > { %v4412_v24 = vmul.f32 %v4348_v22, %v10315_v13  ;;  %v3922_v31 = vadd.f32 2.7557319e-06, %v3858_v17  ;;  %v4860_v43 = vsub.f32 1.0, %v4796_v11  ;;  %v3507_v48 = vmul.f32 0.0009676536, %v10718_v0 }
 0x2ef   : > { %v3820_v29 = vmul.f32 %v3756_v63, %v10312_v12  ;;  %v3443_v19 = vsub.f32 %v10694_v41, %v3379_v23  ;;  %v3380_v55 = vmul.f32 3.140625, %v10735_v39  ;;  %v4075_v28 = vmul.f32 %v4011_v60, %v10284_v36 }
 0x2f0   : > { %v4476_v53 = vadd.f32 %v4412_v24, %v10315_v13  ;;  %v4177_v33 = vadd.f32 0.008333334, %v4113_v21  ;;  %v3986_v34 = vmul.f32 %v3922_v31, %v10715_v9  ;;  %v4524_v59 = vmul.f32 0.5, %v10201_v8 }
 0x2f1   : > { %v3884_v22 = vadd.f32 2.7557319e-06, %v3820_v29  ;;  %v3508_v11 = vmul.f32 0.0009676536, %v10735_v39  ;;  %v4139_v17 = vadd.f32 0.008333334, %v4075_v28  ;;  %v4715_v63 = vsub.f32 %v10185_v6, %v4651_v30 }
 0x2f2   : > { %v4924_v1 = vmul.f32 %v4860_v43, %v4476_v53  ;;  %v4050_v54 = vadd.f32 -0.0001984127, %v3986_v34  ;;  %v4588_v41 = vfloor.f32 %v4524_v59  ;;  %v3675_v23 = vmul.f32 1.6059044e-10, %v10207_v50 }
 0x2f3   : > { %v3948_v13 = vmul.f32 %v3884_v22, %v10312_v12  ;;  %v10757_v24 = vsub.f32 %v3443_v19, %v3507_v48  ;;  %v4203_v21 = vmul.f32 %v4139_v17, %v10284_v36  ;;  %v4507_v60 = vmul.f32 0.5, %v10144_v18 }
 0x2f4   : > { %5037 = vmatpush.msra.mxu1 %v4924_v1  ;;  %v3676_v31 = vmul.f32 1.6059044e-10, %v10217_v40  ;;  %v4241_v43 = vmul.f32 %v4177_v33, %v10690_v49  ;;  %v3444_v29 = vsub.f32 %v10704_v20, %v3380_v55  ;;  %v3739_v30 = vadd.f32 -2.5052108e-08, %v3675_v23 }
 0x2f5   : > { %14753 = vst [vmem:[#allocation29_spill] sm:$0xff] %v10757_v24  ;;  %v4012_v6 = vadd.f32 -0.0001984127, %v3948_v13  ;;  %v10765_v53 = vmul.f32 %v4368_v32, %v10598_v37  ;;  %v4267_v28 = vadd.f32 -0.16666667, %v4203_v21  ;;  %v4652_v34 = vmul.f32 2.0, %v4588_v41 }
 0x2f6   : > { %v3740_v22 = vadd.f32 -2.5052108e-08, %v3676_v31  ;;  %v4114_v48 = vmul.f32 %v4050_v54, %v10715_v9  ;;  %v4779_v19 = vmul.f32 2.0, %v4715_v63  ;;  %v3803_v1 = vmul.f32 %v3739_v30, %v10207_v50 }
 0x2f7   : > { %v4076_v59 = vmul.f32 %v4012_v6, %v10312_v12  ;;  %v10772_v33 = vmul.f32 %v10757_v24, %v10757_v24  ;;  %v4331_v20 = vmul.f32 %v4267_v28, %v10284_v36  ;;  %v4571_v55 = vfloor.f32 %v4507_v60  ;;  %v3006_v6 = vpop.f32.mrf.mxu2 }
 0x2f8   : > { %v3804_v32 = vmul.f32 %v3740_v22, %v10217_v40  ;;  %v4305_v17 = vadd.f32 -0.16666667, %v4241_v43  ;;  %v10776_v13 = vsub.f32 %v3444_v29, %v3508_v11  ;;  %v3867_v23 = vadd.f32 2.7557319e-06, %v3803_v1  ;;  %v3035_v1 = vpop.f32.mrf.mxu3 }
 0x2f9   : > { %14754 = vst [vmem:[#allocation24_spill] sm:$0xff] %v10772_v33  ;;  %v4140_v41 = vadd.f32 0.008333334, %v4076_v59  ;;  %v4395_v54 = vmul.f32 %v4331_v20, %v10254_v35  ;;  %v4716_v63 = vsub.f32 %v10201_v8, %v4652_v34  ;;  %v4508_v31 = vmul.f32 0.5, %v10149_v38 }
 0x2fa   : > { %14755 = vst [vmem:[#allocation35_spill] sm:$0xff] %v10776_v13  ;;  %v3868_v21 = vadd.f32 2.7557319e-06, %v3804_v32  ;;  %v4178_v30 = vadd.f32 0.008333334, %v4114_v48  ;;  %v4843_v24 = vsub.f32 1.0, %v4779_v19  ;;  %v3931_v60 = vmul.f32 %v3867_v23, %v10207_v50  ;;  %v2954_v48 = vpop.f32.mrf.mxu0  ;;  %v2983_v23 = vpop.f32.mrf.mxu1 }
 0x2fb   : > { %v4204_v36 = vmul.f32 %v4140_v41, %v10312_v12  ;;  %v4459_v43 = vadd.f32 %v4395_v54, %v10254_v35  ;;  %v4635_v11 = vmul.f32 2.0, %v4571_v55  ;;  %v4572_v28 = vfloor.f32 %v4508_v31 }
 0x2fc   : > { %v3932_v29 = vmul.f32 %v3868_v21, %v10217_v40  ;;  %v4369_v22 = vmul.f32 %v4305_v17, %v10690_v49  ;;  %v3995_v8 = vadd.f32 -0.0001984127, %v3931_v60  ;;  %v10787_v34 = vadd.f32 %v3006_v6, %v10126_v47 }
 0x2fd   : > { %v4268_v59 = vadd.f32 -0.16666667, %v4204_v36  ;;  %v4907_v19 = vmul.f32 %v4843_v24, %v4459_v43  ;;  %v4780_v20 = vmul.f32 2.0, %v4716_v63  ;;  %v4636_v41 = vmul.f32 2.0, %v4572_v28 }
 0x2fe   : > { %v3996_v32 = vadd.f32 -0.0001984127, %v3932_v29  ;;  %v4242_v35 = vmul.f32 %v4178_v30, %v10715_v9  ;;  %v4059_v54 = vmul.f32 %v3995_v8, %v10207_v50  ;;  %v3173_v49 = vmul.f32 0.31830987, %v10787_v34 }
 0x2ff   : > { %v4332_v55 = vmul.f32 %v4268_v59, %v10312_v12  ;;  %5009 = vmatpush.msra.mxu0 %v4907_v19  ;;  %v4699_v17 = vsub.f32 %v10144_v18, %v4635_v11  ;;  %v10796_v31 = vadd.f32 %v3035_v1, %v10126_v47  ;;  %v10799_v24 = vadd.f32 %v2954_v48, %v10169_v51 }
 0x300   : > { %v4060_v21 = vmul.f32 %v3996_v32, %v10217_v40  ;;  %v4123_v6 = vadd.f32 0.008333334, %v4059_v54  ;;  %v3237_v30 = vadd.f32 0.5, %v3173_v49  ;;  %v10803_v12 = vadd.f32 %v2983_v23, %v10169_v51 }
 0x301   : > { %v4396_v63 = vmul.f32 %v4332_v55, %v10267_v52  ;;  %v4844_v36 = vsub.f32 1.0, %v4780_v20  ;;  %v4700_v43 = vsub.f32 %v10149_v38, %v4636_v41  ;;  %v3174_v18 = vmul.f32 0.31830987, %v10796_v31 }
 0x302   : > { %v4124_v60 = vadd.f32 0.008333334, %v4060_v21  ;;  %v4187_v29 = vmul.f32 %v4123_v6, %v10207_v50  ;;  %v10809_v28 = vfloor.f32 %v3237_v30  ;;  %v3203_v59 = vmul.f32 0.31830987, %v10799_v24 }
 0x303   : > { %v4460_v11 = vadd.f32 %v4396_v63, %v10267_v52  ;;  %v4306_v8 = vadd.f32 -0.16666667, %v4242_v35  ;;  %v3238_v48 = vadd.f32 0.5, %v3174_v18  ;;  %v3204_v19 = vmul.f32 0.31830987, %v10803_v12 }
 0x304   : > { %14756 = vst [vmem:[#allocation66_spill] sm:$0xff] %v10809_v28  ;;  %v4188_v1 = vmul.f32 %v4124_v60, %v10217_v40  ;;  %v4251_v32 = vadd.f32 -0.16666667, %v4187_v29  ;;  %v4763_v23 = vmul.f32 2.0, %v4699_v17  ;;  %v3365_v38 = vmul.f32 3.140625, %v10809_v28  ;;  %v14759_v60 = vld [vmem:[#allocation28_spill] sm:$0xff] }
 0x305   : > { %v4908_v20 = vmul.f32 %v4844_v36, %v4460_v11  ;;  %v10815_v55 = vfloor.f32 %v3238_v48  ;;  %v3267_v52 = vadd.f32 0.5, %v3203_v59  ;;  %v3268_v54 = vadd.f32 0.5, %v3204_v19  ;;  %v14761_v48 = vld [vmem:[#allocation32_spill] sm:$0xff] }
 0x306   : > { %v4252_v41 = vadd.f32 -0.16666667, %v4188_v1  ;;  %v10819_v49 = vmul.f32 %v10776_v13, %v10776_v13  ;;  %v4315_v35 = vmul.f32 %v4251_v32, %v10207_v50  ;;  %v4764_v21 = vmul.f32 2.0, %v4700_v43  ;;  %v14760_v50 = vld [vmem:[#allocation42_spill] sm:$0xff] }
 0x307   : > { %14757 = vst [vmem:[#allocation54_spill] sm:$0xff] %v10815_v55  ;;  %5038 = vmatpush.msra.mxu1 %v4908_v20  ;;  %v4621_v63 = vfloor.f32 %v10453_v14  ;;  %v10824_v6 = vmul.f32 %v4369_v22, %v10678_v44  ;;  %v10827_v17 = vmul.f32 %v4306_v8, %v10715_v9  ;;  %v10830_v36 = vfloor.f32 %v3267_v52  ;;  %v14763_v52 = vld [vmem:[#allocation20_spill] sm:$0xff] }
 0x308   : > { %14758 = vst [vmem:[#allocation40_spill] sm:$0xff] %v10819_v49  ;;  %v4316_v30 = vmul.f32 %v4252_v41, %v10217_v40  ;;  %v4379_v18 = vmul.f32 %v4315_v35, %v14759_v60  ;;  %v4827_v11 = vsub.f32 1.0, %v4763_v23  ;;  %v10833_v29 = vfloor.f32 %v3268_v54  ;;  %v14764_v35 = vld [vmem:[#allocation22_spill] sm:$0xff] }
 0x309   : > { %v4685_v59 = vmul.f32 2.0, %v4621_v63  ;;  %v3429_v14 = vsub.f32 %v10787_v34, %v3365_v38  ;;  %v3366_v22 = vmul.f32 3.140625, %v10815_v55  ;;  %v4493_v9 = vadd.f32 %v10535_v10, %v10369_v5  ;;  %v14762_v34 = vld [vmem:[#allocation6_spill] sm:$0xff]  ;;  %v10851_v5 = vld [vmem:[%s13856_s4] sm:$0xff] }
 0x30a   : > { %v4380_v43 = vmul.f32 %v4316_v30, %v14760_v50  ;;  %v4443_v8 = vadd.f32 %v4379_v18, %v14759_v60  ;;  %v4828_v40 = vsub.f32 1.0, %v4764_v21  ;;  %v3493_v1 = vmul.f32 0.0009676536, %v10809_v28 }
 0x30b   : > { %v4494_v19 = vadd.f32 %v14761_v48, %v10407_v45  ;;  %v3494_v32 = vmul.f32 0.0009676536, %v10815_v55  ;;  %v3395_v23 = vmul.f32 3.140625, %v10830_v36  ;;  %v4749_v38 = vsub.f32 %v14762_v34, %v4685_v59 }
 0x30c   : > { %v4444_v20 = vadd.f32 %v4380_v43, %v14760_v50  ;;  %v4891_v41 = vmul.f32 %v4827_v11, %v4443_v8  ;;  %v3396_v10 = vmul.f32 3.140625, %v10833_v29  ;;  %v4622_v54 = vfloor.f32 %v14763_v52  ;;  %v14766_v50 = vld [vmem:[#allocation55_spill] sm:$0xff]  ;;  %v3009_v8 = vpop.f32.mrf.mxu2 }
 0x30d   : > { %v3709_v45 = vmul.f32 1.6059044e-10, %v14764_v35  ;;  %v10856_v63 = vsub.f32 %v3429_v14, %v3493_v1  ;;  %v3430_v30 = vsub.f32 %v10796_v31, %v3366_v22  ;;  %v4813_v60 = vmul.f32 2.0, %v4749_v38  ;;  %v14767_v14 = vld [vmem:[#allocation60_spill] sm:$0xff]  ;;  %v3038_v22 = vpop.f32.mrf.mxu3  ;;  %v14769_v38 = vld [vmem:[#allocation69_spill] sm:$0xff] }
 0x30e   : > { %v4892_v21 = vmul.f32 %v4828_v40, %v4444_v20  ;;  %5010 = vmatpush.msra.mxu0 %v4891_v41  ;;  %v3523_v18 = vmul.f32 0.0009676536, %v10830_v36  ;;  %v4686_v11 = vmul.f32 2.0, %v4622_v54  ;;  %v4541_v43 = vmul.f32 0.5, %v14766_v50  ;;  %v14768_v20 = vld [vmem:[#allocation13_spill] sm:$0xff] }
 0x30f   : > { %14765 = vst [vmem:[#allocation61_spill] sm:$0xff] %v10856_v63  ;;  %v3773_v59 = vadd.f32 -2.5052108e-08, %v3709_v45  ;;  %7863 = vmatmul.msk.f32.vlgmr.msra.gmra.mxu0 %vm2686_vm2, %v10851_v5  ;;  %v3459_v48 = vsub.f32 %v10799_v24, %v3395_v23  ;;  %v4877_v40 = vsub.f32 1.0, %v4813_v60  ;;  %v3710_v1 = vmul.f32 1.6059044e-10, %v14767_v14 }
 0x310   : > { %5039 = vmatpush.msra.mxu1 %v4892_v21  ;;  %v4542_v31 = vmul.f32 0.5, %v14768_v20  ;;  %v3460_v34 = vsub.f32 %v10803_v12, %v3396_v10  ;;  %v4750_v41 = vsub.f32 %v14769_v38, %v4686_v11  ;;  %v4605_v54 = vfloor.f32 %v4541_v43 }
 0x311   : > { %7867 = vmatmul.msk.f32.vlgmr.msra.gmra.mxu1 %vm2686_vm2, %v10851_v5  ;;  %v3837_v52 = vmul.f32 %v3773_v59, %v14764_v35  ;;  %v4941_v45 = vmul.f32 %v4877_v40, %v4493_v9  ;;  %v3774_v21 = vadd.f32 -2.5052108e-08, %v3710_v1  ;;  %v10872_v24 = vadd.f32 %v3009_v8, %v10104_v2  ;;  %v14770_v59 = vld [vmem:[#allocation27_spill] sm:$0xff] }
 0x312   : > { %v4606_v55 = vfloor.f32 %v4542_v31  ;;  %v4814_v23 = vmul.f32 2.0, %v4750_v41  ;;  %v4669_v28 = vmul.f32 2.0, %v4605_v54  ;;  %v10875_v13 = vadd.f32 %v3038_v22, %v10104_v2  ;;  %v10886_v31 = vld [vmem:[%s13856_s4 + $0x8] sm:$0xff] }
 0x313   : > { %v3901_v60 = vadd.f32 2.7557319e-06, %v3837_v52  ;;  %5065 = vmatpush.msra.mxu2 %v4941_v45  ;;  %v3838_v12 = vmul.f32 %v3774_v21, %v14767_v14  ;;  %v3189_v11 = vmul.f32 0.31830987, %v10872_v24  ;;  %v3693_v43 = vmul.f32 1.6059044e-10, %v14770_v59 }
 0x314   : > { %v4670_v10 = vmul.f32 2.0, %v4606_v55  ;;  %v3524_v9 = vmul.f32 0.0009676536, %v10833_v29  ;;  %v4878_v40 = vsub.f32 1.0, %v4814_v23  ;;  %v3190_v1 = vmul.f32 0.31830987, %v10875_v13 }
 0x315   : > { %v3965_v8 = vmul.f32 %v3901_v60, %v14764_v35  ;;  %v4733_v22 = vsub.f32 %v14766_v50, %v4669_v28  ;;  %v3902_v38 = vadd.f32 2.7557319e-06, %v3838_v12  ;;  %v3253_v55 = vadd.f32 0.5, %v3189_v11 }
 0x316   : > { %v3757_v41 = vadd.f32 -2.5052108e-08, %v3693_v43  ;;  %v10889_v52 = vsub.f32 %v3430_v30, %v3494_v32  ;;  %v4942_v54 = vmul.f32 %v4878_v40, %v4494_v19  ;;  %v4734_v21 = vsub.f32 %v14768_v20, %v4670_v10  ;;  %v14775_v30 = vld [vmem:[#allocation31_spill] sm:$0xff] }
 0x317   : > { %v4029_v45 = vadd.f32 -0.0001984127, %v3965_v8  ;;  %v10892_v23 = vsub.f32 %v3459_v48, %v3523_v18  ;;  %v10894_v60 = vsub.f32 %v3460_v34, %v3524_v9  ;;  %v3966_v62 = vmul.f32 %v3902_v38, %v14767_v14  ;;  %7864 = vmatmul.msk.f32.gmra.mxu0 %vm2686_vm2, %v10886_v31 }
 0x318   : > { %14771 = vst [vmem:[#allocation47_spill] sm:$0xff] %v10889_v52  ;;  %v3821_v28 = vmul.f32 %v3757_v41, %v14770_v59  ;;  %5094 = vmatpush.msra.mxu3 %v4942_v54  ;;  %v10901_v32 = vfloor.f32 %v3253_v55  ;;  %v3254_v19 = vadd.f32 0.5, %v3190_v1  ;;  %v4525_v18 = vmul.f32 0.5, %v14775_v30  ;;  %v14779_v1 = vld [vmem:[#allocation76_spill] sm:$0xff] }
 0x319   : > { %14772 = vst [vmem:[#allocation46_spill] sm:$0xff] %v10892_v23  ;;  %v4093_v50 = vmul.f32 %v4029_v45, %v14764_v35  ;;  %7868 = vmatmul.msk.f32.gmra.mxu1 %vm2686_vm2, %v10886_v31  ;;  %v10908_v48 = vmul.f32 %v10827_v17, %v10709_v3  ;;  %v10912_v20 = vmul.f32 %v10856_v63, %v10856_v63  ;;  %v4797_v34 = vmul.f32 2.0, %v4733_v22 }
 0x31a   : > { %14773 = vst [vmem:[#allocation28_spill] sm:$0xff] %v10894_v60  ;;  %v4030_v12 = vadd.f32 -0.0001984127, %v3966_v62  ;;  %v10916_v10 = vmul.f32 %v10889_v52, %v10889_v52  ;;  %v4798_v43 = vmul.f32 2.0, %v4734_v21  ;;  %v4589_v9 = vfloor.f32 %v4525_v18  ;;  %v14782_v52 = vld [vmem:[#allocation36_spill] sm:$0xff] }
 0x31b   : > { %14774 = vst [vmem:[#allocation42_spill] sm:$0xff] %v10901_v32  ;;  %v4157_v11 = vadd.f32 0.008333334, %v4093_v50  ;;  %v10920_v40 = vmul.f32 %v10892_v23, %v10892_v23  ;;  %v3885_v8 = vadd.f32 2.7557319e-06, %v3821_v28  ;;  %v10926_v22 = vmul.f32 %v10894_v60, %v10894_v60  ;;  %v14786_v60 = vld [vmem:[#allocation59_spill] sm:$0xff] }
 0x31c   : > { %14776 = vst [vmem:[#allocation32_spill] sm:$0xff] %v10912_v20  ;;  %v4094_v17 = vmul.f32 %v4030_v12, %v14767_v14  ;;  %v3694_v38 = vmul.f32 1.6059044e-10, %v14779_v1  ;;  %v3381_v55 = vmul.f32 3.140625, %v10901_v32  ;;  %v10930_v41 = vfloor.f32 %v3254_v19 }
 0x31d   : > { %14777 = vst [vmem:[#allocation6_spill] sm:$0xff] %v10916_v10  ;;  %v4221_v62 = vmul.f32 %v4157_v11, %v14764_v35  ;;  %v4861_v54 = vsub.f32 1.0, %v4797_v34  ;;  %v3949_v21 = vmul.f32 %v3885_v8, %v14770_v59  ;;  %v4862_v12 = vsub.f32 1.0, %v4798_v43 }
 0x31e   : > { %14778 = vst [vmem:[#allocation20_spill] sm:$0xff] %v10920_v40  ;;  %v4158_v45 = vadd.f32 0.008333334, %v4094_v17  ;;  %v3758_v50 = vadd.f32 -2.5052108e-08, %v3694_v38  ;;  %v4653_v28 = vmul.f32 2.0, %v4589_v9  ;;  %v3445_v34 = vsub.f32 %v10872_v24, %v3381_v55 }
 0x31f   : > { %14780 = vst [vmem:[#allocation22_spill] sm:$0xff] %v10926_v22  ;;  %v4285_v18 = vadd.f32 -0.16666667, %v4221_v62  ;;  %v4526_v63 = vmul.f32 0.5, %v14782_v52  ;;  %v3509_v20 = vmul.f32 0.0009676536, %v10901_v32 }
 0x320   : > { %14781 = vst [vmem:[#allocation55_spill] sm:$0xff] %v10930_v41  ;;  %v4222_v10 = vmul.f32 %v4158_v45, %v14767_v14  ;;  %v4013_v56 = vadd.f32 -0.0001984127, %v3949_v21  ;;  %v3822_v11 = vmul.f32 %v3758_v50, %v14779_v1  ;;  %v10940_v17 = vmul.f32 3.140625, %v10930_v41  ;;  %v14783_v62 = vld [vmem:[#allocation9_spill] sm:$0xff]  ;;  %v14784_v32 = vld [vmem:[#allocation16_spill] sm:$0xff] }
 0x321   : > { %v4349_v19 = vmul.f32 %v4285_v18, %v14764_v35  ;;  %v10943_v8 = vmul.f32 0.0009676536, %v10930_v41  ;;  %v3677_v45 = vmul.f32 1.6059044e-10, %v14783_v62  ;;  %v4717_v50 = vsub.f32 %v14775_v30, %v4653_v28  ;;  %v14785_v35 = vld [vmem:[#allocation49_spill] sm:$0xff]  ;;  %v14788_v22 = vld [vmem:[#allocation50_spill] sm:$0xff] }
 0x322   : > { %v4286_v43 = vadd.f32 -0.16666667, %v4222_v10  ;;  %v4077_v9 = vmul.f32 %v4013_v56, %v14770_v59  ;;  %v3886_v38 = vadd.f32 2.7557319e-06, %v3822_v11  ;;  %v4590_v15 = vfloor.f32 %v4526_v63  ;;  %v14811_v40 = vld [vmem:[#allocation26_spill] sm:$0xff] }
 0x323   : > { %v4413_v21 = vmul.f32 %v4349_v19, %v14784_v32  ;;  %v4509_v18 = vmul.f32 0.5, %v14785_v35  ;;  %v3741_v41 = vadd.f32 -2.5052108e-08, %v3677_v45  ;;  %v3446_v56 = vsub.f32 %v10875_v13, %v10940_v17  ;;  %v14787_v19 = vld [vmem:[#allocation78_spill] sm:$0xff] }
 0x324   : > { %v4350_v24 = vmul.f32 %v4286_v43, %v14767_v14  ;;  %v4141_v55 = vadd.f32 0.008333334, %v4077_v9  ;;  %v3950_v39 = vmul.f32 %v3886_v38, %v14779_v1  ;;  %v3678_v49 = vmul.f32 1.6059044e-10, %v14786_v60  ;;  %v2957_v14 = vpop.f32.mrf.mxu0 }
 0x325   : > { %v4477_v10 = vadd.f32 %v4413_v21, %v14784_v32  ;;  %v4573_v11 = vfloor.f32 %v4509_v18  ;;  %v3805_v28 = vmul.f32 %v3741_v41, %v14783_v62  ;;  %v4781_v9 = vmul.f32 2.0, %v4717_v50 }
 0x326   : > { %v4414_v23 = vmul.f32 %v4350_v24, %v14787_v19  ;;  %v4205_v63 = vmul.f32 %v4141_v55, %v14770_v59  ;;  %v4014_v30 = vadd.f32 -0.0001984127, %v3950_v39  ;;  %v4654_v38 = vmul.f32 2.0, %v4590_v15 }
 0x327   : > { %v4925_v43 = vmul.f32 %v4861_v54, %v4477_v10  ;;  %v3742_v45 = vadd.f32 -2.5052108e-08, %v3678_v49  ;;  %v3869_v17 = vadd.f32 2.7557319e-06, %v3805_v28  ;;  %v4637_v18 = vmul.f32 2.0, %v4573_v11  ;;  %v14790_v11 = vld [vmem:[#allocation73_spill] sm:$0xff] }
 0x328   : > { %v4478_v32 = vadd.f32 %v4414_v23, %v14787_v19  ;;  %v4269_v21 = vadd.f32 -0.16666667, %v4205_v63  ;;  %v4078_v13 = vmul.f32 %v4014_v30, %v14779_v1  ;;  %v4510_v55 = vmul.f32 0.5, %v14788_v22 }
 0x329   : > { %5066 = vmatpush.msra.mxu2 %v4925_v43  ;;  %v3806_v24 = vmul.f32 %v3742_v45, %v14786_v60  ;;  %v2958_v39 = vadd.f32 %v2957_v14, %v10140_v25  ;;  %v3933_v15 = vmul.f32 %v3869_v17, %v14783_v62  ;;  %v4718_v49 = vsub.f32 %v14782_v52, %v4654_v38 }
 0x32a   : > { %v4926_v41 = vmul.f32 %v4862_v12, %v4478_v32  ;;  %v4333_v54 = vmul.f32 %v4269_v21, %v14770_v59  ;;  %v4142_v50 = vadd.f32 0.008333334, %v4078_v13  ;;  %v4574_v10 = vfloor.f32 %v4510_v55 }
 0x32b   : > { %v3870_v23 = vadd.f32 2.7557319e-06, %v3806_v24  ;;  %v3219_v19 = vmul.f32 0.31830987, %v2958_v39  ;;  %v10967_v63 = vsub.f32 %v3445_v34, %v3509_v20  ;;  %v3997_v43 = vadd.f32 -0.0001984127, %v3933_v15  ;;  %v2986_v24 = vpop.f32.mrf.mxu1 }
 0x32c   : > { %5095 = vmatpush.msra.mxu3 %v4926_v41  ;;  %v4397_v30 = vmul.f32 %v4333_v54, %v14790_v11  ;;  %v4206_v28 = vmul.f32 %v4142_v50, %v14779_v1  ;;  %v4701_v12 = vsub.f32 %v14785_v35, %v4637_v18  ;;  %v4638_v14 = vmul.f32 2.0, %v4574_v10 }
 0x32d   : > { %14789 = vst [vmem:[#allocation60_spill] sm:$0xff] %v10967_v63  ;;  %v3934_v59 = vmul.f32 %v3870_v23, %v14786_v60  ;;  %v3283_v45 = vadd.f32 0.5, %v3219_v19  ;;  %v4845_v52 = vsub.f32 1.0, %v4781_v9  ;;  %v4061_v21 = vmul.f32 %v3997_v43, %v14783_v62 }
 0x32e   : > { %v4461_v32 = vadd.f32 %v4397_v30, %v14790_v11  ;;  %v4270_v38 = vadd.f32 -0.16666667, %v4206_v28  ;;  %v4782_v13 = vmul.f32 2.0, %v4718_v49  ;;  %v4702_v34 = vsub.f32 %v14788_v22, %v4638_v14  ;;  %v14794_v49 = vld [vmem:[#allocation18_spill] sm:$0xff] }
 0x32f   : > { %v3998_v20 = vadd.f32 -0.0001984127, %v3934_v59  ;;  %v10976_v17 = vfloor.f32 %v3283_v45  ;;  %v4125_v18 = vadd.f32 0.008333334, %v4061_v21  ;;  %v2987_v41 = vadd.f32 %v2986_v24, %v10140_v25  ;;  %v3012_v21 = vpop.f32.mrf.mxu2 }
 0x330   : > { %v4909_v55 = vmul.f32 %v4845_v52, %v4461_v32  ;;  %v4334_v35 = vmul.f32 %v4270_v38, %v14779_v1  ;;  %v10981_v54 = vsub.f32 %v3446_v56, %v10943_v8  ;;  %v4765_v9 = vmul.f32 2.0, %v4701_v12 }
 0x331   : > { %14791 = vst [vmem:[#allocation13_spill] sm:$0xff] %v10976_v17  ;;  %v4062_v50 = vmul.f32 %v3998_v20, %v14786_v60  ;;  %v3411_v15 = vmul.f32 3.140625, %v10976_v17  ;;  %v10987_v22 = vmul.f32 %v10967_v63, %v10967_v63  ;;  %v4189_v1 = vmul.f32 %v4125_v18, %v14783_v62  ;;  %v11006_v20 = vld [vmem:[%s13856_s4 + $0x10] sm:$0xff] }
 0x332   : > { %14792 = vst [vmem:[#allocation69_spill] sm:$0xff] %v10981_v54  ;;  %5067 = vmatpush.msra.mxu2 %v4909_v55  ;;  %v4398_v23 = vmul.f32 %v4334_v35, %v14794_v49  ;;  %v3220_v10 = vmul.f32 0.31830987, %v2987_v41  ;;  %v4846_v19 = vsub.f32 1.0, %v4782_v13  ;;  %v3539_v8 = vmul.f32 0.0009676536, %v10976_v17  ;;  %v3041_v13 = vpop.f32.mrf.mxu3  ;;  %7865 = vmatmul.msk.f32.gmra.mxu0 %vm2686_vm2, %v11006_v20 }
 0x333   : > { %14793 = vst [vmem:[#allocation27_spill] sm:$0xff] %v10987_v22  ;;  %v4126_v11 = vadd.f32 0.008333334, %v4062_v50  ;;  %v3475_v30 = vsub.f32 %v2958_v39, %v3411_v15  ;;  %v4253_v28 = vadd.f32 -0.16666667, %v4189_v1  ;;  %v4766_v43 = vmul.f32 2.0, %v4702_v34  ;;  %7869 = vmatmul.msk.f32.gmra.mxu1 %vm2686_vm2, %v11006_v20  ;;  %v3093_v50 = vpop.f32.mrf.mxu1 }
 0x334   : > { %v4462_v56 = vadd.f32 %v4398_v23, %v14794_v49  ;;  %v3284_v12 = vadd.f32 0.5, %v3220_v10  ;;  %v10995_v59 = vmul.f32 %v10981_v54, %v10981_v54  ;;  %v4829_v14 = vsub.f32 1.0, %v4765_v9  ;;  %v14796_v34 = vld [vmem:[#allocation21_spill] sm:$0xff]  ;;  %v3064_v9 = vpop.f32.mrf.mxu0 }
 0x335   : > { %v4190_v45 = vmul.f32 %v4126_v11, %v14786_v60  ;;  %v10998_v32 = vsub.f32 %v3475_v30, %v3539_v8  ;;  %v4317_v38 = vmul.f32 %v4253_v28, %v14783_v62  ;;  %v4543_v24 = vmul.f32 0.5, %v14796_v34  ;;  %v14797_v15 = vld [vmem:[#allocation45_spill] sm:$0xff] }
 0x336   : > { %14795 = vst [vmem:[#allocation31_spill] sm:$0xff] %v10995_v59  ;;  %v4910_v52 = vmul.f32 %v4846_v19, %v4462_v56  ;;  %v11001_v39 = vfloor.f32 %v3284_v12  ;;  %v11014_v18 = vadd.f32 %v3012_v21, %v10169_v51  ;;  %v11017_v62 = vadd.f32 %v3041_v13, %v10169_v51 }
 0x337   : > { %v4254_v55 = vadd.f32 -0.16666667, %v4190_v45  ;;  %v11011_v35 = vmul.f32 %v10998_v32, %v10998_v32  ;;  %v4381_v49 = vmul.f32 %v4317_v38, %v14797_v15  ;;  %v4830_v23 = vsub.f32 1.0, %v4766_v43  ;;  %v14798_v45 = vld [vmem:[#allocation37_spill] sm:$0xff] }
 0x338   : > { %5096 = vmatpush.msra.mxu3 %v4910_v52  ;;  %v3412_v1 = vmul.f32 3.140625, %v11001_v39  ;;  %v3540_v10 = vmul.f32 0.0009676536, %v11001_v39  ;;  %v3205_v30 = vmul.f32 0.31830987, %v11014_v18  ;;  %v11032_v12 = vadd.f32 %v3064_v9, %v10126_v47 }
 0x339   : > { %v4318_v19 = vmul.f32 %v4254_v55, %v14786_v60  ;;  %v3731_v11 = vmul.f32 1.6059044e-10, %v11011_v35  ;;  %v3206_v8 = vmul.f32 0.31830987, %v11017_v62  ;;  %v4445_v56 = vadd.f32 %v4381_v49, %v14797_v15 }
 0x33a   : > { %v3476_v28 = vsub.f32 %v2987_v41, %v3412_v1  ;;  %v11035_v43 = vadd.f32 %v3093_v50, %v10126_v47  ;;  %v3269_v21 = vadd.f32 0.5, %v3205_v30  ;;  %v3175_v54 = vmul.f32 0.31830987, %v11032_v12 }
 0x33b   : > { %v4382_v52 = vmul.f32 %v4318_v19, %v14798_v45  ;;  %v3795_v38 = vadd.f32 -2.5052108e-08, %v3731_v11  ;;  %v3270_v60 = vadd.f32 0.5, %v3206_v8  ;;  %v4893_v13 = vmul.f32 %v4829_v14, %v4445_v56  ;;  %v14801_v19 = vld [vmem:[#allocation12_spill] sm:$0xff] }
 0x33c   : > { %v11038_v55 = vsub.f32 %v3476_v28, %v3540_v10  ;;  %v3176_v63 = vmul.f32 0.31830987, %v11035_v43  ;;  %v11044_v15 = vfloor.f32 %v3269_v21  ;;  %v3239_v14 = vadd.f32 0.5, %v3175_v54  ;;  %v3015_v10 = vpop.f32.mrf.mxu2 }
 0x33d   : > { %v4446_v41 = vadd.f32 %v4382_v52, %v14798_v45  ;;  %v3859_v9 = vmul.f32 %v3795_v38, %v11011_v35  ;;  %v11046_v50 = vfloor.f32 %v3270_v60  ;;  %5068 = vmatpush.msra.mxu2 %v4893_v13  ;;  %v11053_v11 = vmul.f32 0.5, %v14801_v19  ;;  %v14805_v60 = vld [vmem:[#allocation30_spill] sm:$0xff] }
 0x33e   : > { %14799 = vst [vmem:[#allocation76_spill] sm:$0xff] %v11044_v15  ;;  %v11050_v49 = vmul.f32 %v11038_v55, %v11038_v55  ;;  %v3240_v1 = vadd.f32 0.5, %v3176_v63  ;;  %7871 = vmatmul.msk.f32.vlgmr.msra.gmra.mxu2 %vm2686_vm2, %v10851_v5  ;;  %v3397_v56 = vmul.f32 3.140625, %v11044_v15  ;;  %v4607_v28 = vfloor.f32 %v4543_v24 }
 0x33f   : > { %14800 = vst [vmem:[#allocation36_spill] sm:$0xff] %v11046_v50  ;;  %v4894_v30 = vmul.f32 %v4830_v23, %v4446_v41  ;;  %v3923_v8 = vadd.f32 2.7557319e-06, %v3859_v9  ;;  %v11059_v45 = vmul.f32 0.5, %v10976_v17  ;;  %v3398_v54 = vmul.f32 3.140625, %v11046_v50  ;;  %v14807_v17 = vld [vmem:[#allocation53_spill] sm:$0xff] }
 0x340   : > { %v3732_v52 = vmul.f32 1.6059044e-10, %v11050_v49  ;;  %v11063_v63 = vfloor.f32 %v3239_v14  ;;  %v11066_v23 = vfloor.f32 %v3240_v1  ;;  %v3016_v21 = vadd.f32 %v3015_v10, %v10140_v25 }
 0x341   : > { %14802 = vst [vmem:[#allocation9_spill] sm:$0xff] %v11059_v45  ;;  %5097 = vmatpush.msra.mxu3 %v4894_v30  ;;  %v3987_v38 = vmul.f32 %v3923_v8, %v11011_v35  ;;  %v4623_v13 = vfloor.f32 %v14805_v60  ;;  %v3461_v24 = vsub.f32 %v11014_v18, %v3397_v56  ;;  %v3462_v30 = vsub.f32 %v11017_v62, %v3398_v54  ;;  %v14806_v8 = vld [vmem:[#allocation33_spill] sm:$0xff] }
 0x342   : > { %14803 = vst [vmem:[#allocation16_spill] sm:$0xff] %v11063_v63  ;;  %v3796_v41 = vadd.f32 -2.5052108e-08, %v3732_v52  ;;  %7875 = vmatmul.msk.f32.vlgmr.msra.gmra.mxu3 %vm2686_vm2, %v10851_v5  ;;  %v3367_v9 = vmul.f32 3.140625, %v11063_v63  ;;  %v3711_v1 = vmul.f32 1.6059044e-10, %v14806_v8 }
 0x343   : > { %14804 = vst [vmem:[#allocation49_spill] sm:$0xff] %v11066_v23  ;;  %v4051_v59 = vadd.f32 -0.0001984127, %v3987_v38  ;;  %v11077_v22 = vmul.f32 2.0, %v4607_v28  ;;  %v3525_v52 = vmul.f32 0.0009676536, %v11044_v15 }
 0x344   : > { %v3860_v10 = vmul.f32 %v3796_v41, %v11050_v49  ;;  %v3221_v60 = vmul.f32 0.31830987, %v3016_v21  ;;  %v3712_v5 = vmul.f32 1.6059044e-10, %v14807_v17  ;;  %v3526_v18 = vmul.f32 0.0009676536, %v11046_v50 }
 0x345   : > { %v3431_v56 = vsub.f32 %v11032_v12, %v3367_v9  ;;  %v3368_v14 = vmul.f32 3.140625, %v11066_v23  ;;  %v4687_v38 = vmul.f32 2.0, %v4623_v13  ;;  %v4115_v62 = vmul.f32 %v4051_v59, %v11011_v35  ;;  %v14810_v15 = vld [vmem:[#allocation10_spill] sm:$0xff] }
 0x346   : > { %v3924_v54 = vadd.f32 2.7557319e-06, %v3860_v10  ;;  %v11086_v33 = vsub.f32 %v3461_v24, %v3525_v52  ;;  %v3285_v28 = vadd.f32 0.5, %v3221_v60  ;;  %v11088_v45 = vsub.f32 %v3462_v30, %v3526_v18  ;;  %7872 = vmatmul.msk.f32.gmra.mxu2 %vm2686_vm2, %v10886_v31  ;;  %v3044_v24 = vpop.f32.mrf.mxu3 }
 0x347   : > { %v3495_v41 = vmul.f32 0.0009676536, %v11063_v63  ;;  %v4751_v50 = vsub.f32 %v14810_v15, %v4687_v38  ;;  %v4624_v12 = vfloor.f32 %v14811_v40  ;;  %v11097_v13 = vmul.f32 0.5, %v11001_v39  ;;  %v14818_v63 = vld [vmem:[#allocation58_spill] sm:$0xff] }
 0x348   : > { %14808 = vst [vmem:[#allocation59_spill] sm:$0xff] %v11086_v33  ;;  %v3988_v9 = vmul.f32 %v3924_v54, %v11050_v49  ;;  %v11099_v59 = vfloor.f32 %v3285_v28  ;;  %v3775_v10 = vadd.f32 -2.5052108e-08, %v3711_v1  ;;  %v3432_v52 = vsub.f32 %v11035_v43, %v3368_v14 }
 0x349   : > { %14809 = vst [vmem:[#allocation78_spill] sm:$0xff] %v11088_v45  ;;  %v11101_v30 = vsub.f32 %v3431_v56, %v3495_v41  ;;  %v3496_v60 = vmul.f32 0.0009676536, %v11066_v23  ;;  %v3045_v18 = vadd.f32 %v3044_v24, %v10140_v25  ;;  %v4179_v15 = vadd.f32 0.008333334, %v4115_v62 }
 0x34a   : > { %14812 = vst [vmem:[#allocation50_spill] sm:$0xff] %v11099_v59  ;;  %v4052_v38 = vadd.f32 -0.0001984127, %v3988_v9  ;;  %v11108_v40 = vmul.f32 %v11086_v33, %v11086_v33  ;;  %7876 = vmatmul.msk.f32.gmra.mxu3 %vm2686_vm2, %v10886_v31  ;;  %v3413_v54 = vmul.f32 3.140625, %v11099_v59  ;;  %v11115_v1 = vmul.f32 %v11088_v45, %v11088_v45 }
 0x34b   : > { %14813 = vst [vmem:[#allocation73_spill] sm:$0xff] %v11101_v30  ;;  %v3222_v43 = vmul.f32 0.31830987, %v3045_v18  ;;  %v4815_v14 = vmul.f32 2.0, %v4751_v50  ;;  %v4688_v56 = vmul.f32 2.0, %v4624_v12  ;;  %v3839_v9 = vmul.f32 %v3775_v10, %v14806_v8  ;;  %v11135_v10 = vld [vmem:[%s13856_s4 + $0x18] sm:$0xff] }
 0x34c   : > { %14814 = vst [vmem:[#allocation18_spill] sm:$0xff] %v11108_v40  ;;  %v4116_v28 = vmul.f32 %v4052_v38, %v11050_v49  ;;  %v3477_v62 = vsub.f32 %v3016_v21, %v3413_v54  ;;  %v3541_v41 = vmul.f32 0.0009676536, %v11099_v59  ;;  %v11122_v24 = vmul.f32 %v11101_v30, %v11101_v30  ;;  %7866 = vmatmul.msk.f32.gmra.mxu0 %vm2686_vm2, %v11135_v10 }
 0x34d   : > { %14815 = vst [vmem:[#allocation21_spill] sm:$0xff] %v11115_v1  ;;  %v11124_v31 = vsub.f32 %v3432_v52, %v3496_v60  ;;  %v3286_v23 = vadd.f32 0.5, %v3222_v43  ;;  %v4752_v45 = vsub.f32 %v14818_v63, %v4688_v56  ;;  %v4243_v33 = vmul.f32 %v4179_v15, %v11011_v35  ;;  %7870 = vmatmul.msk.f32.gmra.mxu1 %vm2686_vm2, %v11135_v10  ;;  %v3067_v56 = vpop.f32.mrf.mxu0 }
 0x34e   : > { %14816 = vst [vmem:[#allocation45_spill] sm:$0xff] %v11122_v24  ;;  %v4180_v50 = vadd.f32 0.008333334, %v4116_v28  ;;  %v11128_v12 = vsub.f32 %v3477_v62, %v3541_v41  ;;  %v3903_v38 = vadd.f32 2.7557319e-06, %v3839_v9  ;;  %v4495_v52 = vadd.f32 %v10731_v27, %v10556_v26  ;;  %7873 = vmatmul.msk.f32.gmra.mxu2 %vm2686_vm2, %v11006_v20 }
 0x34f   : > { %14817 = vst [vmem:[#allocation37_spill] sm:$0xff] %v11124_v31  ;;  %v11130_v21 = vfloor.f32 %v3286_v23  ;;  %v4879_v60 = vsub.f32 1.0, %v4815_v14  ;;  %v3776_v54 = vadd.f32 -2.5052108e-08, %v3712_v5  ;;  %v4496_v23 = vadd.f32 %v10765_v53, %v10598_v37 }
 0x350   : > { %v11143_v63 = vmul.f32 %v11128_v12, %v11128_v12  ;;  %v4816_v15 = vmul.f32 2.0, %v4752_v45  ;;  %v3967_v26 = vmul.f32 %v3903_v38, %v14806_v8  ;;  %v11154_v27 = vmul.f32 %v11124_v31, %v11124_v31  ;;  %v3096_v31 = vpop.f32.mrf.mxu1 }
 0x351   : > { %14819 = vst [vmem:[#allocation12_spill] sm:$0xff] %v11130_v21  ;;  %v11157_v5 = vmul.f32 0.5, %v11099_v59  ;;  %v3414_v43 = vmul.f32 3.140625, %v11130_v21  ;;  %v4943_v14 = vmul.f32 %v4879_v60, %v4495_v52  ;;  %v4307_v28 = vadd.f32 -0.16666667, %v4243_v33 }
 0x352   : > { %14820 = vst [vmem:[#allocation30_spill] sm:$0xff] %v11154_v27  ;;  %v4244_v62 = vmul.f32 %v4180_v50, %v11050_v49  ;;  %v3733_v41 = vmul.f32 1.6059044e-10, %v11143_v63  ;;  %v4880_v37 = vsub.f32 1.0, %v4816_v15  ;;  %7877 = vmatmul.msk.f32.gmra.mxu3 %vm2686_vm2, %v11006_v20  ;;  %v3542_v45 = vmul.f32 0.0009676536, %v11130_v21 }
 0x353   : > { %v3478_v53 = vsub.f32 %v3045_v18, %v3414_v43  ;;  %5123 = vmatpush.msrb.mxu0 %v4943_v14  ;;  %v4031_v9 = vadd.f32 -0.0001984127, %v3967_v26  ;;  %v3840_v38 = vmul.f32 %v3776_v54, %v14807_v17  ;;  %v14821_v33 = vfloor.f32 %v11053_v11 }
 0x354   : > { %v3797_v30 = vadd.f32 -2.5052108e-08, %v3733_v41  ;;  %v4944_v52 = vmul.f32 %v4880_v37, %v4496_v23  ;;  %v11169_v50 = vadd.f32 %v3067_v56, %v10104_v2  ;;  %v4735_v18 = vsub.f32 %v14796_v34, %v11077_v22 }
 0x355   : > { %v4672_v60 = vmul.f32 2.0, %v14821_v33  ;;  %v11171_v15 = vsub.f32 %v3478_v53, %v3542_v45  ;;  %v4095_v27 = vmul.f32 %v4031_v9, %v14806_v8  ;;  %v3904_v43 = vadd.f32 2.7557319e-06, %v3840_v38  ;;  %v14822_v53 = vld [vmem:[#allocation65_spill] sm:$0xff] }
 0x356   : > { %v4371_v26 = vmul.f32 %v4307_v28, %v11011_v35  ;;  %v3861_v54 = vmul.f32 %v3797_v30, %v11143_v63  ;;  %5152 = vmatpush.msrb.mxu1 %v4944_v52  ;;  %v3191_v23 = vmul.f32 0.31830987, %v11169_v50  ;;  %v11180_v11 = vadd.f32 %v3096_v31, %v10104_v2  ;;  %7874 = vmatmul.msk.f32.gmra.mxu2 %vm2686_vm2, %v11135_v10  ;;  %v14824_v52 = vld [vmem:[#allocation8_spill] sm:$0xff] }
 0x357   : > { %v4308_v14 = vadd.f32 -0.16666667, %v4244_v62  ;;  %v11184_v56 = vmul.f32 %v11171_v15, %v11171_v15  ;;  %v4159_v41 = vadd.f32 0.008333334, %v4095_v27  ;;  %v3968_v37 = vmul.f32 %v3904_v43, %v14807_v17 }
 0x358   : > { %v3925_v22 = vadd.f32 2.7557319e-06, %v3861_v54  ;;  %v4736_v34 = vsub.f32 %v14801_v19, %v4672_v60  ;;  %v3255_v35 = vadd.f32 0.5, %v3191_v23  ;;  %v3192_v30 = vmul.f32 0.31830987, %v11180_v11 }
 0x359   : > { %v3734_v31 = vmul.f32 1.6059044e-10, %v11184_v56  ;;  %v4223_v28 = vmul.f32 %v4159_v41, %v14806_v8  ;;  %v4032_v62 = vadd.f32 -0.0001984127, %v3968_v37  ;;  %v4527_v45 = vmul.f32 0.5, %v14822_v53 }
 0x35a   : > { %v3989_v27 = vmul.f32 %v3925_v22, %v11143_v63  ;;  %v11195_v9 = vfloor.f32 %v3255_v35  ;;  %v3256_v38 = vadd.f32 0.5, %v3192_v30  ;;  %v3695_v33 = vmul.f32 1.6059044e-10, %v14824_v52  ;;  %7878 = vmatmul.msk.f32.gmra.mxu3 %vm2686_vm2, %v11135_v10 }
 0x35b   : > { %v3798_v19 = vadd.f32 -2.5052108e-08, %v3734_v31  ;;  %v4287_v60 = vadd.f32 -0.16666667, %v4223_v28  ;;  %v4799_v43 = vmul.f32 2.0, %v4735_v18  ;;  %v4096_v54 = vmul.f32 %v4032_v62, %v14807_v17 }
 0x35c   : > { %14823 = vst [vmem:[#allocation33_spill] sm:$0xff] %v11195_v9  ;;  %v11202_v23 = vmul.f32 %v4371_v26, %v10998_v32  ;;  %v4372_v41 = vmul.f32 %v4308_v14, %v11050_v49  ;;  %v4053_v37 = vadd.f32 -0.0001984127, %v3989_v27  ;;  %v11205_v22 = vfloor.f32 %v3256_v38  ;;  %v14826_v26 = vld [vmem:[#allocation25_spill] sm:$0xff] }
 0x35d   : > { %v3862_v35 = vmul.f32 %v3798_v19, %v11184_v56  ;;  %v4351_v30 = vmul.f32 %v4287_v60, %v14806_v8  ;;  %v4160_v24 = vadd.f32 0.008333334, %v4096_v54  ;;  %v3759_v1 = vadd.f32 -2.5052108e-08, %v3695_v33 }
 0x35e   : > { %14825 = vst [vmem:[#allocation53_spill] sm:$0xff] %v11205_v22  ;;  %v4117_v31 = vmul.f32 %v4053_v37, %v11143_v63  ;;  %v4800_v28 = vmul.f32 2.0, %v4736_v34  ;;  %v3383_v18 = vmul.f32 3.140625, %v11195_v9  ;;  %v4591_v62 = vfloor.f32 %v4527_v45 }
 0x35f   : > { %v3926_v40 = vadd.f32 2.7557319e-06, %v3862_v35  ;;  %v4415_v59 = vmul.f32 %v4351_v30, %v14826_v26  ;;  %v4224_v49 = vmul.f32 %v4160_v24, %v14807_v17  ;;  %v3823_v14 = vmul.f32 %v3759_v1, %v14824_v52 }
 0x360   : > { %v4181_v27 = vadd.f32 0.008333334, %v4117_v31  ;;  %v11215_v38 = vmul.f32 0.5, %v11130_v21  ;;  %v4863_v8 = vsub.f32 1.0, %v4799_v43  ;;  %v3384_v33 = vmul.f32 3.140625, %v11205_v22 }
 0x361   : > { %v3990_v19 = vmul.f32 %v3926_v40, %v11184_v56  ;;  %v4479_v34 = vadd.f32 %v4415_v59, %v14826_v26  ;;  %v4288_v60 = vadd.f32 -0.16666667, %v4224_v49  ;;  %v3887_v45 = vadd.f32 2.7557319e-06, %v3823_v14  ;;  %v14828_v26 = vld [vmem:[#allocation19_spill] sm:$0xff] }
 0x362   : > { %14827 = vst [vmem:[#allocation10_spill] sm:$0xff] %v11215_v38  ;;  %v11221_v54 = vmul.f32 %v4372_v41, %v11038_v55  ;;  %v4864_v37 = vsub.f32 1.0, %v4800_v28  ;;  %v3447_v24 = vsub.f32 %v11169_v50, %v3383_v18  ;;  %v4655_v1 = vmul.f32 2.0, %v4591_v62  ;;  %v14829_v28 = vld [vmem:[#allocation74_spill] sm:$0xff] }
 0x363   : > { %v4054_v35 = vadd.f32 -0.0001984127, %v3990_v19  ;;  %v4927_v30 = vmul.f32 %v4863_v8, %v4479_v34  ;;  %v4352_v31 = vmul.f32 %v4288_v60, %v14807_v17  ;;  %v3951_v43 = vmul.f32 %v3887_v45, %v14824_v52  ;;  %v14830_v62 = vld [vmem:[#allocation34_spill] sm:$0xff] }
 0x364   : > { %v4245_v21 = vmul.f32 %v4181_v27, %v11143_v63  ;;  %v3511_v40 = vmul.f32 0.0009676536, %v11195_v9  ;;  %v3448_v59 = vsub.f32 %v11180_v11, %v3384_v33  ;;  %v3696_v49 = vmul.f32 1.6059044e-10, %v14828_v26  ;;  %v14832_v27 = vld [vmem:[#allocation79_spill] sm:$0xff] }
 0x365   : > { %v4118_v41 = vmul.f32 %v4054_v35, %v11184_v56  ;;  %5124 = vmatpush.msrb.mxu0 %v4927_v30  ;;  %v4416_v50 = vmul.f32 %v4352_v31, %v14829_v28  ;;  %v4015_v18 = vadd.f32 -0.0001984127, %v3951_v43  ;;  %v4528_v14 = vmul.f32 0.5, %v14830_v62  ;;  %v14833_v43 = vld [vmem:[#allocation81_spill] sm:$0xff] }
 0x366   : > { %v11233_v8 = vsub.f32 %v3447_v24, %v3511_v40  ;;  %v3512_v17 = vmul.f32 0.0009676536, %v11205_v22  ;;  %v3760_v19 = vadd.f32 -2.5052108e-08, %v3696_v49  ;;  %v3679_v34 = vmul.f32 1.6059044e-10, %v14832_v27 }
 0x367   : > { %v4182_v60 = vadd.f32 0.008333334, %v4118_v41  ;;  %v4480_v11 = vadd.f32 %v4416_v50, %v14829_v28  ;;  %v4079_v33 = vmul.f32 %v4015_v18, %v14824_v52  ;;  %v4719_v45 = vsub.f32 %v14822_v53, %v4655_v1  ;;  %v14835_v50 = vld [vmem:[#allocation15_spill] sm:$0xff] }
 0x368   : > { %14831 = vst [vmem:[#allocation26_spill] sm:$0xff] %v11233_v8  ;;  %v3824_v35 = vmul.f32 %v3760_v19, %v14828_v26  ;;  %v4592_v30 = vfloor.f32 %v4528_v14  ;;  %v3743_v31 = vadd.f32 -2.5052108e-08, %v3679_v34  ;;  %v4511_v9 = vmul.f32 0.5, %v14833_v43  ;;  %v14836_v19 = vld [vmem:[#allocation14_spill] sm:$0xff] }
 0x369   : > { %v4309_v24 = vadd.f32 -0.16666667, %v4245_v21  ;;  %v4928_v40 = vmul.f32 %v4864_v37, %v4480_v11  ;;  %v11242_v38 = vsub.f32 %v3448_v59, %v3512_v17  ;;  %v4143_v49 = vadd.f32 0.008333334, %v4079_v33 }
 0x36a   : > { %v4246_v22 = vmul.f32 %v4182_v60, %v11184_v56  ;;  %v3888_v41 = vadd.f32 2.7557319e-06, %v3824_v35  ;;  %v3807_v28 = vmul.f32 %v3743_v31, %v14832_v27  ;;  %v3680_v18 = vmul.f32 1.6059044e-10, %v14835_v50 }
 0x36b   : > { %14834 = vst [vmem:[#allocation58_spill] sm:$0xff] %v11242_v38  ;;  %5153 = vmatpush.msrb.mxu1 %v4928_v40  ;;  %v4207_v53 = vmul.f32 %v4143_v49, %v14824_v52  ;;  %v4783_v1 = vmul.f32 2.0, %v4719_v45  ;;  %v4575_v14 = vfloor.f32 %v4511_v9  ;;  %v4512_v34 = vmul.f32 0.5, %v14836_v19  ;;  %v3122_v49 = vpop.f32.mrf.mxu2 }
 0x36c   : > { %v3952_v21 = vmul.f32 %v3888_v41, %v14828_v26  ;;  %v4656_v37 = vmul.f32 2.0, %v4592_v30  ;;  %v3871_v59 = vadd.f32 2.7557319e-06, %v3807_v28  ;;  %v3744_v17 = vadd.f32 -2.5052108e-08, %v3680_v18  ;;  %v3151_v30 = vpop.f32.mrf.mxu3 }
 0x36d   : > { %v11252_v60 = vmul.f32 %v11233_v8, %v11233_v8  ;;  %v11256_v11 = vmul.f32 %v11242_v38, %v11242_v38  ;;  %v4271_v33 = vadd.f32 -0.16666667, %v4207_v53  ;;  %v4576_v35 = vfloor.f32 %v4512_v34 }
 0x36e   : > { %v4310_v31 = vadd.f32 -0.16666667, %v4246_v22  ;;  %v4016_v45 = vadd.f32 -0.0001984127, %v3952_v21  ;;  %v3935_v9 = vmul.f32 %v3871_v59, %v14832_v27  ;;  %v3808_v40 = vmul.f32 %v3744_v17, %v14835_v50  ;;  %v14839_v22 = vld [vmem:[#allocation67_spill] sm:$0xff] }
 0x36f   : > { %14837 = vst [vmem:[#allocation65_spill] sm:$0xff] %v11252_v60  ;;  %v4373_v41 = vmul.f32 %v4309_v24, %v11143_v63  ;;  %v4335_v28 = vmul.f32 %v4271_v33, %v14824_v52  ;;  %v4847_v18 = vsub.f32 1.0, %v4783_v1  ;;  %v4639_v8 = vmul.f32 2.0, %v4575_v14  ;;  %v3070_v63 = vpop.f32.mrf.mxu0 }
 0x370   : > { %14838 = vst [vmem:[#allocation8_spill] sm:$0xff] %v11256_v11  ;;  %v4080_v60 = vmul.f32 %v4016_v45, %v14828_v26  ;;  %v4720_v38 = vsub.f32 %v14830_v62, %v4656_v37  ;;  %v3999_v53 = vadd.f32 -0.0001984127, %v3935_v9  ;;  %v3872_v34 = vadd.f32 2.7557319e-06, %v3808_v40 }
 0x371   : > { %v4399_v21 = vmul.f32 %v4335_v28, %v14839_v22  ;;  %v4640_v11 = vmul.f32 2.0, %v4576_v35  ;;  %v11266_v59 = vadd.f32 %v3122_v49, %v10126_v47  ;;  %v11269_v17 = vadd.f32 %v3151_v30, %v10126_v47 }
 0x372   : > { %v4374_v52 = vmul.f32 %v4310_v31, %v11184_v56  ;;  %v4144_v24 = vadd.f32 0.008333334, %v4080_v60  ;;  %v4063_v1 = vmul.f32 %v3999_v53, %v14832_v27  ;;  %v3936_v14 = vmul.f32 %v3872_v34, %v14835_v50  ;;  %v3099_v56 = vpop.f32.mrf.mxu1 }
 0x373   : > { %14840 = vst [vmem:[#allocation25_spill] sm:$0xff] %v11269_v17  ;;  %v4463_v62 = vadd.f32 %v4399_v21, %v14839_v22  ;;  %v4703_v37 = vsub.f32 %v14833_v43, %v4639_v8  ;;  %v3177_v33 = vmul.f32 0.31830987, %v11266_v59  ;;  %v3178_v35 = vmul.f32 0.31830987, %v11269_v17  ;;  %v14858_v17 = vld [vmem:[#allocation17_spill] sm:$0xff] }
 0x374   : > { %v4208_v45 = vmul.f32 %v4144_v24, %v14828_v26  ;;  %v4127_v47 = vadd.f32 0.008333334, %v4063_v1  ;;  %v4000_v9 = vadd.f32 -0.0001984127, %v3936_v14  ;;  %v11280_v40 = vadd.f32 %v3070_v63, %v10169_v51 }
 0x375   : > { %v4911_v60 = vmul.f32 %v4847_v18, %v4463_v62  ;;  %v4704_v31 = vsub.f32 %v14836_v19, %v4640_v11  ;;  %v3241_v49 = vadd.f32 0.5, %v3177_v33  ;;  %v3242_v30 = vadd.f32 0.5, %v3178_v35  ;;  %v14843_v33 = vld [vmem:[#allocation68_spill] sm:$0xff] }
 0x376   : > { %v4272_v28 = vadd.f32 -0.16666667, %v4208_v45  ;;  %v4191_v8 = vmul.f32 %v4127_v47, %v14832_v27  ;;  %v4064_v43 = vmul.f32 %v4000_v9, %v14835_v50  ;;  %v3207_v53 = vmul.f32 0.31830987, %v11280_v40 }
 0x377   : > { %5125 = vmatpush.msrb.mxu0 %v4911_v60  ;;  %v4784_v34 = vmul.f32 2.0, %v4720_v38  ;;  %v11286_v22 = vfloor.f32 %v3241_v49  ;;  %v11288_v21 = vfloor.f32 %v3242_v30  ;;  %v11291_v63 = vadd.f32 %v3099_v56, %v10169_v51 }
 0x378   : > { %v4336_v19 = vmul.f32 %v4272_v28, %v14828_v26  ;;  %v4255_v11 = vadd.f32 -0.16666667, %v4191_v8  ;;  %v4128_v18 = vadd.f32 0.008333334, %v4064_v43  ;;  %v3271_v24 = vadd.f32 0.5, %v3207_v53 }
 0x379   : > { %14841 = vst [vmem:[#allocation19_spill] sm:$0xff] %v11286_v22  ;;  %v11295_v1 = vmul.f32 %v4373_v41, %v11128_v12  ;;  %v11298_v14 = vmul.f32 %v4374_v52, %v11171_v15  ;;  %v4767_v62 = vmul.f32 2.0, %v4703_v37  ;;  %v4768_v38 = vmul.f32 2.0, %v4704_v31  ;;  %v14845_v37 = vld [vmem:[#allocation62_spill] sm:$0xff] }
 0x37a   : > { %14842 = vst [vmem:[#allocation74_spill] sm:$0xff] %v11288_v21  ;;  %v4400_v35 = vmul.f32 %v4336_v19, %v14843_v33  ;;  %v4319_v45 = vmul.f32 %v4255_v11, %v14832_v27  ;;  %v4192_v47 = vmul.f32 %v4128_v18, %v14835_v50  ;;  %v11303_v9 = vfloor.f32 %v3271_v24 }
 0x37b   : > { %v4848_v26 = vsub.f32 1.0, %v4784_v34  ;;  %v11306_v56 = vmul.f32 3.140625, %v11286_v22  ;;  %v3208_v41 = vmul.f32 0.31830987, %v11291_v63  ;;  %v4625_v60 = vfloor.f32 %v10683_v16 }
 0x37c   : > { %v4464_v52 = vadd.f32 %v4400_v35, %v14843_v33  ;;  %v4383_v31 = vmul.f32 %v4319_v45, %v14845_v37  ;;  %v4256_v49 = vadd.f32 -0.16666667, %v4192_v47  ;;  %v11313_v30 = vmul.f32 3.140625, %v11288_v21  ;;  %v14848_v33 = vld [vmem:[#allocation70_spill] sm:$0xff] }
 0x37d   : > { %14844 = vst [vmem:[#allocation34_spill] sm:$0xff] %v11306_v56  ;;  %v4831_v27 = vsub.f32 1.0, %v4767_v62  ;;  %v4832_v28 = vsub.f32 1.0, %v4768_v38  ;;  %v3272_v8 = vadd.f32 0.5, %v3208_v41  ;;  %v4497_v43 = vadd.f32 %v10824_v6, %v10678_v44 }
 0x37e   : > { %14846 = vst [vmem:[#allocation79_spill] sm:$0xff] %v11313_v30  ;;  %v4912_v53 = vmul.f32 %v4848_v26, %v4464_v52  ;;  %v4447_v34 = vadd.f32 %v4383_v31, %v14845_v37  ;;  %v4320_v19 = vmul.f32 %v4256_v49, %v14835_v50  ;;  %v3399_v16 = vmul.f32 3.140625, %v11303_v9  ;;  %v14849_v37 = vld [vmem:[#allocation43_spill] sm:$0xff]  ;;  %v11344_v49 = vld [vmem:[%s13856_s4] sm:$0xff] }
 0x37f   : > { %v11321_v11 = vmul.f32 0.0009676536, %v11286_v22  ;;  %v11324_v18 = vmul.f32 0.0009676536, %v11288_v21  ;;  %v11326_v24 = vfloor.f32 %v3272_v8  ;;  %v4689_v62 = vmul.f32 2.0, %v4625_v60 }
 0x380   : > { %5154 = vmatpush.msrb.mxu1 %v4912_v53  ;;  %v4895_v38 = vmul.f32 %v4831_v27, %v4447_v34  ;;  %v4384_v44 = vmul.f32 %v4320_v19, %v14848_v33  ;;  %v3527_v35 = vmul.f32 0.0009676536, %v11303_v9  ;;  %v4626_v26 = vfloor.f32 %v10741_v57 }
 0x381   : > { %14847 = vst [vmem:[#allocation81_spill] sm:$0xff] %v11324_v18  ;;  %v3400_v45 = vmul.f32 3.140625, %v11326_v24  ;;  %v4753_v47 = vsub.f32 %v10650_v58, %v4689_v62  ;;  %v3463_v60 = vsub.f32 %v11280_v40, %v3399_v16  ;;  %v3713_v52 = vmul.f32 1.6059044e-10, %v10662_v42  ;;  %v3125_v40 = vpop.f32.mrf.mxu2  ;;  %v14850_v16 = vld [vmem:[#allocation41_spill] sm:$0xff] }
 0x382   : > { %5126 = vmatpush.msrb.mxu0 %v4895_v38  ;;  %v4448_v41 = vadd.f32 %v4384_v44, %v14848_v33  ;;  %v4545_v31 = vmul.f32 0.5, %v14849_v37  ;;  %v4498_v57 = vadd.f32 %v10908_v48, %v10709_v3  ;;  %v4690_v27 = vmul.f32 2.0, %v4626_v26  ;;  %v3154_v26 = vpop.f32.mrf.mxu3 }
 0x383   : > { %7879 = vmatmul.msk.f32.vlgmr.msrb.gmra.mxu0 %vm2686_vm2, %v11344_v49  ;;  %v4817_v58 = vmul.f32 2.0, %v4753_v47  ;;  %v3714_v8 = vmul.f32 1.6059044e-10, %v10672_v46  ;;  %v3777_v34 = vadd.f32 -2.5052108e-08, %v3713_v52  ;;  %v4546_v62 = vmul.f32 0.5, %v14850_v16 }
 0x384   : > { %v4896_v53 = vmul.f32 %v4832_v28, %v4448_v41  ;;  %v4609_v19 = vfloor.f32 %v4545_v31  ;;  %v3464_v38 = vsub.f32 %v11291_v63, %v3400_v45  ;;  %v4754_v44 = vsub.f32 %v10685_v61, %v4690_v27 }
 0x385   : > { %v4881_v33 = vsub.f32 1.0, %v4817_v58  ;;  %v3778_v50 = vadd.f32 -2.5052108e-08, %v3714_v8  ;;  %v3841_v47 = vmul.f32 %v3777_v34, %v10662_v42  ;;  %v4610_v3 = vfloor.f32 %v4546_v62 }
 0x386   : > { %5155 = vmatpush.msrb.mxu1 %v4896_v53  ;;  %v4673_v6 = vmul.f32 2.0, %v4609_v19  ;;  %v11356_v48 = vadd.f32 %v3125_v40, %v10104_v2  ;;  %v3528_v28 = vmul.f32 0.0009676536, %v11326_v24  ;;  %v4818_v63 = vmul.f32 2.0, %v4754_v44  ;;  %v14851_v53 = vld [vmem:[#allocation63_spill] sm:$0xff]  ;;  %v11378_v44 = vld [vmem:[%s13856_s4 + $0x8] sm:$0xff] }
 0x387   : > { %7883 = vmatmul.msk.f32.vlgmr.msrb.gmra.mxu1 %vm2686_vm2, %v11344_v49  ;;  %v4945_v41 = vmul.f32 %v4881_v33, %v4497_v43  ;;  %v3842_v45 = vmul.f32 %v3778_v50, %v10672_v46  ;;  %v3905_v61 = vadd.f32 2.7557319e-06, %v3841_v47  ;;  %v4674_v31 = vmul.f32 2.0, %v4610_v3 }
 0x388   : > { %v4737_v52 = vsub.f32 %v14849_v37, %v4673_v6  ;;  %v3193_v58 = vmul.f32 0.31830987, %v11356_v48  ;;  %v4882_v27 = vsub.f32 1.0, %v4818_v63  ;;  %v11365_v40 = vadd.f32 %v3154_v26, %v10104_v2 }
 0x389   : > { %5181 = vmatpush.msrb.mxu2 %v4945_v41  ;;  %v3906_v8 = vadd.f32 2.7557319e-06, %v3842_v45  ;;  %v3697_v34 = vmul.f32 1.6059044e-10, %v14851_v53  ;;  %v11368_v19 = vsub.f32 %v3463_v60, %v3527_v35  ;;  %v11370_v43 = vsub.f32 %v3464_v38, %v3528_v28  ;;  %v14853_v28 = vld [vmem:[#allocation71_spill] sm:$0xff] }
 0x38a   : > { %v3969_v50 = vmul.f32 %v3905_v61, %v10662_v42  ;;  %v3257_v62 = vadd.f32 0.5, %v3193_v58  ;;  %v4946_v33 = vmul.f32 %v4882_v27, %v4498_v57  ;;  %v3194_v37 = vmul.f32 0.31830987, %v11365_v40 }
 0x38b   : > { %v3970_v6 = vmul.f32 %v3906_v8, %v10672_v46  ;;  %7880 = vmatmul.msk.f32.gmra.mxu0 %vm2686_vm2, %v11378_v44  ;;  %v3761_v2 = vadd.f32 -2.5052108e-08, %v3697_v34  ;;  %v11382_v60 = vmul.f32 2.0, %v4737_v52  ;;  %v4738_v38 = vsub.f32 %v14850_v16, %v4674_v31 }
 0x38c   : > { %v4033_v35 = vadd.f32 -0.0001984127, %v3969_v50  ;;  %v11385_v47 = vfloor.f32 %v3257_v62  ;;  %5210 = vmatpush.msrb.mxu3 %v4946_v33  ;;  %v3258_v3 = vadd.f32 0.5, %v3194_v37  ;;  %v4529_v41 = vmul.f32 0.5, %v14853_v28  ;;  %v14855_v50 = vld [vmem:[#allocation56_spill] sm:$0xff]  ;;  %v14856_v33 = vld [vmem:[#allocation7_spill] sm:$0xff] }
 0x38d   : > { %v4034_v57 = vadd.f32 -0.0001984127, %v3970_v6  ;;  %v3825_v26 = vmul.f32 %v3761_v2, %v14851_v53  ;;  %v11391_v63 = vmul.f32 %v11368_v19, %v11368_v19  ;;  %v11395_v45 = vmul.f32 %v11370_v43, %v11370_v43 }
 0x38e   : > { %14852 = vst [vmem:[#allocation15_spill] sm:$0xff] %v11385_v47  ;;  %v4097_v61 = vmul.f32 %v4033_v35, %v10662_v42  ;;  %v3385_v16 = vmul.f32 3.140625, %v11385_v47  ;;  %v11400_v31 = vfloor.f32 %v3258_v3  ;;  %v4593_v27 = vfloor.f32 %v4529_v41 }
 0x38f   : > { %v4098_v52 = vmul.f32 %v4034_v57, %v10672_v46  ;;  %7884 = vmatmul.msk.f32.gmra.mxu1 %vm2686_vm2, %v11378_v44  ;;  %v3889_v58 = vadd.f32 2.7557319e-06, %v3825_v26  ;;  %v3698_v62 = vmul.f32 1.6059044e-10, %v14855_v50  ;;  %v4530_v6 = vmul.f32 0.5, %v14856_v33 }
 0x390   : > { %14854 = vst [vmem:[#allocation14_spill] sm:$0xff] %v11400_v31  ;;  %v4161_v8 = vadd.f32 0.008333334, %v4097_v61  ;;  %v3449_v34 = vsub.f32 %v11356_v48, %v3385_v16  ;;  %v4865_v37 = vsub.f32 1.0, %v11382_v60  ;;  %v4802_v35 = vmul.f32 2.0, %v4738_v38 }
 0x391   : > { %v4162_v2 = vadd.f32 0.008333334, %v4098_v52  ;;  %v3953_v57 = vmul.f32 %v3889_v58, %v14851_v53  ;;  %v3513_v21 = vmul.f32 0.0009676536, %v11385_v47  ;;  %v4657_v22 = vmul.f32 2.0, %v4593_v27 }
 0x392   : > { %v4225_v3 = vmul.f32 %v4161_v8, %v10662_v42  ;;  %v3762_v26 = vadd.f32 -2.5052108e-08, %v3698_v62  ;;  %v11413_v48 = vmul.f32 3.140625, %v11400_v31  ;;  %v4594_v16 = vfloor.f32 %v4530_v6 }
 0x393   : > { %v4226_v41 = vmul.f32 %v4162_v2, %v10672_v46  ;;  %v4017_v61 = vadd.f32 -0.0001984127, %v3953_v57  ;;  %7881 = vmatmul.msk.f32.gmra.mxu0 %vm2686_vm2, %v11006_v20  ;;  %v11417_v38 = vsub.f32 %v3449_v34, %v3513_v21  ;;  %v4721_v52 = vsub.f32 %v14853_v28, %v4657_v22 }
 0x394   : > { %v4289_v60 = vadd.f32 -0.16666667, %v4225_v3  ;;  %v3826_v58 = vmul.f32 %v3762_v26, %v14855_v50  ;;  %v4866_v27 = vsub.f32 1.0, %v4802_v35  ;;  %v4658_v2 = vmul.f32 2.0, %v4594_v16 }
 0x395   : > { %14857 = vst [vmem:[#allocation67_spill] sm:$0xff] %v11417_v38  ;;  %v4290_v8 = vadd.f32 -0.16666667, %v4226_v41  ;;  %v4081_v62 = vmul.f32 %v4017_v61, %v14851_v53  ;;  %v3514_v57 = vmul.f32 0.0009676536, %v11400_v31  ;;  %v3450_v21 = vsub.f32 %v11365_v40, %v11413_v48  ;;  %v14860_v48 = vld [vmem:[#allocation11_spill] sm:$0xff] }
 0x396   : > { %v4353_v30 = vmul.f32 %v4289_v60, %v10662_v42  ;;  %v3890_v6 = vadd.f32 2.7557319e-06, %v3826_v58  ;;  %v3681_v18 = vmul.f32 1.6059044e-10, %v14858_v17  ;;  %v4785_v28 = vmul.f32 2.0, %v4721_v52  ;;  %v14861_v60 = vld [vmem:[#allocation75_spill] sm:$0xff] }
 0x397   : > { %v4354_v3 = vmul.f32 %v4290_v8, %v10672_v46  ;;  %v4145_v22 = vadd.f32 0.008333334, %v4081_v62  ;;  %7885 = vmatmul.msk.f32.gmra.mxu1 %vm2686_vm2, %v11006_v20  ;;  %v11433_v42 = vmul.f32 %v11417_v38, %v11417_v38  ;;  %v4722_v40 = vsub.f32 %v14856_v33, %v4658_v2 }
 0x398   : > { %v4417_v34 = vmul.f32 %v4353_v30, %v10647_v4  ;;  %v3954_v35 = vmul.f32 %v3890_v6, %v14855_v50  ;;  %v3745_v26 = vadd.f32 -2.5052108e-08, %v3681_v18  ;;  %v4513_v61 = vmul.f32 0.5, %v14860_v48  ;;  %v3073_v6 = vpop.f32.mrf.mxu0 }
 0x399   : > { %14859 = vst [vmem:[#allocation68_spill] sm:$0xff] %v11433_v42  ;;  %v4418_v41 = vmul.f32 %v4354_v3, %v10654_v7  ;;  %v4209_v46 = vmul.f32 %v4145_v22, %v14851_v53  ;;  %v3682_v52 = vmul.f32 1.6059044e-10, %v14861_v60  ;;  %v4849_v62 = vsub.f32 1.0, %v4785_v28 }
 0x39a   : > { %v4481_v16 = vadd.f32 %v4417_v34, %v10647_v4  ;;  %v4018_v20 = vadd.f32 -0.0001984127, %v3954_v35  ;;  %v3809_v30 = vmul.f32 %v3745_v26, %v14858_v17  ;;  %v4577_v18 = vfloor.f32 %v4513_v61  ;;  %v14862_v26 = vld [vmem:[#allocation80_spill] sm:$0xff] }
 0x39b   : > { %v4482_v58 = vadd.f32 %v4418_v41, %v10654_v7  ;;  %v4273_v8 = vadd.f32 -0.16666667, %v4209_v46  ;;  %7882 = vmatmul.msk.f32.gmra.mxu0 %vm2686_vm2, %v11135_v10  ;;  %v3746_v22 = vadd.f32 -2.5052108e-08, %v3682_v52  ;;  %v4514_v38 = vmul.f32 0.5, %v14862_v26 }
 0x39c   : > { %v4929_v3 = vmul.f32 %v4865_v37, %v4481_v16  ;;  %v4082_v33 = vmul.f32 %v4018_v20, %v14855_v50  ;;  %v3873_v2 = vadd.f32 2.7557319e-06, %v3809_v30  ;;  %v4641_v35 = vmul.f32 2.0, %v4577_v18  ;;  %v14863_v37 = vld [vmem:[#allocation64_spill] sm:$0xff] }
 0x39d   : > { %v4930_v4 = vmul.f32 %v4866_v27, %v4482_v58  ;;  %v4337_v34 = vmul.f32 %v4273_v8, %v14851_v53  ;;  %v3810_v41 = vmul.f32 %v3746_v22, %v14861_v60  ;;  %v3074_v46 = vadd.f32 %v3073_v6, %v10140_v25 }
 0x39e   : > { %5182 = vmatpush.msrb.mxu2 %v4929_v3  ;;  %v4146_v7 = vadd.f32 0.008333334, %v4082_v33  ;;  %v3937_v28 = vmul.f32 %v3873_v2, %v14858_v17  ;;  %v4786_v16 = vmul.f32 2.0, %v4722_v40  ;;  %v4705_v20 = vsub.f32 %v14860_v48, %v4641_v35 }
 0x39f   : > { %5211 = vmatpush.msrb.mxu3 %v4930_v4  ;;  %v4401_v61 = vmul.f32 %v4337_v34, %v14863_v37  ;;  %v4578_v27 = vfloor.f32 %v4514_v38  ;;  %7886 = vmatmul.msk.f32.gmra.mxu1 %vm2686_vm2, %v11135_v10  ;;  %v3874_v52 = vadd.f32 2.7557319e-06, %v3810_v41  ;;  %v3223_v58 = vmul.f32 0.31830987, %v3074_v46 }
 0x3a0   : > { %v4210_v53 = vmul.f32 %v4146_v7, %v14855_v50  ;;  %v4001_v30 = vadd.f32 -0.0001984127, %v3937_v28  ;;  %v11458_v18 = vmul.f32 2.0, %v4705_v20  ;;  %v4547_v3 = vmul.f32 0.5, %v10830_v36 }
 0x3a1   : > { %v4465_v8 = vadd.f32 %v4401_v61, %v14863_v37  ;;  %v4642_v6 = vmul.f32 2.0, %v4578_v27  ;;  %v3938_v38 = vmul.f32 %v3874_v52, %v14861_v60  ;;  %v3287_v48 = vadd.f32 0.5, %v3223_v58  ;;  %v3102_v27 = vpop.f32.mrf.mxu1 }
 0x3a2   : > { %v4274_v33 = vadd.f32 -0.16666667, %v4210_v53  ;;  %v4065_v40 = vmul.f32 %v4001_v30, %v14858_v17  ;;  %v11463_v2 = vsub.f32 %v3450_v21, %v3514_v57  ;;  %v4611_v4 = vfloor.f32 %v4547_v3  ;;  %v14865_v57 = vld [vmem:[#allocation48_spill] sm:$0xff] }
 0x3a3   : > { %v4913_v10 = vmul.f32 %v4849_v62, %v4465_v8  ;;  %v4706_v22 = vsub.f32 %v14862_v26, %v4642_v6  ;;  %v4002_v7 = vadd.f32 -0.0001984127, %v3938_v38  ;;  %v11467_v28 = vfloor.f32 %v3287_v48 }
 0x3a4   : > { %14864 = vst [vmem:[#allocation62_spill] sm:$0xff] %v11463_v2  ;;  %v4338_v34 = vmul.f32 %v4274_v33, %v14855_v50  ;;  %v4129_v35 = vadd.f32 0.008333334, %v4065_v40  ;;  %v4850_v41 = vsub.f32 1.0, %v4786_v16  ;;  %v4833_v37 = vsub.f32 1.0, %v11458_v18  ;;  %v14866_v40 = vld [vmem:[#allocation20_spill] sm:$0xff] }
 0x3a5   : > { %5183 = vmatpush.msrb.mxu2 %v4913_v10  ;;  %v4675_v61 = vmul.f32 2.0, %v4611_v4  ;;  %v11471_v20 = vmul.f32 0.5, %v10718_v0  ;;  %v4066_v26 = vmul.f32 %v4002_v7, %v14861_v60  ;;  %v3415_v50 = vmul.f32 3.140625, %v11467_v28  ;;  %v14867_v7 = vld [vmem:[#allocation9_spill] sm:$0xff] }
 0x3a6   : > { %v4402_v21 = vmul.f32 %v4338_v34, %v14865_v57  ;;  %v4193_v62 = vmul.f32 %v4129_v35, %v14858_v17  ;;  %v4770_v53 = vmul.f32 2.0, %v4706_v22  ;;  %v3543_v30 = vmul.f32 0.0009676536, %v11467_v28 }
 0x3a7   : > { %v3103_v16 = vadd.f32 %v3102_v27, %v10140_v25  ;;  %v11480_v52 = vmul.f32 0.5, %v10833_v29  ;;  %v4130_v18 = vadd.f32 0.008333334, %v4066_v26  ;;  %v3479_v6 = vsub.f32 %v3074_v46, %v3415_v50 }
 0x3a8   : > { %v4466_v58 = vadd.f32 %v4402_v21, %v14865_v57  ;;  %v4257_v8 = vadd.f32 -0.16666667, %v4193_v62  ;;  %v11484_v3 = vmul.f32 0.5, %v11467_v28  ;;  %v3715_v38 = vmul.f32 1.6059044e-10, %v14866_v40  ;;  %v14868_v62 = vld [vmem:[#allocation77_spill] sm:$0xff] }
 0x3a9   : > { %v3224_v33 = vmul.f32 0.31830987, %v3103_v16  ;;  %v4739_v48 = vsub.f32 %v10830_v36, %v4675_v61  ;;  %v4194_v4 = vmul.f32 %v4130_v18, %v14861_v60  ;;  %v11490_v34 = vsub.f32 %v3479_v6, %v3543_v30 }
 0x3aa   : > { %v4914_v10 = vmul.f32 %v4850_v41, %v4466_v58  ;;  %v4321_v22 = vmul.f32 %v4257_v8, %v14858_v17  ;;  %v4627_v57 = vfloor.f32 %v14867_v7  ;;  %v4628_v46 = vfloor.f32 %v11097_v13  ;;  %v14869_v41 = vld [vmem:[#allocation24_spill] sm:$0xff] }
 0x3ab   : > { %v3288_v35 = vadd.f32 0.5, %v3224_v33  ;;  %v3779_v21 = vadd.f32 -2.5052108e-08, %v3715_v38  ;;  %v4258_v50 = vadd.f32 -0.16666667, %v4194_v4  ;;  %v11497_v36 = vmul.f32 %v11490_v34, %v11490_v34  ;;  %v14870_v7 = vld [vmem:[#allocation72_spill] sm:$0xff] }
 0x3ac   : > { %5212 = vmatpush.msrb.mxu3 %v4914_v10  ;;  %v4385_v26 = vmul.f32 %v4321_v22, %v14868_v62  ;;  %v11500_v17 = vmul.f32 1.6059044e-10, %v14869_v41  ;;  %v4834_v61 = vsub.f32 1.0, %v4770_v53  ;;  %v11505_v58 = vmul.f32 2.0, %v4739_v48  ;;  %v3128_v10 = vpop.f32.mrf.mxu2  ;;  %v3157_v53 = vpop.f32.mrf.mxu3  ;;  %v4962_v22 = vld [vmem:[%s13857_s5 + $0x18] sm:$0xff] }
 0x3ad   : > { %v11503_v30 = vfloor.f32 %v3288_v35  ;;  %v4322_v8 = vmul.f32 %v4258_v50, %v14861_v60  ;;  %v3735_v18 = vmul.f32 1.6059044e-10, %v11497_v36  ;;  %v4691_v6 = vmul.f32 2.0, %v4627_v57  ;;  %4980 = vperm.xlu2 %7989, %v4962_v22  }
 0x3ae   : > { %v4449_v13 = vadd.f32 %v4385_v26, %v14868_v62  ;;  %v4692_v48 = vmul.f32 2.0, %v4628_v46  ;;  %v3843_v4 = vmul.f32 %v3779_v21, %v14866_v40  ;;  %v3129_v57 = vadd.f32 %v3128_v10, %v10169_v51 }
 0x3af   : > { %v3416_v33 = vmul.f32 3.140625, %v11503_v30  ;;  %v11512_v38 = vmul.f32 0.5, %v11503_v30  ;;  %v4386_v60 = vmul.f32 %v4322_v8, %v14870_v7  ;;  %v3799_v62 = vadd.f32 -2.5052108e-08, %v3735_v18 }
 0x3b0   : > { %v4897_v35 = vmul.f32 %v4833_v37, %v4449_v13  ;;  %v3544_v50 = vmul.f32 0.0009676536, %v11503_v30  ;;  %v3158_v27 = vadd.f32 %v3157_v53, %v10169_v51  ;;  %v3209_v21 = vmul.f32 0.31830987, %v3129_v57  ;;  %v14871_v37 = vld [vmem:[#allocation13_spill] sm:$0xff] }
 0x3b1   : > { %v3480_v26 = vsub.f32 %v3103_v16, %v3416_v33  ;;  %v4450_v47 = vadd.f32 %v4386_v60, %v14870_v7  ;;  %v3863_v46 = vmul.f32 %v3799_v62, %v11497_v36  ;;  %v4755_v13 = vsub.f32 %v14871_v37, %v4691_v6  ;;  %v14872_v60 = vld [vmem:[#allocation22_spill] sm:$0xff] }
 0x3b2   : > { %5184 = vmatpush.msrb.mxu2 %v4897_v35  ;;  %v3210_v16 = vmul.f32 0.31830987, %v3158_v27  ;;  %v3907_v33 = vadd.f32 2.7557319e-06, %v3843_v4  ;;  %v3273_v53 = vadd.f32 0.5, %v3209_v21  ;;  %v4756_v22 = vsub.f32 %v11001_v39, %v4692_v48 }
 0x3b3   : > { %v11526_v8 = vsub.f32 %v3480_v26, %v3544_v50  ;;  %7887 = vmatmul.msk.f32.vlgmr.msrb.gmra.mxu2 %vm2686_vm2, %v11344_v49  ;;  %v4898_v51 = vmul.f32 %v4834_v61, %v4450_v47  ;;  %v3927_v10 = vadd.f32 2.7557319e-06, %v3863_v46  ;;  %v3716_v62 = vmul.f32 1.6059044e-10, %v14872_v60 }
 0x3b4   : > { %v3274_v7 = vadd.f32 0.5, %v3210_v16  ;;  %v3971_v6 = vmul.f32 %v3907_v33, %v14866_v40  ;;  %v11539_v50 = vfloor.f32 %v3273_v53  ;;  %v11541_v4 = vmul.f32 2.0, %v4755_v13  ;;  %v3131_v48 = vpop.f32.mrf.mxu2 }
 0x3b5   : > { %v11534_v35 = vmul.f32 %v11526_v8, %v11526_v8  ;;  %5213 = vmatpush.msrb.mxu3 %v4898_v51  ;;  %v3991_v26 = vmul.f32 %v3927_v10, %v11497_v36  ;;  %v4612_v47 = vfloor.f32 %v11480_v52  ;;  %v3780_v21 = vadd.f32 -2.5052108e-08, %v3716_v62 }
 0x3b6   : > { %7891 = vmatmul.msk.f32.vlgmr.msrb.gmra.mxu3 %vm2686_vm2, %v11344_v49  ;;  %v11547_v61 = vfloor.f32 %v3274_v7  ;;  %v4035_v46 = vadd.f32 -0.0001984127, %v3971_v6  ;;  %v3401_v16 = vmul.f32 3.140625, %v11539_v50  ;;  %v3132_v33 = vadd.f32 %v3131_v48, %v10140_v25 }
 0x3b7   : > { %v3736_v39 = vmul.f32 1.6059044e-10, %v11534_v35  ;;  %v4055_v37 = vadd.f32 -0.0001984127, %v3991_v26  ;;  %v11551_v51 = vmul.f32 2.0, %v4756_v22  ;;  %v3844_v6 = vmul.f32 %v3780_v21, %v14872_v60 }
 0x3b8   : > { %14873 = vst [vmem:[#allocation70_spill] sm:$0xff] %v11547_v61  ;;  %v3529_v52 = vmul.f32 0.0009676536, %v11539_v50  ;;  %v3402_v10 = vmul.f32 3.140625, %v11547_v61  ;;  %v4099_v53 = vmul.f32 %v4035_v46, %v14866_v40  ;;  %v3465_v18 = vsub.f32 %v3129_v57, %v3401_v16 }
 0x3b9   : > { %v3800_v13 = vadd.f32 -2.5052108e-08, %v3736_v39  ;;  %v4119_v7 = vmul.f32 %v4055_v37, %v11497_v36  ;;  %v3225_v31 = vmul.f32 0.31830987, %v3132_v33  ;;  %v4676_v39 = vmul.f32 2.0, %v4612_v47 }
 0x3ba   : > { %v3466_v26 = vsub.f32 %v3158_v27, %v3402_v10  ;;  %v4163_v22 = vadd.f32 0.008333334, %v4099_v53  ;;  %v11561_v42 = vsub.f32 %v3465_v18, %v3529_v52  ;;  %v3908_v56 = vadd.f32 2.7557319e-06, %v3844_v6 }
 0x3bb   : > { %v3864_v62 = vmul.f32 %v3800_v13, %v11534_v35  ;;  %7888 = vmatmul.msk.f32.gmra.mxu2 %vm2686_vm2, %v11378_v44  ;;  %v4183_v48 = vadd.f32 0.008333334, %v4119_v7  ;;  %v3289_v2 = vadd.f32 0.5, %v3225_v31  ;;  %v3530_v37 = vmul.f32 0.0009676536, %v11547_v61  ;;  %v3160_v7 = vpop.f32.mrf.mxu3 }
 0x3bc   : > { %14874 = vst [vmem:[#allocation43_spill] sm:$0xff] %v11561_v42  ;;  %v4227_v57 = vmul.f32 %v4163_v22, %v14866_v40  ;;  %v4740_v21 = vsub.f32 %v10833_v29, %v4676_v39  ;;  %v3972_v47 = vmul.f32 %v3908_v56, %v14872_v60  ;;  %v4884_v31 = vsub.f32 1.0, %v11551_v51 }
 0x3bd   : > { %v3928_v46 = vadd.f32 2.7557319e-06, %v3864_v62  ;;  %v4247_v16 = vmul.f32 %v4183_v48, %v11497_v36  ;;  %v11567_v27 = vfloor.f32 %v3289_v2  ;;  %v11572_v52 = vsub.f32 %v3466_v26, %v3530_v37 }
 0x3be   : > { %7892 = vmatmul.msk.f32.gmra.mxu3 %vm2686_vm2, %v11378_v44  ;;  %v4291_v10 = vadd.f32 -0.16666667, %v4227_v57  ;;  %v11579_v29 = vmul.f32 %v11561_v42, %v11561_v42  ;;  %v11582_v6 = vmul.f32 2.0, %v4740_v21  ;;  %v3161_v62 = vadd.f32 %v3160_v7, %v10140_v25  ;;  %v11597_v25 = vld [vmem:[%s13856_s4 + $0x10] sm:$0xff] }
 0x3bf   : > { %v3992_v18 = vmul.f32 %v3928_v46, %v11534_v35  ;;  %14875 = vst [vmem:[#allocation41_spill] sm:$0xff] %v11572_v52  ;;  %v4311_v53 = vadd.f32 -0.16666667, %v4247_v16  ;;  %v3417_v2 = vmul.f32 3.140625, %v11567_v27  ;;  %v4036_v22 = vadd.f32 -0.0001984127, %v3972_v47 }
 0x3c0   : > { %v4355_v26 = vmul.f32 %v4291_v10, %v14866_v40  ;;  %v3545_v48 = vmul.f32 0.0009676536, %v11567_v27  ;;  %v11589_v46 = vmul.f32 0.5, %v11567_v27  ;;  %v3226_v57 = vmul.f32 0.31830987, %v3161_v62  ;;  %v14876_v16 = vld [vmem:[#allocation46_spill] sm:$0xff] }
 0x3c1   : > { %v4056_v56 = vadd.f32 -0.0001984127, %v3992_v18  ;;  %v4375_v39 = vmul.f32 %v4311_v53, %v11497_v36  ;;  %v3481_v51 = vsub.f32 %v3132_v33, %v3417_v2  ;;  %v4100_v18 = vmul.f32 %v4036_v22, %v14872_v60  ;;  %v4961_v22 = vld [vmem:[%s13857_s5 + $0x10] sm:$0xff] }
 0x3c2   : > { %v4419_v21 = vmul.f32 %v4355_v26, %v14876_v16  ;;  %v3763_v33 = vadd.f32 -2.5052108e-08, %v11500_v17  ;;  %v4595_v47 = vfloor.f32 %v11471_v20  ;;  %v11608_v53 = vmul.f32 %v11572_v52, %v11572_v52  ;;  %4975 = vperm.xlu2 %7989, %v4961_v22  }
 0x3c3   : > { %v4120_v37 = vmul.f32 %v4056_v56, %v11534_v35  ;;  %7889 = vmatmul.msk.f32.gmra.mxu2 %vm2686_vm2, %v11597_v25  ;;  %v4439_v40 = vmul.f32 %v4375_v39, %v11490_v34  ;;  %v11602_v36 = vsub.f32 %v3481_v51, %v3545_v48  ;;  %v3290_v2 = vadd.f32 0.5, %v3226_v57 }
 0x3c4   : > { %14877 = vst [vmem:[#allocation63_spill] sm:$0xff] %v11608_v53  ;;  %v4164_v7 = vadd.f32 0.008333334, %v4100_v18  ;;  %v3827_v17 = vmul.f32 %v3763_v33, %v14869_v41  ;;  %v4659_v20 = vmul.f32 2.0, %v4595_v47  ;;  %v4483_v33 = vadd.f32 %v4419_v21, %v14876_v16  ;;  %v14882_v53 = vld [vmem:[#allocation44_spill] sm:$0xff] }
 0x3c5   : > { %v4184_v10 = vadd.f32 0.008333334, %v4120_v37  ;;  %v11612_v56 = vmul.f32 %v11602_v36, %v11602_v36  ;;  %v11620_v51 = vfloor.f32 %v3290_v2  ;;  %v4868_v37 = vsub.f32 1.0, %v11582_v6 }
 0x3c6   : > { %v4228_v48 = vmul.f32 %v4164_v7, %v14872_v60  ;;  %7893 = vmatmul.msk.f32.gmra.mxu3 %vm2686_vm2, %v11597_v25  ;;  %v11627_v57 = vadd.f32 %v4439_v40, %v11490_v34  ;;  %v3891_v47 = vadd.f32 2.7557319e-06, %v3827_v17  ;;  %v4723_v2 = vsub.f32 %v10718_v0, %v4659_v20  ;;  %v14878_v7 = vld [vmem:[#allocation40_spill] sm:$0xff] }
 0x3c7   : > { %v4248_v39 = vmul.f32 %v4184_v10, %v11534_v35  ;;  %v3737_v18 = vmul.f32 1.6059044e-10, %v11612_v56  ;;  %v3418_v10 = vmul.f32 3.140625, %v11620_v51  ;;  %v3700_v13 = vmul.f32 1.6059044e-10, %v14878_v7  ;;  %v11646_v0 = vld [vmem:[%s13856_s4 + $0x18] sm:$0xff] }
 0x3c8   : > { %v4499_v52 = vadd.f32 %v11202_v23, %v10998_v32  ;;  %v4500_v34 = vadd.f32 %v11221_v54, %v11038_v55  ;;  %v4292_v40 = vadd.f32 -0.16666667, %v4228_v48  ;;  %v3546_v42 = vmul.f32 0.0009676536, %v11620_v51 }
 0x3c9   : > { %v4312_v26 = vadd.f32 -0.16666667, %v4248_v39  ;;  %v3801_v6 = vadd.f32 -2.5052108e-08, %v3737_v18  ;;  %v3482_v22 = vsub.f32 %v3161_v62, %v3418_v10  ;;  %v11640_v16 = vmul.f32 0.5, %v11620_v51  ;;  %v14881_v10 = vld [vmem:[#allocation28_spill] sm:$0xff] }
 0x3ca   : > { %v3955_v21 = vmul.f32 %v3891_v47, %v14869_v41  ;;  %v14879_v55 = vsub.f32 1.0, %v11541_v4  ;;  %v4948_v54 = vmul.f32 %v4884_v31, %v4500_v34  ;;  %v4356_v62 = vmul.f32 %v4292_v40, %v14872_v60 }
 0x3cb   : > { %7890 = vmatmul.msk.f32.gmra.mxu2 %vm2686_vm2, %v11646_v0  ;;  %v3865_v32 = vmul.f32 %v3801_v6, %v11612_v56  ;;  %v4376_v17 = vmul.f32 %v4312_v26, %v11534_v35  ;;  %v11655_v20 = vsub.f32 %v3482_v22, %v3546_v42  ;;  %v14880_v39 = vsub.f32 1.0, %v11505_v58  ;;  %v14883_v22 = vld [vmem:[#allocation23_spill] sm:$0xff] }
 0x3cc   : > { %v4947_v23 = vmul.f32 %v14879_v55, %v4499_v52  ;;  %v4019_v18 = vadd.f32 -0.0001984127, %v3955_v21  ;;  %5268 = vmatpush.msra.mxu1 %v4948_v54  ;;  %v4420_v61 = vmul.f32 %v4356_v62, %v14881_v10  ;;  %v3764_v6 = vadd.f32 -2.5052108e-08, %v3700_v13 }
 0x3cd   : > { %v4931_v48 = vmul.f32 %v14880_v39, %v4483_v33  ;;  %v3929_v47 = vadd.f32 2.7557319e-06, %v3865_v32  ;;  %v4532_v4 = vmul.f32 0.5, %v14882_v53  ;;  %v11663_v52 = vmul.f32 %v11655_v20, %v11655_v20 }
 0x3ce   : > { %5239 = vmatpush.msra.mxu0 %v4947_v23  ;;  %v4083_v42 = vmul.f32 %v4019_v18, %v14869_v41  ;;  %v4787_v60 = vmul.f32 2.0, %v4723_v2  ;;  %7894 = vmatmul.msk.f32.gmra.mxu3 %vm2686_vm2, %v11646_v0  ;;  %v4484_v31 = vadd.f32 %v4420_v61, %v14881_v10  ;;  %v3828_v13 = vmul.f32 %v3764_v6, %v14878_v7  ;;  %v14885_v10 = vld [vmem:[#allocation51_spill] sm:$0xff] }
 0x3cf   : > { %v3993_v58 = vmul.f32 %v3929_v47, %v11612_v56  ;;  %v4596_v26 = vfloor.f32 %v4532_v4  ;;  %v4440_v33 = vmul.f32 %v4376_v17, %v11526_v8  ;;  %v3738_v34 = vmul.f32 1.6059044e-10, %v11663_v52 }
 0x3d0   : > { %5240 = vmatpush.msra.mxu0 %v4931_v48  ;;  %v4147_v40 = vadd.f32 0.008333334, %v4083_v42  ;;  %v3683_v21 = vmul.f32 1.6059044e-10, %v14883_v22  ;;  %v4932_v2 = vmul.f32 %v4868_v37, %v4484_v31  ;;  %v3892_v55 = vadd.f32 2.7557319e-06, %v3828_v13 }
 0x3d1   : > { %v4057_v32 = vadd.f32 -0.0001984127, %v3993_v58  ;;  %v4660_v23 = vmul.f32 2.0, %v4596_v26  ;;  %v3802_v54 = vadd.f32 -2.5052108e-08, %v3738_v34  ;;  %v14884_v48 = vld [vmem:[#allocation39_spill] sm:$0xff] }
 0x3d2   : > { %v4211_v62 = vmul.f32 %v4147_v40, %v14869_v41  ;;  %v3747_v39 = vadd.f32 -2.5052108e-08, %v3683_v21  ;;  %v4515_v61 = vmul.f32 0.5, %v14884_v48  ;;  %5269 = vmatpush.msra.mxu1 %v4932_v2  ;;  %v3956_v17 = vmul.f32 %v3892_v55, %v14878_v7  ;;  %v14886_v34 = vld [vmem:[#allocation38_spill] sm:$0xff] }
 0x3d3   : > { %v4121_v18 = vmul.f32 %v4057_v32, %v11612_v56  ;;  %v4724_v47 = vsub.f32 %v14882_v53, %v4660_v23  ;;  %v3684_v6 = vmul.f32 1.6059044e-10, %v14885_v10  ;;  %v3866_v4 = vmul.f32 %v3802_v54, %v11663_v52 }
 0x3d4   : > { %v4275_v37 = vadd.f32 -0.16666667, %v4211_v62  ;;  %v3811_v42 = vmul.f32 %v3747_v39, %v14883_v22  ;;  %v4579_v58 = vfloor.f32 %v4515_v61  ;;  %v4851_v13 = vsub.f32 1.0, %v4787_v60  ;;  %v14887_v39 = vld [vmem:[#allocation29_spill] sm:$0xff] }
 0x3d5   : > { %v4185_v31 = vadd.f32 0.008333334, %v4121_v18  ;;  %v4020_v26 = vadd.f32 -0.0001984127, %v3956_v17  ;;  %v4516_v40 = vmul.f32 0.5, %v14886_v34  ;;  %v4788_v35 = vmul.f32 2.0, %v4724_v47 }
 0x3d6   : > { %v3930_v21 = vadd.f32 2.7557319e-06, %v3866_v4  ;;  %v4339_v32 = vmul.f32 %v4275_v37, %v14869_v41  ;;  %v3875_v2 = vadd.f32 2.7557319e-06, %v3811_v42  ;;  %v4643_v55 = vmul.f32 2.0, %v4579_v58 }
 0x3d7   : > { %v4249_v53 = vmul.f32 %v4185_v31, %v11612_v56  ;;  %v4084_v23 = vmul.f32 %v4020_v26, %v14878_v7  ;;  %v3748_v54 = vadd.f32 -2.5052108e-08, %v3684_v6  ;;  %v4580_v37 = vfloor.f32 %v4516_v40 }
 0x3d8   : > { %v3994_v62 = vmul.f32 %v3930_v21, %v11663_v52  ;;  %v4403_v61 = vmul.f32 %v4339_v32, %v14887_v39  ;;  %v3939_v60 = vmul.f32 %v3875_v2, %v14883_v22  ;;  %v4707_v18 = vsub.f32 %v14884_v48, %v4643_v55 }
 0x3d9   : > { %v4313_v17 = vadd.f32 -0.16666667, %v4249_v53  ;;  %v4148_v4 = vadd.f32 0.008333334, %v4084_v23  ;;  %v3812_v41 = vmul.f32 %v3748_v54, %v14885_v10  ;;  %v4644_v32 = vmul.f32 2.0, %v4580_v37 }
 0x3da   : > { %v4058_v42 = vadd.f32 -0.0001984127, %v3994_v62  ;;  %v4467_v58 = vadd.f32 %v4403_v61, %v14887_v39  ;;  %v4003_v31 = vadd.f32 -0.0001984127, %v3939_v60  ;;  %v11693_v26 = vmul.f32 2.0, %v4707_v18 }
 0x3db   : > { %v4377_v47 = vmul.f32 %v4313_v17, %v11612_v56  ;;  %v4212_v6 = vmul.f32 %v4148_v4, %v14878_v7  ;;  %v3876_v21 = vadd.f32 2.7557319e-06, %v3812_v41  ;;  %v11698_v2 = vadd.f32 %v4440_v33, %v11526_v8 }
 0x3dc   : > { %v4122_v48 = vmul.f32 %v4058_v42, %v11663_v52  ;;  %v4915_v55 = vmul.f32 %v4851_v13, %v4467_v58  ;;  %v4067_v40 = vmul.f32 %v4003_v31, %v14883_v22  ;;  %v4708_v62 = vsub.f32 %v14886_v34, %v4644_v32 }
 0x3dd   : > { %v4441_v53 = vmul.f32 %v4377_v47, %v11602_v36  ;;  %v4276_v23 = vadd.f32 -0.16666667, %v4212_v6  ;;  %v3940_v54 = vmul.f32 %v3876_v21, %v14885_v10  ;;  %v4852_v39 = vsub.f32 1.0, %v4788_v35  ;;  %v14888_v35 = vld [vmem:[#allocation35_spill] sm:$0xff]  ;;  %v14890_v47 = vld [vmem:[#allocation50_spill] sm:$0xff] }
 0x3de   : > { %v4186_v56 = vadd.f32 0.008333334, %v4122_v48  ;;  %5241 = vmatpush.msra.mxu0 %v4915_v55  ;;  %v4131_v61 = vadd.f32 0.008333334, %v4067_v40  ;;  %v4629_v60 = vfloor.f32 %v11157_v5  ;;  %v4835_v33 = vsub.f32 1.0, %v11693_v26  ;;  %v14892_v48 = vld [vmem:[#allocation76_spill] sm:$0xff] }
 0x3df   : > { %v4340_v8 = vmul.f32 %v4276_v23, %v14878_v7  ;;  %v4004_v13 = vadd.f32 -0.0001984127, %v3940_v54  ;;  %v4501_v18 = vadd.f32 %v11295_v1, %v11128_v12  ;;  %v11711_v17 = vadd.f32 %v4441_v53, %v11602_v36  ;;  %v14889_v7 = vld [vmem:[#allocation10_spill] sm:$0xff] }
 0x3e0   : > { %v4250_v4 = vmul.f32 %v4186_v56, %v11663_v52  ;;  %v4195_v34 = vmul.f32 %v4131_v61, %v14883_v22  ;;  %v4693_v41 = vmul.f32 2.0, %v4629_v60  ;;  %v4772_v42 = vmul.f32 2.0, %v4708_v62  ;;  %v14891_v12 = vld [vmem:[#allocation18_spill] sm:$0xff]  ;;  %v14893_v61 = vld [vmem:[#allocation12_spill] sm:$0xff] }
 0x3e1   : > { %v4404_v37 = vmul.f32 %v4340_v8, %v14888_v35  ;;  %v4068_v5 = vmul.f32 %v4004_v13, %v14885_v10  ;;  %v4630_v58 = vfloor.f32 %v14889_v7  ;;  %v3717_v1 = vmul.f32 1.6059044e-10, %v14891_v12  ;;  %v14895_v7 = vld [vmem:[#allocation21_spill] sm:$0xff] }
 0x3e2   : > { %v4314_v31 = vadd.f32 -0.16666667, %v4250_v4  ;;  %v4259_v26 = vadd.f32 -0.16666667, %v4195_v34  ;;  %v4757_v6 = vsub.f32 %v14890_v47, %v4693_v41  ;;  %v4549_v55 = vmul.f32 0.5, %v14892_v48  ;;  %v14894_v4 = vld [vmem:[#allocation57_spill] sm:$0xff] }
 0x3e3   : > { %v4468_v36 = vadd.f32 %v4404_v37, %v14888_v35  ;;  %v4132_v21 = vadd.f32 0.008333334, %v4068_v5  ;;  %v4694_v32 = vmul.f32 2.0, %v4630_v58  ;;  %v4502_v23 = vadd.f32 %v11298_v14, %v11171_v15 }
 0x3e4   : > { %v4323_v40 = vmul.f32 %v4259_v26, %v14883_v22  ;;  %v4821_v53 = vmul.f32 2.0, %v4757_v6  ;;  %v3781_v54 = vadd.f32 -2.5052108e-08, %v3717_v1  ;;  %v4613_v8 = vfloor.f32 %v4549_v55  ;;  %v14897_v55 = vld [vmem:[#allocation27_spill] sm:$0xff] }
 0x3e5   : > { %v4916_v62 = vmul.f32 %v4852_v39, %v4468_v36  ;;  %v4196_v56 = vmul.f32 %v4132_v21, %v14885_v10  ;;  %v4758_v60 = vsub.f32 %v14893_v61, %v4694_v32  ;;  %v4378_v13 = vmul.f32 %v4314_v31, %v11663_v52  ;;  %v14896_v21 = vld [vmem:[#allocation36_spill] sm:$0xff] }
 0x3e6   : > { %v4387_v34 = vmul.f32 %v4323_v40, %v14894_v4  ;;  %v4885_v41 = vsub.f32 1.0, %v4821_v53  ;;  %v3845_v35 = vmul.f32 %v3781_v54, %v14891_v12  ;;  %v4677_v5 = vmul.f32 2.0, %v4613_v8 }
 0x3e7   : > { %5270 = vmatpush.msra.mxu1 %v4916_v62  ;;  %v4260_v22 = vadd.f32 -0.16666667, %v4196_v56  ;;  %v4822_v37 = vmul.f32 2.0, %v4758_v60  ;;  %v3718_v15 = vmul.f32 1.6059044e-10, %v14895_v7  ;;  %v4836_v39 = vsub.f32 1.0, %v4772_v42 }
 0x3e8   : > { %v4451_v14 = vadd.f32 %v4387_v34, %v14894_v4  ;;  %v4949_v58 = vmul.f32 %v4885_v41, %v4501_v18  ;;  %v3909_v26 = vadd.f32 2.7557319e-06, %v3845_v35  ;;  %v4741_v52 = vsub.f32 %v14892_v48, %v4677_v5  ;;  %v14898_v42 = vld [vmem:[#allocation52_spill] sm:$0xff]  ;;  %v14900_v4 = vld [vmem:[#allocation31_spill] sm:$0xff] }
 0x3e9   : > { %v4324_v47 = vmul.f32 %v4260_v22, %v14885_v10  ;;  %v4886_v6 = vsub.f32 1.0, %v4822_v37  ;;  %v3782_v31 = vadd.f32 -2.5052108e-08, %v3718_v15  ;;  %v4550_v32 = vmul.f32 0.5, %v14896_v21 }
 0x3ea   : > { %v4899_v1 = vmul.f32 %v4835_v33, %v4451_v14  ;;  %5297 = vmatpush.msra.mxu2 %v4949_v58  ;;  %v3973_v36 = vmul.f32 %v3909_v26, %v14891_v12  ;;  %v3701_v40 = vmul.f32 1.6059044e-10, %v14897_v55  ;;  %v11738_v53 = vmul.f32 %v4378_v13, %v11655_v20  ;;  %v14899_v33 = vld [vmem:[#allocation42_spill] sm:$0xff]  ;;  %v14901_v14 = vld [vmem:[#allocation55_spill] sm:$0xff] }
 0x3eb   : > { %v4388_v18 = vmul.f32 %v4324_v47, %v14898_v42  ;;  %v4950_v54 = vmul.f32 %v4886_v6, %v4502_v23  ;;  %v3846_v10 = vmul.f32 %v3782_v31, %v14895_v7  ;;  %v4614_v48 = vfloor.f32 %v4550_v32  ;;  %v14902_v32 = vld [vmem:[#allocation32_spill] sm:$0xff] }
 0x3ec   : > { %5242 = vmatpush.msra.mxu0 %v4899_v1  ;;  %v4037_v62 = vadd.f32 -0.0001984127, %v3973_v36  ;;  %v3765_v56 = vadd.f32 -2.5052108e-08, %v3701_v40  ;;  %v4533_v61 = vmul.f32 0.5, %v14899_v33  ;;  %v11746_v8 = vmul.f32 2.0, %v4741_v52 }
 0x3ed   : > { %v4452_v60 = vadd.f32 %v4388_v18, %v14898_v42  ;;  %7895 = vmatmul.msk.f32.vlgmr.msra.gmra.mxu0 %vm2686_vm2, %v11344_v49  ;;  %5326 = vmatpush.msra.mxu3 %v4950_v54  ;;  %v3910_v13 = vadd.f32 2.7557319e-06, %v3846_v10  ;;  %v3702_v34 = vmul.f32 1.6059044e-10, %v14900_v4  ;;  %v4678_v41 = vmul.f32 2.0, %v4614_v48 }
 0x3ee   : > { %v4101_v23 = vmul.f32 %v4037_v62, %v14891_v12  ;;  %v3829_v35 = vmul.f32 %v3765_v56, %v14897_v55  ;;  %v4597_v22 = vfloor.f32 %v4533_v61  ;;  %v4534_v58 = vmul.f32 0.5, %v14901_v14 }
 0x3ef   : > { %v4900_v37 = vmul.f32 %v4836_v39, %v4452_v60  ;;  %v3974_v5 = vmul.f32 %v3910_v13, %v14895_v7  ;;  %v3766_v15 = vadd.f32 -2.5052108e-08, %v3702_v34  ;;  %v4742_v47 = vsub.f32 %v14896_v21, %v4678_v41 }
 0x3f0   : > { %v4165_v26 = vadd.f32 0.008333334, %v4101_v23  ;;  %v3893_v6 = vadd.f32 2.7557319e-06, %v3829_v35  ;;  %v4661_v52 = vmul.f32 2.0, %v4597_v22  ;;  %v4598_v36 = vfloor.f32 %v4534_v58 }
 0x3f1   : > { %5271 = vmatpush.msra.mxu1 %v4900_v37  ;;  %v4038_v31 = vadd.f32 -0.0001984127, %v3974_v5  ;;  %v3830_v1 = vmul.f32 %v3766_v15, %v14900_v4  ;;  %v3685_v40 = vmul.f32 1.6059044e-10, %v14902_v32  ;;  %v11759_v42 = vmul.f32 2.0, %v4742_v47  ;;  %v14904_v47 = vld [vmem:[#allocation59_spill] sm:$0xff] }
 0x3f2   : > { %7899 = vmatmul.msk.f32.vlgmr.msra.gmra.mxu1 %vm2686_vm2, %v11344_v49  ;;  %v4229_v39 = vmul.f32 %v4165_v26, %v14891_v12  ;;  %v3957_v18 = vmul.f32 %v3893_v6, %v14897_v55  ;;  %v4725_v21 = vsub.f32 %v14899_v33, %v4661_v52  ;;  %v4662_v62 = vmul.f32 2.0, %v4598_v36 }
 0x3f3   : > { %v4102_v54 = vmul.f32 %v4038_v31, %v14895_v7  ;;  %v3894_v10 = vadd.f32 2.7557319e-06, %v3830_v1  ;;  %v3749_v48 = vadd.f32 -2.5052108e-08, %v3685_v40  ;;  %v4869_v61 = vsub.f32 1.0, %v11746_v8  ;;  %v14903_v8 = vld [vmem:[#allocation66_spill] sm:$0xff] }
 0x3f4   : > { %v4293_v56 = vadd.f32 -0.16666667, %v4229_v39  ;;  %v4021_v60 = vadd.f32 -0.0001984127, %v3957_v18  ;;  %v11765_v13 = vmul.f32 2.0, %v4725_v21  ;;  %v4726_v23 = vsub.f32 %v14901_v14, %v4662_v62  ;;  %v14905_v31 = vld [vmem:[#allocation6_spill] sm:$0xff] }
 0x3f5   : > { %v4166_v49 = vadd.f32 0.008333334, %v4102_v54  ;;  %7896 = vmatmul.msk.f32.gmra.mxu0 %vm2686_vm2, %v11378_v44  ;;  %v3958_v34 = vmul.f32 %v3894_v10, %v14900_v4  ;;  %v3813_v33 = vmul.f32 %v3749_v48, %v14902_v32  ;;  %v4870_v35 = vsub.f32 1.0, %v11759_v42 }
 0x3f6   : > { %v4357_v41 = vmul.f32 %v4293_v56, %v14891_v12  ;;  %v4085_v22 = vmul.f32 %v4021_v60, %v14897_v55  ;;  %v4517_v37 = vmul.f32 0.5, %v14903_v8  ;;  %v4853_v15 = vsub.f32 1.0, %v11765_v13  ;;  %v14906_v56 = vld [vmem:[#allocation54_spill] sm:$0xff] }
 0x3f7   : > { %v4230_v5 = vmul.f32 %v4166_v49, %v14895_v7  ;;  %v4022_v58 = vadd.f32 -0.0001984127, %v3958_v34  ;;  %v3877_v26 = vadd.f32 2.7557319e-06, %v3813_v33  ;;  %v3686_v1 = vmul.f32 1.6059044e-10, %v14905_v31 }
 0x3f8   : > { %v4421_v6 = vmul.f32 %v4357_v41, %v14904_v47  ;;  %v4149_v52 = vadd.f32 0.008333334, %v4085_v22  ;;  %v4581_v14 = vfloor.f32 %v4517_v37  ;;  %v4790_v40 = vmul.f32 2.0, %v4726_v23  ;;  %v14907_v33 = vld [vmem:[#allocation78_spill] sm:$0xff] }
 0x3f9   : > { %v4294_v36 = vadd.f32 -0.16666667, %v4230_v5  ;;  %v4086_v12 = vmul.f32 %v4022_v58, %v14900_v4  ;;  %v3941_v39 = vmul.f32 %v3877_v26, %v14902_v32  ;;  %v3750_v54 = vadd.f32 -2.5052108e-08, %v3686_v1 }
 0x3fa   : > { %v4485_v42 = vadd.f32 %v4421_v6, %v14904_v47  ;;  %7900 = vmatmul.msk.f32.gmra.mxu1 %vm2686_vm2, %v11378_v44  ;;  %v4213_v18 = vmul.f32 %v4149_v52, %v14897_v55  ;;  %v4645_v21 = vmul.f32 2.0, %v4581_v14  ;;  %v4518_v60 = vmul.f32 0.5, %v14906_v56  ;;  %v14909_v14 = vld [vmem:[#allocation60_spill] sm:$0xff] }
 0x3fb   : > { %v4358_v10 = vmul.f32 %v4294_v36, %v14895_v7  ;;  %v4150_v62 = vadd.f32 0.008333334, %v4086_v12  ;;  %v4005_v48 = vadd.f32 -0.0001984127, %v3941_v39  ;;  %v3814_v23 = vmul.f32 %v3750_v54, %v14905_v31 }
 0x3fc   : > { %v4933_v13 = vmul.f32 %v4869_v61, %v4485_v42  ;;  %v4277_v49 = vadd.f32 -0.16666667, %v4213_v18  ;;  %v4709_v34 = vsub.f32 %v14903_v8, %v4645_v21  ;;  %v4582_v37 = vfloor.f32 %v4518_v60 }
 0x3fd   : > { %v4422_v41 = vmul.f32 %v4358_v10, %v14907_v33  ;;  %v4214_v44 = vmul.f32 %v4150_v62, %v14900_v4  ;;  %v4069_v22 = vmul.f32 %v4005_v48, %v14902_v32  ;;  %7897 = vmatmul.msk.f32.gmra.mxu0 %vm2686_vm2, %v11597_v25  ;;  %v3878_v61 = vadd.f32 2.7557319e-06, %v3814_v23  ;;  %v14911_v48 = vld [vmem:[#allocation69_spill] sm:$0xff] }
 0x3fe   : > { %5298 = vmatpush.msra.mxu2 %v4933_v13  ;;  %v4341_v7 = vmul.f32 %v4277_v49, %v14897_v55  ;;  %v4773_v5 = vmul.f32 2.0, %v4709_v34  ;;  %v14908_v58 = vfloor.f32 %v11484_v3  ;;  %v4646_v52 = vmul.f32 2.0, %v4582_v37 }
 0x3ff   : > { %v4486_v26 = vadd.f32 %v4422_v41, %v14907_v33  ;;  %v4278_v47 = vadd.f32 -0.16666667, %v4214_v44  ;;  %v4133_v6 = vadd.f32 0.008333334, %v4069_v22  ;;  %v4854_v36 = vsub.f32 1.0, %v4790_v40 }
 0x400   : > { %v4695_v8 = vmul.f32 2.0, %v14908_v58  ;;  %v4405_v1 = vmul.f32 %v4341_v7, %v14909_v14  ;;  %v3942_v12 = vmul.f32 %v3878_v61, %v14905_v31  ;;  %v4710_v3 = vsub.f32 %v14906_v56, %v4646_v52 }
 0x401   : > { %v4934_v42 = vmul.f32 %v4870_v35, %v4486_v26  ;;  %v4342_v55 = vmul.f32 %v4278_v47, %v14900_v4  ;;  %v4197_v18 = vmul.f32 %v4133_v6, %v14902_v32  ;;  %v14910_v40 = vfloor.f32 %v11512_v38 }
 0x402   : > { %v4759_v39 = vsub.f32 %v11467_v28, %v4695_v8  ;;  %v4469_v21 = vadd.f32 %v4405_v1, %v14909_v14  ;;  %v4006_v54 = vadd.f32 -0.0001984127, %v3942_v12  ;;  %7901 = vmatmul.msk.f32.gmra.mxu1 %vm2686_vm2, %v11597_v25  ;;  %v4837_v60 = vsub.f32 1.0, %v4773_v5  ;;  %v14912_v5 = vld [vmem:[#allocation61_spill] sm:$0xff] }
 0x403   : > { %v4696_v62 = vmul.f32 2.0, %v14910_v40  ;;  %5327 = vmatpush.msra.mxu3 %v4934_v42  ;;  %v4406_v28 = vmul.f32 %v4342_v55, %v14911_v48  ;;  %v4261_v35 = vadd.f32 -0.16666667, %v4197_v18  ;;  %v3719_v4 = vmul.f32 1.6059044e-10, %v11391_v63  ;;  %v14913_v14 = vld [vmem:[#allocation65_spill] sm:$0xff] }
 0x404   : > { %v4823_v10 = vmul.f32 2.0, %v4759_v39  ;;  %v4917_v13 = vmul.f32 %v4853_v15, %v4469_v21  ;;  %v4070_v56 = vmul.f32 %v4006_v54, %v14905_v31  ;;  %v4774_v41 = vmul.f32 2.0, %v4710_v3 }
 0x405   : > { %v4760_v34 = vsub.f32 %v11503_v30, %v4696_v62  ;;  %v4470_v23 = vadd.f32 %v4406_v28, %v14911_v48  ;;  %v4325_v33 = vmul.f32 %v4261_v35, %v14902_v32  ;;  %7898 = vmatmul.msk.f32.gmra.mxu0 %vm2686_vm2, %v11646_v0  ;;  %v3783_v38 = vadd.f32 -2.5052108e-08, %v3719_v4  ;;  %v14914_v62 = vld [vmem:[#allocation33_spill] sm:$0xff]  ;;  %v14915_v4 = vld [vmem:[#allocation8_spill] sm:$0xff] }
 0x406   : > { %v4887_v49 = vsub.f32 1.0, %v4823_v10  ;;  %5299 = vmatpush.msra.mxu2 %v4917_v13  ;;  %v4134_v44 = vadd.f32 0.008333334, %v4070_v56  ;;  %v4551_v15 = vmul.f32 0.5, %v11303_v9  ;;  %v3720_v58 = vmul.f32 1.6059044e-10, %v11395_v45 }
 0x407   : > { %v4824_v37 = vmul.f32 2.0, %v4760_v34  ;;  %v4918_v7 = vmul.f32 %v4854_v36, %v4470_v23  ;;  %v4389_v61 = vmul.f32 %v4325_v33, %v14912_v5  ;;  %v3847_v30 = vmul.f32 %v3783_v38, %v11391_v63  ;;  %v14916_v56 = vld [vmem:[#allocation47_spill] sm:$0xff] }
 0x408   : > { %v4951_v22 = vmul.f32 %v4887_v49, %v11627_v57  ;;  %v4198_v32 = vmul.f32 %v4134_v44, %v14905_v31  ;;  %v4615_v26 = vfloor.f32 %v4551_v15  ;;  %v4552_v47 = vmul.f32 0.5, %v11326_v24 }
 0x409   : > { %v4888_v8 = vsub.f32 1.0, %v4824_v37  ;;  %5328 = vmatpush.msra.mxu3 %v4918_v7  ;;  %v4453_v57 = vadd.f32 %v4389_v61, %v14912_v5  ;;  %v3911_v6 = vadd.f32 2.7557319e-06, %v3847_v30  ;;  %v3784_v52 = vadd.f32 -2.5052108e-08, %v3720_v58 }
 0x40a   : > { %5355 = vmatpush.msrb.mxu0 %v4951_v22  ;;  %v3703_v1 = vmul.f32 1.6059044e-10, %v14913_v14  ;;  %v4262_v36 = vadd.f32 -0.16666667, %v4198_v32  ;;  %7902 = vmatmul.msk.f32.gmra.mxu1 %vm2686_vm2, %v11646_v0  ;;  %v4679_v39 = vmul.f32 2.0, %v4615_v26  ;;  %v4616_v42 = vfloor.f32 %v4552_v47 }
 0x40b   : > { %v4952_v12 = vmul.f32 %v4888_v8, %v11698_v2  ;;  %v4901_v55 = vmul.f32 %v4837_v60, %v4453_v57  ;;  %v3975_v18 = vmul.f32 %v3911_v6, %v11391_v63  ;;  %v3848_v3 = vmul.f32 %v3784_v52, %v11395_v45  ;;  %v14917_v8 = vld [vmem:[#allocation53_spill] sm:$0xff] }
 0x40c   : > { %v3767_v21 = vadd.f32 -2.5052108e-08, %v3703_v1  ;;  %v4326_v54 = vmul.f32 %v4262_v36, %v14905_v31  ;;  %v4743_v10 = vsub.f32 %v11303_v9, %v4679_v39  ;;  %v4680_v40 = vmul.f32 2.0, %v4616_v42  ;;  %v11845_v9 = vld [vmem:[%s13856_s4] sm:$0xff] }
 0x40d   : > { %5384 = vmatpush.msrb.mxu1 %v4952_v12  ;;  %v4535_v48 = vmul.f32 0.5, %v14914_v62  ;;  %5300 = vmatpush.msra.mxu2 %v4901_v55  ;;  %v4039_v28 = vadd.f32 -0.0001984127, %v3975_v18  ;;  %v3912_v35 = vadd.f32 2.7557319e-06, %v3848_v3  ;;  %v11839_v13 = vadd.f32 %v11738_v53, %v11655_v20  ;;  %v14918_v1 = vld [vmem:[#allocation45_spill] sm:$0xff] }
 0x40e   : > { %v3831_v2 = vmul.f32 %v3767_v21, %v14913_v14  ;;  %v3704_v60 = vmul.f32 1.6059044e-10, %v14915_v4  ;;  %v4390_v49 = vmul.f32 %v4326_v54, %v14916_v56  ;;  %7903 = vmatmul.msk.f32.vlgmr.msra.gmra.mxu2 %vm2686_vm2, %v11845_v9  ;;  %v11849_v31 = vmul.f32 2.0, %v4743_v10  ;;  %v14919_v12 = vld [vmem:[#allocation16_spill] sm:$0xff]  ;;  %v11871_v21 = vld [vmem:[%s13856_s4 + $0x8] sm:$0xff] }
 0x40f   : > { %v4599_v34 = vfloor.f32 %v4535_v48  ;;  %v4103_v23 = vmul.f32 %v4039_v28, %v11391_v63  ;;  %v3976_v33 = vmul.f32 %v3912_v35, %v11395_v45  ;;  %v4838_v44 = vsub.f32 1.0, %v4774_v41 }
 0x410   : > { %v3895_v38 = vadd.f32 2.7557319e-06, %v3831_v2  ;;  %v3768_v20 = vadd.f32 -2.5052108e-08, %v3704_v60  ;;  %v4454_v53 = vadd.f32 %v4390_v49, %v14916_v56  ;;  %v4744_v22 = vsub.f32 %v11326_v24, %v4680_v40 }
 0x411   : > { %v4663_v37 = vmul.f32 2.0, %v4599_v34  ;;  %v4167_v15 = vadd.f32 0.008333334, %v4103_v23  ;;  %v4040_v7 = vadd.f32 -0.0001984127, %v3976_v33  ;;  %v4871_v58 = vsub.f32 1.0, %v11849_v31 }
 0x412   : > { %v3959_v5 = vmul.f32 %v3895_v38, %v14913_v14  ;;  %v3832_v61 = vmul.f32 %v3768_v20, %v14915_v4  ;;  %v4902_v30 = vmul.f32 %v4838_v44, %v4454_v53  ;;  %v4536_v26 = vmul.f32 0.5, %v14917_v8  ;;  %v14920_v31 = vld [vmem:[#allocation30_spill] sm:$0xff] }
 0x413   : > { %v4727_v32 = vsub.f32 %v14914_v62, %v4663_v37  ;;  %v4231_v47 = vmul.f32 %v4167_v15, %v11391_v63  ;;  %v4104_v41 = vmul.f32 %v4040_v7, %v11395_v45  ;;  %v4808_v6 = vmul.f32 2.0, %v4744_v22 }
 0x414   : > { %v4023_v57 = vadd.f32 -0.0001984127, %v3959_v5  ;;  %v3896_v24 = vadd.f32 2.7557319e-06, %v3832_v61  ;;  %5329 = vmatpush.msra.mxu3 %v4902_v30  ;;  %v4600_v52 = vfloor.f32 %v4536_v26  ;;  %v3687_v36 = vmul.f32 1.6059044e-10, %v14918_v1 }
 0x415   : > { %v4519_v39 = vmul.f32 0.5, %v14919_v12  ;;  %7907 = vmatmul.msk.f32.vlgmr.msra.gmra.mxu3 %vm2686_vm2, %v11845_v9  ;;  %v4295_v42 = vadd.f32 -0.16666667, %v4231_v47  ;;  %v4168_v55 = vadd.f32 0.008333334, %v4104_v41  ;;  %v4791_v54 = vmul.f32 2.0, %v4727_v32 }
 0x416   : > { %v4087_v18 = vmul.f32 %v4023_v57, %v14913_v14  ;;  %v3960_v3 = vmul.f32 %v3896_v24, %v14915_v4  ;;  %7904 = vmatmul.msk.f32.gmra.mxu2 %vm2686_vm2, %v11871_v21  ;;  %v4664_v10 = vmul.f32 2.0, %v4600_v52  ;;  %v3751_v40 = vadd.f32 -2.5052108e-08, %v3687_v36 }
 0x417   : > { %v4583_v62 = vfloor.f32 %v4519_v39  ;;  %v4359_v48 = vmul.f32 %v4295_v42, %v11391_v63  ;;  %v4232_v28 = vmul.f32 %v4168_v55, %v11395_v45  ;;  %v3688_v34 = vmul.f32 1.6059044e-10, %v14920_v31 }
 0x418   : > { %v4151_v35 = vadd.f32 0.008333334, %v4087_v18  ;;  %v4024_v2 = vadd.f32 -0.0001984127, %v3960_v3  ;;  %v4728_v60 = vsub.f32 %v14917_v8, %v4664_v10  ;;  %v3815_v56 = vmul.f32 %v3751_v40, %v14918_v1 }
 0x419   : > { %v4647_v49 = vmul.f32 2.0, %v4583_v62  ;;  %v4423_v23 = vmul.f32 %v4359_v48, %v11368_v19  ;;  %v4296_v33 = vadd.f32 -0.16666667, %v4232_v28  ;;  %v4872_v53 = vsub.f32 1.0, %v4808_v6  ;;  %v14921_v6 = vld [vmem:[#allocation49_spill] sm:$0xff] }
 0x41a   : > { %v4215_v38 = vmul.f32 %v4151_v35, %v14913_v14  ;;  %v4088_v20 = vmul.f32 %v4024_v2, %v14915_v4  ;;  %v4792_v63 = vmul.f32 2.0, %v4728_v60  ;;  %v3879_v44 = vadd.f32 2.7557319e-06, %v3815_v56  ;;  %v14925_v56 = vld [vmem:[#allocation58_spill] sm:$0xff] }
 0x41b   : > { %v3752_v22 = vadd.f32 -2.5052108e-08, %v3688_v34  ;;  %v4487_v37 = vadd.f32 %v4423_v23, %v11368_v19  ;;  %v4360_v15 = vmul.f32 %v4296_v33, %v11395_v45  ;;  %v4855_v61 = vsub.f32 1.0, %v4791_v54 }
 0x41c   : > { %v4279_v7 = vadd.f32 -0.16666667, %v4215_v38  ;;  %v4152_v5 = vadd.f32 0.008333334, %v4088_v20  ;;  %v3943_v30 = vmul.f32 %v3879_v44, %v14918_v1  ;;  %v4711_v32 = vsub.f32 %v14919_v12, %v4647_v49  ;;  %v14922_v12 = vld [vmem:[#allocation26_spill] sm:$0xff] }
 0x41d   : > { %v3816_v8 = vmul.f32 %v3752_v22, %v14920_v31  ;;  %7908 = vmatmul.msk.f32.gmra.mxu3 %vm2686_vm2, %v11871_v21  ;;  %v4935_v26 = vmul.f32 %v4871_v58, %v4487_v37  ;;  %v4424_v47 = vmul.f32 %v4360_v15, %v11370_v43  ;;  %v4856_v45 = vsub.f32 1.0, %v4792_v63 }
 0x41e   : > { %v4343_v41 = vmul.f32 %v4279_v7, %v14913_v14  ;;  %v4216_v19 = vmul.f32 %v4152_v5, %v14915_v4  ;;  %7905 = vmatmul.msk.f32.gmra.mxu2 %vm2686_vm2, %v11597_v25  ;;  %v4007_v57 = vadd.f32 -0.0001984127, %v3943_v30  ;;  %v4520_v52 = vmul.f32 0.5, %v14921_v6 }
 0x41f   : > { %v3880_v24 = vadd.f32 2.7557319e-06, %v3816_v8  ;;  %5356 = vmatpush.msrb.mxu0 %v4935_v26  ;;  %v4488_v36 = vadd.f32 %v4424_v47, %v11370_v43  ;;  %v14923_v42 = vfloor.f32 %v11589_v46  ;;  %v14924_v54 = vfloor.f32 %v11640_v16 }
 0x420   : > { %v4407_v39 = vmul.f32 %v4343_v41, %v14922_v12  ;;  %v4280_v58 = vadd.f32 -0.16666667, %v4216_v19  ;;  %v4071_v14 = vmul.f32 %v4007_v57, %v14918_v1  ;;  %v4584_v3 = vfloor.f32 %v4520_v52  ;;  %v14929_v57 = vld [vmem:[#allocation70_spill] sm:$0xff] }
 0x421   : > { %v4697_v55 = vmul.f32 2.0, %v14923_v42  ;;  %v3944_v18 = vmul.f32 %v3880_v24, %v14920_v31  ;;  %v4698_v10 = vmul.f32 2.0, %v14924_v54  ;;  %v4936_v40 = vmul.f32 %v4872_v53, %v4488_v36 }
 0x422   : > { %v4471_v62 = vadd.f32 %v4407_v39, %v14922_v12  ;;  %v4344_v48 = vmul.f32 %v4280_v58, %v14915_v4  ;;  %v4135_v28 = vadd.f32 0.008333334, %v4071_v14  ;;  %v4648_v2 = vmul.f32 2.0, %v4584_v3  ;;  %v14933_v3 = vld [vmem:[#allocation15_spill] sm:$0xff] }
 0x423   : > { %v4761_v43 = vsub.f32 %v11567_v27, %v4697_v55  ;;  %v4008_v35 = vadd.f32 -0.0001984127, %v3944_v18  ;;  %v4762_v46 = vsub.f32 %v11620_v51, %v4698_v10  ;;  %5385 = vmatpush.msrb.mxu1 %v4936_v40  ;;  %v3721_v16 = vmul.f32 1.6059044e-10, %v11579_v29 }
 0x424   : > { %v4919_v60 = vmul.f32 %v4855_v61, %v4471_v62  ;;  %v4408_v49 = vmul.f32 %v4344_v48, %v14925_v56  ;;  %v4199_v23 = vmul.f32 %v4135_v28, %v14918_v1  ;;  %v4775_v33 = vmul.f32 2.0, %v4711_v32  ;;  %v14926_v61 = vld [vmem:[#allocation34_spill] sm:$0xff]  ;;  %v14935_v28 = vld [vmem:[#allocation25_spill] sm:$0xff] }
 0x425   : > { %v4825_v34 = vmul.f32 2.0, %v4761_v43  ;;  %v4072_v38 = vmul.f32 %v4008_v35, %v14920_v31  ;;  %v4826_v4 = vmul.f32 2.0, %v4762_v46  ;;  %7909 = vmatmul.msk.f32.gmra.mxu3 %vm2686_vm2, %v11597_v25  ;;  %v3785_v20 = vadd.f32 -2.5052108e-08, %v3721_v16  ;;  %v14934_v43 = vld [vmem:[#allocation81_spill] sm:$0xff]  ;;  %v14936_v35 = vld [vmem:[#allocation79_spill] sm:$0xff] }
 0x426   : > { %5357 = vmatpush.msrb.mxu0 %v4919_v60  ;;  %v4472_v27 = vadd.f32 %v4408_v49, %v14925_v56  ;;  %v4553_v53 = vmul.f32 0.5, %v11539_v50  ;;  %v4263_v63 = vadd.f32 -0.16666667, %v4199_v23  ;;  %v4712_v22 = vsub.f32 %v14921_v6, %v4648_v2  ;;  %7906 = vmatmul.msk.f32.gmra.mxu2 %vm2686_vm2, %v11646_v0  ;;  %v14930_v6 = vld [vmem:[#allocation62_spill] sm:$0xff] }
 0x427   : > { %v4889_v51 = vsub.f32 1.0, %v4825_v34  ;;  %v4136_v44 = vadd.f32 0.008333334, %v4072_v38  ;;  %v4890_v37 = vsub.f32 1.0, %v4826_v4  ;;  %v3849_v25 = vmul.f32 %v3785_v20, %v11579_v29 }
 0x428   : > { %v4920_v15 = vmul.f32 %v4856_v45, %v4472_v27  ;;  %v4617_v5 = vfloor.f32 %v4553_v53  ;;  %v14927_v30 = vsub.f32 %v11266_v59, %v14926_v61  ;;  %v4327_v8 = vmul.f32 %v4263_v63, %v14918_v1  ;;  %v14931_v59 = vld [vmem:[#allocation73_spill] sm:$0xff]  ;;  %v14932_v1 = vld [vmem:[#allocation68_spill] sm:$0xff] }
 0x429   : > { %v4953_v7 = vmul.f32 %v4889_v51, %v11711_v17  ;;  %v4200_v26 = vmul.f32 %v4136_v44, %v14920_v31  ;;  %v4954_v47 = vmul.f32 %v4890_v37, %v11839_v13  ;;  %v3913_v41 = vadd.f32 2.7557319e-06, %v3849_v25  ;;  %v14928_v17 = vld [vmem:[#allocation63_spill] sm:$0xff]  ;;  %v14939_v25 = vld [vmem:[#allocation14_spill] sm:$0xff] }
 0x42a   : > { %v11925_v32 = vsub.f32 %v14927_v30, %v11321_v11  ;;  %5386 = vmatpush.msrb.mxu1 %v4920_v15  ;;  %v4681_v19 = vmul.f32 2.0, %v4617_v5  ;;  %v3722_v45 = vmul.f32 1.6059044e-10, %v14928_v17  ;;  %v4554_v24 = vmul.f32 0.5, %v14929_v57 }
 0x42b   : > { %5413 = vmatpush.msrb.mxu2 %v4953_v7  ;;  %v11934_v52 = vmul.f32 %v14930_v6, %v14930_v6  ;;  %v4391_v11 = vmul.f32 %v4327_v8, %v14931_v59  ;;  %v4264_v36 = vadd.f32 -0.16666667, %v4200_v26  ;;  %5442 = vmatpush.msrb.mxu3 %v4954_v47  ;;  %v3705_v12 = vmul.f32 1.6059044e-10, %v14932_v1 }
 0x42c   : > { %v4839_v39 = vsub.f32 1.0, %v4775_v33  ;;  %v4776_v13 = vmul.f32 2.0, %v4712_v22  ;;  %v3977_v58 = vmul.f32 %v3913_v41, %v11579_v29  ;;  %v3786_v42 = vadd.f32 -2.5052108e-08, %v3722_v45 }
 0x42d   : > { %v4455_v55 = vadd.f32 %v4391_v11, %v14931_v59  ;;  %v4328_v14 = vmul.f32 %v4264_v36, %v14920_v31  ;;  %v3769_v18 = vadd.f32 -2.5052108e-08, %v3705_v12  ;;  %v4537_v54 = vmul.f32 0.5, %v14933_v3  ;;  %7910 = vmatmul.msk.f32.gmra.mxu3 %vm2686_vm2, %v11646_v0  ;;  %v14938_v31 = vld [vmem:[#allocation37_spill] sm:$0xff] }
 0x42e   : > { %v4041_v10 = vadd.f32 -0.0001984127, %v3977_v58  ;;  %v4745_v40 = vsub.f32 %v11539_v50, %v4681_v19  ;;  %v3850_v62 = vmul.f32 %v3786_v42, %v14928_v17  ;;  %v4618_v48 = vfloor.f32 %v4554_v24  ;;  %v14940_v58 = vld [vmem:[#allocation19_spill] sm:$0xff] }
 0x42f   : > { %v14937_v2 = vsub.f32 %v14935_v28, %v14936_v35  ;;  %v4903_v60 = vmul.f32 %v4839_v39, %v4455_v55  ;;  %v4392_v56 = vmul.f32 %v4328_v14, %v14938_v31  ;;  %v3833_v49 = vmul.f32 %v3769_v18, %v14932_v1 }
 0x430   : > { %v11956_v0 = vmul.f32 %v11925_v32, %v11925_v32  ;;  %v4840_v34 = vsub.f32 1.0, %v4776_v13  ;;  %v4105_v50 = vmul.f32 %v4041_v10, %v11579_v29  ;;  %v3914_v16 = vadd.f32 2.7557319e-06, %v3850_v62  ;;  %v14941_v10 = vld [vmem:[#allocation43_spill] sm:$0xff] }
 0x431   : > { %v11950_v46 = vsub.f32 %v14937_v2, %v14934_v43  ;;  %5358 = vmatpush.msrb.mxu0 %v4903_v60  ;;  %v4456_v23 = vadd.f32 %v4392_v56, %v14938_v31  ;;  %v3897_v33 = vadd.f32 2.7557319e-06, %v3833_v49  ;;  %v4601_v38 = vfloor.f32 %v4537_v54 }
 0x432   : > { %v3706_v4 = vmul.f32 1.6059044e-10, %v11934_v52  ;;  %7911 = vmatmul.msk.f32.vlgmr.msrb.gmra.mxu0 %vm2686_vm2, %v11845_v9  ;;  %v4169_v27 = vadd.f32 0.008333334, %v4105_v50  ;;  %v4809_v51 = vmul.f32 2.0, %v4745_v40  ;;  %v3978_v20 = vmul.f32 %v3914_v16, %v14928_v17 }
 0x433   : > { %v4682_v53 = vmul.f32 2.0, %v4618_v48  ;;  %v11966_v63 = vmul.f32 %v11950_v46, %v11950_v46  ;;  %v4904_v44 = vmul.f32 %v4840_v34, %v4456_v23  ;;  %v3961_v22 = vmul.f32 %v3897_v33, %v14932_v1 }
 0x434   : > { %v3770_v37 = vadd.f32 -2.5052108e-08, %v3706_v4  ;;  %v4233_v15 = vmul.f32 %v4169_v27, %v11579_v29  ;;  %v4042_v7 = vadd.f32 -0.0001984127, %v3978_v20  ;;  %v4538_v5 = vmul.f32 0.5, %v14939_v25 }
 0x435   : > { %5387 = vmatpush.msrb.mxu1 %v4904_v44  ;;  %v4025_v61 = vadd.f32 -0.0001984127, %v3961_v22  ;;  %v4665_v30 = vmul.f32 2.0, %v4601_v38  ;;  %v3689_v26 = vmul.f32 1.6059044e-10, %v11956_v0  ;;  %v4873_v41 = vsub.f32 1.0, %v4809_v51 }
 0x436   : > { %v3834_v8 = vmul.f32 %v3770_v37, %v11934_v52  ;;  %7915 = vmatmul.msk.f32.vlgmr.msrb.gmra.mxu1 %vm2686_vm2, %v11845_v9  ;;  %v4297_v47 = vadd.f32 -0.16666667, %v4233_v15  ;;  %v4106_v19 = vmul.f32 %v4042_v7, %v14928_v17  ;;  %v4746_v45 = vsub.f32 %v14929_v57, %v4682_v53  ;;  %v14942_v38 = vld [vmem:[#allocation74_spill] sm:$0xff]  ;;  %v14943_v44 = vld [vmem:[#allocation41_spill] sm:$0xff] }
 0x437   : > { %v4089_v24 = vmul.f32 %v4025_v61, %v14932_v1  ;;  %v3753_v11 = vadd.f32 -2.5052108e-08, %v3689_v26  ;;  %v3690_v36 = vmul.f32 1.6059044e-10, %v11966_v63  ;;  %v4602_v13 = vfloor.f32 %v4538_v5 }
 0x438   : > { %v3898_v59 = vadd.f32 2.7557319e-06, %v3834_v8  ;;  %v4361_v12 = vmul.f32 %v4297_v47, %v11579_v29  ;;  %v4170_v39 = vadd.f32 0.008333334, %v4106_v19  ;;  %v4521_v42 = vmul.f32 0.5, %v14940_v58  ;;  %v12008_v19 = vld [vmem:[%s13856_s4 + $0x10] sm:$0xff] }
 0x439   : > { %v4153_v55 = vadd.f32 0.008333334, %v4089_v24  ;;  %v3817_v18 = vmul.f32 %v3753_v11, %v11956_v0  ;;  %v3754_v54 = vadd.f32 -2.5052108e-08, %v3690_v36  ;;  %v4810_v62 = vmul.f32 2.0, %v4746_v45 }
 0x43a   : > { %v3962_v14 = vmul.f32 %v3898_v59, %v11934_v52  ;;  %v4425_v57 = vmul.f32 %v4361_v12, %v14941_v10  ;;  %v4234_v40 = vmul.f32 %v4170_v39, %v14928_v17  ;;  %7912 = vmatmul.msk.f32.gmra.mxu0 %vm2686_vm2, %v11871_v21  ;;  %v4729_v29 = vsub.f32 %v14933_v3, %v4665_v30  ;;  %v5012_v39 = vpop.f32.mrf.mxu0 }
 0x43b   : > { %v4217_v48 = vmul.f32 %v4153_v55, %v14932_v1  ;;  %v3881_v28 = vadd.f32 2.7557319e-06, %v3817_v18  ;;  %v3818_v35 = vmul.f32 %v3754_v54, %v11966_v63  ;;  %v4666_v31 = vmul.f32 2.0, %v4602_v13 }
 0x43c   : > { %v4026_v43 = vadd.f32 -0.0001984127, %v3962_v14  ;;  %v4489_v2 = vadd.f32 %v4425_v57, %v14941_v10  ;;  %v4298_v60 = vadd.f32 -0.16666667, %v4234_v40  ;;  %v4585_v56 = vfloor.f32 %v4521_v42 }
 0x43d   : > { %v4281_v49 = vadd.f32 -0.16666667, %v4217_v48  ;;  %v3945_v50 = vmul.f32 %v3881_v28, %v11956_v0  ;;  %v3882_v16 = vadd.f32 2.7557319e-06, %v3818_v35  ;;  %v4793_v33 = vmul.f32 2.0, %v4729_v29 }
 0x43e   : > { %v4090_v34 = vmul.f32 %v4026_v43, %v11934_v52  ;;  %v4937_v23 = vmul.f32 %v4873_v41, %v4489_v2  ;;  %v4362_v3 = vmul.f32 %v4298_v60, %v14928_v17  ;;  %7916 = vmatmul.msk.f32.gmra.mxu1 %vm2686_vm2, %v11871_v21  ;;  %v4522_v4 = vmul.f32 0.5, %v14942_v38  ;;  %v14944_v17 = vld [vmem:[#allocation67_spill] sm:$0xff] }
 0x43f   : > { %v4345_v27 = vmul.f32 %v4281_v49, %v14932_v1  ;;  %v4009_v20 = vadd.f32 -0.0001984127, %v3945_v50  ;;  %v3946_v53 = vmul.f32 %v3882_v16, %v11966_v63  ;;  %v4730_v37 = vsub.f32 %v14939_v25, %v4666_v31  ;;  %v12027_v43 = vld [vmem:[%s13856_s4 + $0x18] sm:$0xff] }
 0x440   : > { %v4154_v51 = vadd.f32 0.008333334, %v4090_v34  ;;  %5414 = vmatpush.msrb.mxu2 %v4937_v23  ;;  %v4426_v22 = vmul.f32 %v4362_v3, %v14943_v44  ;;  %v4649_v15 = vmul.f32 2.0, %v4585_v56  ;;  %v4586_v7 = vfloor.f32 %v4522_v4  ;;  %v12040_v3 = vpop.permute.xlu1 %4965 }
 0x441   : > { %v4409_v5 = vmul.f32 %v4345_v27, %v14944_v17  ;;  %v4073_v30 = vmul.f32 %v4009_v20, %v11956_v0  ;;  %v4010_v8 = vadd.f32 -0.0001984127, %v3946_v53  ;;  %v4874_v26 = vsub.f32 1.0, %v4810_v62  ;;  %v5070_v20 = vpop.f32.mrf.mxu2  ;;  %v12056_v53 = vpop.permute.xlu0 %4970 }
 0x442   : > { %v4218_v61 = vmul.f32 %v4154_v51, %v11934_v52  ;;  %v4490_v1 = vadd.f32 %v4426_v22, %v14943_v44  ;;  %v4857_v47 = vsub.f32 1.0, %v4793_v33  ;;  %v4650_v41 = vmul.f32 2.0, %v4586_v7  ;;  %7913 = vmatmul.msk.f32.gmra.mxu0 %vm2686_vm2, %v12008_v19  ;;  %v5015_v31 = vpop.f32.mrf.mxu0  ;;  %v12052_v51 = vpop.permute.xlu2 %4980 }
 0x443   : > { %v4473_v25 = vadd.f32 %v4409_v5, %v14944_v17  ;;  %v4137_v24 = vadd.f32 0.008333334, %v4073_v30  ;;  %v4074_v59 = vmul.f32 %v4010_v8, %v11966_v63  ;;  %v4794_v36 = vmul.f32 2.0, %v4730_v37  ;;  %v5099_v37 = vpop.f32.mrf.mxu3 }
 0x444   : > { %v4282_v45 = vadd.f32 -0.16666667, %v4218_v61  ;;  %v4938_v11 = vmul.f32 %v4874_v26, %v4490_v1  ;;  %v4713_v12 = vsub.f32 %v14940_v58, %v4649_v15  ;;  %v4714_v57 = vsub.f32 %v14942_v38, %v4650_v41  ;;  %v5041_v58 = vpop.f32.mrf.mxu1 }
 0x445   : > { %v4921_v13 = vmul.f32 %v4857_v47, %v4473_v25  ;;  %v4201_v55 = vmul.f32 %v4137_v24, %v11956_v0  ;;  %v4138_v14 = vadd.f32 0.008333334, %v4074_v59  ;;  %v4858_v40 = vsub.f32 1.0, %v4794_v36 }
 0x446   : > { %v4346_v42 = vmul.f32 %v4282_v45, %v11934_v52  ;;  %5443 = vmatpush.msrb.mxu3 %v4938_v11  ;;  %7917 = vmatmul.msk.f32.gmra.mxu1 %vm2686_vm2, %v12008_v19  ;;  %v4777_v29 = vmul.f32 2.0, %v4713_v12  ;;  %v4778_v60 = vmul.f32 2.0, %v4714_v57  ;;  %v5013_v33 = vadd.f32 %v5012_v39, %v12040_v3 }
 0x447   : > { %5415 = vmatpush.msrb.mxu2 %v4921_v13  ;;  %v4265_v54 = vadd.f32 -0.16666667, %v4201_v55  ;;  %v4202_v10 = vmul.f32 %v4138_v14, %v11966_v63  ;;  %v5042_v38 = vadd.f32 %v5041_v58, %v12040_v3  ;;  %v12060_v7 = vadd.f32 %v5015_v31, %v12056_v53 }
 0x448   : > { %v4410_v18 = vmul.f32 %v4346_v42, %v14930_v6  ;;  %v4841_v56 = vsub.f32 1.0, %v4777_v29  ;;  %v4842_v16 = vsub.f32 1.0, %v4778_v60  ;;  %v12066_v5 = vadd.f32 %v5070_v20, %v12040_v3 }
 0x449   : > { %v4329_v52 = vmul.f32 %v4265_v54, %v11956_v0  ;;  %v4266_v48 = vadd.f32 -0.16666667, %v4202_v10  ;;  %v5460_v4 = vmul.f32 0.31830987, %v5042_v38  ;;  %v5475_v26 = vmul.f32 0.31830987, %v12060_v7 }
 0x44a   : > { %v4474_v62 = vadd.f32 %v4410_v18, %v14930_v6  ;;  %7914 = vmatmul.msk.f32.gmra.mxu0 %vm2686_vm2, %v12027_v43  ;;  %v7252_v6 = vld [vmem:[#allocation2] sm:$0x1]  ;;  %v5461_v41 = vmul.f32 0.31830987, %v12066_v5 }
 0x44b   : > { %v4393_v35 = vmul.f32 %v4329_v52, %v11925_v32  ;;  %v4330_v2 = vmul.f32 %v4266_v48, %v11966_v63  ;;  %7255 = vperm.xlu2 %7989, %v7252_v6   ;;  %v5524_v22 = vadd.f32 0.5, %v5460_v4  ;;  %v5539_v39 = vadd.f32 0.5, %v5475_v26 }
 0x44c   : > { %v4922_v28 = vmul.f32 %v4858_v40, %v4474_v62  ;;  %v5044_v63 = vpop.f32.mrf.mxu1  ;;  %v5525_v55 = vadd.f32 0.5, %v5461_v41 }
 0x44d   : > { %v4457_v0 = vadd.f32 %v4393_v35, %v11925_v32  ;;  %v4394_v49 = vmul.f32 %v4330_v2, %v11950_v46  ;;  %v12044_v32 = vpop.f32.mrf.mxu0  ;;  %v12063_v17 = vadd.f32 %v5044_v63, %v12056_v53  ;;  %v12073_v8 = vfloor.f32 %v5524_v22 }
 0x44e   : > { %5444 = vmatpush.msrb.mxu3 %v4922_v28  ;;  %7918 = vmatmul.msk.f32.gmra.mxu1 %vm2686_vm2, %v12027_v43  ;;  %v12095_v40 = vfloor.f32 %v5539_v39  ;;  %v12100_v48 = vfloor.f32 %v5525_v55 }
 0x44f   : > { %v4905_v34 = vmul.f32 %v4841_v56, %v4457_v0  ;;  %v4458_v50 = vadd.f32 %v4394_v49, %v11950_v46  ;;  %v5459_v46 = vmul.f32 0.31830987, %v5013_v33  ;;  %v5476_v47 = vmul.f32 0.31830987, %v12063_v17 }
 0x450   : > { %v5652_v59 = vmul.f32 3.140625, %v12073_v8  ;;  %v5780_v52 = vmul.f32 0.0009676536, %v12073_v8  ;;  %14945 = vst [vmem:[#allocation71_spill] sm:$0xff] %v12100_v48  ;;  %v5667_v0 = vmul.f32 3.140625, %v12095_v40 }
 0x451   : > { %5416 = vmatpush.msrb.mxu2 %v4905_v34  ;;  %v4906_v23 = vmul.f32 %v4842_v16, %v4458_v50  ;;  %v5523_v44 = vadd.f32 0.5, %v5459_v46  ;;  %v5540_v42 = vadd.f32 0.5, %v5476_v47  ;;  %v5795_v56 = vmul.f32 0.0009676536, %v12095_v40  ;;  %v5073_v50 = vpop.f32.mrf.mxu2 }
 0x452   : > { %7919 = vmatmul.msk.f32.vlgmr.msrb.gmra.mxu2 %vm2686_vm2, %v11845_v9  ;;  %v5716_v10 = vsub.f32 %v5042_v38, %v5652_v59  ;;  %v5653_v16 = vmul.f32 3.140625, %v12100_v48  ;;  %v12124_v63 = vadd.f32 %v5073_v50, %v12056_v53 }
 0x453   : > { %5445 = vmatpush.msrb.mxu3 %v4906_v23  ;;  %v12071_v30 = vfloor.f32 %v5523_v44  ;;  %v12098_v29 = vfloor.f32 %v5540_v42 }
 0x454   : > { %7923 = vmatmul.msk.f32.vlgmr.msrb.gmra.mxu3 %vm2686_vm2, %v11845_v9  ;;  %v12050_v27 = vpop.f32.mrf.mxu1  ;;  %v12114_v31 = vsub.f32 %v5716_v10, %v5780_v52 }
 0x455   : > { %v5021_v9 = vpop.f32.mrf.mxu0  ;;  %v5651_v24 = vmul.f32 3.140625, %v12071_v30  ;;  %v5779_v58 = vmul.f32 0.0009676536, %v12071_v30  ;;  %v5796_v22 = vmul.f32 0.0009676536, %v12098_v29 }
 0x456   : > { %v5022_v15 = vadd.f32 %v5021_v9, %v12052_v51 }
 0x458   : > { %v5507_v61 = vmul.f32 0.31830987, %v5022_v15 }
 0x45a   : > { %7920 = vmatmul.msk.f32.gmra.mxu2 %vm2686_vm2, %v11871_v21  ;;  %v5571_v1 = vadd.f32 0.5, %v5507_v61 }
 0x45c   : > { %7924 = vmatmul.msk.f32.gmra.mxu3 %vm2686_vm2, %v11871_v21  ;;  %v12069_v21 = vadd.f32 %v5099_v37, %v12040_v3  ;;  %v12080_v25 = vfloor.f32 %v5571_v1  ;;  %v5050_v12 = vpop.f32.mrf.mxu1  ;;  %v5731_v1 = vsub.f32 %v12060_v7, %v5667_v0 }
 0x45d   : > { %v5051_v13 = vadd.f32 %v5050_v12, %v12052_v51  ;;  %v5128_v38 = vpop.f32.mrf.mxu0 }
 0x45e   : > { %v5462_v45 = vmul.f32 0.31830987, %v12069_v21  ;;  %v5699_v11 = vmul.f32 3.140625, %v12080_v25  ;;  %v5827_v36 = vmul.f32 0.0009676536, %v12080_v25  ;;  %v12131_v9 = vadd.f32 %v5128_v38, %v12040_v3 }
 0x45f   : > { %v5508_v54 = vmul.f32 0.31830987, %v5051_v13 }
 0x460   : > { %v5763_v14 = vsub.f32 %v5022_v15, %v5699_v11  ;;  %v5526_v18 = vadd.f32 0.5, %v5462_v45  ;;  %v5477_v15 = vmul.f32 0.31830987, %v12124_v63  ;;  %v5463_v41 = vmul.f32 0.31830987, %v12131_v9 }
 0x461   : > { %v5572_v62 = vadd.f32 0.5, %v5508_v54 }
 0x462   : > { %7921 = vmatmul.msk.f32.gmra.mxu2 %vm2686_vm2, %v12008_v19  ;;  %v12090_v57 = vsub.f32 %v5763_v14, %v5827_v36  ;;  %v12108_v35 = vfloor.f32 %v5526_v18  ;;  %v5541_v59 = vadd.f32 0.5, %v5477_v15  ;;  %v5717_v36 = vsub.f32 %v12066_v5, %v5653_v16 }
 0x463   : > { %v12110_v2 = vfloor.f32 %v5572_v62  ;;  %v12155_v14 = vsub.f32 %v5731_v1, %v5795_v56  ;;  %v12174_v56 = vmul.f32 %v12114_v31, %v12114_v31 }
 0x464   : > { %7925 = vmatmul.msk.f32.gmra.mxu3 %vm2686_vm2, %v12008_v19  ;;  %v5715_v19 = vsub.f32 %v5013_v33, %v5651_v24  ;;  %v12104_v28 = vmul.f32 %v12090_v57, %v12090_v57  ;;  %14946 = vst [vmem:[#allocation56_spill] sm:$0xff] %v12108_v35  ;;  %v5102_v33 = vpop.f32.mrf.mxu3  ;;  %v5654_v46 = vmul.f32 3.140625, %v12108_v35  ;;  %v5157_v44 = vpop.f32.mrf.mxu1  ;;  %v5782_v42 = vmul.f32 0.0009676536, %v12108_v35 }
 0x465   : > { %v5700_v49 = vmul.f32 3.140625, %v12110_v2  ;;  %v5828_v34 = vmul.f32 0.0009676536, %v12110_v2  ;;  %v12128_v20 = vadd.f32 %v5102_v33, %v12056_v53  ;;  %v12137_v61 = vadd.f32 %v5157_v44, %v12040_v3 }
 0x466   : > { %v12112_v60 = vsub.f32 %v5715_v19, %v5779_v58  ;;  %v6019_v6 = vmul.f32 1.6059044e-10, %v12104_v28  ;;  %v5718_v12 = vsub.f32 %v12069_v21, %v5654_v46  ;;  %v12158_v54 = vfloor.f32 %v5541_v59  ;;  %v5076_v21 = vpop.f32.mrf.mxu2 }
 0x467   : > { %v5764_v4 = vsub.f32 %v5051_v13, %v5700_v49  ;;  %v5478_v47 = vmul.f32 0.31830987, %v12128_v20  ;;  %v5464_v11 = vmul.f32 0.31830987, %v12137_v61  ;;  %v5781_v13 = vmul.f32 0.0009676536, %v12100_v48 }
 0x468   : > { %v6083_v23 = vadd.f32 -2.5052108e-08, %v6019_v6  ;;  %14947 = vst [vmem:[#allocation7_spill] sm:$0xff] %v12158_v54  ;;  %v12166_v52 = vsub.f32 %v5718_v12, %v5782_v42  ;;  %v12170_v0 = vmul.f32 %v12112_v60, %v12112_v60  ;;  %v5669_v33 = vmul.f32 3.140625, %v12158_v54 }
 0x469   : > { %v12140_v26 = vsub.f32 %v5764_v4, %v5828_v34  ;;  %v5542_v7 = vadd.f32 0.5, %v5478_v47  ;;  %v5528_v5 = vadd.f32 0.5, %v5464_v11  ;;  %v12164_v62 = vsub.f32 %v5717_v36, %v5781_v13 }
 0x46a   : > { %7922 = vmatmul.msk.f32.gmra.mxu2 %vm2686_vm2, %v12027_v43  ;;  %v6147_v37 = vmul.f32 %v6083_v23, %v12104_v28  ;;  %14950 = vst [vmem:[#allocation75_spill] sm:$0xff] %v12166_v52  ;;  %v12184_v23 = vpop.permute.xlu2 %4975  ;;  %v12203_v15 = vmul.f32 %v12166_v52, %v12166_v52 }
 0x46b   : > { %v12150_v39 = vmul.f32 %v12140_v26, %v12140_v26  ;;  %v12162_v58 = vfloor.f32 %v5542_v7  ;;  %14949 = vst [vmem:[#allocation11_spill] sm:$0xff] %v12164_v62  ;;  %v12187_v38 = vfloor.f32 %v5528_v5  ;;  %v5733_v7 = vsub.f32 %v12124_v63, %v5669_v33 }
 0x46c   : > { %7926 = vmatmul.msk.f32.gmra.mxu3 %vm2686_vm2, %v12027_v43  ;;  %v5668_v43 = vmul.f32 3.140625, %v12098_v29  ;;  %v6211_v24 = vadd.f32 2.7557319e-06, %v6147_v37  ;;  %v5105_v50 = vpop.f32.mrf.mxu3  ;;  %v12199_v37 = vmul.f32 %v12164_v62, %v12164_v62  ;;  %14954 = vst [vmem:[#allocation20_spill] sm:$0xff] %v12203_v15  ;;  %v5160_v36 = vpop.f32.mrf.mxu1 }
 0x46d   : > { %v6020_v18 = vmul.f32 1.6059044e-10, %v12150_v39  ;;  %14948 = vst [vmem:[#allocation17_spill] sm:$0xff] %v12162_v58  ;;  %v5670_v44 = vmul.f32 3.140625, %v12162_v58  ;;  %v12206_v47 = vadd.f32 %v5105_v50, %v12184_v23  ;;  %v5656_v13 = vmul.f32 3.140625, %v12187_v38 }
 0x46e   : > { %v5732_v45 = vsub.f32 %v12063_v17, %v5668_v43  ;;  %v6275_v55 = vmul.f32 %v6211_v24, %v12104_v28  ;;  %v5527_v17 = vadd.f32 0.5, %v5463_v41  ;;  %v12181_v43 = vmul.f32 %v12155_v14, %v12155_v14  ;;  %14952 = vst [vmem:[#allocation64_spill] sm:$0xff] %v12187_v38  ;;  %v5131_v41 = vpop.f32.mrf.mxu0 }
 0x46f   : > { %v6084_v6 = vadd.f32 -2.5052108e-08, %v6020_v18  ;;  %14953 = vst [vmem:[#allocation48_spill] sm:$0xff] %v12199_v37  ;;  %v5797_v24 = vmul.f32 0.0009676536, %v12158_v54  ;;  %v5734_v18 = vsub.f32 %v12128_v20, %v5670_v44 }
 0x470   : > { %v12160_v19 = vsub.f32 %v5732_v45, %v5796_v22  ;;  %v6339_v10 = vadd.f32 -0.0001984127, %v6275_v55  ;;  %v12177_v34 = vfloor.f32 %v5527_v17  ;;  %v12195_v22 = vadd.f32 %v5076_v21, %v12184_v23  ;;  %v5079_v55 = vpop.f32.mrf.mxu2 }
 0x471   : > { %v6148_v16 = vmul.f32 %v6084_v6, %v12150_v39  ;;  %v12209_v45 = vmul.f32 0.5, %v12080_v25  ;;  %v5494_v42 = vmul.f32 0.31830987, %v12206_v47  ;;  %v12221_v21 = vadd.f32 %v5131_v41, %v12056_v53 }
 0x472   : > { %v6403_v49 = vmul.f32 %v6339_v10, %v12104_v28  ;;  %14951 = vst [vmem:[#allocation80_spill] sm:$0xff] %v12177_v34  ;;  %v12191_v46 = vmul.f32 %v12160_v19, %v12160_v19  ;;  %v5655_v59 = vmul.f32 3.140625, %v12177_v34  ;;  %v5493_v11 = vmul.f32 0.31830987, %v12195_v22 }
 0x473   : > { %v6212_v1 = vadd.f32 2.7557319e-06, %v6148_v16  ;;  %v5558_v6 = vadd.f32 0.5, %v5494_v42  ;;  %v5080_v63 = vadd.f32 %v5079_v55, %v12052_v51  ;;  %v5798_v50 = vmul.f32 0.0009676536, %v12162_v58 }
 0x474   : > { %v6467_v4 = vadd.f32 0.008333334, %v6403_v49  ;;  %v5557_v5 = vadd.f32 0.5, %v5493_v11  ;;  %v12224_v49 = vadd.f32 %v5160_v36, %v12056_v53  ;;  %v5719_v16 = vsub.f32 %v12131_v9, %v5655_v59 }
 0x475   : > { %v6276_v12 = vmul.f32 %v6212_v1, %v12150_v39  ;;  %v12233_v44 = vfloor.f32 %v5558_v6  ;;  %v5509_v41 = vmul.f32 0.31830987, %v5080_v63  ;;  %v12237_v11 = vmul.f32 0.5, %v12110_v2 }
 0x476   : > { %v6531_v17 = vmul.f32 %v6467_v4, %v12104_v28  ;;  %v12229_v33 = vfloor.f32 %v5557_v5  ;;  %v5479_v4 = vmul.f32 0.31830987, %v12221_v21  ;;  %v5480_v1 = vmul.f32 0.31830987, %v12224_v49 }
 0x477   : > { %v6340_v10 = vadd.f32 -0.0001984127, %v6276_v12  ;;  %14955 = vst [vmem:[#allocation9_spill] sm:$0xff] %v12233_v44  ;;  %v12239_v36 = vsub.f32 %v5733_v7, %v5797_v24  ;;  %v5783_v12 = vmul.f32 0.0009676536, %v12177_v34  ;;  %v12242_v55 = vsub.f32 %v5734_v18, %v5798_v50 }
 0x478   : > { %v5543_v42 = vadd.f32 0.5, %v5479_v4  ;;  %v6595_v9 = vadd.f32 -0.16666667, %v6531_v17  ;;  %v5720_v5 = vsub.f32 %v12137_v61, %v5656_v13  ;;  %v5784_v6 = vmul.f32 0.0009676536, %v12187_v38 }
 0x479   : > { %v6404_v20 = vmul.f32 %v6340_v10, %v12150_v39  ;;  %14956 = vst [vmem:[#allocation77_spill] sm:$0xff] %v12239_v36  ;;  %v12245_v10 = vsub.f32 %v5719_v16, %v5783_v12  ;;  %v5685_v52 = vmul.f32 3.140625, %v12229_v33  ;;  %v5573_v62 = vadd.f32 0.5, %v5509_v41  ;;  %v5108_v12 = vpop.f32.mrf.mxu3 }
 0x47a   : > { %14957 = vst [vmem:[#allocation24_spill] sm:$0xff] %v12242_v55  ;;  %v5686_v24 = vmul.f32 3.140625, %v12233_v44  ;;  %v12251_v7 = vfloor.f32 %v5543_v42  ;;  %v5544_v4 = vadd.f32 0.5, %v5480_v1  ;;  %v12259_v61 = vadd.f32 %v12044_v32, %v12184_v23 }
 0x47b   : > { %v6468_v59 = vadd.f32 0.008333334, %v6404_v20  ;;  %14958 = vst [vmem:[#allocation72_spill] sm:$0xff] %v12245_v10  ;;  %v12255_v50 = vfloor.f32 %v5573_v62  ;;  %v6659_v13 = vmul.f32 %v6595_v9, %v12104_v28  ;;  %v12264_v16 = vmul.f32 %v12239_v36, %v12239_v36 }
 0x47c   : > { %14959 = vst [vmem:[#allocation13_spill] sm:$0xff] %v12251_v7  ;;  %v12268_v20 = vmul.f32 %v12242_v55, %v12242_v55  ;;  %v12270_v1 = vsub.f32 %v5720_v5, %v5784_v6  ;;  %v12274_v62 = vmul.f32 %v12245_v10, %v12245_v10  ;;  %v5749_v41 = vsub.f32 %v12195_v22, %v5685_v52 }
 0x47d   : > { %v6532_v35 = vmul.f32 %v6468_v59, %v12150_v39  ;;  %14960 = vst [vmem:[#allocation22_spill] sm:$0xff] %v12264_v16  ;;  %v5813_v32 = vmul.f32 0.0009676536, %v12229_v33  ;;  %v5701_v28 = vmul.f32 3.140625, %v12255_v50  ;;  %v5750_v9 = vsub.f32 %v12206_v47, %v5686_v24 }
 0x47e   : > { %14961 = vst [vmem:[#allocation46_spill] sm:$0xff] %v12268_v20  ;;  %v5671_v59 = vmul.f32 3.140625, %v12251_v7  ;;  %v12281_v18 = vfloor.f32 %v5544_v4  ;;  %v5829_v6 = vmul.f32 0.0009676536, %v12255_v50  ;;  %v5109_v17 = vadd.f32 %v5108_v12, %v12052_v51 }
 0x47f   : > { %14962 = vst [vmem:[#allocation40_spill] sm:$0xff] %v12270_v1  ;;  %v6596_v42 = vadd.f32 -0.16666667, %v6532_v35  ;;  %v5765_v5 = vsub.f32 %v5080_v63, %v5701_v28  ;;  %v5491_v10 = vmul.f32 0.31830987, %v12259_v61  ;;  %v6723_v52 = vmul.f32 %v6659_v13, %v12090_v57 }
 0x480   : > { %14963 = vst [vmem:[#allocation28_spill] sm:$0xff] %v12274_v62  ;;  %v12289_v22 = vmul.f32 %v12270_v1, %v12270_v1  ;;  %v5814_v35 = vmul.f32 0.0009676536, %v12233_v44  ;;  %v12294_v47 = vadd.f32 %v12050_v27, %v12184_v23  ;;  %v12296_v24 = vsub.f32 %v5749_v41, %v5813_v32  ;;  %v5134_v62 = vpop.f32.mrf.mxu0 }
 0x481   : > { %14964 = vst [vmem:[#allocation44_spill] sm:$0xff] %v12281_v18  ;;  %v12298_v63 = vsub.f32 %v5765_v5, %v5829_v6  ;;  %v5510_v4 = vmul.f32 0.31830987, %v5109_v17  ;;  %v5555_v28 = vadd.f32 0.5, %v5491_v10  ;;  %v5735_v13 = vsub.f32 %v12221_v21, %v5671_v59 }
 0x482   : > { %14965 = vst [vmem:[#allocation23_spill] sm:$0xff] %v12289_v22  ;;  %v12300_v12 = vsub.f32 %v5750_v9, %v5814_v35  ;;  %v5672_v38 = vmul.f32 3.140625, %v12281_v18  ;;  %v5492_v1 = vmul.f32 0.31830987, %v12294_v47  ;;  %v6660_v22 = vmul.f32 %v6596_v42, %v12150_v39 }
 0x483   : > { %14966 = vst [vmem:[#allocation39_spill] sm:$0xff] %v12296_v24  ;;  %v12308_v27 = vmul.f32 %v12298_v63, %v12298_v63  ;;  %v5574_v41 = vadd.f32 0.5, %v5510_v4  ;;  %v12310_v32 = vfloor.f32 %v5555_v28  ;;  %v12313_v5 = vadd.f32 %v6723_v52, %v12090_v57 }
 0x484   : > { %14967 = vst [vmem:[#allocation51_spill] sm:$0xff] %v12300_v12  ;;  %v5799_v10 = vmul.f32 0.0009676536, %v12251_v7  ;;  %v5800_v21 = vmul.f32 0.0009676536, %v12281_v18  ;;  %v5556_v9 = vadd.f32 0.5, %v5492_v1  ;;  %v12319_v59 = vmul.f32 %v12296_v24, %v12296_v24  ;;  %v5163_v18 = vpop.f32.mrf.mxu1 }
 0x485   : > { %v6021_v39 = vmul.f32 1.6059044e-10, %v12308_v27  ;;  %v12322_v42 = vfloor.f32 %v5574_v41  ;;  %v5683_v6 = vmul.f32 3.140625, %v12310_v32  ;;  %v12327_v35 = vmul.f32 %v12300_v12, %v12300_v12 }
 0x486   : > { %14968 = vst [vmem:[#allocation38_spill] sm:$0xff] %v12319_v59  ;;  %v5736_v57 = vsub.f32 %v12224_v49, %v5672_v38  ;;  %v12331_v52 = vmul.f32 0.5, %v12255_v50  ;;  %v5811_v1 = vmul.f32 0.0009676536, %v12310_v32  ;;  %v6724_v4 = vmul.f32 %v6660_v22, %v12140_v26  ;;  %v5186_v38 = vpop.f32.mrf.mxu2  ;;  %v5215_v49 = vpop.f32.mrf.mxu3 }
 0x487   : > { %14969 = vst [vmem:[#allocation29_spill] sm:$0xff] %v12322_v42  ;;  %v12335_v28 = vsub.f32 %v5735_v13, %v5799_v10  ;;  %v6085_v34 = vadd.f32 -2.5052108e-08, %v6021_v39  ;;  %v5702_v41 = vmul.f32 3.140625, %v12322_v42  ;;  %v5135_v7 = vadd.f32 %v5134_v62, %v12184_v23 }
 0x488   : > { %14970 = vst [vmem:[#allocation35_spill] sm:$0xff] %v12327_v35  ;;  %v12340_v55 = vadd.f32 %v5163_v18, %v12184_v23  ;;  %v5747_v36 = vsub.f32 %v12259_v61, %v5683_v6  ;;  %v12343_v15 = vfloor.f32 %v5556_v9  ;;  %v5830_v10 = vmul.f32 0.0009676536, %v12322_v42 }
 0x489   : > { %14971 = vst [vmem:[#allocation10_spill] sm:$0xff] %v12335_v28  ;;  %v6149_v22 = vmul.f32 %v6085_v34, %v12308_v27  ;;  %v5766_v13 = vsub.f32 %v5109_v17, %v5702_v41  ;;  %v5187_v39 = vadd.f32 %v5186_v38, %v12040_v3  ;;  %v5495_v48 = vmul.f32 0.31830987, %v5135_v7 }
 0x48a   : > { %v5496_v37 = vmul.f32 0.31830987, %v12340_v55  ;;  %v12350_v62 = vadd.f32 %v5215_v49, %v12040_v3  ;;  %v12352_v18 = vsub.f32 %v5747_v36, %v5811_v1  ;;  %v12354_v12 = vsub.f32 %v5736_v57, %v5800_v21 }
 0x48b   : > { %v6213_v61 = vadd.f32 2.7557319e-06, %v6149_v22  ;;  %v12356_v9 = vsub.f32 %v5766_v13, %v5830_v10  ;;  %v5465_v6 = vmul.f32 0.31830987, %v5187_v39  ;;  %v5559_v34 = vadd.f32 0.5, %v5495_v48 }
 0x48c   : > { %14972 = vst [vmem:[#allocation50_spill] sm:$0xff] %v12354_v12  ;;  %v5560_v17 = vadd.f32 0.5, %v5496_v37  ;;  %v5466_v41 = vmul.f32 0.31830987, %v12350_v62  ;;  %v12361_v38 = vmul.f32 %v12352_v18, %v12352_v18  ;;  %v5684_v57 = vmul.f32 3.140625, %v12343_v15 }
 0x48d   : > { %v6277_v58 = vmul.f32 %v6213_v61, %v12308_v27  ;;  %v12366_v36 = vmul.f32 %v12356_v9, %v12356_v9  ;;  %v5529_v21 = vadd.f32 0.5, %v5465_v6  ;;  %v12370_v49 = vfloor.f32 %v5559_v34  ;;  %v5137_v61 = vpop.f32.mrf.mxu0 }
 0x48e   : > { %v12372_v48 = vfloor.f32 %v5560_v17  ;;  %v5530_v37 = vadd.f32 0.5, %v5466_v41  ;;  %v6003_v20 = vmul.f32 1.6059044e-10, %v12361_v38  ;;  %v12379_v24 = vadd.f32 %v6724_v4, %v12140_v26 }
 0x48f   : > { %14973 = vst [vmem:[#allocation18_spill] sm:$0xff] %v12370_v49  ;;  %v6341_v22 = vadd.f32 -0.0001984127, %v6277_v58  ;;  %v6022_v13 = vmul.f32 1.6059044e-10, %v12366_v36  ;;  %v12375_v10 = vfloor.f32 %v5529_v21  ;;  %v12383_v6 = vmul.f32 %v12335_v28, %v12335_v28 }
 0x490   : > { %14974 = vst [vmem:[#allocation76_spill] sm:$0xff] %v12372_v48  ;;  %v5687_v34 = vmul.f32 3.140625, %v12370_v49  ;;  %v5688_v17 = vmul.f32 3.140625, %v12372_v48  ;;  %v5748_v1 = vsub.f32 %v12294_v47, %v5684_v57  ;;  %v5815_v16 = vmul.f32 0.0009676536, %v12370_v49 }
 0x491   : > { %14975 = vst [vmem:[#allocation12_spill] sm:$0xff] %v12375_v10  ;;  %v6405_v58 = vmul.f32 %v6341_v22, %v12308_v27  ;;  %v6086_v41 = vadd.f32 -2.5052108e-08, %v6022_v13  ;;  %v5657_v21 = vmul.f32 3.140625, %v12375_v10  ;;  %v12391_v26 = vfloor.f32 %v5530_v37 }
 0x492   : > { %14976 = vst [vmem:[#allocation57_spill] sm:$0xff] %v12383_v6  ;;  %v5751_v54 = vsub.f32 %v5135_v7, %v5687_v34  ;;  %v5138_v4 = vadd.f32 %v5137_v61, %v12052_v51  ;;  %v6067_v44 = vadd.f32 -2.5052108e-08, %v6003_v20  ;;  %v5812_v35 = vmul.f32 0.0009676536, %v12343_v15 }
 0x493   : > { %14977 = vst [vmem:[#allocation21_spill] sm:$0xff] %v12391_v26  ;;  %v6469_v28 = vadd.f32 0.008333334, %v6405_v58  ;;  %v6150_v6 = vmul.f32 %v6086_v41, %v12366_v36  ;;  %v5752_v22 = vsub.f32 %v12340_v55, %v5688_v17  ;;  %v5816_v13 = vmul.f32 0.0009676536, %v12372_v48 }
 0x494   : > { %v5721_v59 = vsub.f32 %v5187_v39, %v5657_v21  ;;  %v5658_v47 = vmul.f32 3.140625, %v12391_v26  ;;  %v12401_v37 = vmul.f32 0.5, %v12322_v42  ;;  %v5511_v61 = vmul.f32 0.31830987, %v5138_v4 }
 0x495   : > { %v6533_v7 = vmul.f32 %v6469_v28, %v12308_v27  ;;  %v6214_v57 = vadd.f32 2.7557319e-06, %v6150_v6  ;;  %v12403_v34 = vsub.f32 %v5751_v54, %v5815_v16  ;;  %v5785_v20 = vmul.f32 0.0009676536, %v12375_v10 }
 0x496   : > { %14978 = vst [vmem:[#allocation36_spill] sm:$0xff] %v12401_v37  ;;  %v5722_v58 = vsub.f32 %v12350_v62, %v5658_v47  ;;  %v6131_v55 = vmul.f32 %v6067_v44, %v12361_v38  ;;  %v5575_v41 = vadd.f32 0.5, %v5511_v61  ;;  %v12409_v21 = vsub.f32 %v5748_v1, %v5812_v35 }
 0x497   : > { %14979 = vst [vmem:[#allocation27_spill] sm:$0xff] %v12403_v34  ;;  %v6597_v17 = vadd.f32 -0.16666667, %v6533_v7  ;;  %v6278_v39 = vmul.f32 %v6214_v57, %v12366_v36  ;;  %v12411_v28 = vsub.f32 %v5752_v22, %v5816_v13  ;;  %v12413_v6 = vsub.f32 %v5721_v59, %v5785_v20  ;;  %v5166_v20 = vpop.f32.mrf.mxu1 }
 0x498   : > { %v5786_v48 = vmul.f32 0.0009676536, %v12391_v26  ;;  %v6195_v54 = vadd.f32 2.7557319e-06, %v6131_v55  ;;  %v12418_v16 = vmul.f32 %v12354_v12, %v12354_v12  ;;  %v12421_v47 = vfloor.f32 %v5575_v41 }
 0x499   : > { %14980 = vst [vmem:[#allocation52_spill] sm:$0xff] %v12411_v28  ;;  %v6342_v62 = vadd.f32 -0.0001984127, %v6278_v39  ;;  %v12425_v35 = vmul.f32 %v12403_v34, %v12403_v34  ;;  %v6835_v22 = vmul.f32 0.5, %v12310_v32  ;;  %v6661_v13 = vmul.f32 %v6597_v17, %v12308_v27 }
 0x49a   : > { %14981 = vst [vmem:[#allocation42_spill] sm:$0xff] %v12413_v6  ;;  %v12427_v1 = vsub.f32 %v5722_v58, %v5786_v48  ;;  %v6259_v59 = vmul.f32 %v6195_v54, %v12361_v38  ;;  %v5703_v57 = vmul.f32 3.140625, %v12421_v47  ;;  %v5831_v61 = vmul.f32 0.0009676536, %v12421_v47 }
 0x49b   : > { %14982 = vst [vmem:[#allocation31_spill] sm:$0xff] %v12418_v16  ;;  %v6406_v7 = vmul.f32 %v6342_v62, %v12366_v36  ;;  %v12437_v55 = vmul.f32 %v12411_v28, %v12411_v28  ;;  %v12441_v48 = vmul.f32 %v12413_v6, %v12413_v6  ;;  %v5167_v58 = vadd.f32 %v5166_v20, %v12052_v51 }
 0x49c   : > { %14983 = vst [vmem:[#allocation55_spill] sm:$0xff] %v12421_v47  ;;  %v12446_v27 = vmul.f32 %v12409_v21, %v12409_v21  ;;  %v5767_v39 = vsub.f32 %v5138_v4, %v5703_v57  ;;  %v14988_v41 = vfloor.f32 %v12209_v45  ;;  %v6323_v62 = vadd.f32 -0.0001984127, %v6259_v59  ;;  %v5218_v57 = vpop.f32.mrf.mxu3 }
 0x49d   : > { %14984 = vst [vmem:[#allocation32_spill] sm:$0xff] %v12425_v35  ;;  %v6470_v17 = vadd.f32 0.008333334, %v6406_v7  ;;  %v12452_v44 = vmul.f32 %v12427_v1, %v12427_v1  ;;  %v5512_v26 = vmul.f32 0.31830987, %v5167_v58  ;;  %v6899_v10 = vfloor.f32 %v6835_v22  ;;  %v5189_v7 = vpop.f32.mrf.mxu2 }
 0x49e   : > { %14985 = vst [vmem:[#allocation66_spill] sm:$0xff] %v12427_v1  ;;  %v6979_v54 = vmul.f32 2.0, %v14988_v41  ;;  %v12455_v6 = vmul.f32 1.6059044e-10, %v12181_v43  ;;  %v6725_v20 = vmul.f32 %v6661_v13, %v12298_v63  ;;  %v12459_v12 = vsub.f32 %v5767_v39, %v5831_v61 }
 0x49f   : > { %14986 = vst [vmem:[#allocation59_spill] sm:$0xff] %v12437_v55  ;;  %v12463_v45 = vmul.f32 0.5, %v12421_v47  ;;  %v5576_v59 = vadd.f32 0.5, %v5512_v26  ;;  %v14991_v41 = vfloor.f32 %v12237_v11  ;;  %v6004_v1 = vmul.f32 1.6059044e-10, %v12446_v27 }
 0x4a0   : > { %14987 = vst [vmem:[#allocation6_spill] sm:$0xff] %v12441_v48  ;;  %v6534_v48 = vmul.f32 %v6470_v17, %v12366_v36  ;;  %v7043_v4 = vsub.f32 %v12080_v25, %v6979_v54  ;;  %v12470_v13 = vmul.f32 %v12459_v12, %v12459_v12  ;;  %v12473_v61 = vadd.f32 %v5189_v7, %v12056_v53 }
 0x4a1   : > { %14989 = vst [vmem:[#allocation54_spill] sm:$0xff] %v12452_v44  ;;  %v6980_v22 = vmul.f32 2.0, %v14991_v41  ;;  %v12476_v25 = vadd.f32 %v5218_v57, %v12056_v53  ;;  %v6387_v17 = vmul.f32 %v6323_v62, %v12361_v38  ;;  %v12479_v39 = vfloor.f32 %v5576_v59  ;;  %v5244_v62 = vpop.f32.mrf.mxu0  ;;  %v5273_v59 = vpop.f32.mrf.mxu1 }
 0x4a2   : > { %14990 = vst [vmem:[#allocation78_spill] sm:$0xff] %v12463_v45  ;;  %v6598_v26 = vadd.f32 -0.16666667, %v6534_v48  ;;  %v7107_v54 = vmul.f32 2.0, %v7043_v4  ;;  %v12481_v11 = vmul.f32 2.0, %v6899_v10  ;;  %v12484_v41 = vadd.f32 %v6725_v20, %v12298_v63 }
 0x4a3   : > { %14992 = vst [vmem:[#allocation60_spill] sm:$0xff] %v12479_v39  ;;  %v6023_v44 = vmul.f32 1.6059044e-10, %v12470_v13  ;;  %v5481_v28 = vmul.f32 0.31830987, %v12473_v61  ;;  %v5704_v34 = vmul.f32 3.140625, %v12479_v39  ;;  %v7044_v10 = vsub.f32 %v12110_v2, %v6980_v22 }
 0x4a4   : > { %14993 = vst [vmem:[#allocation69_spill] sm:$0xff] %v12484_v41  ;;  %v5482_v7 = vmul.f32 0.31830987, %v12476_v25  ;;  %v5832_v48 = vmul.f32 0.0009676536, %v12479_v39  ;;  %v12494_v49 = vadd.f32 %v5244_v62, %v12040_v3  ;;  %v12497_v35 = vadd.f32 %v5273_v59, %v12040_v3 }
 0x4a5   : > { %v6087_v4 = vadd.f32 -2.5052108e-08, %v6023_v44  ;;  %v5545_v16 = vadd.f32 0.5, %v5481_v28  ;;  %v6451_v20 = vadd.f32 0.008333334, %v6387_v17  ;;  %v5768_v55 = vsub.f32 %v5167_v58, %v5704_v34  ;;  %v5192_v44 = vpop.f32.mrf.mxu2 }
 0x4a6   : > { %v5546_v63 = vadd.f32 0.5, %v5482_v7  ;;  %v7171_v57 = vsub.f32 1.0, %v7107_v54  ;;  %v6662_v47 = vmul.f32 %v6598_v26, %v12366_v36  ;;  %v5467_v28 = vmul.f32 0.31830987, %v12494_v49  ;;  %v5221_v7 = vpop.f32.mrf.mxu3 }
 0x4a7   : > { %v6151_v45 = vmul.f32 %v6087_v4, %v12470_v13  ;;  %v12501_v41 = vfloor.f32 %v5545_v16  ;;  %v12505_v2 = vsub.f32 %v5768_v55, %v5832_v48  ;;  %v5468_v34 = vmul.f32 0.31830987, %v12497_v35 }
 0x4a8   : > { %v12503_v42 = vfloor.f32 %v5546_v63  ;;  %v7235_v58 = vmul.f32 %v7171_v57, %v12313_v5  ;;  %v7027_v36 = vsub.f32 %v12310_v32, %v12481_v11  ;;  %v6068_v26 = vadd.f32 -2.5052108e-08, %v6004_v1 }
 0x4a9   : > { %14994 = vst [vmem:[#allocation61_spill] sm:$0xff] %v12501_v41  ;;  %v6215_v22 = vadd.f32 2.7557319e-06, %v6151_v45  ;;  %v5673_v17 = vmul.f32 3.140625, %v12501_v41  ;;  %v12515_v16 = vmul.f32 %v12505_v2, %v12505_v2  ;;  %v5531_v55 = vadd.f32 0.5, %v5467_v28 }
 0x4aa   : > { %v5532_v54 = vadd.f32 0.5, %v5468_v34  ;;  %7274 = vmatpush.msra.mxu0 %v7235_v58  ;;  %v7108_v48 = vmul.f32 2.0, %v7044_v10  ;;  %v6726_v62 = vmul.f32 %v6662_v47, %v12356_v9  ;;  %v12520_v45 = vmul.f32 0.5, %v12479_v39 }
 0x4ab   : > { %v6279_v5 = vmul.f32 %v6215_v22, %v12470_v13  ;;  %v12523_v57 = vadd.f32 %v5192_v44, %v12184_v23  ;;  %v6024_v32 = vmul.f32 1.6059044e-10, %v12515_v16  ;;  %v5674_v1 = vmul.f32 3.140625, %v12503_v42 }
 0x4ac   : > { %14995 = vst [vmem:[#allocation65_spill] sm:$0xff] %v12520_v45  ;;  %v12527_v11 = vfloor.f32 %v5531_v55  ;;  %v12529_v59 = vfloor.f32 %v5532_v54  ;;  %v5737_v10 = vsub.f32 %v12473_v61, %v5673_v17  ;;  %v12534_v63 = vadd.f32 %v5221_v7, %v12184_v23 }
 0x4ad   : > { %v6343_v4 = vadd.f32 -0.0001984127, %v6279_v5  ;;  %v5497_v47 = vmul.f32 0.31830987, %v12523_v57  ;;  %v6088_v28 = vadd.f32 -2.5052108e-08, %v6024_v32  ;;  %v6515_v58 = vmul.f32 %v6451_v20, %v12361_v38 }
 0x4ae   : > { %14996 = vst [vmem:[#allocation33_spill] sm:$0xff] %v12527_v11  ;;  %v5659_v34 = vmul.f32 3.140625, %v12527_v11  ;;  %v5660_v44 = vmul.f32 3.140625, %v12529_v59  ;;  %v12540_v22 = vadd.f32 %v6726_v62, %v12356_v9  ;;  %v5801_v61 = vmul.f32 0.0009676536, %v12501_v41 }
 0x4af   : > { %14997 = vst [vmem:[#allocation8_spill] sm:$0xff] %v12529_v59  ;;  %v6407_v55 = vmul.f32 %v6343_v4, %v12470_v13  ;;  %v6152_v17 = vmul.f32 %v6088_v28, %v12515_v16  ;;  %v5738_v7 = vsub.f32 %v12476_v25, %v5674_v1  ;;  %v5802_v5 = vmul.f32 0.0009676536, %v12503_v42 }
 0x4b0   : > { %v5561_v32 = vadd.f32 0.5, %v5497_v47  ;;  %v12548_v37 = vsub.f32 %v5737_v10, %v5801_v61  ;;  %v5498_v20 = vmul.f32 0.31830987, %v12534_v63  ;;  %v7172_v9 = vsub.f32 1.0, %v7108_v48 }
 0x4b1   : > { %v6471_v39 = vadd.f32 0.008333334, %v6407_v55  ;;  %v6216_v62 = vadd.f32 2.7557319e-06, %v6152_v17  ;;  %v5723_v4 = vsub.f32 %v12494_v49, %v5659_v34  ;;  %v5724_v54 = vsub.f32 %v12497_v35, %v5660_v44  ;;  %v5247_v17 = vpop.f32.mrf.mxu0 }
 0x4b2   : > { %v12553_v45 = vfloor.f32 %v5561_v32  ;;  %v5562_v41 = vadd.f32 0.5, %v5498_v20  ;;  %v7236_v25 = vmul.f32 %v7172_v9, %v12379_v24  ;;  %v6579_v1 = vadd.f32 -0.16666667, %v6515_v58 }
 0x4b3   : > { %v6535_v28 = vmul.f32 %v6471_v39, %v12470_v13  ;;  %v6280_v47 = vmul.f32 %v6216_v62, %v12515_v16  ;;  %v12558_v10 = vsub.f32 %v5738_v7, %v5802_v5  ;;  %v5787_v55 = vmul.f32 0.0009676536, %v12527_v11  ;;  %v15021_v11 = vld [vmem:[#allocation69_spill] sm:$0xff] }
 0x4b4   : > { %v5788_v48 = vmul.f32 0.0009676536, %v12529_v59  ;;  %v5689_v49 = vmul.f32 3.140625, %v12553_v45  ;;  %v12563_v34 = vfloor.f32 %v5562_v41  ;;  %7294 = vmatpush.msra.mxu1 %v7236_v25  ;;  %v6643_v35 = vmul.f32 %v6579_v1, %v12361_v38 }
 0x4b5   : > { %v7091_v39 = vmul.f32 2.0, %v7027_v36  ;;  %v6599_v44 = vadd.f32 -0.16666667, %v6535_v28  ;;  %v6344_v61 = vadd.f32 -0.0001984127, %v6280_v47  ;;  %v12568_v24 = vmul.f32 %v12548_v37, %v12548_v37 }
 0x4b6   : > { %v6132_v58 = vmul.f32 %v6068_v26, %v12446_v27  ;;  %v12571_v7 = vsub.f32 %v5723_v4, %v5787_v55  ;;  %v12573_v5 = vsub.f32 %v5724_v54, %v5788_v48  ;;  %v5690_v41 = vmul.f32 3.140625, %v12563_v34  ;;  %v5276_v54 = vpop.f32.mrf.mxu1 }
 0x4b7   : > { %v6707_v32 = vmul.f32 %v6643_v35, %v12352_v18  ;;  %v6408_v38 = vmul.f32 %v6344_v61, %v12515_v16  ;;  %v5817_v36 = vmul.f32 0.0009676536, %v12553_v45  ;;  %v6836_v9 = vmul.f32 0.5, %v12343_v15 }
 0x4b8   : > { %14998 = vst [vmem:[#allocation47_spill] sm:$0xff] %v12571_v7  ;;  %v6196_v20 = vadd.f32 2.7557319e-06, %v6132_v58  ;;  %v5753_v62 = vsub.f32 %v12523_v57, %v5689_v49  ;;  %v7155_v28 = vsub.f32 1.0, %v7091_v39  ;;  %v12583_v4 = vadd.f32 %v5247_v17, %v12056_v53 }
 0x4b9   : > { %14999 = vst [vmem:[#allocation53_spill] sm:$0xff] %v12573_v5  ;;  %v6771_v26 = vadd.f32 %v6707_v32, %v12352_v18  ;;  %v6663_v25 = vmul.f32 %v6599_v44, %v12470_v13  ;;  %v6472_v1 = vadd.f32 0.008333334, %v6408_v38  ;;  %v6900_v55 = vfloor.f32 %v6836_v9 }
 0x4ba   : > { %v6260_v47 = vmul.f32 %v6196_v20, %v12446_v27  ;;  %v5754_v48 = vsub.f32 %v12534_v63, %v5690_v41  ;;  %v5818_v35 = vmul.f32 0.0009676536, %v12563_v34  ;;  %v5483_v57 = vmul.f32 0.31830987, %v12583_v4 }
 0x4bb   : > { %v7219_v61 = vmul.f32 %v7155_v28, %v6771_v26  ;;  %v6536_v18 = vmul.f32 %v6472_v1, %v12515_v16  ;;  %v6964_v39 = vmul.f32 2.0, %v6900_v55  ;;  %v12592_v58 = vadd.f32 %v5276_v54, %v12056_v53 }
 0x4bc   : > { %v6324_v49 = vadd.f32 -0.0001984127, %v6260_v47  ;;  %v12594_v17 = vsub.f32 %v5753_v62, %v5817_v36  ;;  %v5547_v13 = vadd.f32 0.5, %v5483_v57  ;;  %v6051_v44 = vadd.f32 -2.5052108e-08, %v12455_v6 }
 0x4bd   : > { %7275 = vmatpush.msra.mxu0 %v7219_v61  ;;  %v6819_v63 = vmul.f32 0.5, %v12095_v40  ;;  %v6600_v41 = vadd.f32 -0.16666667, %v6536_v18  ;;  %v7028_v38 = vsub.f32 %v12343_v15, %v6964_v39  ;;  %v5484_v20 = vmul.f32 0.31830987, %v12592_v58 }
 0x4be   : > { %v6388_v32 = vmul.f32 %v6324_v49, %v12446_v27  ;;  %v12601_v9 = vfloor.f32 %v5547_v13  ;;  %v6115_v26 = vmul.f32 %v6051_v44, %v12181_v43  ;;  %v5988_v36 = vmul.f32 1.6059044e-10, %v12191_v46  ;;  %v5195_v13 = vpop.f32.mrf.mxu2 }
 0x4bf   : > { %v6883_v28 = vfloor.f32 %v6819_v63  ;;  %v6727_v62 = vmul.f32 %v6663_v25, %v12459_v12  ;;  %v6664_v6 = vmul.f32 %v6600_v41, %v12515_v16  ;;  %v12607_v54 = vsub.f32 %v5754_v48, %v5818_v35 }
 0x4c0   : > { %15000 = vst [vmem:[#allocation45_spill] sm:$0xff] %v12601_v9  ;;  %v6452_v1 = vadd.f32 0.008333334, %v6388_v32  ;;  %v12611_v47 = vmul.f32 %v12558_v10, %v12558_v10  ;;  %v12615_v15 = vmul.f32 %v12571_v7, %v12571_v7  ;;  %v7092_v55 = vmul.f32 2.0, %v7028_v38 }
 0x4c1   : > { %v6179_v61 = vadd.f32 2.7557319e-06, %v6115_v26  ;;  %v12619_v57 = vmul.f32 %v12573_v5, %v12573_v5  ;;  %v12623_v16 = vmul.f32 %v12594_v17, %v12594_v17  ;;  %v5548_v48 = vadd.f32 0.5, %v5484_v20 }
 0x4c2   : > { %15001 = vst [vmem:[#allocation16_spill] sm:$0xff] %v12615_v15  ;;  %v6516_v25 = vmul.f32 %v6452_v1, %v12446_v27  ;;  %v12627_v35 = vmul.f32 3.140625, %v12601_v9  ;;  %v6947_v49 = vmul.f32 2.0, %v6883_v28  ;;  %v6052_v39 = vadd.f32 -2.5052108e-08, %v5988_v36 }
 0x4c3   : > { %15002 = vst [vmem:[#allocation30_spill] sm:$0xff] %v12619_v57  ;;  %v6243_v18 = vmul.f32 %v6179_v61, %v12181_v43  ;;  %v12631_v44 = vadd.f32 %v6727_v62, %v12459_v12  ;;  %v6728_v63 = vmul.f32 %v6664_v6, %v12505_v2  ;;  %v12636_v41 = vmul.f32 %v12607_v54, %v12607_v54 }
 0x4c4   : > { %v6580_v32 = vadd.f32 -0.16666667, %v6516_v25  ;;  %v7156_v38 = vsub.f32 1.0, %v7092_v55  ;;  %v5803_v20 = vmul.f32 0.0009676536, %v12601_v9  ;;  %v6116_v1 = vmul.f32 %v6052_v39, %v12191_v46 }
 0x4c5   : > { %v6307_v26 = vadd.f32 -0.0001984127, %v6243_v18  ;;  %v12641_v36 = vfloor.f32 %v5548_v48  ;;  %v6820_v12 = vmul.f32 0.5, %v12098_v29  ;;  %v5196_v62 = vadd.f32 %v5195_v13, %v12052_v51 }
 0x4c6   : > { %v6644_v28 = vmul.f32 %v6580_v32, %v12446_v27  ;;  %v5739_v6 = vsub.f32 %v12583_v4, %v12627_v35  ;;  %v7011_v55 = vsub.f32 %v12095_v40, %v6947_v49  ;;  %v6180_v25 = vadd.f32 2.7557319e-06, %v6116_v1 }
 0x4c7   : > { %15003 = vst [vmem:[#allocation49_spill] sm:$0xff] %v12641_v36  ;;  %v6371_v61 = vmul.f32 %v6307_v26, %v12181_v43  ;;  %v12650_v18 = vadd.f32 %v6728_v63, %v12505_v2  ;;  %v6884_v27 = vfloor.f32 %v6820_v12  ;;  %v5513_v48 = vmul.f32 0.31830987, %v5196_v62 }
 0x4c8   : > { %v6708_v39 = vmul.f32 %v6644_v28, %v12409_v21  ;;  %v6244_v5 = vmul.f32 %v6180_v25, %v12191_v46  ;;  %v5971_v13 = vmul.f32 1.6059044e-10, %v12170_v0  ;;  %v6803_v7 = vmul.f32 0.5, %v12071_v30 }
 0x4c9   : > { %v6435_v32 = vadd.f32 0.008333334, %v6371_v61  ;;  %v5676_v35 = vmul.f32 3.140625, %v12641_v36  ;;  %v6948_v40 = vmul.f32 2.0, %v6884_v27  ;;  %v5577_v49 = vadd.f32 0.5, %v5513_v48  ;;  %v5224_v48 = vpop.f32.mrf.mxu3 }
 0x4ca   : > { %v6772_v4 = vadd.f32 %v6708_v39, %v12409_v21  ;;  %v6308_v63 = vadd.f32 -0.0001984127, %v6244_v5  ;;  %v6035_v26 = vadd.f32 -2.5052108e-08, %v5971_v13  ;;  %v6867_v1 = vfloor.f32 %v6803_v7 }
 0x4cb   : > { %v6499_v2 = vmul.f32 %v6435_v32, %v12181_v43  ;;  %v7075_v12 = vmul.f32 2.0, %v7011_v55  ;;  %v7012_v61 = vsub.f32 %v12098_v29, %v6948_v40  ;;  %v12660_v25 = vfloor.f32 %v5577_v49 }
 0x4cc   : > { %v7220_v28 = vmul.f32 %v7156_v38, %v6772_v4  ;;  %v5804_v59 = vmul.f32 0.0009676536, %v12641_v36  ;;  %v6372_v21 = vmul.f32 %v6308_v63, %v12191_v46  ;;  %v6099_v39 = vmul.f32 %v6035_v26, %v12170_v0 }
 0x4cd   : > { %v6563_v57 = vadd.f32 -0.16666667, %v6499_v2  ;;  %v5740_v27 = vsub.f32 %v12592_v58, %v5676_v35  ;;  %v5705_v5 = vmul.f32 3.140625, %v12660_v25  ;;  %v6931_v7 = vmul.f32 2.0, %v6867_v1 }
 0x4ce   : > { %7295 = vmatpush.msra.mxu1 %v7220_v28  ;;  %v5972_v38 = vmul.f32 1.6059044e-10, %v12174_v56  ;;  %v6436_v55 = vadd.f32 0.008333334, %v6372_v21  ;;  %v5225_v32 = vadd.f32 %v5224_v48, %v12052_v51  ;;  %v6163_v13 = vadd.f32 2.7557319e-06, %v6099_v39 }
 0x4cf   : > { %v6627_v29 = vmul.f32 %v6563_v57, %v12181_v43  ;;  %v7139_v4 = vsub.f32 1.0, %v7075_v12  ;;  %v7076_v40 = vmul.f32 2.0, %v7012_v61  ;;  %v5769_v49 = vsub.f32 %v5196_v62, %v5705_v5 }
 0x4d0   : > { %v5833_v2 = vmul.f32 0.0009676536, %v12660_v25  ;;  %v6500_v58 = vmul.f32 %v6436_v55, %v12191_v46  ;;  %v5514_v35 = vmul.f32 0.31830987, %v5225_v32  ;;  %v6227_v26 = vmul.f32 %v6163_v13, %v12170_v0 }
 0x4d1   : > { %v6691_v63 = vmul.f32 %v6627_v29, %v12155_v14  ;;  %v6995_v43 = vsub.f32 %v12071_v30, %v6931_v7  ;;  %v6036_v57 = vadd.f32 -2.5052108e-08, %v5972_v38  ;;  %v6804_v28 = vmul.f32 0.5, %v12073_v8 }
 0x4d2   : > { %v12674_v1 = vsub.f32 %v5769_v49, %v5833_v2  ;;  %v6564_v61 = vadd.f32 -0.16666667, %v6500_v58  ;;  %v5578_v62 = vadd.f32 0.5, %v5514_v35  ;;  %v6291_v21 = vadd.f32 -0.0001984127, %v6227_v26 }
 0x4d3   : > { %v6755_v12 = vadd.f32 %v6691_v63, %v12155_v14  ;;  %v12679_v39 = vsub.f32 %v5739_v6, %v5803_v20  ;;  %v6100_v48 = vmul.f32 %v6036_v57, %v12174_v56  ;;  %v6868_v29 = vfloor.f32 %v6804_v28 }
 0x4d4   : > { %v12683_v5 = vmul.f32 %v12674_v1, %v12674_v1  ;;  %v6628_v30 = vmul.f32 %v6564_v61, %v12191_v46  ;;  %v12687_v7 = vfloor.f32 %v5578_v62  ;;  %v6355_v38 = vmul.f32 %v6291_v21, %v12170_v0  ;;  %v5250_v46 = vpop.f32.mrf.mxu0 }
 0x4d5   : > { %15004 = vst [vmem:[#allocation26_spill] sm:$0xff] %v12679_v39  ;;  %v7203_v55 = vmul.f32 %v7139_v4, %v6755_v12  ;;  %v12690_v14 = vsub.f32 %v5740_v27, %v5804_v59  ;;  %v7059_v20 = vmul.f32 2.0, %v6995_v43  ;;  %v6164_v6 = vadd.f32 2.7557319e-06, %v6100_v48  ;;  %v5279_v27 = vpop.f32.mrf.mxu1  ;;  %v5302_v48 = vpop.f32.mrf.mxu2 }
 0x4d6   : > { %v6025_v13 = vmul.f32 1.6059044e-10, %v12683_v5  ;;  %v6692_v49 = vmul.f32 %v6628_v30, %v12160_v19  ;;  %v7140_v2 = vsub.f32 1.0, %v7076_v40  ;;  %v12695_v63 = vmul.f32 0.5, %v12660_v25 }
 0x4d7   : > { %15005 = vst [vmem:[#allocation58_spill] sm:$0xff] %v12690_v14  ;;  %7276 = vmatpush.msra.mxu0 %v7203_v55  ;;  %v5706_v4 = vmul.f32 3.140625, %v12687_v7  ;;  %v6419_v35 = vadd.f32 0.008333334, %v6355_v38  ;;  %v6228_v26 = vmul.f32 %v6164_v6, %v12174_v56  ;;  %v6932_v59 = vmul.f32 2.0, %v6868_v29 }
 0x4d8   : > { %v6089_v58 = vadd.f32 -2.5052108e-08, %v6025_v13  ;;  %v6756_v57 = vadd.f32 %v6692_v49, %v12160_v19  ;;  %v5834_v28 = vmul.f32 0.0009676536, %v12687_v7  ;;  %v12702_v12 = vadd.f32 %v5250_v46, %v12184_v23 }
 0x4d9   : > { %v5770_v43 = vsub.f32 %v5225_v32, %v5706_v4  ;;  %v6483_v61 = vmul.f32 %v6419_v35, %v12170_v0  ;;  %v7123_v62 = vsub.f32 1.0, %v7059_v20  ;;  %v6292_v21 = vadd.f32 -0.0001984127, %v6228_v26  ;;  %v5331_v32 = vpop.f32.mrf.mxu3 }
 0x4da   : > { %v6153_v40 = vmul.f32 %v6089_v58, %v12683_v5  ;;  %v7204_v55 = vmul.f32 %v7140_v2, %v6756_v57  ;;  %v5499_v29 = vmul.f32 0.31830987, %v12702_v12  ;;  %v12710_v19 = vadd.f32 %v5279_v27, %v12184_v23 }
 0x4db   : > { %v12706_v30 = vsub.f32 %v5770_v43, %v5834_v28  ;;  %v6547_v13 = vadd.f32 -0.16666667, %v6483_v61  ;;  %v6356_v6 = vmul.f32 %v6292_v21, %v12174_v56  ;;  %v6996_v49 = vsub.f32 %v12073_v8, %v6932_v59 }
 0x4dc   : > { %v6217_v38 = vadd.f32 2.7557319e-06, %v6153_v40  ;;  %7296 = vmatpush.msra.mxu1 %v7204_v55  ;;  %v5563_v2 = vadd.f32 0.5, %v5499_v29  ;;  %v5500_v4 = vmul.f32 0.31830987, %v12710_v19  ;;  %v12720_v46 = vadd.f32 %v5302_v48, %v12040_v3 }
 0x4dd   : > { %v12716_v20 = vmul.f32 %v12706_v30, %v12706_v30  ;;  %v6611_v35 = vmul.f32 %v6547_v13, %v12170_v0  ;;  %v6420_v26 = vadd.f32 0.008333334, %v6356_v6  ;;  %v12725_v27 = vadd.f32 %v5331_v32, %v12040_v3 }
 0x4de   : > { %v6281_v58 = vmul.f32 %v6217_v38, %v12683_v5  ;;  %v12728_v59 = vfloor.f32 %v5563_v2  ;;  %v5564_v57 = vadd.f32 0.5, %v5500_v4  ;;  %v5469_v43 = vmul.f32 0.31830987, %v12720_v46 }
 0x4df   : > { %v6026_v8 = vmul.f32 1.6059044e-10, %v12716_v20  ;;  %v6675_v40 = vmul.f32 %v6611_v35, %v12112_v60  ;;  %v6484_v61 = vmul.f32 %v6420_v26, %v12174_v56  ;;  %v7060_v21 = vmul.f32 2.0, %v6996_v49 }
 0x4e0   : > { %15006 = vst [vmem:[#allocation34_spill] sm:$0xff] %v12728_v59  ;;  %v6345_v28 = vadd.f32 -0.0001984127, %v6281_v58  ;;  %v5691_v0 = vmul.f32 3.140625, %v12728_v59  ;;  %v12734_v55 = vfloor.f32 %v5564_v57  ;;  %v5470_v29 = vmul.f32 0.31830987, %v12725_v27 }
 0x4e1   : > { %v6090_v48 = vadd.f32 -2.5052108e-08, %v6026_v8  ;;  %v6739_v38 = vadd.f32 %v6675_v40, %v12112_v60  ;;  %v6548_v13 = vadd.f32 -0.16666667, %v6484_v61  ;;  %v5533_v6 = vadd.f32 0.5, %v5469_v43 }
 0x4e2   : > { %15007 = vst [vmem:[#allocation63_spill] sm:$0xff] %v12734_v55  ;;  %v6409_v32 = vmul.f32 %v6345_v28, %v12683_v5  ;;  %v5755_v4 = vsub.f32 %v12702_v12, %v5691_v0  ;;  %v5819_v58 = vmul.f32 0.0009676536, %v12728_v59  ;;  %v5692_v49 = vmul.f32 3.140625, %v12734_v55  ;;  %v12747_v57 = vld [vmem:[%s13858_s6] sm:$0x1] }
 0x4e3   : > { %v6154_v2 = vmul.f32 %v6090_v48, %v12716_v20  ;;  %v7187_v26 = vmul.f32 %v7123_v62, %v6739_v38  ;;  %v6612_v8 = vmul.f32 %v6548_v13, %v12174_v56  ;;  %v12749_v60 = vfloor.f32 %v5533_v6 }
 0x4e4   : > { %v6473_v35 = vadd.f32 0.008333334, %v6409_v32  ;;  %v12753_v43 = vmul.f32 %v12679_v39, %v12679_v39  ;;  %v12756_v28 = vmul.f32 0.5, %v12687_v7  ;;  %v5534_v40 = vadd.f32 0.5, %v5470_v29 }
 0x4e5   : > { %15008 = vst [vmem:[#allocation70_spill] sm:$0xff] %v12749_v60  ;;  %v6218_v12 = vadd.f32 2.7557319e-06, %v6154_v2  ;;  %v12760_v62 = vmul.f32 %v12690_v14, %v12690_v14  ;;  %7277 = vmatpush.msra.mxu0 %v7187_v26  ;;  %v6676_v56 = vmul.f32 %v6612_v8, %v12114_v31  ;;  %v5756_v61 = vsub.f32 %v12710_v19, %v5692_v49  ;;  %v5253_v26 = vpop.f32.mrf.mxu0 }
 0x4e6   : > { %15009 = vst [vmem:[#allocation62_spill] sm:$0xff] %v12753_v43  ;;  %v5820_v48 = vmul.f32 0.0009676536, %v12734_v55  ;;  %v6537_v0 = vmul.f32 %v6473_v35, %v12683_v5  ;;  %v7124_v13 = vsub.f32 1.0, %v7060_v21  ;;  %7927 = vmatmul.msk.f32.vlgmr.msra.gmra.mxu0 %vm2686_vm2, %v12747_v57  ;;  %v12771_v6 = vsub.f32 %v5755_v4, %v5819_v58 }
 0x4e7   : > { %15010 = vst [vmem:[#allocation73_spill] sm:$0xff] %v12760_v62  ;;  %v6282_v38 = vmul.f32 %v6218_v12, %v12716_v20  ;;  %v6740_v29 = vadd.f32 %v6676_v56, %v12114_v31  ;;  %v5661_v2 = vmul.f32 3.140625, %v12749_v60  ;;  %v15012_v19 = vfloor.f32 %v12331_v52  ;;  %v15015_v52 = vld [vmem:[#allocation36_spill] sm:$0xff] }
 0x4e8   : > { %15011 = vst [vmem:[#allocation68_spill] sm:$0xff] %v12771_v6  ;;  %v12777_v32 = vfloor.f32 %v5534_v40  ;;  %v6837_v21 = vmul.f32 0.5, %v12229_v33  ;;  %v12780_v14 = vsub.f32 %v5756_v61, %v5820_v48  ;;  %v5789_v31 = vmul.f32 0.0009676536, %v12749_v60 }
 0x4e9   : > { %v6981_v49 = vmul.f32 2.0, %v15012_v19  ;;  %v6346_v8 = vadd.f32 -0.0001984127, %v6282_v38  ;;  %v7188_v12 = vmul.f32 %v7124_v13, %v6740_v29  ;;  %v6601_v58 = vadd.f32 -0.16666667, %v6537_v0  ;;  %v15018_v13 = vld [vmem:[#allocation38_spill] sm:$0xff] }
 0x4ea   : > { %15013 = vst [vmem:[#allocation15_spill] sm:$0xff] %v12777_v32  ;;  %v15016_v19 = vfloor.f32 %v15015_v52  ;;  %v5254_v38 = vadd.f32 %v5253_v26, %v12052_v51  ;;  %v12790_v40 = vmul.f32 %v12771_v6, %v12771_v6  ;;  %v5725_v61 = vsub.f32 %v12720_v46, %v5661_v2  ;;  %v15019_v0 = vld [vmem:[#allocation29_spill] sm:$0xff] }
 0x4eb   : > { %15014 = vst [vmem:[#allocation81_spill] sm:$0xff] %v12780_v14  ;;  %v7045_v4 = vsub.f32 %v12255_v50, %v6981_v49  ;;  %v6410_v56 = vmul.f32 %v6346_v8, %v12716_v20  ;;  %7297 = vmatpush.msra.mxu1 %v7188_v12  ;;  %v6005_v29 = vmul.f32 1.6059044e-10, %v15018_v13  ;;  %v5662_v50 = vmul.f32 3.140625, %v12777_v32 }
 0x4ec   : > { %v6982_v39 = vmul.f32 2.0, %v15016_v19  ;;  %15017 = vst [vmem:[#allocation25_spill] sm:$0xff] %v12790_v40  ;;  %7928 = vmatmul.msk.f32.vlgmr.msra.gmra.mxu1 %vm2686_vm2, %v12747_v57  ;;  %v5515_v8 = vmul.f32 0.31830987, %v5254_v38  ;;  %v12800_v26 = vmul.f32 %v12780_v14, %v12780_v14  ;;  %v6901_v19 = vfloor.f32 %v6837_v21 }
 0x4ed   : > { %v7109_v48 = vmul.f32 2.0, %v7045_v4  ;;  %v6474_v35 = vadd.f32 0.008333334, %v6410_v56  ;;  %v6069_v52 = vadd.f32 -2.5052108e-08, %v6005_v29  ;;  %v6665_v46 = vmul.f32 %v6601_v58, %v12683_v5 }
 0x4ee   : > { %v7046_v49 = vsub.f32 %v15019_v0, %v6982_v39  ;;  %15020 = vst [vmem:[#allocation79_spill] sm:$0xff] %v12800_v26  ;;  %v5579_v56 = vadd.f32 0.5, %v5515_v8  ;;  %v5790_v60 = vmul.f32 0.0009676536, %v12777_v32  ;;  %v15022_v0 = vld [vmem:[#allocation35_spill] sm:$0xff]  ;;  %v5726_v14 = vsub.f32 %v12725_v27, %v5662_v50 }
 0x4ef   : > { %v7173_v12 = vsub.f32 1.0, %v7109_v48  ;;  %v6538_v2 = vmul.f32 %v6474_v35, %v12716_v20  ;;  %v6133_v39 = vmul.f32 %v6069_v52, %v15018_v13  ;;  %v6006_v15 = vmul.f32 1.6059044e-10, %v15022_v0  ;;  %v5282_v52 = vpop.f32.mrf.mxu1 }
 0x4f0   : > { %v7110_v4 = vmul.f32 2.0, %v7046_v49  ;;  %v12809_v48 = vfloor.f32 %v5579_v56  ;;  %v6965_v21 = vmul.f32 2.0, %v6901_v19  ;;  %v12811_v5 = vsub.f32 %v5725_v61, %v5789_v31  ;;  %v15024_v19 = vld [vmem:[#allocation9_spill] sm:$0xff]  ;;  %v15025_v31 = vld [vmem:[#allocation22_spill] sm:$0xff] }
 0x4f1   : > { %v7237_v6 = vmul.f32 %v7173_v12, %v15021_v11  ;;  %v6602_v29 = vadd.f32 -0.16666667, %v6538_v2  ;;  %v6197_v35 = vadd.f32 2.7557319e-06, %v6133_v39  ;;  %v6070_v58 = vadd.f32 -2.5052108e-08, %v6006_v15 }
 0x4f2   : > { %v7174_v36 = vsub.f32 1.0, %v7110_v4  ;;  %15023 = vst [vmem:[#allocation37_spill] sm:$0xff] %v12811_v5  ;;  %v6729_v49 = vmul.f32 %v6665_v46, %v12674_v1  ;;  %v5707_v8 = vmul.f32 3.140625, %v12809_v48  ;;  %v5835_v12 = vmul.f32 0.0009676536, %v12809_v48 }
 0x4f3   : > { %7314 = vmatpush.msra.mxu2 %v7237_v6  ;;  %v5283_v27 = vadd.f32 %v5282_v52, %v12052_v51  ;;  %v6261_v50 = vmul.f32 %v6197_v35, %v15018_v13  ;;  %v6838_v2 = vmul.f32 0.5, %v15024_v19  ;;  %v5989_v61 = vmul.f32 1.6059044e-10, %v15025_v31 }
 0x4f4   : > { %v7238_v11 = vmul.f32 %v7174_v36, %v12540_v22  ;;  %v12821_v6 = vsub.f32 %v5726_v14, %v5790_v60  ;;  %v5771_v15 = vsub.f32 %v5254_v38, %v5707_v8  ;;  %v7029_v46 = vsub.f32 %v12229_v33, %v6965_v21 }
 0x4f5   : > { %v6134_v22 = vmul.f32 %v6070_v58, %v15022_v0  ;;  %v6666_v36 = vmul.f32 %v6602_v29, %v12716_v20  ;;  %v12828_v4 = vmul.f32 %v12811_v5, %v12811_v5  ;;  %v5516_v56 = vmul.f32 0.31830987, %v5283_v27 }
 0x4f6   : > { %15026 = vst [vmem:[#allocation14_spill] sm:$0xff] %v12821_v6  ;;  %7334 = vmatpush.msra.mxu3 %v7238_v11  ;;  %v6325_v39 = vadd.f32 -0.0001984127, %v6261_v50  ;;  %v12831_v35 = vadd.f32 %v6729_v49, %v12674_v1  ;;  %v12833_v52 = vsub.f32 %v5771_v15, %v5835_v12  ;;  %v12836_v14 = vmul.f32 0.5, %v12809_v48  ;;  %v15030_v50 = vld [vmem:[#allocation7_spill] sm:$0xff] }
 0x4f7   : > { %15027 = vst [vmem:[#allocation19_spill] sm:$0xff] %v12828_v4  ;;  %v6198_v60 = vadd.f32 2.7557319e-06, %v6134_v22  ;;  %v5580_v33 = vadd.f32 0.5, %v5516_v56  ;;  %v6902_v21 = vfloor.f32 %v6838_v2  ;;  %v6053_v20 = vadd.f32 -2.5052108e-08, %v5989_v61 }
 0x4f8   : > { %v6389_v38 = vmul.f32 %v6325_v39, %v15018_v13  ;;  %v12841_v29 = vmul.f32 %v12821_v6, %v12821_v6  ;;  %v12845_v58 = vmul.f32 %v12833_v52, %v12833_v52  ;;  %v7093_v1 = vmul.f32 2.0, %v7029_v46 }
 0x4f9   : > { %v6262_v49 = vmul.f32 %v6198_v60, %v15022_v0  ;;  %v6730_v11 = vmul.f32 %v6666_v36, %v12706_v30  ;;  %v12849_v8 = vfloor.f32 %v5580_v33  ;;  %v6821_v15 = vmul.f32 0.5, %v15030_v50  ;;  %v5305_v36 = vpop.f32.mrf.mxu2  ;;  %v5334_v33 = vpop.f32.mrf.mxu3 }
 0x4fa   : > { %15028 = vst [vmem:[#allocation43_spill] sm:$0xff] %v12841_v29  ;;  %v6453_v12 = vadd.f32 0.008333334, %v6389_v38  ;;  %v6027_v2 = vmul.f32 1.6059044e-10, %v12845_v58  ;;  %v6117_v56 = vmul.f32 %v6053_v20, %v15025_v31  ;;  %v6966_v6 = vmul.f32 2.0, %v6902_v21 }
 0x4fb   : > { %15029 = vst [vmem:[#allocation74_spill] sm:$0xff] %v12849_v8  ;;  %v6326_v22 = vadd.f32 -0.0001984127, %v6262_v49  ;;  %v5708_v39 = vmul.f32 3.140625, %v12849_v8  ;;  %v5836_v46 = vmul.f32 0.0009676536, %v12849_v8  ;;  %v12860_v29 = vadd.f32 %v5305_v36, %v12056_v53 }
 0x4fc   : > { %v6517_v60 = vmul.f32 %v6453_v12, %v15018_v13  ;;  %v6091_v5 = vadd.f32 -2.5052108e-08, %v6027_v2  ;;  %v7157_v38 = vsub.f32 1.0, %v7093_v1  ;;  %v12863_v20 = vadd.f32 %v5334_v33, %v12056_v53 }
 0x4fd   : > { %v6390_v32 = vmul.f32 %v6326_v22, %v15022_v0  ;;  %v5772_v61 = vsub.f32 %v5283_v27, %v5708_v39  ;;  %v6885_v4 = vfloor.f32 %v6821_v15  ;;  %v5485_v21 = vmul.f32 0.31830987, %v12860_v29 }
 0x4fe   : > { %v6581_v49 = vadd.f32 -0.16666667, %v6517_v60  ;;  %v6155_v62 = vmul.f32 %v6091_v5, %v12845_v58  ;;  %v6181_v12 = vadd.f32 2.7557319e-06, %v6117_v56  ;;  %v7030_v2 = vsub.f32 %v15024_v19, %v6966_v6  ;;  %v15031_v5 = vld [vmem:[#allocation39_spill] sm:$0xff] }
 0x4ff   : > { %v6454_v9 = vadd.f32 0.008333334, %v6390_v32  ;;  %v12867_v43 = vsub.f32 %v5772_v61, %v5836_v46  ;;  %v5486_v22 = vmul.f32 0.31830987, %v12863_v20  ;;  %v5549_v60 = vadd.f32 0.5, %v5485_v21  ;;  %v15032_v46 = vld [vmem:[#allocation46_spill] sm:$0xff] }
 0x500   : > { %v6645_v1 = vmul.f32 %v6581_v49, %v15018_v13  ;;  %v6219_v27 = vadd.f32 2.7557319e-06, %v6155_v62  ;;  %v6245_v15 = vmul.f32 %v6181_v12, %v15025_v31  ;;  %v5990_v36 = vmul.f32 1.6059044e-10, %v15032_v46 }
 0x501   : > { %v6518_v39 = vmul.f32 %v6454_v9, %v15022_v0  ;;  %v12876_v32 = vmul.f32 %v12867_v43, %v12867_v43  ;;  %v5550_v61 = vadd.f32 0.5, %v5486_v22  ;;  %v6949_v33 = vmul.f32 2.0, %v6885_v4 }
 0x502   : > { %v6709_v56 = vmul.f32 %v6645_v1, %v15031_v5  ;;  %v6283_v13 = vmul.f32 %v6219_v27, %v12845_v58  ;;  %v6309_v6 = vadd.f32 -0.0001984127, %v6245_v15  ;;  %v7094_v49 = vmul.f32 2.0, %v7030_v2  ;;  %v15037_v2 = vld [vmem:[#allocation51_spill] sm:$0xff] }
 0x503   : > { %v6582_v19 = vadd.f32 -0.16666667, %v6518_v39  ;;  %v6028_v62 = vmul.f32 1.6059044e-10, %v12876_v32  ;;  %v12883_v21 = vfloor.f32 %v5549_v60  ;;  %v12886_v12 = vadd.f32 %v6730_v11, %v12706_v30  ;;  %v15036_v39 = vld [vmem:[#allocation17_spill] sm:$0xff] }
 0x504   : > { %v6773_v9 = vadd.f32 %v6709_v56, %v15031_v5  ;;  %v6347_v55 = vadd.f32 -0.0001984127, %v6283_v13  ;;  %v12889_v22 = vfloor.f32 %v5550_v61  ;;  %v12892_v27 = vmul.f32 0.5, %v12849_v8 }
 0x505   : > { %15033 = vst [vmem:[#allocation41_spill] sm:$0xff] %v12883_v21  ;;  %v6646_v1 = vmul.f32 %v6582_v19, %v15022_v0  ;;  %v6092_v26 = vadd.f32 -2.5052108e-08, %v6028_v62  ;;  %v6822_v15 = vmul.f32 0.5, %v15036_v39  ;;  %v6373_v56 = vmul.f32 %v6309_v6, %v15025_v31 }
 0x506   : > { %15034 = vst [vmem:[#allocation67_spill] sm:$0xff] %v12889_v22  ;;  %v7221_v4 = vmul.f32 %v7157_v38, %v6773_v9  ;;  %v6411_v5 = vmul.f32 %v6347_v55, %v12845_v58  ;;  %v7013_v30 = vsub.f32 %v15030_v50, %v6949_v33  ;;  %v7158_v0 = vsub.f32 1.0, %v7094_v49 }
 0x507   : > { %15035 = vst [vmem:[#allocation36_spill] sm:$0xff] %v12892_v27  ;;  %v6710_v60 = vmul.f32 %v6646_v1, %v15037_v2  ;;  %v6156_v11 = vmul.f32 %v6092_v26, %v12876_v32  ;;  %v5677_v61 = vmul.f32 3.140625, %v12883_v21  ;;  %v6054_v13 = vadd.f32 -2.5052108e-08, %v5990_v36 }
 0x508   : > { %7315 = vmatpush.msra.mxu2 %v7221_v4  ;;  %v6475_v19 = vadd.f32 0.008333334, %v6411_v5  ;;  %v5678_v62 = vmul.f32 3.140625, %v12889_v22  ;;  %v6437_v9 = vadd.f32 0.008333334, %v6373_v56  ;;  %v6886_v59 = vfloor.f32 %v6822_v15  ;;  %v15038_v15 = vld [vmem:[#allocation48_spill] sm:$0xff] }
 0x509   : > { %v6774_v38 = vadd.f32 %v6710_v60, %v15037_v2  ;;  %v6220_v55 = vadd.f32 2.7557319e-06, %v6156_v11  ;;  %v6118_v6 = vmul.f32 %v6054_v13, %v15032_v46  ;;  %v5805_v26 = vmul.f32 0.0009676536, %v12883_v21 }
 0x50a   : > { %v6501_v33 = vmul.f32 %v6437_v9, %v15025_v31  ;;  %v7077_v49 = vmul.f32 2.0, %v7013_v30  ;;  %v6539_v36 = vmul.f32 %v6475_v19, %v12845_v58  ;;  %v5806_v5 = vmul.f32 0.0009676536, %v12889_v22  ;;  %v15039_v30 = vld [vmem:[#allocation71_spill] sm:$0xff]  ;;  %v5360_v19 = vpop.f32.mrf.mxu0 }
 0x50b   : > { %v7222_v50 = vmul.f32 %v7158_v0, %v6774_v38  ;;  %v6284_v4 = vmul.f32 %v6220_v55, %v12876_v32  ;;  %v6182_v2 = vadd.f32 2.7557319e-06, %v6118_v6  ;;  %v5741_v60 = vsub.f32 %v12860_v29, %v5677_v61  ;;  %v15040_v6 = vld [vmem:[#allocation20_spill] sm:$0xff] }
 0x50c   : > { %v5742_v56 = vsub.f32 %v12863_v20, %v5678_v62  ;;  %v6565_v11 = vadd.f32 -0.16666667, %v6501_v33  ;;  %v5973_v0 = vmul.f32 1.6059044e-10, %v15038_v15  ;;  %v6950_v9 = vmul.f32 2.0, %v6886_v59  ;;  %v15041_v62 = vld [vmem:[#allocation77_spill] sm:$0xff] }
 0x50d   : > { %7335 = vmatpush.msra.mxu3 %v7222_v50  ;;  %v6348_v13 = vadd.f32 -0.0001984127, %v6284_v4  ;;  %v6246_v38 = vmul.f32 %v6182_v2, %v15032_v46  ;;  %v6805_v1 = vmul.f32 0.5, %v15039_v30  ;;  %v7141_v21 = vsub.f32 1.0, %v7077_v49 }
 0x50e   : > { %v6629_v55 = vmul.f32 %v6565_v11, %v15025_v31  ;;  %v6037_v22 = vadd.f32 -2.5052108e-08, %v5973_v0  ;;  %v5974_v50 = vmul.f32 1.6059044e-10, %v15040_v6  ;;  %v6603_v40 = vadd.f32 -0.16666667, %v6539_v36 }
 0x50f   : > { %v6412_v29 = vmul.f32 %v6348_v13, %v12876_v32  ;;  %v6310_v20 = vadd.f32 -0.0001984127, %v6246_v38  ;;  %v6869_v61 = vfloor.f32 %v6805_v1  ;;  %v12921_v59 = vadd.f32 %v5360_v19, %v12040_v3  ;;  %v15044_v19 = vld [vmem:[#allocation56_spill] sm:$0xff] }
 0x510   : > { %v6693_v33 = vmul.f32 %v6629_v55, %v15041_v62  ;;  %v6101_v4 = vmul.f32 %v6037_v22, %v15038_v15  ;;  %v6038_v2 = vadd.f32 -2.5052108e-08, %v5974_v50  ;;  %v12923_v27 = vsub.f32 %v5741_v60, %v5805_v26  ;;  %v5389_v50 = vpop.f32.mrf.mxu1 }
 0x511   : > { %v6476_v8 = vadd.f32 0.008333334, %v6412_v29  ;;  %v6374_v31 = vmul.f32 %v6310_v20, %v15032_v46  ;;  %v7014_v49 = vsub.f32 %v15036_v39, %v6950_v9  ;;  %v12927_v36 = vsub.f32 %v5742_v56, %v5806_v5 }
 0x512   : > { %15042 = vst [vmem:[#allocation38_spill] sm:$0xff] %v12923_v27  ;;  %v6757_v11 = vadd.f32 %v6693_v33, %v15041_v62  ;;  %v6165_v1 = vadd.f32 2.7557319e-06, %v6101_v4  ;;  %v6102_v0 = vmul.f32 %v6038_v2, %v15040_v6  ;;  %v6667_v22 = vmul.f32 %v6603_v40, %v12845_v58 }
 0x513   : > { %15043 = vst [vmem:[#allocation29_spill] sm:$0xff] %v12927_v36  ;;  %v6438_v13 = vadd.f32 0.008333334, %v6374_v31  ;;  %v6933_v38 = vmul.f32 2.0, %v6869_v61  ;;  %v6806_v55 = vmul.f32 0.5, %v15044_v19  ;;  %v6540_v5 = vmul.f32 %v6476_v8, %v12876_v32 }
 0x514   : > { %v7205_v26 = vmul.f32 %v7141_v21, %v6757_v11  ;;  %v6229_v60 = vmul.f32 %v6165_v1, %v15038_v15  ;;  %v6166_v29 = vadd.f32 2.7557319e-06, %v6102_v0  ;;  %v5471_v39 = vmul.f32 0.31830987, %v12921_v59  ;;  %v5308_v21 = vpop.f32.mrf.mxu2 }
 0x515   : > { %v6502_v56 = vmul.f32 %v6438_v13, %v15032_v46  ;;  %v7078_v9 = vmul.f32 2.0, %v7014_v49  ;;  %v6870_v20 = vfloor.f32 %v6806_v55  ;;  %v12939_v61 = vadd.f32 %v5389_v50, %v12040_v3 }
 0x516   : > { %7316 = vmatpush.msra.mxu2 %v7205_v26  ;;  %v6293_v62 = vadd.f32 -0.0001984127, %v6229_v60  ;;  %v6230_v40 = vmul.f32 %v6166_v29, %v15040_v6  ;;  %v5535_v58 = vadd.f32 0.5, %v5471_v39  ;;  %v12943_v33 = vmul.f32 %v12923_v27, %v12923_v27  ;;  %v5337_v60 = vpop.f32.mrf.mxu3  ;;  %v15048_v29 = vld [vmem:[#allocation24_spill] sm:$0xff] }
 0x517   : > { %v6566_v4 = vadd.f32 -0.16666667, %v6502_v56  ;;  %v6997_v8 = vsub.f32 %v15039_v30, %v6933_v38  ;;  %v6934_v2 = vmul.f32 2.0, %v6870_v20  ;;  %v6731_v31 = vmul.f32 %v6667_v22, %v12833_v52 }
 0x518   : > { %15045 = vst [vmem:[#allocation69_spill] sm:$0xff] %v12943_v33  ;;  %v6357_v49 = vmul.f32 %v6293_v62, %v15038_v15  ;;  %v6294_v11 = vadd.f32 -0.0001984127, %v6230_v40  ;;  %v5472_v1 = vmul.f32 0.31830987, %v12939_v61  ;;  %v12951_v0 = vmul.f32 %v12927_v36, %v12927_v36  ;;  %v15078_v33 = vld [vmem:[#allocation28_spill] sm:$0xff] }
 0x519   : > { %v6630_v13 = vmul.f32 %v6566_v4, %v15032_v46  ;;  %v12954_v55 = vfloor.f32 %v5535_v58  ;;  %v12957_v50 = vadd.f32 %v5308_v21, %v12184_v23  ;;  %v6604_v30 = vadd.f32 -0.16666667, %v6540_v5 }
 0x51a   : > { %15046 = vst [vmem:[#allocation35_spill] sm:$0xff] %v12951_v0  ;;  %v7142_v38 = vsub.f32 1.0, %v7078_v9  ;;  %v6421_v26 = vadd.f32 0.008333334, %v6357_v49  ;;  %v6358_v22 = vmul.f32 %v6294_v11, %v15040_v6  ;;  %v7061_v56 = vmul.f32 2.0, %v6997_v8 }
 0x51b   : > { %15047 = vst [vmem:[#allocation9_spill] sm:$0xff] %v12954_v55  ;;  %v6694_v39 = vmul.f32 %v6630_v13, %v15048_v29  ;;  %v6998_v20 = vsub.f32 %v15044_v19, %v6934_v2  ;;  %v5536_v62 = vadd.f32 0.5, %v5472_v1  ;;  %v12963_v40 = vadd.f32 %v6731_v31, %v12833_v52 }
 0x51c   : > { %v6485_v46 = vmul.f32 %v6421_v26, %v15038_v15  ;;  %v6422_v58 = vadd.f32 0.008333334, %v6358_v22  ;;  %v5501_v21 = vmul.f32 0.31830987, %v12957_v50  ;;  %v5663_v9 = vmul.f32 3.140625, %v12954_v55 }
 0x51d   : > { %v6758_v5 = vadd.f32 %v6694_v39, %v15048_v29  ;;  %v12969_v4 = vfloor.f32 %v5536_v62  ;;  %v12972_v49 = vadd.f32 %v5337_v60, %v12184_v23  ;;  %v6668_v19 = vmul.f32 %v6604_v30, %v12876_v32  ;;  %v15051_v30 = vld [vmem:[#allocation78_spill] sm:$0xff] }
 0x51e   : > { %v6549_v8 = vadd.f32 -0.16666667, %v6485_v46  ;;  %v6486_v52 = vmul.f32 %v6422_v58, %v15040_v6  ;;  %v5565_v2 = vadd.f32 0.5, %v5501_v21  ;;  %v7125_v11 = vsub.f32 1.0, %v7061_v56  ;;  %v15053_v58 = vld [vmem:[#allocation65_spill] sm:$0xff]  ;;  %v15055_v21 = vld [vmem:[#allocation11_spill] sm:$0xff] }
 0x51f   : > { %15049 = vst [vmem:[#allocation22_spill] sm:$0xff] %v12969_v4  ;;  %v7206_v31 = vmul.f32 %v7142_v38, %v6758_v5  ;;  %v7062_v1 = vmul.f32 2.0, %v6998_v20  ;;  %v5502_v13 = vmul.f32 0.31830987, %v12972_v49  ;;  %v5664_v29 = vmul.f32 3.140625, %v12969_v4 }
 0x520   : > { %v6613_v26 = vmul.f32 %v6549_v8, %v15038_v15  ;;  %v6550_v22 = vadd.f32 -0.16666667, %v6486_v52  ;;  %v12979_v39 = vfloor.f32 %v5565_v2  ;;  %v5727_v60 = vsub.f32 %v12921_v59, %v5663_v9  ;;  %v15056_v59 = vld [vmem:[#allocation55_spill] sm:$0xff] }
 0x521   : > { %7336 = vmatpush.msra.mxu3 %v7206_v31  ;;  %v5566_v32 = vadd.f32 0.5, %v5502_v13  ;;  %v15052_v62 = vfloor.f32 %v15051_v30  ;;  %v15054_v38 = vfloor.f32 %v15053_v58  ;;  %v12987_v20 = vmul.f32 %v6668_v19, %v12867_v43  ;;  %v15057_v31 = vld [vmem:[#allocation60_spill] sm:$0xff] }
 0x522   : > { %15050 = vst [vmem:[#allocation7_spill] sm:$0xff] %v12979_v39  ;;  %v6677_v15 = vmul.f32 %v6613_v26, %v15055_v21  ;;  %v6614_v5 = vmul.f32 %v6550_v22, %v15040_v6  ;;  %v5791_v8 = vmul.f32 0.0009676536, %v12954_v55  ;;  %v7126_v52 = vsub.f32 1.0, %v7062_v1 }
 0x523   : > { %v6983_v46 = vmul.f32 2.0, %v15052_v62  ;;  %v6984_v56 = vmul.f32 2.0, %v15054_v38  ;;  %v5693_v2 = vmul.f32 3.140625, %v12979_v39  ;;  %v15058_v62 = vld [vmem:[#allocation75_spill] sm:$0xff]  ;;  %v5728_v19 = vsub.f32 %v12939_v61, %v5664_v29  ;;  %v15059_v38 = vld [vmem:[#allocation32_spill] sm:$0xff]  ;;  %v15062_v61 = vld [vmem:[#allocation18_spill] sm:$0xff] }
 0x524   : > { %v6741_v30 = vadd.f32 %v6677_v15, %v15055_v21  ;;  %v6678_v58 = vmul.f32 %v6614_v5, %v15058_v62  ;;  %v6007_v36 = vmul.f32 1.6059044e-10, %v15059_v38  ;;  %v12999_v26 = vsub.f32 %v5727_v60, %v5791_v8 }
 0x525   : > { %v7047_v9 = vsub.f32 %v15056_v59, %v6983_v46  ;;  %v7048_v13 = vsub.f32 %v15057_v31, %v6984_v56  ;;  %v5792_v6 = vmul.f32 0.0009676536, %v12969_v4  ;;  %v13002_v22 = vfloor.f32 %v5566_v32  ;;  %v5363_v31 = vpop.f32.mrf.mxu0  ;;  %v15064_v4 = vld [vmem:[#allocation59_spill] sm:$0xff] }
 0x526   : > { %15060 = vst [vmem:[#allocation39_spill] sm:$0xff] %v12999_v26  ;;  %v7189_v55 = vmul.f32 %v7125_v11, %v6741_v30  ;;  %v6742_v46 = vadd.f32 %v6678_v58, %v15058_v62  ;;  %v5821_v56 = vmul.f32 0.0009676536, %v12979_v39  ;;  %v5757_v21 = vsub.f32 %v12957_v50, %v5693_v2  ;;  %v5392_v11 = vpop.f32.mrf.mxu1  ;;  %v15065_v30 = vld [vmem:[#allocation76_spill] sm:$0xff] }
 0x527   : > { %15061 = vst [vmem:[#allocation46_spill] sm:$0xff] %v13002_v22  ;;  %v7111_v1 = vmul.f32 2.0, %v7047_v9  ;;  %v7112_v59 = vmul.f32 2.0, %v7048_v13  ;;  %v6071_v5 = vadd.f32 -2.5052108e-08, %v6007_v36  ;;  %v6839_v29 = vmul.f32 0.5, %v15062_v61 }
 0x528   : > { %7317 = vmatpush.msra.mxu2 %v7189_v55  ;;  %v7190_v60 = vmul.f32 %v7126_v52, %v6742_v46  ;;  %v13008_v8 = vsub.f32 %v5728_v19, %v5792_v6  ;;  %v6008_v9 = vmul.f32 1.6059044e-10, %v15064_v4  ;;  %v5694_v13 = vmul.f32 3.140625, %v13002_v22 }
 0x529   : > { %v7175_v15 = vsub.f32 1.0, %v7111_v1  ;;  %v7176_v32 = vsub.f32 1.0, %v7112_v59  ;;  %7929 = vmatmul.msk.f32.vlgmr.msra.gmra.mxu2 %vm2686_vm2, %v12747_v57  ;;  %v6135_v36 = vmul.f32 %v6071_v5, %v15059_v38  ;;  %v6903_v2 = vfloor.f32 %v6839_v29 }
 0x52a   : > { %15063 = vst [vmem:[#allocation17_spill] sm:$0xff] %v13008_v8  ;;  %7337 = vmatpush.msra.mxu3 %v7190_v60  ;;  %v6072_v52 = vadd.f32 -2.5052108e-08, %v6008_v9  ;;  %v6840_v62 = vmul.f32 0.5, %v15065_v30  ;;  %v13019_v58 = vadd.f32 %v5363_v31, %v12056_v53  ;;  %v13023_v19 = vsub.f32 %v5757_v21, %v5821_v56  ;;  %v15068_v21 = vld [vmem:[#allocation13_spill] sm:$0xff] }
 0x52b   : > { %v7239_v50 = vmul.f32 %v7175_v15, %v12631_v44  ;;  %v7240_v55 = vmul.f32 %v7176_v32, %v12650_v18  ;;  %7930 = vmatmul.msk.f32.vlgmr.msra.gmra.mxu3 %vm2686_vm2, %v12747_v57  ;;  %v6199_v6 = vadd.f32 2.7557319e-06, %v6135_v36  ;;  %v6967_v44 = vmul.f32 2.0, %v6903_v2  ;;  %v15067_v15 = vld [vmem:[#allocation57_spill] sm:$0xff] }
 0x52c   : > { %15066 = vst [vmem:[#allocation51_spill] sm:$0xff] %v13023_v19  ;;  %v13026_v1 = vadd.f32 %v5392_v11, %v12056_v53  ;;  %v6136_v18 = vmul.f32 %v6072_v52, %v15064_v4  ;;  %v6904_v46 = vfloor.f32 %v6840_v62  ;;  %v5487_v59 = vmul.f32 0.31830987, %v13019_v58 }
 0x52d   : > { %7354 = vmatpush.msrb.mxu0 %v7239_v50  ;;  %7374 = vmatpush.msrb.mxu1 %v7240_v55  ;;  %v5991_v5 = vmul.f32 1.6059044e-10, %v15067_v15  ;;  %v6263_v29 = vmul.f32 %v6199_v6, %v15059_v38  ;;  %v7031_v31 = vsub.f32 %v15062_v61, %v6967_v44  ;;  %v6823_v60 = vmul.f32 0.5, %v15068_v21 }
 0x52e   : > { %v5488_v56 = vmul.f32 0.31830987, %v13026_v1  ;;  %v6200_v32 = vadd.f32 2.7557319e-06, %v6136_v18  ;;  %v6968_v9 = vmul.f32 2.0, %v6904_v46  ;;  %v5551_v11 = vadd.f32 0.5, %v5487_v59 }
 0x52f   : > { %v6055_v50 = vadd.f32 -2.5052108e-08, %v5991_v5  ;;  %v5758_v36 = vsub.f32 %v12972_v49, %v5694_v13  ;;  %v6327_v2 = vadd.f32 -0.0001984127, %v6263_v29  ;;  %v13036_v55 = vmul.f32 2.0, %v7031_v31 }
 0x530   : > { %v5552_v52 = vadd.f32 0.5, %v5488_v56  ;;  %v6264_v62 = vmul.f32 %v6200_v32, %v15064_v4  ;;  %v7032_v6 = vsub.f32 %v15065_v30, %v6968_v9  ;;  %v6887_v44 = vfloor.f32 %v6823_v60 }
 0x531   : > { %v6119_v61 = vmul.f32 %v6055_v50, %v15067_v15  ;;  %v13043_v27 = vadd.f32 %v12987_v20, %v12867_v43  ;;  %v5822_v18 = vmul.f32 0.0009676536, %v13002_v22  ;;  %v6391_v46 = vmul.f32 %v6327_v2, %v15059_v38  ;;  %v15079_v22 = vld [vmem:[#allocation27_spill] sm:$0xff] }
 0x532   : > { %v13047_v49 = vfloor.f32 %v5551_v11  ;;  %v13051_v13 = vmul.f32 %v12999_v26, %v12999_v26  ;;  %v13055_v30 = vmul.f32 %v13008_v8, %v13008_v8  ;;  %v6328_v59 = vadd.f32 -0.0001984127, %v6264_v62 }
 0x533   : > { %v13057_v5 = vfloor.f32 %v5552_v52  ;;  %v13061_v43 = vmul.f32 %v13023_v19, %v13023_v19  ;;  %v13063_v20 = vsub.f32 %v5758_v36, %v5822_v18  ;;  %v6455_v29 = vadd.f32 0.008333334, %v6391_v46  ;;  %v15075_v52 = vld [vmem:[#allocation31_spill] sm:$0xff] }
 0x534   : > { %15069 = vst [vmem:[#allocation48_spill] sm:$0xff] %v13047_v49  ;;  %v7159_v31 = vsub.f32 1.0, %v13036_v55  ;;  %v6392_v56 = vmul.f32 %v6328_v59, %v15064_v4  ;;  %v7096_v60 = vmul.f32 2.0, %v7032_v6  ;;  %v6183_v32 = vadd.f32 2.7557319e-06, %v6119_v61  ;;  %v15076_v55 = vld [vmem:[#allocation44_spill] sm:$0xff]  ;;  %v5311_v59 = vpop.f32.mrf.mxu2 }
 0x535   : > { %15070 = vst [vmem:[#allocation71_spill] sm:$0xff] %v13051_v13  ;;  %v6951_v9 = vmul.f32 2.0, %v6887_v44  ;;  %v6519_v11 = vmul.f32 %v6455_v29, %v15059_v38  ;;  %v5679_v50 = vmul.f32 3.140625, %v13047_v49  ;;  %v5807_v2 = vmul.f32 0.0009676536, %v13047_v49 }
 0x536   : > { %15071 = vst [vmem:[#allocation20_spill] sm:$0xff] %v13055_v30  ;;  %v5992_v62 = vmul.f32 1.6059044e-10, %v15075_v52  ;;  %v6456_v8 = vadd.f32 0.008333334, %v6392_v56  ;;  %v13072_v36 = vmul.f32 3.140625, %v13057_v5  ;;  %v6247_v18 = vmul.f32 %v6183_v32, %v15067_v15 }
 0x537   : > { %15072 = vst [vmem:[#allocation77_spill] sm:$0xff] %v13057_v5  ;;  %v6824_v46 = vmul.f32 0.5, %v15076_v55  ;;  %v13078_v6 = vmul.f32 %v13063_v20, %v13063_v20  ;;  %v6583_v61 = vadd.f32 -0.16666667, %v6519_v11  ;;  %v13081_v44 = vmul.f32 0.0009676536, %v13057_v5 }
 0x538   : > { %15073 = vst [vmem:[#allocation56_spill] sm:$0xff] %v13061_v43  ;;  %v6056_v29 = vadd.f32 -2.5052108e-08, %v5992_v62  ;;  %v6520_v26 = vmul.f32 %v6456_v8, %v15064_v4  ;;  %v6311_v56 = vadd.f32 -0.0001984127, %v6247_v18  ;;  %v7015_v30 = vsub.f32 %v15068_v21, %v6951_v9  ;;  %v15080_v21 = vld [vmem:[#allocation80_spill] sm:$0xff] }
 0x539   : > { %15074 = vst [vmem:[#allocation24_spill] sm:$0xff] %v13063_v20  ;;  %v6888_v13 = vfloor.f32 %v6824_v46  ;;  %v6647_v32 = vmul.f32 %v6583_v61, %v15059_v38  ;;  %v7160_v49 = vsub.f32 1.0, %v7096_v60  ;;  %v5312_v0 = vadd.f32 %v5311_v59, %v12052_v51 }
 0x53a   : > { %15077 = vst [vmem:[#allocation78_spill] sm:$0xff] %v13078_v6  ;;  %v6120_v19 = vmul.f32 %v6056_v29, %v15075_v52  ;;  %v6584_v20 = vadd.f32 -0.16666667, %v6520_v26  ;;  %v5743_v11 = vsub.f32 %v13019_v58, %v5679_v50  ;;  %v6375_v5 = vmul.f32 %v6311_v56, %v15067_v15  ;;  %v15081_v29 = vld [vmem:[#allocation52_spill] sm:$0xff] }
 0x53b   : > { %v5975_v62 = vmul.f32 1.6059044e-10, %v15078_v33  ;;  %v6711_v8 = vmul.f32 %v6647_v32, %v15079_v22  ;;  %v5517_v6 = vmul.f32 0.31830987, %v5312_v0  ;;  %v6807_v9 = vmul.f32 0.5, %v15080_v21 }
 0x53c   : > { %v6184_v18 = vadd.f32 2.7557319e-06, %v6120_v19  ;;  %v6648_v38 = vmul.f32 %v6584_v20, %v15064_v4  ;;  %v6439_v60 = vadd.f32 0.008333334, %v6375_v5  ;;  %v6952_v46 = vmul.f32 2.0, %v6888_v13 }
 0x53d   : > { %v6039_v61 = vadd.f32 -2.5052108e-08, %v5975_v62  ;;  %v6775_v59 = vadd.f32 %v6711_v8, %v15079_v22  ;;  %v5581_v58 = vadd.f32 0.5, %v5517_v6  ;;  %v6871_v50 = vfloor.f32 %v6807_v9 }
 0x53e   : > { %v6248_v26 = vmul.f32 %v6184_v18, %v15075_v52  ;;  %v6712_v56 = vmul.f32 %v6648_v38, %v15081_v29  ;;  %v5744_v32 = vsub.f32 %v13026_v1, %v13072_v36  ;;  %v6503_v19 = vmul.f32 %v6439_v60, %v15067_v15  ;;  %v5340_v18 = vpop.f32.mrf.mxu3 }
 0x53f   : > { %v6103_v39 = vmul.f32 %v6039_v61, %v15078_v33  ;;  %v7223_v43 = vmul.f32 %v7159_v31, %v6775_v59  ;;  %v7079_v4 = vmul.f32 2.0, %v7015_v30  ;;  %v13101_v13 = vfloor.f32 %v5581_v58 }
 0x540   : > { %v6312_v5 = vadd.f32 -0.0001984127, %v6248_v26  ;;  %v6776_v22 = vadd.f32 %v6712_v56, %v15081_v29  ;;  %v13104_v20 = vsub.f32 %v5743_v11, %v5807_v2  ;;  %v6567_v6 = vadd.f32 -0.16666667, %v6503_v19  ;;  %v15083_v26 = vld [vmem:[#allocation23_spill] sm:$0xff] }
 0x541   : > { %v6167_v62 = vadd.f32 2.7557319e-06, %v6103_v39  ;;  %7355 = vmatpush.msrb.mxu0 %v7223_v43  ;;  %v7016_v1 = vsub.f32 %v15076_v55, %v6952_v46  ;;  %v5709_v36 = vmul.f32 3.140625, %v13101_v13  ;;  %v6935_v9 = vmul.f32 2.0, %v6871_v50  ;;  %v15082_v43 = vld [vmem:[#allocation10_spill] sm:$0xff] }
 0x542   : > { %v6376_v8 = vmul.f32 %v6312_v5, %v15075_v52  ;;  %v7224_v31 = vmul.f32 %v7160_v49, %v6776_v22  ;;  %v6631_v30 = vmul.f32 %v6567_v6, %v15067_v15  ;;  %v5341_v38 = vadd.f32 %v5340_v18, %v12052_v51 }
 0x543   : > { %v6231_v60 = vmul.f32 %v6167_v62, %v15078_v33  ;;  %v7143_v2 = vsub.f32 1.0, %v7079_v4  ;;  %v5773_v61 = vsub.f32 %v5312_v0, %v5709_v36  ;;  %v5837_v39 = vmul.f32 0.0009676536, %v13101_v13  ;;  %v15085_v62 = vld [vmem:[#allocation64_spill] sm:$0xff] }
 0x544   : > { %v6440_v11 = vadd.f32 0.008333334, %v6376_v8  ;;  %7375 = vmatpush.msrb.mxu1 %v7224_v31  ;;  %v6695_v59 = vmul.f32 %v6631_v30, %v15082_v43  ;;  %v5518_v55 = vmul.f32 0.31830987, %v5341_v38  ;;  %v5976_v58 = vmul.f32 1.6059044e-10, %v15083_v26 }
 0x545   : > { %v6295_v46 = vadd.f32 -0.0001984127, %v6231_v60  ;;  %v7080_v50 = vmul.f32 2.0, %v7016_v1  ;;  %v13116_v15 = vsub.f32 %v5773_v61, %v5837_v39  ;;  %v6999_v29 = vsub.f32 %v15080_v21, %v6935_v9  ;;  %v5366_v61 = vpop.f32.mrf.mxu0  ;;  %v15086_v39 = vld [vmem:[#allocation50_spill] sm:$0xff] }
 0x546   : > { %v6504_v49 = vmul.f32 %v6440_v11, %v15075_v52  ;;  %v6759_v56 = vadd.f32 %v6695_v59, %v15082_v43  ;;  %v5582_v19 = vadd.f32 0.5, %v5518_v55  ;;  %v6040_v4 = vadd.f32 -2.5052108e-08, %v5976_v58  ;;  %v5395_v58 = vpop.f32.mrf.mxu1 }
 0x547   : > { %v6359_v0 = vmul.f32 %v6295_v46, %v15078_v33  ;;  %v13122_v5 = vsub.f32 %v5744_v32, %v13081_v44  ;;  %v13126_v6 = vmul.f32 %v13116_v15, %v13116_v15  ;;  %v6808_v8 = vmul.f32 0.5, %v15085_v62 }
 0x548   : > { %v6568_v22 = vadd.f32 -0.16666667, %v6504_v49  ;;  %v7207_v1 = vmul.f32 %v7143_v2, %v6759_v56  ;;  %v13129_v36 = vfloor.f32 %v5582_v19  ;;  %v6104_v18 = vmul.f32 %v6040_v4, %v15083_v26 }
 0x549   : > { %15084 = vst [vmem:[#allocation65_spill] sm:$0xff] %v13122_v5  ;;  %v6423_v21 = vadd.f32 0.008333334, %v6359_v0  ;;  %v13134_v9 = vmul.f32 %v13104_v20, %v13104_v20  ;;  %v6029_v32 = vmul.f32 1.6059044e-10, %v13126_v6  ;;  %v7063_v31 = vmul.f32 2.0, %v6999_v29 }
 0x54a   : > { %v6632_v44 = vmul.f32 %v6568_v22, %v15075_v52  ;;  %7356 = vmatpush.msrb.mxu0 %v7207_v1  ;;  %v7144_v30 = vsub.f32 1.0, %v7080_v50  ;;  %v13139_v60 = vmul.f32 0.5, %v13101_v13  ;;  %v5710_v2 = vmul.f32 3.140625, %v13129_v36 }
 0x54b   : > { %v6487_v11 = vmul.f32 %v6423_v21, %v15078_v33  ;;  %v6093_v59 = vadd.f32 -2.5052108e-08, %v6029_v32  ;;  %v6168_v55 = vadd.f32 2.7557319e-06, %v6104_v18  ;;  %v6872_v46 = vfloor.f32 %v6808_v8 }
 0x54c   : > { %v6696_v43 = vmul.f32 %v6632_v44, %v15086_v39  ;;  %v5774_v52 = vsub.f32 %v5341_v38, %v5710_v2  ;;  %v5838_v49 = vmul.f32 0.0009676536, %v13129_v36  ;;  %v5367_v50 = vadd.f32 %v5366_v61, %v12184_v23  ;;  %v5418_v38 = vpop.f32.mrf.mxu2 }
 0x54d   : > { %v6551_v29 = vadd.f32 -0.16666667, %v6487_v11  ;;  %v6157_v19 = vmul.f32 %v6093_v59, %v13126_v6  ;;  %v7127_v0 = vsub.f32 1.0, %v7063_v31  ;;  %v6232_v4 = vmul.f32 %v6168_v55, %v15083_v26  ;;  %v15087_v31 = vld [vmem:[#allocation72_spill] sm:$0xff]  ;;  %v5447_v59 = vpop.f32.mrf.mxu3 }
 0x54e   : > { %v6760_v56 = vadd.f32 %v6696_v43, %v15086_v39  ;;  %v13149_v22 = vsub.f32 %v5774_v52, %v5838_v49  ;;  %v5503_v21 = vmul.f32 0.31830987, %v5367_v50  ;;  %v13153_v8 = vadd.f32 %v5395_v58, %v12184_v23 }
 0x54f   : > { %v6615_v1 = vmul.f32 %v6551_v29, %v15078_v33  ;;  %v6221_v44 = vadd.f32 2.7557319e-06, %v6157_v19  ;;  %v6296_v32 = vadd.f32 -0.0001984127, %v6232_v4  ;;  %v6936_v2 = vmul.f32 2.0, %v6872_v46 }
 0x550   : > { %v7208_v18 = vmul.f32 %v7144_v30, %v6760_v56  ;;  %v13157_v11 = vmul.f32 %v13149_v22, %v13149_v22  ;;  %v5567_v39 = vadd.f32 0.5, %v5503_v21  ;;  %v5504_v43 = vmul.f32 0.31830987, %v13153_v8 }
 0x551   : > { %v6679_v61 = vmul.f32 %v6615_v1, %v15087_v31  ;;  %v6285_v33 = vmul.f32 %v6221_v44, %v13126_v6  ;;  %v13163_v55 = vmul.f32 0.5, %v13129_v36  ;;  %v6360_v30 = vmul.f32 %v6296_v32, %v15083_v26 }
 0x552   : > { %7376 = vmatpush.msrb.mxu1 %v7208_v18  ;;  %v13167_v46 = vadd.f32 %v5418_v38, %v12040_v3  ;;  %v6030_v58 = vmul.f32 1.6059044e-10, %v13157_v11  ;;  %v13171_v49 = vfloor.f32 %v5567_v39  ;;  %v5568_v29 = vadd.f32 0.5, %v5504_v43 }
 0x553   : > { %v6743_v52 = vadd.f32 %v6679_v61, %v15087_v31  ;;  %v6349_v56 = vadd.f32 -0.0001984127, %v6285_v33  ;;  %v6424_v19 = vadd.f32 0.008333334, %v6360_v30  ;;  %v13175_v1 = vadd.f32 %v5447_v59, %v12040_v3 }
 0x554   : > { %v5473_v4 = vmul.f32 0.31830987, %v13167_v46  ;;  %v6094_v21 = vadd.f32 -2.5052108e-08, %v6030_v58  ;;  %v7000_v44 = vsub.f32 %v15085_v62, %v6936_v2  ;;  %v5695_v38 = vmul.f32 3.140625, %v13171_v49 }
 0x555   : > { %15088 = vst [vmem:[#allocation11_spill] sm:$0xff] %v13175_v1  ;;  %v7191_v18 = vmul.f32 %v7127_v0, %v6743_v52  ;;  %v6413_v32 = vmul.f32 %v6349_v56, %v13126_v6  ;;  %v6488_v31 = vmul.f32 %v6424_v19, %v15083_v26  ;;  %v13181_v61 = vfloor.f32 %v5568_v29 }
 0x556   : > { %v5537_v39 = vadd.f32 0.5, %v5473_v4  ;;  %v6158_v43 = vmul.f32 %v6094_v21, %v13157_v11  ;;  %v5759_v33 = vsub.f32 %v5367_v50, %v5695_v38  ;;  %v5823_v3 = vmul.f32 0.0009676536, %v13171_v49 }
 0x557   : > { %7357 = vmatpush.msrb.mxu0 %v7191_v18  ;;  %v5474_v59 = vmul.f32 0.31830987, %v13175_v1  ;;  %v6477_v0 = vadd.f32 0.008333334, %v6413_v32  ;;  %v6552_v30 = vadd.f32 -0.16666667, %v6488_v31  ;;  %v15090_v56 = vfloor.f32 %v12695_v63 }
 0x558   : > { %7931 = vmatmul.msk.f32.vlgmr.msrb.gmra.mxu0 %vm2686_vm2, %v12747_v57  ;;  %v5696_v62 = vmul.f32 3.140625, %v13181_v61  ;;  %v13189_v2 = vfloor.f32 %v5537_v39  ;;  %v6222_v58 = vadd.f32 2.7557319e-06, %v6158_v43  ;;  %v7064_v52 = vmul.f32 2.0, %v7000_v44  ;;  %v15091_v31 = vld [vmem:[#allocation40_spill] sm:$0xff] }
 0x559   : > { %v5538_v29 = vadd.f32 0.5, %v5474_v59  ;;  %v6985_v19 = vmul.f32 2.0, %v15090_v56  ;;  %v13195_v50 = vmul.f32 %v13122_v5, %v13122_v5  ;;  %v6541_v4 = vmul.f32 %v6477_v0, %v13126_v6 }
 0x55a   : > { %15089 = vst [vmem:[#allocation55_spill] sm:$0xff] %v13189_v2  ;;  %v6616_v21 = vmul.f32 %v6552_v30, %v15083_v26  ;;  %v13199_v18 = vsub.f32 %v5759_v33, %v5823_v3  ;;  %v6286_v38 = vmul.f32 %v6222_v58, %v13157_v11  ;;  %v5760_v44 = vsub.f32 %v13153_v8, %v5696_v62  ;;  %v5369_v30 = vpop.f32.mrf.mxu0 }
 0x55b   : > { %v6841_v32 = vmul.f32 0.5, %v12553_v45  ;;  %v5665_v43 = vmul.f32 3.140625, %v13189_v2  ;;  %v13208_v59 = vfloor.f32 %v5538_v29  ;;  %v7128_v26 = vsub.f32 1.0, %v7064_v52 }
 0x55c   : > { %v6680_v39 = vmul.f32 %v6616_v21, %v15091_v31  ;;  %v6350_v0 = vadd.f32 -0.0001984127, %v6286_v38  ;;  %v5824_v33 = vmul.f32 0.0009676536, %v13181_v61  ;;  %v7049_v3 = vsub.f32 %v12660_v25, %v6985_v19 }
 0x55d   : > { %15092 = vst [vmem:[#allocation60_spill] sm:$0xff] %v13208_v59  ;;  %v6605_v58 = vadd.f32 -0.16666667, %v6541_v4  ;;  %v13215_v62 = vmul.f32 %v13199_v18, %v13199_v18  ;;  %v5793_v56 = vmul.f32 0.0009676536, %v13189_v2  ;;  %v15093_v52 = vfloor.f32 %v12756_v28 }
 0x55e   : > { %v6744_v8 = vadd.f32 %v6680_v39, %v15091_v31  ;;  %v6414_v21 = vmul.f32 %v6350_v0, %v13157_v11  ;;  %v13219_v29 = vsub.f32 %v5760_v44, %v5824_v33  ;;  %v7113_v38 = vmul.f32 2.0, %v7049_v3 }
 0x55f   : > { %v6986_v63 = vmul.f32 2.0, %v15093_v52  ;;  %v5729_v25 = vsub.f32 %v13167_v46, %v5665_v43  ;;  %v13225_v19 = vmul.f32 3.140625, %v13208_v59  ;;  %v5370_v4 = vadd.f32 %v5369_v30, %v12052_v51  ;;  %v13238_v43 = vld [vmem:[%s13858_s6] sm:$0x1] }
 0x560   : > { %v7192_v57 = vmul.f32 %v7128_v26, %v6744_v8  ;;  %v6478_v31 = vadd.f32 0.008333334, %v6414_v21  ;;  %v13229_v39 = vmul.f32 0.0009676536, %v13208_v59  ;;  %v7177_v2 = vsub.f32 1.0, %v7113_v38 }
 0x561   : > { %15094 = vst [vmem:[#allocation75_spill] sm:$0xff] %v13225_v19  ;;  %v7050_v44 = vsub.f32 %v12687_v7, %v6986_v63  ;;  %v6669_v0 = vmul.f32 %v6605_v58, %v13126_v6  ;;  %v5519_v28 = vmul.f32 0.31830987, %v5370_v4  ;;  %v6009_v26 = vmul.f32 1.6059044e-10, %v12623_v16 }
 0x562   : > { %15095 = vst [vmem:[#allocation32_spill] sm:$0xff] %v13229_v39  ;;  %7377 = vmatpush.msrb.mxu1 %v7192_v57  ;;  %v6905_v33 = vfloor.f32 %v6841_v32  ;;  %v6542_v46 = vmul.f32 %v6478_v31, %v13157_v11  ;;  %v13244_v7 = vmul.f32 %v13219_v29, %v13219_v29  ;;  %v7241_v6 = vmul.f32 %v7177_v2, %v12831_v35 }
 0x563   : > { %7932 = vmatmul.msk.f32.vlgmr.msrb.gmra.mxu1 %vm2686_vm2, %v13238_v43  ;;  %v7114_v57 = vmul.f32 2.0, %v7050_v44  ;;  %v5583_v63 = vadd.f32 0.5, %v5519_v28  ;;  %v6073_v3 = vadd.f32 -2.5052108e-08, %v6009_v26  ;;  %v6010_v30 = vmul.f32 1.6059044e-10, %v12636_v41 }
 0x564   : > { %v6969_v32 = vmul.f32 2.0, %v6905_v33  ;;  %v6606_v58 = vadd.f32 -0.16666667, %v6542_v46  ;;  %7394 = vmatpush.msrb.mxu2 %v7241_v6  ;;  %v6842_v21 = vmul.f32 0.5, %v12563_v34  ;;  %v5993_v38 = vmul.f32 1.6059044e-10, %v12568_v24  ;;  %v5398_v6 = vpop.f32.mrf.mxu1 }
 0x565   : > { %v7178_v8 = vsub.f32 1.0, %v7114_v57  ;;  %v13250_v52 = vsub.f32 %v5729_v25, %v5793_v56  ;;  %v13252_v31 = vfloor.f32 %v5583_v63  ;;  %v6137_v59 = vmul.f32 %v6073_v3, %v12623_v16  ;;  %v5421_v25 = vpop.f32.mrf.mxu2 }
 0x566   : > { %v6074_v35 = vadd.f32 -2.5052108e-08, %v6010_v30  ;;  %v6670_v2 = vmul.f32 %v6606_v58, %v13157_v11  ;;  %v7033_v28 = vsub.f32 %v12553_v45, %v6969_v32  ;;  %v6906_v26 = vfloor.f32 %v6842_v21 }
 0x567   : > { %15096 = vst [vmem:[#allocation18_spill] sm:$0xff] %v13250_v52  ;;  %v7242_v44 = vmul.f32 %v7178_v8, %v12886_v12  ;;  %v6733_v33 = vmul.f32 %v6669_v0, %v13116_v15  ;;  %v5711_v46 = vmul.f32 3.140625, %v13252_v31  ;;  %v6201_v57 = vadd.f32 2.7557319e-06, %v6137_v59 }
 0x568   : > { %v6057_v56 = vadd.f32 -2.5052108e-08, %v5993_v38  ;;  %v5839_v63 = vmul.f32 0.0009676536, %v13252_v31  ;;  %v5399_v11 = vadd.f32 %v5398_v6, %v12052_v51  ;;  %v6138_v12 = vmul.f32 %v6074_v35, %v12636_v41 }
 0x569   : > { %7414 = vmatpush.msrb.mxu3 %v7242_v44  ;;  %v5775_v3 = vsub.f32 %v5370_v4, %v5711_v46  ;;  %v13266_v45 = vmul.f32 0.5, %v13252_v31  ;;  %v6265_v0 = vmul.f32 %v6201_v57, %v12623_v16  ;;  %v6970_v32 = vmul.f32 2.0, %v6906_v26  ;;  %v15097_v26 = vld [vmem:[#allocation61_spill] sm:$0xff] }
 0x56a   : > { %v6734_v59 = vmul.f32 %v6670_v2, %v13149_v22  ;;  %v5520_v30 = vmul.f32 0.31830987, %v5399_v11  ;;  %v13270_v58 = vmul.f32 2.0, %v7033_v28  ;;  %v6202_v8 = vadd.f32 2.7557319e-06, %v6138_v12 }
 0x56b   : > { %v13273_v21 = vadd.f32 %v6733_v33, %v13116_v15  ;;  %v13275_v38 = vsub.f32 %v5775_v3, %v5839_v63  ;;  %v6329_v44 = vadd.f32 -0.0001984127, %v6265_v0  ;;  %v6121_v4 = vmul.f32 %v6057_v56, %v12568_v24 }
 0x56c   : > { %v5584_v35 = vadd.f32 0.5, %v5520_v30  ;;  %v6266_v46 = vmul.f32 %v6202_v8, %v12636_v41  ;;  %v7034_v6 = vsub.f32 %v12563_v34, %v6970_v32  ;;  %v6825_v57 = vmul.f32 0.5, %v15097_v26 }
 0x56d   : > { %v13283_v2 = vmul.f32 %v13275_v38, %v13275_v38  ;;  %v6393_v15 = vmul.f32 %v6329_v44, %v12623_v16  ;;  %v6185_v33 = vadd.f32 2.7557319e-06, %v6121_v4  ;;  %v13288_v63 = vadd.f32 %v6734_v59, %v13149_v22  ;;  %v5450_v22 = vpop.f32.mrf.mxu3 }
 0x56e   : > { %v13290_v56 = vfloor.f32 %v5584_v35  ;;  %v7161_v12 = vsub.f32 1.0, %v13270_v58  ;;  %v6330_v3 = vadd.f32 -0.0001984127, %v6266_v46  ;;  %v5994_v30 = vmul.f32 1.6059044e-10, %v12611_v47 }
 0x56f   : > { %v6031_v34 = vmul.f32 1.6059044e-10, %v13283_v2  ;;  %v6457_v0 = vadd.f32 0.008333334, %v6393_v15  ;;  %v6249_v32 = vmul.f32 %v6185_v33, %v12568_v24  ;;  %v7098_v4 = vmul.f32 2.0, %v7034_v6 }
 0x570   : > { %v5712_v8 = vmul.f32 3.140625, %v13290_v56  ;;  %v6394_v44 = vmul.f32 %v6330_v3, %v12636_v41  ;;  %v6889_v59 = vfloor.f32 %v6825_v57  ;;  %v5422_v58 = vadd.f32 %v5421_v25, %v12056_v53 }
 0x571   : > { %v6095_v35 = vadd.f32 -2.5052108e-08, %v6031_v34  ;;  %v6521_v28 = vmul.f32 %v6457_v0, %v12623_v16  ;;  %v13301_v46 = vadd.f32 %v5450_v22, %v12056_v53  ;;  %v5840_v33 = vmul.f32 0.0009676536, %v13290_v56 }
 0x572   : > { %v5776_v15 = vsub.f32 %v5399_v11, %v5712_v8  ;;  %v6458_v52 = vadd.f32 0.008333334, %v6394_v44  ;;  %v6313_v19 = vadd.f32 -0.0001984127, %v6249_v32  ;;  %v5489_v6 = vmul.f32 0.31830987, %v5422_v58 }
 0x573   : > { %v6159_v1 = vmul.f32 %v6095_v35, %v13283_v2  ;;  %v6585_v3 = vadd.f32 -0.16666667, %v6521_v28  ;;  %v5490_v39 = vmul.f32 0.31830987, %v13301_v46  ;;  %v6953_v0 = vmul.f32 2.0, %v6889_v59 }
 0x574   : > { %v13306_v57 = vsub.f32 %v5776_v15, %v5840_v33  ;;  %v6522_v34 = vmul.f32 %v6458_v52, %v12636_v41  ;;  %v6377_v25 = vmul.f32 %v6313_v19, %v12568_v24  ;;  %v5553_v8 = vadd.f32 0.5, %v5489_v6 }
 0x575   : > { %v6223_v53 = vadd.f32 2.7557319e-06, %v6159_v1  ;;  %v6649_v11 = vmul.f32 %v6585_v3, %v12623_v16  ;;  %v5554_v22 = vadd.f32 0.5, %v5490_v39  ;;  %v7017_v35 = vsub.f32 %v15097_v26, %v6953_v0 }
 0x576   : > { %v13313_v32 = vmul.f32 %v13306_v57, %v13306_v57  ;;  %v6586_v28 = vadd.f32 -0.16666667, %v6522_v34  ;;  %v6441_v44 = vadd.f32 0.008333334, %v6377_v25  ;;  %v13318_v33 = vfloor.f32 %v5553_v8 }
 0x577   : > { %v6287_v15 = vmul.f32 %v6223_v53, %v13283_v2  ;;  %v6713_v52 = vmul.f32 %v6649_v11, %v12594_v17  ;;  %v13320_v19 = vfloor.f32 %v5554_v22  ;;  %v6058_v59 = vadd.f32 -2.5052108e-08, %v5994_v30 }
 0x578   : > { %v6032_v16 = vmul.f32 1.6059044e-10, %v13313_v32  ;;  %v6650_v1 = vmul.f32 %v6586_v28, %v12636_v41  ;;  %v6505_v39 = vmul.f32 %v6441_v44, %v12568_v24  ;;  %v7162_v34 = vsub.f32 1.0, %v7098_v4 }
 0x579   : > { %15098 = vst [vmem:[#allocation59_spill] sm:$0xff] %v13320_v19  ;;  %v6351_v3 = vadd.f32 -0.0001984127, %v6287_v15  ;;  %v6777_v6 = vadd.f32 %v6713_v52, %v12594_v17  ;;  %v5681_v26 = vmul.f32 3.140625, %v13318_v33  ;;  %v13328_v0 = vmul.f32 0.5, %v13290_v56 }
 0x57a   : > { %v6096_v25 = vadd.f32 -2.5052108e-08, %v6032_v16  ;;  %v6714_v53 = vmul.f32 %v6650_v1, %v12607_v54  ;;  %v5682_v11 = vmul.f32 3.140625, %v13320_v19  ;;  %v6569_v22 = vadd.f32 -0.16666667, %v6505_v39 }
 0x57b   : > { %v6415_v8 = vmul.f32 %v6351_v3, %v13283_v2  ;;  %v7225_v41 = vmul.f32 %v7161_v12, %v6777_v6  ;;  %v7081_v28 = vmul.f32 2.0, %v7017_v35  ;;  %v5745_v4 = vsub.f32 %v5422_v58, %v5681_v26 }
 0x57c   : > { %v6160_v30 = vmul.f32 %v6096_v25, %v13313_v32  ;;  %v6778_v17 = vadd.f32 %v6714_v53, %v12607_v54  ;;  %v5809_v44 = vmul.f32 0.0009676536, %v13318_v33  ;;  %v5810_v52 = vmul.f32 0.0009676536, %v13320_v19  ;;  %v15100_v53 = vld [vmem:[#allocation6_spill] sm:$0xff] }
 0x57d   : > { %v6479_v15 = vadd.f32 0.008333334, %v6415_v8  ;;  %7395 = vmatpush.msrb.mxu2 %v7225_v41  ;;  %v6633_v16 = vmul.f32 %v6569_v22, %v12568_v24  ;;  %v6122_v1 = vmul.f32 %v6058_v59, %v12611_v47  ;;  %v5746_v12 = vsub.f32 %v13301_v46, %v5682_v11  ;;  %v15101_v11 = vld [vmem:[#allocation12_spill] sm:$0xff] }
 0x57e   : > { %v6224_v5 = vadd.f32 2.7557319e-06, %v6160_v30  ;;  %v7226_v3 = vmul.f32 %v7162_v34, %v6778_v17  ;;  %v6826_v35 = vmul.f32 0.5, %v12503_v42  ;;  %v7145_v58 = vsub.f32 1.0, %v7081_v28  ;;  %v15103_v17 = vld [vmem:[#allocation21_spill] sm:$0xff] }
 0x57f   : > { %v6543_v39 = vmul.f32 %v6479_v15, %v13283_v2  ;;  %v6697_v54 = vmul.f32 %v6633_v16, %v12548_v37  ;;  %v6186_v6 = vadd.f32 2.7557319e-06, %v6122_v1  ;;  %v13344_v25 = vsub.f32 %v5745_v4, %v5809_v44  ;;  %v5424_v1 = vpop.f32.mrf.mxu2 }
 0x580   : > { %v6288_v26 = vmul.f32 %v6224_v5, %v13313_v32  ;;  %7415 = vmatpush.msrb.mxu3 %v7226_v3  ;;  %v6890_v24 = vfloor.f32 %v6826_v35  ;;  %v5977_v59 = vmul.f32 1.6059044e-10, %v15100_v53  ;;  %v6809_v41 = vmul.f32 0.5, %v15101_v11 }
 0x581   : > { %15099 = vst [vmem:[#allocation76_spill] sm:$0xff] %v13344_v25  ;;  %v6607_v8 = vadd.f32 -0.16666667, %v6543_v39  ;;  %v6761_v34 = vadd.f32 %v6697_v54, %v12548_v37  ;;  %v6250_v46 = vmul.f32 %v6186_v6, %v12611_v47  ;;  %v13350_v30 = vsub.f32 %v5746_v12, %v5810_v52  ;;  %v15104_v39 = vld [vmem:[#allocation54_spill] sm:$0xff] }
 0x582   : > { %v6352_v22 = vadd.f32 -0.0001984127, %v6288_v26  ;;  %v6041_v28 = vadd.f32 -2.5052108e-08, %v5977_v59  ;;  %v6810_v15 = vmul.f32 0.5, %v15103_v17  ;;  %v6954_v4 = vmul.f32 2.0, %v6890_v24 }
 0x583   : > { %15102 = vst [vmem:[#allocation57_spill] sm:$0xff] %v13350_v30  ;;  %v7209_v5 = vmul.f32 %v7145_v58, %v6761_v34  ;;  %v6314_v16 = vadd.f32 -0.0001984127, %v6250_v46  ;;  %v6873_v44 = vfloor.f32 %v6809_v41  ;;  %v5978_v54 = vmul.f32 1.6059044e-10, %v15104_v39 }
 0x584   : > { %v6416_v3 = vmul.f32 %v6352_v22, %v13313_v32  ;;  %v6105_v37 = vmul.f32 %v6041_v28, %v15100_v53  ;;  %v6671_v6 = vmul.f32 %v6607_v8, %v13283_v2  ;;  %v6874_v26 = vfloor.f32 %v6810_v15  ;;  %v5453_v22 = vpop.f32.mrf.mxu3 }
 0x585   : > { %7396 = vmatpush.msrb.mxu2 %v7209_v5  ;;  %v6378_v52 = vmul.f32 %v6314_v16, %v12611_v47  ;;  %v6937_v12 = vmul.f32 2.0, %v6873_v44  ;;  %v13361_v24 = vmul.f32 %v13344_v25, %v13344_v25  ;;  %v13364_v34 = vadd.f32 %v5424_v1, %v12184_v23  ;;  %v15116_v25 = vld [vmem:[#allocation66_spill] sm:$0xff] }
 0x586   : > { %v6480_v58 = vadd.f32 0.008333334, %v6416_v3  ;;  %v6169_v59 = vadd.f32 2.7557319e-06, %v6105_v37  ;;  %v13368_v46 = vmul.f32 %v13350_v30, %v13350_v30  ;;  %v7018_v2 = vsub.f32 %v12503_v42, %v6954_v4 }
 0x587   : > { %v6442_v41 = vadd.f32 0.008333334, %v6378_v52  ;;  %v6042_v8 = vadd.f32 -2.5052108e-08, %v5978_v54  ;;  %v7001_v5 = vsub.f32 %v15101_v11, %v6937_v12  ;;  %v6938_v16 = vmul.f32 2.0, %v6874_v26 }
 0x588   : > { %v6544_v28 = vmul.f32 %v6480_v58, %v13313_v32  ;;  %v6233_v15 = vmul.f32 %v6169_v59, %v15100_v53  ;;  %v6735_v44 = vmul.f32 %v6671_v6, %v13275_v38  ;;  %v5505_v37 = vmul.f32 0.31830987, %v13364_v34 }
 0x589   : > { %v6506_v1 = vmul.f32 %v6442_v41, %v12611_v47  ;;  %v6106_v3 = vmul.f32 %v6042_v8, %v15104_v39  ;;  %v7002_v42 = vsub.f32 %v15103_v17, %v6938_v16  ;;  %v13380_v4 = vadd.f32 %v5453_v22, %v12184_v23 }
 0x58a   : > { %v6608_v52 = vadd.f32 -0.16666667, %v6544_v28  ;;  %v6297_v35 = vadd.f32 -0.0001984127, %v6233_v15  ;;  %v7082_v58 = vmul.f32 2.0, %v7018_v2  ;;  %v5569_v11 = vadd.f32 0.5, %v5505_v37 }
 0x58b   : > { %v6570_v54 = vadd.f32 -0.16666667, %v6506_v1  ;;  %v6170_v59 = vadd.f32 2.7557319e-06, %v6106_v3  ;;  %v7065_v26 = vmul.f32 2.0, %v7001_v5  ;;  %v15105_v23 = vfloor.f32 %v12836_v14 }
 0x58c   : > { %v6672_v12 = vmul.f32 %v6608_v52, %v13313_v32  ;;  %v6361_v6 = vmul.f32 %v6297_v35, %v15100_v53  ;;  %v5506_v41 = vmul.f32 0.31830987, %v13380_v4  ;;  %v13387_v15 = vfloor.f32 %v5569_v11 }
 0x58d   : > { %v6634_v8 = vmul.f32 %v6570_v54, %v12611_v47  ;;  %v6234_v28 = vmul.f32 %v6170_v59, %v15104_v39  ;;  %v6987_v17 = vmul.f32 2.0, %v15105_v23  ;;  %v13392_v2 = vadd.f32 %v6735_v44, %v13275_v38  ;;  %v15106_v54 = vld [vmem:[#allocation36_spill] sm:$0xff] }
 0x58e   : > { %v6425_v22 = vadd.f32 0.008333334, %v6361_v6  ;;  %v13394_v16 = vmul.f32 2.0, %v7002_v42  ;;  %v5570_v32 = vadd.f32 0.5, %v5506_v41  ;;  %v6736_v35 = vmul.f32 %v6672_v12, %v13306_v57 }
 0x58f   : > { %v6698_v5 = vmul.f32 %v6634_v8, %v12558_v10  ;;  %v7146_v1 = vsub.f32 1.0, %v7082_v58  ;;  %v6298_v47 = vadd.f32 -0.0001984127, %v6234_v28  ;;  %v7129_v37 = vsub.f32 1.0, %v7065_v26  ;;  %v15108_v28 = vld [vmem:[#allocation74_spill] sm:$0xff] }
 0x590   : > { %v6489_v3 = vmul.f32 %v6425_v22, %v15100_v53  ;;  %v5697_v52 = vmul.f32 3.140625, %v13387_v15  ;;  %v7051_v14 = vsub.f32 %v12809_v48, %v6987_v17  ;;  %v13403_v42 = vfloor.f32 %v5570_v32  ;;  %v15109_v32 = vld [vmem:[#allocation25_spill] sm:$0xff] }
 0x591   : > { %v6762_v38 = vadd.f32 %v6698_v5, %v12558_v10  ;;  %v6362_v44 = vmul.f32 %v6298_v47, %v15104_v39  ;;  %v15107_v59 = vfloor.f32 %v15106_v54  ;;  %v7130_v58 = vsub.f32 1.0, %v13394_v16 }
 0x592   : > { %v6553_v12 = vadd.f32 -0.16666667, %v6489_v3  ;;  %v5825_v6 = vmul.f32 0.0009676536, %v13387_v15  ;;  %v7115_v41 = vmul.f32 2.0, %v7051_v14  ;;  %v13410_v26 = vadd.f32 %v6736_v35, %v13306_v57  ;;  %v15110_v14 = vld [vmem:[#allocation34_spill] sm:$0xff] }
 0x593   : > { %v6988_v11 = vmul.f32 2.0, %v15107_v59  ;;  %v7210_v8 = vmul.f32 %v7146_v1, %v6762_v38  ;;  %v6426_v48 = vadd.f32 0.008333334, %v6362_v44  ;;  %v5761_v17 = vsub.f32 %v13364_v34, %v5697_v52  ;;  %v15111_v35 = vld [vmem:[#allocation42_spill] sm:$0xff]  ;;  %v15112_v59 = vld [vmem:[#allocation79_spill] sm:$0xff] }
 0x594   : > { %v6617_v23 = vmul.f32 %v6553_v12, %v15100_v53  ;;  %v7179_v22 = vsub.f32 1.0, %v7115_v41  ;;  %v6011_v5 = vmul.f32 1.6059044e-10, %v15109_v32  ;;  %v5698_v47 = vmul.f32 3.140625, %v13403_v42 }
 0x595   : > { %v7052_v10 = vsub.f32 %v15108_v28, %v6988_v11  ;;  %7416 = vmatpush.msrb.mxu3 %v7210_v8  ;;  %v6490_v16 = vmul.f32 %v6426_v48, %v15104_v39  ;;  %v6843_v57 = vmul.f32 0.5, %v15110_v14  ;;  %v5826_v38 = vmul.f32 0.0009676536, %v13403_v42  ;;  %v15114_v48 = vld [vmem:[#allocation63_spill] sm:$0xff] }
 0x596   : > { %v6681_v1 = vmul.f32 %v6617_v23, %v15111_v35  ;;  %v7243_v44 = vmul.f32 %v7179_v22, %v12963_v40  ;;  %v6075_v53 = vadd.f32 -2.5052108e-08, %v6011_v5  ;;  %v6012_v11 = vmul.f32 1.6059044e-10, %v15112_v59 }
 0x597   : > { %v7116_v3 = vmul.f32 2.0, %v7052_v10  ;;  %v6554_v54 = vadd.f32 -0.16666667, %v6490_v16  ;;  %v6907_v52 = vfloor.f32 %v6843_v57  ;;  %v13424_v41 = vsub.f32 %v5761_v17, %v5825_v6  ;;  %v15115_v57 = vld [vmem:[#allocation62_spill] sm:$0xff] }
 0x598   : > { %v6745_v12 = vadd.f32 %v6681_v1, %v15111_v35  ;;  %7434 = vmatpush.msra.mxu0 %v7243_v44  ;;  %v6139_v8 = vmul.f32 %v6075_v53, %v15109_v32  ;;  %v6844_v28 = vmul.f32 0.5, %v15114_v48  ;;  %v6076_v22 = vadd.f32 -2.5052108e-08, %v6012_v11  ;;  %v15117_v1 = vld [vmem:[#allocation45_spill] sm:$0xff] }
 0x599   : > { %v7180_v34 = vsub.f32 1.0, %v7116_v3  ;;  %15113 = vst [vmem:[#allocation13_spill] sm:$0xff] %v13424_v41  ;;  %v6618_v10 = vmul.f32 %v6554_v54, %v15104_v39  ;;  %v6971_v40 = vmul.f32 2.0, %v6907_v52  ;;  %v5995_v30 = vmul.f32 1.6059044e-10, %v15115_v57  ;;  %v15118_v54 = vld [vmem:[#allocation73_spill] sm:$0xff] }
 0x59a   : > { %v7193_v5 = vmul.f32 %v7129_v37, %v6745_v12  ;;  %v6203_v16 = vadd.f32 2.7557319e-06, %v6139_v8  ;;  %v6908_v3 = vfloor.f32 %v6844_v28  ;;  %v5762_v6 = vsub.f32 %v13380_v4, %v5698_v47 }
 0x59b   : > { %v7244_v23 = vmul.f32 %v7180_v34, %v13043_v27  ;;  %v6682_v35 = vmul.f32 %v6618_v10, %v15116_v25  ;;  %v6140_v17 = vmul.f32 %v6076_v22, %v15112_v59  ;;  %v6827_v44 = vmul.f32 0.5, %v15117_v1 }
 0x59c   : > { %7397 = vmatpush.msrb.mxu2 %v7193_v5  ;;  %v6267_v39 = vmul.f32 %v6203_v16, %v15109_v32  ;;  %v6972_v27 = vmul.f32 2.0, %v6908_v3  ;;  %v6059_v53 = vadd.f32 -2.5052108e-08, %v5995_v30  ;;  %v5996_v37 = vmul.f32 1.6059044e-10, %v15118_v54  ;;  %v5427_v30 = vpop.f32.mrf.mxu2 }
 0x59d   : > { %7454 = vmatpush.msra.mxu1 %v7244_v23  ;;  %v6746_v34 = vadd.f32 %v6682_v35, %v15116_v25  ;;  %7933 = vmatmul.msk.f32.vlgmr.msrb.gmra.mxu2 %vm2686_vm2, %v13238_v43  ;;  %v13442_v4 = vmul.f32 %v13424_v41, %v13424_v41  ;;  %v6204_v47 = vadd.f32 2.7557319e-06, %v6140_v17  ;;  %v6891_v52 = vfloor.f32 %v6827_v44 }
 0x59e   : > { %v6331_v11 = vadd.f32 -0.0001984127, %v6267_v39  ;;  %v7035_v12 = vsub.f32 %v15110_v14, %v6971_v40  ;;  %v6123_v8 = vmul.f32 %v6059_v53, %v15115_v57  ;;  %v6060_v28 = vadd.f32 -2.5052108e-08, %v5996_v37  ;;  %v15119_v40 = vld [vmem:[#allocation49_spill] sm:$0xff] }
 0x59f   : > { %v7194_v10 = vmul.f32 %v7130_v58, %v6746_v34  ;;  %v6268_v23 = vmul.f32 %v6204_v47, %v15112_v59  ;;  %v7036_v25 = vsub.f32 %v15114_v48, %v6972_v27  ;;  %v6955_v22 = vmul.f32 2.0, %v6891_v52 }
 0x5a0   : > { %v13448_v5 = vsub.f32 %v5762_v6, %v5826_v38  ;;  %v6395_v16 = vmul.f32 %v6331_v11, %v15109_v32  ;;  %v6187_v3 = vadd.f32 2.7557319e-06, %v6123_v8  ;;  %v6124_v35 = vmul.f32 %v6060_v28, %v15118_v54  ;;  %v15120_v11 = vld [vmem:[#allocation16_spill] sm:$0xff] }
 0x5a1   : > { %7417 = vmatpush.msrb.mxu3 %v7194_v10  ;;  %v6332_v17 = vadd.f32 -0.0001984127, %v6268_v23  ;;  %v7019_v14 = vsub.f32 %v15117_v1, %v6955_v22  ;;  %v6828_v44 = vmul.f32 0.5, %v15119_v40  ;;  %v5428_v58 = vadd.f32 %v5427_v30, %v12052_v51 }
 0x5a2   : > { %7934 = vmatmul.msk.f32.vlgmr.msrb.gmra.mxu3 %vm2686_vm2, %v13238_v43  ;;  %v6459_v48 = vadd.f32 0.008333334, %v6395_v16  ;;  %v7099_v39 = vmul.f32 2.0, %v7035_v12  ;;  %v6251_v38 = vmul.f32 %v6187_v3, %v15115_v57  ;;  %v6188_v6 = vadd.f32 2.7557319e-06, %v6124_v35 }
 0x5a3   : > { %v6396_v27 = vmul.f32 %v6332_v17, %v15112_v59  ;;  %v7100_v53 = vmul.f32 2.0, %v7036_v25  ;;  %v6892_v37 = vfloor.f32 %v6828_v44  ;;  %v5521_v34 = vmul.f32 0.31830987, %v5428_v58 }
 0x5a4   : > { %v6523_v47 = vmul.f32 %v6459_v48, %v15109_v32  ;;  %v6315_v1 = vadd.f32 -0.0001984127, %v6251_v38  ;;  %v6252_v52 = vmul.f32 %v6188_v6, %v15118_v54  ;;  %v5979_v8 = vmul.f32 1.6059044e-10, %v15120_v11 }
 0x5a5   : > { %v6460_v28 = vadd.f32 0.008333334, %v6396_v27  ;;  %v13462_v30 = vmul.f32 2.0, %v7019_v14  ;;  %v6956_v10 = vmul.f32 2.0, %v6892_v37  ;;  %v5585_v12 = vadd.f32 0.5, %v5521_v34 }
 0x5a6   : > { %v6587_v23 = vadd.f32 -0.16666667, %v6523_v47  ;;  %v6379_v22 = vmul.f32 %v6315_v1, %v15115_v57  ;;  %v6316_v16 = vadd.f32 -0.0001984127, %v6252_v52  ;;  %v6043_v3 = vadd.f32 -2.5052108e-08, %v5979_v8  ;;  %v5456_v47 = vpop.f32.mrf.mxu3 }
 0x5a7   : > { %v7163_v25 = vsub.f32 1.0, %v7099_v39  ;;  %v6524_v35 = vmul.f32 %v6460_v28, %v15112_v59  ;;  %v7164_v17 = vsub.f32 1.0, %v7100_v53  ;;  %v13466_v44 = vfloor.f32 %v5585_v12  ;;  %v15121_v1 = vld [vmem:[#allocation68_spill] sm:$0xff]  ;;  %v15122_v28 = vld [vmem:[#allocation33_spill] sm:$0xff] }
 0x5a8   : > { %v6651_v48 = vmul.f32 %v6587_v23, %v15109_v32  ;;  %v6443_v38 = vadd.f32 0.008333334, %v6379_v22  ;;  %v6380_v6 = vmul.f32 %v6316_v16, %v15118_v54  ;;  %v7020_v14 = vsub.f32 %v15119_v40, %v6956_v10 }
 0x5a9   : > { %v6588_v27 = vadd.f32 -0.16666667, %v6524_v35  ;;  %v7147_v37 = vsub.f32 1.0, %v13462_v30  ;;  %v5713_v34 = vmul.f32 3.140625, %v13466_v44  ;;  %v6107_v39 = vmul.f32 %v6043_v3, %v15120_v11  ;;  %v15123_v35 = vld [vmem:[#allocation81_spill] sm:$0xff] }
 0x5aa   : > { %v6715_v52 = vmul.f32 %v6651_v48, %v15121_v1  ;;  %v6507_v53 = vmul.f32 %v6443_v38, %v15115_v57  ;;  %v6444_v8 = vadd.f32 0.008333334, %v6380_v6  ;;  %v6811_v32 = vmul.f32 0.5, %v15122_v28 }
 0x5ab   : > { %v6652_v12 = vmul.f32 %v6588_v27, %v15112_v59  ;;  %v5777_v23 = vsub.f32 %v5428_v58, %v5713_v34  ;;  %v5841_v40 = vmul.f32 0.0009676536, %v13466_v44  ;;  %v5457_v10 = vadd.f32 %v5456_v47, %v12052_v51 }
 0x5ac   : > { %v6779_v30 = vadd.f32 %v6715_v52, %v15121_v1  ;;  %v6571_v22 = vadd.f32 -0.16666667, %v6507_v53  ;;  %v6508_v16 = vmul.f32 %v6444_v8, %v15118_v54  ;;  %v7084_v3 = vmul.f32 2.0, %v7020_v14  ;;  %v15124_v1 = vld [vmem:[#allocation26_spill] sm:$0xff] }
 0x5ad   : > { %v6716_v48 = vmul.f32 %v6652_v12, %v15123_v35  ;;  %v13483_v41 = vsub.f32 %v5777_v23, %v5841_v40  ;;  %v5522_v38 = vmul.f32 0.31830987, %v5457_v10  ;;  %v6171_v6 = vadd.f32 2.7557319e-06, %v6107_v39 }
 0x5ae   : > { %v7227_v19 = vmul.f32 %v7163_v25, %v6779_v30  ;;  %v6635_v59 = vmul.f32 %v6571_v22, %v15115_v57  ;;  %v6572_v58 = vadd.f32 -0.16666667, %v6508_v16  ;;  %v6875_v27 = vfloor.f32 %v6811_v32  ;;  %v15125_v25 = vld [vmem:[#allocation30_spill] sm:$0xff] }
 0x5af   : > { %v6780_v34 = vadd.f32 %v6716_v48, %v15123_v35  ;;  %v13489_v51 = vmul.f32 %v13483_v41, %v13483_v41  ;;  %v5586_v47 = vadd.f32 0.5, %v5522_v38  ;;  %v6235_v14 = vmul.f32 %v6171_v6, %v15120_v11  ;;  %v15126_v30 = vld [vmem:[#allocation58_spill] sm:$0xff] }
 0x5b0   : > { %7435 = vmatpush.msra.mxu0 %v7227_v19  ;;  %v6699_v52 = vmul.f32 %v6635_v59, %v15124_v1  ;;  %v6636_v53 = vmul.f32 %v6572_v58, %v15118_v54  ;;  %v6939_v39 = vmul.f32 2.0, %v6875_v27  ;;  %v5980_v8 = vmul.f32 1.6059044e-10, %v15125_v25 }
 0x5b1   : > { %v7228_v57 = vmul.f32 %v7164_v17, %v6780_v34  ;;  %v6033_v32 = vmul.f32 1.6059044e-10, %v13489_v51  ;;  %v13496_v12 = vfloor.f32 %v5586_v47  ;;  %v6299_v23 = vadd.f32 -0.0001984127, %v6235_v14 }
 0x5b2   : > { %v6763_v40 = vadd.f32 %v6699_v52, %v15124_v1  ;;  %v6700_v22 = vmul.f32 %v6636_v53, %v15126_v30  ;;  %v7003_v16 = vsub.f32 %v15122_v28, %v6939_v39  ;;  %v6044_v19 = vadd.f32 -2.5052108e-08, %v5980_v8  ;;  %v15127_v52 = vld [vmem:[#allocation8_spill] sm:$0xff] }
 0x5b3   : > { %7455 = vmatpush.msra.mxu1 %v7228_v57  ;;  %v7148_v35 = vsub.f32 1.0, %v7084_v3  ;;  %v6097_v48 = vadd.f32 -2.5052108e-08, %v6033_v32  ;;  %v13502_v54 = vmul.f32 0.5, %v13466_v44  ;;  %v5714_v17 = vmul.f32 3.140625, %v13496_v12 }
 0x5b4   : > { %v7211_v38 = vmul.f32 %v7147_v37, %v6763_v40  ;;  %v6764_v6 = vadd.f32 %v6700_v22, %v15126_v30  ;;  %v5842_v59 = vmul.f32 0.0009676536, %v13496_v12  ;;  %v6363_v58 = vmul.f32 %v6299_v23, %v15120_v11  ;;  %v15130_v22 = vld [vmem:[#allocation56_spill] sm:$0xff] }
 0x5b5   : > { %v6161_v27 = vmul.f32 %v6097_v48, %v13489_v51  ;;  %v5778_v34 = vsub.f32 %v5457_v10, %v5714_v17  ;;  %v13510_v28 = vmul.f32 0.5, %v13496_v12  ;;  %v6108_v3 = vmul.f32 %v6044_v19, %v15125_v25 }
 0x5b6   : > { %7436 = vmatpush.msra.mxu0 %v7211_v38  ;;  %v7212_v47 = vmul.f32 %v7148_v35, %v6764_v6  ;;  %v6427_v14 = vadd.f32 0.008333334, %v6363_v58  ;;  %v7067_v1 = vmul.f32 2.0, %v7003_v16  ;;  %v6812_v37 = vmul.f32 0.5, %v15127_v52 }
 0x5b7   : > { %v6225_v53 = vadd.f32 2.7557319e-06, %v6161_v27  ;;  %v13514_v39 = vsub.f32 %v5778_v34, %v5842_v59  ;;  %v6172_v8 = vadd.f32 2.7557319e-06, %v6108_v3  ;;  %v15128_v57 = vfloor.f32 %v13139_v60 }
 0x5b8   : > { %7456 = vmatpush.msra.mxu1 %v7212_v47  ;;  %v6491_v10 = vmul.f32 %v6427_v14, %v15120_v11  ;;  %v6876_v23 = vfloor.f32 %v6812_v37  ;;  %v15129_v40 = vfloor.f32 %v13163_v55  ;;  %v6013_v19 = vmul.f32 1.6059044e-10, %v15130_v22 }
 0x5b9   : > { %v6989_v32 = vmul.f32 2.0, %v15128_v57  ;;  %v6289_v16 = vmul.f32 %v6225_v53, %v13489_v51  ;;  %v13525_v35 = vmul.f32 %v13514_v39, %v13514_v39  ;;  %v6236_v48 = vmul.f32 %v6172_v8, %v15125_v25  ;;  %v15131_v57 = vld [vmem:[#allocation47_spill] sm:$0xff] }
 0x5ba   : > { %v6990_v30 = vmul.f32 2.0, %v15129_v40  ;;  %v6555_v17 = vadd.f32 -0.16666667, %v6491_v10  ;;  %v6940_v38 = vmul.f32 2.0, %v6876_v23  ;;  %v6077_v59 = vadd.f32 -2.5052108e-08, %v6013_v19 }
 0x5bb   : > { %v7053_v60 = vsub.f32 %v13101_v13, %v6989_v32  ;;  %v13532_v55 = vmul.f32 %v13448_v5, %v13448_v5  ;;  %v6353_v58 = vadd.f32 -0.0001984127, %v6289_v16  ;;  %v6034_v27 = vmul.f32 1.6059044e-10, %v13525_v35 }
 0x5bc   : > { %v7054_v6 = vsub.f32 %v13129_v36, %v6990_v30  ;;  %v6300_v34 = vadd.f32 -0.0001984127, %v6236_v48  ;;  %v6619_v3 = vmul.f32 %v6555_v17, %v15120_v11  ;;  %v7004_v47 = vsub.f32 %v15127_v52, %v6940_v38 }
 0x5bd   : > { %v7117_v14 = vmul.f32 2.0, %v7053_v60  ;;  %v6417_v13 = vmul.f32 %v6353_v58, %v13489_v51  ;;  %v6098_v53 = vadd.f32 -2.5052108e-08, %v6034_v27  ;;  %v6141_v8 = vmul.f32 %v6077_v59, %v15130_v22  ;;  %v15132_v27 = vld [vmem:[#allocation7_spill] sm:$0xff] }
 0x5be   : > { %v7118_v37 = vmul.f32 2.0, %v7054_v6  ;;  %v6364_v36 = vmul.f32 %v6300_v34, %v15125_v25  ;;  %v6683_v32 = vmul.f32 %v6619_v3, %v15131_v57  ;;  %v7131_v10 = vsub.f32 1.0, %v7067_v1  ;;  %v15133_v3 = vld [vmem:[#allocation78_spill] sm:$0xff] }
 0x5bf   : > { %v7181_v23 = vsub.f32 1.0, %v7117_v14  ;;  %v6481_v30 = vadd.f32 0.008333334, %v6417_v13  ;;  %v6162_v19 = vmul.f32 %v6098_v53, %v13525_v35  ;;  %v6205_v16 = vadd.f32 2.7557319e-06, %v6141_v8 }
 0x5c0   : > { %v7182_v40 = vsub.f32 1.0, %v7118_v37  ;;  %v6428_v11 = vadd.f32 0.008333334, %v6364_v36  ;;  %v6747_v52 = vadd.f32 %v6683_v32, %v15131_v57  ;;  %v7068_v48 = vmul.f32 2.0, %v7004_v47  ;;  %v15134_v37 = vld [vmem:[#allocation46_spill] sm:$0xff]  ;;  %v15135_v32 = vld [vmem:[#allocation69_spill] sm:$0xff] }
 0x5c1   : > { %v7245_v60 = vmul.f32 %v7181_v23, %v13273_v21  ;;  %v6545_v38 = vmul.f32 %v6481_v30, %v13489_v51  ;;  %v6226_v6 = vadd.f32 2.7557319e-06, %v6162_v19  ;;  %v6269_v1 = vmul.f32 %v6205_v16, %v15130_v22 }
 0x5c2   : > { %v7246_v17 = vmul.f32 %v7182_v40, %v13288_v63  ;;  %v6492_v59 = vmul.f32 %v6428_v11, %v15125_v25  ;;  %v7195_v58 = vmul.f32 %v7131_v10, %v6747_v52  ;;  %v6845_v34 = vmul.f32 0.5, %v15132_v27 }
 0x5c3   : > { %7474 = vmatpush.msra.mxu2 %v7245_v60  ;;  %v6014_v14 = vmul.f32 1.6059044e-10, %v15133_v3  ;;  %v6846_v47 = vmul.f32 0.5, %v15134_v37  ;;  %v6609_v13 = vadd.f32 -0.16666667, %v6545_v38  ;;  %v6290_v21 = vmul.f32 %v6226_v6, %v13525_v35  ;;  %v15136_v6 = vld [vmem:[#allocation53_spill] sm:$0xff] }
 0x5c4   : > { %7494 = vmatpush.msra.mxu3 %v7246_v17  ;;  %v6556_v63 = vadd.f32 -0.16666667, %v6492_v59  ;;  %v6333_v53 = vadd.f32 -0.0001984127, %v6269_v1  ;;  %7437 = vmatpush.msra.mxu0 %v7195_v58  ;;  %v6909_v36 = vfloor.f32 %v6845_v34  ;;  %v5997_v23 = vmul.f32 1.6059044e-10, %v15135_v32 }
 0x5c5   : > { %v6078_v8 = vadd.f32 -2.5052108e-08, %v6014_v14  ;;  %v6910_v57 = vfloor.f32 %v6846_v47  ;;  %v6673_v10 = vmul.f32 %v6609_v13, %v13489_v51  ;;  %v6354_v40 = vadd.f32 -0.0001984127, %v6290_v21  ;;  %7935 = vmatmul.msk.f32.vlgmr.msra.gmra.mxu0 %vm2686_vm2, %v13238_v43 }
 0x5c6   : > { %v6620_v30 = vmul.f32 %v6556_v63, %v15125_v25  ;;  %v6397_v19 = vmul.f32 %v6333_v53, %v15130_v22  ;;  %v6973_v11 = vmul.f32 2.0, %v6909_v36  ;;  %v6061_v60 = vadd.f32 -2.5052108e-08, %v5997_v23 }
 0x5c7   : > { %v6142_v16 = vmul.f32 %v6078_v8, %v15133_v3  ;;  %v6974_v52 = vmul.f32 2.0, %v6910_v57  ;;  %v6737_v17 = vmul.f32 %v6673_v10, %v13483_v41  ;;  %v6418_v38 = vmul.f32 %v6354_v40, %v13525_v35  ;;  %v15137_v10 = vld [vmem:[#allocation41_spill] sm:$0xff] }
 0x5c8   : > { %v6684_v59 = vmul.f32 %v6620_v30, %v15136_v6  ;;  %v6461_v51 = vadd.f32 0.008333334, %v6397_v19  ;;  %v7037_v1 = vsub.f32 %v15132_v27, %v6973_v11  ;;  %v6125_v34 = vmul.f32 %v6061_v60, %v15135_v32  ;;  %v15138_v60 = vld [vmem:[#allocation35_spill] sm:$0xff] }
 0x5c9   : > { %v6206_v25 = vadd.f32 2.7557319e-06, %v6142_v16  ;;  %v7038_v58 = vsub.f32 %v15134_v37, %v6974_v52  ;;  %v6482_v14 = vadd.f32 0.008333334, %v6418_v38  ;;  %v7132_v13 = vsub.f32 1.0, %v7068_v48 }
 0x5ca   : > { %v6748_v47 = vadd.f32 %v6684_v59, %v15136_v6  ;;  %v6525_v21 = vmul.f32 %v6461_v51, %v15130_v22  ;;  %v6929_v63 = vfloor.f32 %v13502_v54  ;;  %v6930_v53 = vfloor.f32 %v13510_v28  ;;  %v15140_v51 = vld [vmem:[#allocation19_spill] sm:$0xff] }
 0x5cb   : > { %v6270_v36 = vmul.f32 %v6206_v25, %v15133_v3  ;;  %v6189_v8 = vadd.f32 2.7557319e-06, %v6125_v34  ;;  %v7101_v23 = vmul.f32 2.0, %v7037_v1  ;;  %v6829_v37 = vmul.f32 0.5, %v15137_v10  ;;  %v15141_v25 = vld [vmem:[#allocation51_spill] sm:$0xff] }
 0x5cc   : > { %v7196_v57 = vmul.f32 %v7132_v13, %v6748_v47  ;;  %v6589_v27 = vadd.f32 -0.16666667, %v6525_v21  ;;  %v13572_v40 = vadd.f32 %v6737_v17, %v13483_v41  ;;  %v13574_v19 = vmul.f32 2.0, %v7038_v58  ;;  %v15139_v17 = vld [vmem:[#allocation67_spill] sm:$0xff] }
 0x5cd   : > { %v6334_v30 = vadd.f32 -0.0001984127, %v6270_v36  ;;  %v6253_v48 = vmul.f32 %v6189_v8, %v15135_v32  ;;  %v6546_v11 = vmul.f32 %v6482_v14, %v13525_v35  ;;  %v6893_v52 = vfloor.f32 %v6829_v37 }
 0x5ce   : > { %7457 = vmatpush.msra.mxu1 %v7196_v57  ;;  %v6653_v16 = vmul.f32 %v6589_v27, %v15130_v22  ;;  %v5998_v38 = vmul.f32 1.6059044e-10, %v15138_v60  ;;  %v6830_v59 = vmul.f32 0.5, %v15139_v17  ;;  %v5981_v1 = vmul.f32 1.6059044e-10, %v15140_v51 }
 0x5cf   : > { %7936 = vmatmul.msk.f32.vlgmr.msra.gmra.mxu1 %vm2686_vm2, %v13238_v43  ;;  %v6398_v6 = vmul.f32 %v6334_v30, %v15133_v3  ;;  %v6317_v41 = vadd.f32 -0.0001984127, %v6253_v48  ;;  %v7165_v34 = vsub.f32 1.0, %v7101_v23  ;;  %v6957_v14 = vmul.f32 2.0, %v6893_v52 }
 0x5d0   : > { %v6717_v58 = vmul.f32 %v6653_v16, %v15141_v25  ;;  %v6062_v47 = vadd.f32 -2.5052108e-08, %v5998_v38  ;;  %v6894_v21 = vfloor.f32 %v6830_v59  ;;  %v6045_v36 = vadd.f32 -2.5052108e-08, %v5981_v1 }
 0x5d1   : > { %v6462_v13 = vadd.f32 0.008333334, %v6398_v6  ;;  %v6381_v22 = vmul.f32 %v6317_v41, %v15135_v32  ;;  %v6610_v8 = vadd.f32 -0.16666667, %v6546_v11  ;;  %v7021_v57 = vsub.f32 %v15137_v10, %v6957_v14 }
 0x5d2   : > { %v6781_v43 = vadd.f32 %v6717_v58, %v15141_v25  ;;  %v6126_v27 = vmul.f32 %v6062_v47, %v15138_v60  ;;  %v6958_v48 = vmul.f32 2.0, %v6894_v21  ;;  %v6109_v23 = vmul.f32 %v6045_v36, %v15140_v51  ;;  %v15142_v58 = vld [vmem:[#allocation70_spill] sm:$0xff]  ;;  %v15143_v47 = vld [vmem:[#allocation43_spill] sm:$0xff] }
 0x5d3   : > { %v6526_v37 = vmul.f32 %v6462_v13, %v15133_v3  ;;  %v6445_v30 = vadd.f32 0.008333334, %v6381_v22  ;;  %v7166_v52 = vsub.f32 1.0, %v13574_v19  ;;  %v7085_v38 = vmul.f32 2.0, %v7021_v57 }
 0x5d4   : > { %v7229_v16 = vmul.f32 %v7165_v34, %v6781_v43  ;;  %v6190_v6 = vadd.f32 2.7557319e-06, %v6126_v27  ;;  %v7022_v59 = vsub.f32 %v15139_v17, %v6958_v48  ;;  %v6173_v1 = vadd.f32 2.7557319e-06, %v6109_v23  ;;  %v15144_v17 = vld [vmem:[#allocation15_spill] sm:$0xff] }
 0x5d5   : > { %v6590_v41 = vadd.f32 -0.16666667, %v6526_v37  ;;  %v6509_v11 = vmul.f32 %v6445_v30, %v15135_v32  ;;  %v6674_v10 = vmul.f32 %v6610_v8, %v13525_v35  ;;  %v6813_v14 = vmul.f32 0.5, %v15142_v58  ;;  %v15145_v37 = vld [vmem:[#allocation24_spill] sm:$0xff] }
 0x5d6   : > { %7475 = vmatpush.msra.mxu2 %v7229_v16  ;;  %v6254_v25 = vmul.f32 %v6190_v6, %v15138_v60  ;;  %v5982_v13 = vmul.f32 1.6059044e-10, %v15143_v47  ;;  %v7149_v22 = vsub.f32 1.0, %v7085_v38  ;;  %v6237_v21 = vmul.f32 %v6173_v1, %v15140_v51 }
 0x5d7   : > { %v6654_v34 = vmul.f32 %v6590_v41, %v15133_v3  ;;  %v6573_v19 = vadd.f32 -0.16666667, %v6509_v11  ;;  %v6877_v43 = vfloor.f32 %v6813_v14  ;;  %v6814_v27 = vmul.f32 0.5, %v15144_v17  ;;  %v15146_v41 = vld [vmem:[#allocation38_spill] sm:$0xff] }
 0x5d8   : > { %v6318_v36 = vadd.f32 -0.0001984127, %v6254_v25  ;;  %v6046_v57 = vadd.f32 -2.5052108e-08, %v5982_v13  ;;  %v7086_v30 = vmul.f32 2.0, %v7022_v59  ;;  %v15147_v25 = vfloor.f32 %v13266_v45 }
 0x5d9   : > { %v6718_v35 = vmul.f32 %v6654_v34, %v15145_v37  ;;  %v6637_v8 = vmul.f32 %v6573_v19, %v15135_v32  ;;  %v6301_v48 = vadd.f32 -0.0001984127, %v6237_v21  ;;  %v6941_v16 = vmul.f32 2.0, %v6877_v43 }
 0x5da   : > { %v6382_v23 = vmul.f32 %v6318_v36, %v15138_v60  ;;  %v6110_v3 = vmul.f32 %v6046_v57, %v15143_v47  ;;  %v6878_v6 = vfloor.f32 %v6814_v27  ;;  %v6991_v14 = vmul.f32 2.0, %v15147_v25 }
 0x5db   : > { %v6782_v38 = vadd.f32 %v6718_v35, %v15145_v37  ;;  %v6701_v11 = vmul.f32 %v6637_v8, %v15146_v41  ;;  %v6365_v1 = vmul.f32 %v6301_v48, %v15140_v51  ;;  %v7005_v32 = vsub.f32 %v15142_v58, %v6941_v16 }
 0x5dc   : > { %v6446_v13 = vadd.f32 0.008333334, %v6382_v23  ;;  %v6174_v59 = vadd.f32 2.7557319e-06, %v6110_v3  ;;  %v6942_v34 = vmul.f32 2.0, %v6878_v6  ;;  %v7055_v43 = vsub.f32 %v13252_v31, %v6991_v14 }
 0x5dd   : > { %v7230_v19 = vmul.f32 %v7166_v52, %v6782_v38  ;;  %v6765_v21 = vadd.f32 %v6701_v11, %v15146_v41  ;;  %v6429_v36 = vadd.f32 0.008333334, %v6365_v1  ;;  %v6738_v57 = vmul.f32 %v6674_v10, %v13514_v39 }
 0x5de   : > { %v6510_v27 = vmul.f32 %v6446_v13, %v15138_v60  ;;  %v7069_v37 = vmul.f32 2.0, %v7005_v32  ;;  %v6238_v35 = vmul.f32 %v6174_v59, %v15143_v47  ;;  %v7119_v58 = vmul.f32 2.0, %v7055_v43  ;;  %v15149_v13 = vld [vmem:[#allocation29_spill] sm:$0xff] }
 0x5df   : > { %7495 = vmatpush.msra.mxu3 %v7230_v19  ;;  %v7213_v45 = vmul.f32 %v7149_v22, %v6765_v21  ;;  %v6493_v8 = vmul.f32 %v6429_v36, %v15140_v51  ;;  %v15148_v48 = vfloor.f32 %v13328_v0  ;;  %v7150_v16 = vsub.f32 1.0, %v7086_v30  ;;  %v15150_v19 = vld [vmem:[#allocation37_spill] sm:$0xff] }
 0x5e0   : > { %v6574_v23 = vadd.f32 -0.16666667, %v6510_v27  ;;  %v6302_v3 = vadd.f32 -0.0001984127, %v6238_v35  ;;  %v7006_v31 = vsub.f32 %v15144_v17, %v6942_v34  ;;  %v7183_v6 = vsub.f32 1.0, %v7119_v58 }
 0x5e1   : > { %v6992_v52 = vmul.f32 2.0, %v15148_v48  ;;  %7476 = vmatpush.msra.mxu2 %v7213_v45  ;;  %v6557_v10 = vadd.f32 -0.16666667, %v6493_v8  ;;  %v6015_v41 = vmul.f32 1.6059044e-10, %v13215_v62  ;;  %v7133_v11 = vsub.f32 1.0, %v7069_v37 }
 0x5e2   : > { %v6638_v22 = vmul.f32 %v6574_v23, %v15138_v60  ;;  %v6366_v1 = vmul.f32 %v6302_v3, %v15143_v47  ;;  %v6847_v0 = vmul.f32 0.5, %v13171_v49  ;;  %v7247_v30 = vmul.f32 %v7183_v6, %v13392_v2 }
 0x5e3   : > { %v7056_v38 = vsub.f32 %v13290_v56, %v6992_v52  ;;  %v6621_v25 = vmul.f32 %v6557_v10, %v15140_v51  ;;  %v6079_v17 = vadd.f32 -2.5052108e-08, %v6015_v41  ;;  %v6016_v56 = vmul.f32 1.6059044e-10, %v13244_v7 }
 0x5e4   : > { %v6702_v32 = vmul.f32 %v6638_v22, %v15149_v13  ;;  %v6430_v59 = vadd.f32 0.008333334, %v6366_v1  ;;  %v6911_v34 = vfloor.f32 %v6847_v0  ;;  %7514 = vmatpush.msrb.mxu0 %v7247_v30  ;;  %v6848_v43 = vmul.f32 0.5, %v13181_v61  ;;  %v15151_v0 = vld [vmem:[#allocation48_spill] sm:$0xff] }
 0x5e5   : > { %v7120_v14 = vmul.f32 2.0, %v7056_v38  ;;  %v6685_v21 = vmul.f32 %v6621_v25, %v15150_v19  ;;  %v6143_v36 = vmul.f32 %v6079_v17, %v13215_v62  ;;  %v6080_v37 = vadd.f32 -2.5052108e-08, %v6016_v56 }
 0x5e6   : > { %v6766_v51 = vadd.f32 %v6702_v32, %v15149_v13  ;;  %v6494_v2 = vmul.f32 %v6430_v59, %v15143_v47  ;;  %v6975_v27 = vmul.f32 2.0, %v6911_v34  ;;  %v6912_v58 = vfloor.f32 %v6848_v43 }
 0x5e7   : > { %v7184_v60 = vsub.f32 1.0, %v7120_v14  ;;  %v6749_v35 = vadd.f32 %v6685_v21, %v15150_v19  ;;  %v6207_v8 = vadd.f32 2.7557319e-06, %v6143_v36  ;;  %v7070_v23 = vmul.f32 2.0, %v7006_v31  ;;  %v15152_v14 = vld [vmem:[#allocation14_spill] sm:$0xff] }
 0x5e8   : > { %v7214_v48 = vmul.f32 %v7150_v16, %v6766_v51  ;;  %v6558_v52 = vadd.f32 -0.16666667, %v6494_v2  ;;  %v6144_v3 = vmul.f32 %v6080_v37, %v13244_v7  ;;  %v6976_v38 = vmul.f32 2.0, %v6912_v58 }
 0x5e9   : > { %v7248_v45 = vmul.f32 %v7184_v60, %v13410_v26  ;;  %v7197_v10 = vmul.f32 %v7133_v11, %v6749_v35  ;;  %v6271_v6 = vmul.f32 %v6207_v8, %v13215_v62  ;;  %v5999_v41 = vmul.f32 1.6059044e-10, %v13134_v9  ;;  %v15153_v60 = vld [vmem:[#allocation77_spill] sm:$0xff] }
 0x5ea   : > { %v13641_v22 = vadd.f32 %v6738_v57, %v13514_v39  ;;  %7496 = vmatpush.msra.mxu3 %v7214_v48  ;;  %v6622_v26 = vmul.f32 %v6558_v52, %v15143_v47  ;;  %v6208_v1 = vadd.f32 2.7557319e-06, %v6144_v3  ;;  %v6831_v16 = vmul.f32 0.5, %v15151_v0  ;;  %v13651_v39 = vld [vmem:[%s13858_s6] sm:$0x1]  ;;  %v15154_v52 = vld [vmem:[#allocation71_spill] sm:$0xff] }
 0x5eb   : > { %7534 = vmatpush.msrb.mxu1 %v7248_v45  ;;  %7477 = vmatpush.msra.mxu2 %v7197_v10  ;;  %v6335_v31 = vadd.f32 -0.0001984127, %v6271_v6  ;;  %v7039_v25 = vsub.f32 %v13171_v49, %v6975_v27  ;;  %v6063_v11 = vadd.f32 -2.5052108e-08, %v5999_v41  ;;  %v6000_v30 = vmul.f32 1.6059044e-10, %v13195_v50 }
 0x5ec   : > { %v6686_v17 = vmul.f32 %v6622_v26, %v15152_v14  ;;  %v7134_v13 = vsub.f32 1.0, %v7070_v23  ;;  %7937 = vmatmul.msk.f32.vlgmr.msra.gmra.mxu2 %vm2686_vm2, %v13651_v39  ;;  %v6272_v47 = vmul.f32 %v6208_v1, %v13244_v7  ;;  %v6895_v57 = vfloor.f32 %v6831_v16 }
 0x5ed   : > { %v6399_v32 = vmul.f32 %v6335_v31, %v13215_v62  ;;  %v7040_v49 = vsub.f32 %v13181_v61, %v6976_v38  ;;  %v6127_v59 = vmul.f32 %v6063_v11, %v13134_v9  ;;  %v6064_v34 = vadd.f32 -2.5052108e-08, %v6000_v30  ;;  %v15155_v38 = vld [vmem:[#allocation9_spill] sm:$0xff] }
 0x5ee   : > { %v6750_v56 = vadd.f32 %v6686_v17, %v15152_v14  ;;  %v6336_v19 = vadd.f32 -0.0001984127, %v6272_v47  ;;  %v6959_v21 = vmul.f32 2.0, %v6895_v57  ;;  %v6832_v36 = vmul.f32 0.5, %v15153_v60 }
 0x5ef   : > { %v6463_v43 = vadd.f32 0.008333334, %v6399_v32  ;;  %v7103_v51 = vmul.f32 2.0, %v7039_v25  ;;  %v6191_v2 = vadd.f32 2.7557319e-06, %v6127_v59  ;;  %v6128_v27 = vmul.f32 %v6064_v34, %v13195_v50  ;;  %v15156_v59 = vld [vmem:[#allocation20_spill] sm:$0xff] }
 0x5f0   : > { %v7198_v37 = vmul.f32 %v7134_v13, %v6750_v56  ;;  %v6400_v35 = vmul.f32 %v6336_v19, %v13244_v7  ;;  %v7023_v45 = vsub.f32 %v15151_v0, %v6959_v21  ;;  %v6896_v61 = vfloor.f32 %v6832_v36 }
 0x5f1   : > { %v6527_v8 = vmul.f32 %v6463_v43, %v13215_v62  ;;  %v6255_v58 = vmul.f32 %v6191_v2, %v13134_v9  ;;  %v6192_v48 = vadd.f32 2.7557319e-06, %v6128_v27  ;;  %v5983_v23 = vmul.f32 1.6059044e-10, %v15154_v52 }
 0x5f2   : > { %7497 = vmatpush.msra.mxu3 %v7198_v37  ;;  %v6464_v3 = vadd.f32 0.008333334, %v6400_v35  ;;  %v7104_v10 = vmul.f32 2.0, %v7040_v49  ;;  %v6960_v6 = vmul.f32 2.0, %v6896_v61  ;;  %v6815_v41 = vmul.f32 0.5, %v15155_v38 }
 0x5f3   : > { %7938 = vmatmul.msk.f32.vlgmr.msra.gmra.mxu3 %vm2686_vm2, %v13651_v39  ;;  %v6591_v26 = vadd.f32 -0.16666667, %v6527_v8  ;;  %v6319_v1 = vadd.f32 -0.0001984127, %v6255_v58  ;;  %v6256_v0 = vmul.f32 %v6192_v48, %v13195_v50  ;;  %v6047_v16 = vadd.f32 -2.5052108e-08, %v5983_v23 }
 0x5f4   : > { %v7167_v31 = vsub.f32 1.0, %v7103_v51  ;;  %v6528_v25 = vmul.f32 %v6464_v3, %v13244_v7  ;;  %v7087_v11 = vmul.f32 2.0, %v7023_v45  ;;  %v7024_v30 = vsub.f32 %v15153_v60, %v6960_v6  ;;  %v15157_v58 = vld [vmem:[#allocation22_spill] sm:$0xff] }
 0x5f5   : > { %v6655_v14 = vmul.f32 %v6591_v26, %v13215_v62  ;;  %v6383_v17 = vmul.f32 %v6319_v1, %v13134_v9  ;;  %v6320_v13 = vadd.f32 -0.0001984127, %v6256_v0  ;;  %v6111_v47 = vmul.f32 %v6047_v16, %v15154_v52 }
 0x5f6   : > { %v6592_v57 = vadd.f32 -0.16666667, %v6528_v25  ;;  %v7168_v32 = vsub.f32 1.0, %v7104_v10  ;;  %v6879_v49 = vfloor.f32 %v6815_v41  ;;  %v5984_v34 = vmul.f32 1.6059044e-10, %v15156_v59 }
 0x5f7   : > { %v6719_v56 = vmul.f32 %v6655_v14, %v13199_v18  ;;  %v6447_v19 = vadd.f32 0.008333334, %v6383_v17  ;;  %v6384_v21 = vmul.f32 %v6320_v13, %v13195_v50  ;;  %v6175_v36 = vadd.f32 2.7557319e-06, %v6111_v47 }
 0x5f8   : > { %v6656_v60 = vmul.f32 %v6592_v57, %v13244_v7  ;;  %v7151_v43 = vsub.f32 1.0, %v7087_v11  ;;  %v7088_v62 = vmul.f32 2.0, %v7024_v30  ;;  %v6048_v51 = vadd.f32 -2.5052108e-08, %v5984_v34 }
 0x5f9   : > { %v6783_v2 = vadd.f32 %v6719_v56, %v13199_v18  ;;  %v6511_v27 = vmul.f32 %v6447_v19, %v13134_v9  ;;  %v6448_v37 = vadd.f32 0.008333334, %v6384_v21  ;;  %v6239_v35 = vmul.f32 %v6175_v36, %v15154_v52 }
 0x5fa   : > { %v6720_v45 = vmul.f32 %v6656_v60, %v13219_v29  ;;  %v6943_v61 = vmul.f32 2.0, %v6879_v49  ;;  %v6112_v8 = vmul.f32 %v6048_v51, %v15156_v59  ;;  %v6816_v48 = vmul.f32 0.5, %v15157_v58 }
 0x5fb   : > { %v7231_v23 = vmul.f32 %v7167_v31, %v6783_v2  ;;  %v6575_v3 = vadd.f32 -0.16666667, %v6511_v27  ;;  %v6512_v7 = vmul.f32 %v6448_v37, %v13195_v50  ;;  %v6303_v10 = vadd.f32 -0.0001984127, %v6239_v35 }
 0x5fc   : > { %v6784_v6 = vadd.f32 %v6720_v45, %v13219_v29  ;;  %v7152_v18 = vsub.f32 1.0, %v7088_v62  ;;  %v6176_v41 = vadd.f32 2.7557319e-06, %v6112_v8  ;;  %v6880_v26 = vfloor.f32 %v6816_v48 }
 0x5fd   : > { %7515 = vmatpush.msrb.mxu0 %v7231_v23  ;;  %v6639_v1 = vmul.f32 %v6575_v3, %v13134_v9  ;;  %v6576_v0 = vadd.f32 -0.16666667, %v6512_v7  ;;  %v6367_v16 = vmul.f32 %v6303_v10, %v15154_v52  ;;  %v6993_v25 = vmul.f32 2.0, %v6929_v63 }
 0x5fe   : > { %v7232_v11 = vmul.f32 %v7168_v32, %v6784_v6  ;;  %v7007_v31 = vsub.f32 %v15155_v38, %v6943_v61  ;;  %v6240_v30 = vmul.f32 %v6176_v41, %v15156_v59  ;;  %v6994_v29 = vmul.f32 2.0, %v6930_v53  ;;  %v15158_v32 = vld [vmem:[#allocation65_spill] sm:$0xff] }
 0x5ff   : > { %v6703_v14 = vmul.f32 %v6639_v1, %v13104_v20  ;;  %v6640_v17 = vmul.f32 %v6576_v0, %v13195_v50  ;;  %v6431_v13 = vadd.f32 0.008333334, %v6367_v16  ;;  %v7057_v9 = vsub.f32 %v13466_v44, %v6993_v25 }
 0x600   : > { %7535 = vmatpush.msrb.mxu1 %v7232_v11  ;;  %v6304_v47 = vadd.f32 -0.0001984127, %v6240_v30  ;;  %v6944_v57 = vmul.f32 2.0, %v6880_v26  ;;  %v7058_v54 = vsub.f32 %v13496_v12, %v6994_v29  ;;  %v6017_v63 = vmul.f32 1.6059044e-10, %v13442_v4 }
 0x601   : > { %v6767_v38 = vadd.f32 %v6703_v14, %v13104_v20  ;;  %v6704_v49 = vmul.f32 %v6640_v17, %v15158_v32  ;;  %v6495_v28 = vmul.f32 %v6431_v13, %v15154_v52  ;;  %v7121_v53 = vmul.f32 2.0, %v7057_v9  ;;  %v15160_v14 = vld [vmem:[#allocation32_spill] sm:$0xff]  ;;  %v15161_v17 = vld [vmem:[#allocation11_spill] sm:$0xff] }
 0x602   : > { %v7071_v34 = vmul.f32 2.0, %v7007_v31  ;;  %v6368_v50 = vmul.f32 %v6304_v47, %v15156_v59  ;;  %v7122_v56 = vmul.f32 2.0, %v7058_v54  ;;  %v6081_v19 = vadd.f32 -2.5052108e-08, %v6017_v63  ;;  %v15162_v13 = vld [vmem:[#allocation75_spill] sm:$0xff] }
 0x603   : > { %v7215_v44 = vmul.f32 %v7151_v43, %v6767_v38  ;;  %v6768_v21 = vadd.f32 %v6704_v49, %v15158_v32  ;;  %v6559_v36 = vadd.f32 -0.16666667, %v6495_v28  ;;  %v7185_v60 = vsub.f32 1.0, %v7121_v53  ;;  %v15165_v38 = vld [vmem:[#allocation18_spill] sm:$0xff] }
 0x604   : > { %v6432_v12 = vadd.f32 0.008333334, %v6368_v50  ;;  %v7008_v62 = vsub.f32 %v15157_v58, %v6944_v57  ;;  %v7186_v51 = vsub.f32 1.0, %v7122_v56  ;;  %v6145_v20 = vmul.f32 %v6081_v19, %v13442_v4  ;;  %v15159_v58 = vld [vmem:[#allocation39_spill] sm:$0xff]  ;;  %v15164_v57 = vld [vmem:[#allocation17_spill] sm:$0xff] }
 0x605   : > { %7516 = vmatpush.msrb.mxu0 %v7215_v44  ;;  %v7216_v2 = vmul.f32 %v7152_v18, %v6768_v21  ;;  %v6623_v27 = vmul.f32 %v6559_v36, %v15154_v52  ;;  %v7249_v37 = vmul.f32 %v7185_v60, %v13572_v40  ;;  %v6849_v35 = vmul.f32 0.5, %v13387_v15 }
 0x606   : > { %v6496_v43 = vmul.f32 %v6432_v12, %v15156_v59  ;;  %v7250_v45 = vmul.f32 %v7186_v51, %v13641_v22  ;;  %v6209_v61 = vadd.f32 2.7557319e-06, %v6145_v20  ;;  %v6018_v8 = vmul.f32 1.6059044e-10, %v13532_v55 }
 0x607   : > { %7536 = vmatpush.msrb.mxu1 %v7216_v2  ;;  %v6687_v48 = vmul.f32 %v6623_v27, %v15159_v58  ;;  %7554 = vmatpush.msrb.mxu2 %v7249_v37  ;;  %v6913_v23 = vfloor.f32 %v6849_v35  ;;  %v6850_v3 = vmul.f32 0.5, %v13403_v42  ;;  %v6001_v52 = vmul.f32 1.6059044e-10, %v13361_v24  ;;  %v15166_v37 = vld [vmem:[#allocation59_spill] sm:$0xff] }
 0x608   : > { %v6560_v7 = vadd.f32 -0.16666667, %v6496_v43  ;;  %7574 = vmatpush.msrb.mxu3 %v7250_v45  ;;  %v6273_v40 = vmul.f32 %v6209_v61, %v13442_v4  ;;  %v6082_v10 = vadd.f32 -2.5052108e-08, %v6018_v8  ;;  %v6833_v6 = vmul.f32 0.5, %v13318_v33 }
 0x609   : > { %v6751_v22 = vadd.f32 %v6687_v48, %v15159_v58  ;;  %v7135_v18 = vsub.f32 1.0, %v7071_v34  ;;  %v7072_v41 = vmul.f32 2.0, %v7008_v62  ;;  %v6065_v26 = vadd.f32 -2.5052108e-08, %v6001_v52 }
 0x60a   : > { %v6624_v1 = vmul.f32 %v6560_v7, %v15156_v59  ;;  %v6337_v0 = vadd.f32 -0.0001984127, %v6273_v40  ;;  %v6977_v16 = vmul.f32 2.0, %v6913_v23  ;;  %v6146_v25 = vmul.f32 %v6082_v10, %v13532_v55 }
 0x60b   : > { %v7199_v11 = vmul.f32 %v7135_v18, %v6751_v22  ;;  %v6914_v31 = vfloor.f32 %v6850_v3  ;;  %v6129_v30 = vmul.f32 %v6065_v26, %v13361_v24  ;;  %v6897_v29 = vfloor.f32 %v6833_v6  ;;  %v15167_v18 = vld [vmem:[#allocation55_spill] sm:$0xff]  ;;  %v15168_v26 = vld [vmem:[#allocation13_spill] sm:$0xff] }
 0x60c   : > { %v15163_v9 = vsub.f32 %v15161_v17, %v15162_v13  ;;  %v6688_v54 = vmul.f32 %v6624_v1, %v15164_v57  ;;  %v6401_v63 = vmul.f32 %v6337_v0, %v13442_v4  ;;  %v6210_v59 = vadd.f32 2.7557319e-06, %v6146_v25 }
 0x60d   : > { %v13733_v32 = vmul.f32 %v15165_v38, %v15165_v38  ;;  %7517 = vmatpush.msrb.mxu0 %v7199_v11  ;;  %v7136_v49 = vsub.f32 1.0, %v7072_v41  ;;  %v6193_v28 = vadd.f32 2.7557319e-06, %v6129_v30  ;;  %v6002_v53 = vmul.f32 1.6059044e-10, %v13368_v46 }
 0x60e   : > { %v13727_v47 = vsub.f32 %v15163_v9, %v15160_v14  ;;  %v6752_v34 = vadd.f32 %v6688_v54, %v15164_v57  ;;  %7939 = vmatmul.msk.f32.vlgmr.msrb.gmra.mxu0 %vm2686_vm2, %v13651_v39  ;;  %v6465_v50 = vadd.f32 0.008333334, %v6401_v63  ;;  %v7041_v56 = vsub.f32 %v13387_v15, %v6977_v16 }
 0x60f   : > { %v6274_v19 = vmul.f32 %v6210_v59, %v13532_v55  ;;  %v6978_v44 = vmul.f32 2.0, %v6914_v31  ;;  %v6257_v21 = vmul.f32 %v6193_v28, %v13361_v24  ;;  %v6961_v36 = vmul.f32 2.0, %v6897_v29 }
 0x610   : > { %v6066_v60 = vadd.f32 -2.5052108e-08, %v6002_v53  ;;  %v13744_v12 = vmul.f32 %v13727_v47, %v13727_v47  ;;  %v7200_v62 = vmul.f32 %v7136_v49, %v6752_v34  ;;  %v6529_v51 = vmul.f32 %v6465_v50, %v13442_v4 }
 0x611   : > { %v6338_v20 = vadd.f32 -0.0001984127, %v6274_v19  ;;  %v6321_v2 = vadd.f32 -0.0001984127, %v6257_v21  ;;  %v6834_v15 = vmul.f32 0.5, %v15166_v37  ;;  %v7105_v43 = vmul.f32 2.0, %v7041_v56 }
 0x612   : > { %v6130_v27 = vmul.f32 %v6066_v60, %v13368_v46  ;;  %7537 = vmatpush.msrb.mxu1 %v7200_v62  ;;  %v6593_v35 = vadd.f32 -0.16666667, %v6529_v51  ;;  %v5985_v61 = vmul.f32 1.6059044e-10, %v13733_v32  ;;  %v7042_v8 = vsub.f32 %v13403_v42, %v6978_v44  ;;  %v15169_v21 = vld [vmem:[#allocation60_spill] sm:$0xff] }
 0x613   : > { %v6402_v45 = vmul.f32 %v6338_v20, %v13532_v55  ;;  %7940 = vmatmul.msk.f32.vlgmr.msrb.gmra.mxu1 %vm2686_vm2, %v13651_v39  ;;  %v6385_v58 = vmul.f32 %v6321_v2, %v13361_v24  ;;  %v7025_v48 = vsub.f32 %v13318_v33, %v6961_v36  ;;  %v5986_v40 = vmul.f32 1.6059044e-10, %v13744_v12  ;;  %v15170_v60 = vld [vmem:[#allocation76_spill] sm:$0xff] }
 0x614   : > { %v6194_v23 = vadd.f32 2.7557319e-06, %v6130_v27  ;;  %v6657_v3 = vmul.f32 %v6593_v35, %v13442_v4  ;;  %v6049_v7 = vadd.f32 -2.5052108e-08, %v5985_v61  ;;  %v6898_v22 = vfloor.f32 %v6834_v15 }
 0x615   : > { %v6466_v52 = vadd.f32 0.008333334, %v6402_v45  ;;  %v6449_v10 = vadd.f32 0.008333334, %v6385_v58  ;;  %v6817_v41 = vmul.f32 0.5, %v15167_v18  ;;  %v7169_v16 = vsub.f32 1.0, %v7105_v43 }
 0x616   : > { %v6258_v6 = vmul.f32 %v6194_v23, %v13368_v46  ;;  %v6721_v1 = vmul.f32 %v6657_v3, %v15168_v26  ;;  %v6113_v0 = vmul.f32 %v6049_v7, %v13733_v32  ;;  %v6050_v33 = vadd.f32 -2.5052108e-08, %v5986_v40  ;;  %v15171_v40 = vld [vmem:[#allocation57_spill] sm:$0xff] }
 0x617   : > { %v6530_v42 = vmul.f32 %v6466_v52, %v13532_v55  ;;  %v7106_v25 = vmul.f32 2.0, %v7042_v8  ;;  %v6513_v4 = vmul.f32 %v6449_v10, %v13361_v24  ;;  %v6962_v9 = vmul.f32 2.0, %v6898_v22 }
 0x618   : > { %v6322_v11 = vadd.f32 -0.0001984127, %v6258_v6  ;;  %v6785_v31 = vadd.f32 %v6721_v1, %v15168_v26  ;;  %v6177_v29 = vadd.f32 2.7557319e-06, %v6113_v0  ;;  %v6114_v14 = vmul.f32 %v6050_v33, %v13744_v12 }
 0x619   : > { %v6594_v30 = vadd.f32 -0.16666667, %v6530_v42  ;;  %v6577_v17 = vadd.f32 -0.16666667, %v6513_v4  ;;  %v6881_v57 = vfloor.f32 %v6817_v41  ;;  %v7170_v28 = vsub.f32 1.0, %v7106_v25 }
 0x61a   : > { %v6386_v13 = vmul.f32 %v6322_v11, %v13368_v46  ;;  %v7233_v54 = vmul.f32 %v7169_v16, %v6785_v31  ;;  %v6241_v59 = vmul.f32 %v6177_v29, %v13733_v32  ;;  %v6178_v49 = vadd.f32 2.7557319e-06, %v6114_v14 }
 0x61b   : > { %v6658_v63 = vmul.f32 %v6594_v30, %v13532_v55  ;;  %v6641_v53 = vmul.f32 %v6577_v17, %v13361_v24  ;;  %v7089_v34 = vmul.f32 2.0, %v7025_v48  ;;  %v6818_v36 = vmul.f32 0.5, %v15169_v21  ;;  %v7339_v17 = vpop.f32.mrf.mxu3 }
 0x61c   : > { %v6450_v50 = vadd.f32 0.008333334, %v6386_v13  ;;  %7555 = vmatpush.msrb.mxu2 %v7233_v54  ;;  %v6305_v19 = vadd.f32 -0.0001984127, %v6241_v59  ;;  %v6242_v44 = vmul.f32 %v6178_v49, %v13744_v12  ;;  %v7026_v51 = vsub.f32 %v15166_v37, %v6962_v9  ;;  %v7279_v13 = vpop.f32.mrf.mxu0  ;;  %v7256_v9 = vpop.permute.xlu2 %7255 }
 0x61d   : > { %v6722_v56 = vmul.f32 %v6658_v63, %v13448_v5  ;;  %v6705_v62 = vmul.f32 %v6641_v53, %v15170_v60  ;;  %v6945_v20 = vmul.f32 2.0, %v6881_v57  ;;  %v6882_v15 = vfloor.f32 %v6818_v36 }
 0x61e   : > { %v6514_v55 = vmul.f32 %v6450_v50, %v13368_v46  ;;  %v6369_v24 = vmul.f32 %v6305_v19, %v13733_v32  ;;  %v6306_v27 = vadd.f32 -0.0001984127, %v6242_v44  ;;  %v7153_v43 = vsub.f32 1.0, %v7089_v34 }
 0x61f   : > { %v6786_v2 = vadd.f32 %v6722_v56, %v13448_v5  ;;  %v6769_v35 = vadd.f32 %v6705_v62, %v15170_v60  ;;  %v6946_v48 = vmul.f32 2.0, %v6882_v15  ;;  %v7090_v37 = vmul.f32 2.0, %v7026_v51 }
 0x620   : > { %v6578_v45 = vadd.f32 -0.16666667, %v6514_v55  ;;  %v6433_v8 = vadd.f32 0.008333334, %v6369_v24  ;;  %v6370_v58 = vmul.f32 %v6306_v27, %v13744_v12  ;;  %v7009_v52 = vsub.f32 %v15167_v18, %v6945_v20 }
 0x621   : > { %v7234_v61 = vmul.f32 %v7170_v28, %v6786_v2  ;;  %v7217_v23 = vmul.f32 %v7153_v43, %v6769_v35  ;;  %v7010_v41 = vsub.f32 %v15169_v21, %v6946_v48  ;;  %v7154_v1 = vsub.f32 1.0, %v7090_v37 }
 0x622   : > { %v6642_v3 = vmul.f32 %v6578_v45, %v13368_v46  ;;  %v6497_v5 = vmul.f32 %v6433_v8, %v13733_v32  ;;  %v6434_v7 = vadd.f32 0.008333334, %v6370_v58  ;;  %v7073_v42 = vmul.f32 2.0, %v7009_v52 }
 0x623   : > { %7575 = vmatpush.msrb.mxu3 %v7234_v61  ;;  %7556 = vmatpush.msrb.mxu2 %v7217_v23  ;;  %v7074_v25 = vmul.f32 2.0, %v7010_v41  ;;  %v7258_v63 = vperm.slane %v7256_v9, 0 }
 0x624   : > { %v6706_v10 = vmul.f32 %v6642_v3, %v15171_v40  ;;  %v6561_v6 = vadd.f32 -0.16666667, %v6497_v5  ;;  %v6498_v22 = vmul.f32 %v6434_v7, %v13744_v12  ;;  %v7137_v11 = vsub.f32 1.0, %v7073_v42  ;;  %v7359_v59 = vpop.f32.mrf.mxu0 }
 0x625   : > { %v7138_v14 = vsub.f32 1.0, %v7074_v25  ;;  %v7419_v54 = vpop.f32.mrf.mxu3  ;;  %v7340_v34 = vadd.f32 %v7339_v17, %v7258_v63  ;;  %v7360_v50 = vadd.f32 %v7359_v59, %v7258_v63  ;;  %v7280_v20 = vadd.f32 %v7279_v13, %v7258_v63 }
 0x626   : > { %v6770_v26 = vadd.f32 %v6706_v10, %v15171_v40  ;;  %v6625_v46 = vmul.f32 %v6561_v6, %v13733_v32  ;;  %v6562_v0 = vadd.f32 -0.16666667, %v6498_v22  ;;  %v7420_v28 = vadd.f32 %v7419_v54, %v7258_v63 }
 0x627   : > { %v7600_v36 = vrot.slane %v7340_v34, 5  ;;  %v7601_v60 = vrot.slane %v7360_v50, 4 }
 0x628   : > { %v7218_v33 = vmul.f32 %v7154_v1, %v6770_v26  ;;  %v6689_v16 = vmul.f32 %v6625_v46, %v15165_v38  ;;  %v6626_v18 = vmul.f32 %v6562_v0, %v13744_v12  ;;  %v7319_v12 = vpop.f32.mrf.mxu2  ;;  %v7604_v44 = vrot.slane %v7420_v28, 1 }
 0x629   : > { %v7320_v53 = vadd.f32 %v7319_v12, %v7258_v63 }
 0x62a   : > { %7576 = vmatpush.msrb.mxu3 %v7218_v33  ;;  %v6753_v4 = vadd.f32 %v6689_v16, %v15165_v38  ;;  %v6690_v31 = vmul.f32 %v6626_v18, %v13727_v47  ;;  %v7299_v38 = vpop.f32.mrf.mxu1 }
 0x62b   : > { %v7300_v19 = vadd.f32 %v7299_v38, %v7258_v63  ;;  %v7599_v21 = vrot.slane %v7320_v53, 6 }
 0x62c   : > { %v7201_v30 = vmul.f32 %v7137_v11, %v6753_v4  ;;  %v6754_v29 = vadd.f32 %v6690_v31, %v13727_v47 }
 0x62d   : > { %v7598_v55 = vrot.slane %v7300_v19, 7  ;;  %v7615_v2 = vsel %vm7614_vm4, %v7599_v21, %v7600_v36 }
 0x62e   : > { %7557 = vmatpush.msrb.mxu2 %v7201_v30  ;;  %v7202_v32 = vmul.f32 %v7138_v14, %v6754_v29 }
 0x62f   : > { %7941 = vmatmul.msk.f32.vlgmr.msrb.gmra.mxu2 %vm2686_vm2, %v13651_v39  ;;  %v7613_v15 = vsel %vm7612_vm7, %v7280_v20, %v7598_v55 }
 0x630   : > { %7577 = vmatpush.msrb.mxu3 %v7202_v32  ;;  %v7399_v57 = vpop.f32.mrf.mxu2  ;;  %v7617_v35 = vsel %vm7616_vm8, %v7613_v15, %v7615_v2 }
 0x631   : > { %7942 = vmatmul.msk.f32.vlgmr.msrb.gmra.mxu3 %vm2686_vm2, %v13651_v39  ;;  %v7400_v49 = vadd.f32 %v7399_v57, %v7258_v63 }
 0x632   : > { %v7379_v47 = vpop.f32.mrf.mxu1 }
 0x633   : > { %v7380_v56 = vadd.f32 %v7379_v47, %v7258_v63  ;;  %v7603_v39 = vrot.slane %v7400_v49, 2 }
 0x635   : > { %v7602_v62 = vrot.slane %v7380_v56, 3  ;;  %v7621_v51 = vsel %vm7620_vm3, %v7603_v39, %v7604_v44 }
 0x637   : > { %v7619_v24 = vsel %vm7618_vm5, %v7601_v60, %v7602_v62 }
 0x638   : > { %v7623_v27 = vsel %vm7622_vm6, %v7619_v24, %v7621_v51 }
 0x639   : > { %v7625_v43 = vsel %vm7624_vm9, %v7617_v35, %v7623_v27 }
 0x63a   : > { %7635 = vst [vmem:[%s13807_s20] sm:$0xff] %v7625_v43 }
 0x642   : > { %v7439_v45 = vpop.f32.mrf.mxu0 }
 0x643   : > { %v7440_v33 = vadd.f32 %v7439_v45, %v7258_v63 }
 0x64c   : > { %v7459_v61 = vpop.f32.mrf.mxu1 }
 0x64d   : > { %v7460_v5 = vadd.f32 %v7459_v61, %v7258_v63 }
 0x64f   : > { %v7605_v41 = vrot.slane %v7460_v5, 7 }
 0x651   : > { %v7626_v25 = vsel %vm7612_vm7, %v7440_v33, %v7605_v41 }
 0x66f   : > { %v7479_v8 = vpop.f32.mrf.mxu2 }
 0x670   : > { %v7480_v3 = vadd.f32 %v7479_v8, %v7258_v63 }
 0x672   : > { %v7606_v10 = vrot.slane %v7480_v3, 6 }
 0x676   : > { %v7499_v58 = vpop.f32.mrf.mxu3 }
 0x677   : > { %v7500_v37 = vadd.f32 %v7499_v58, %v7258_v63 }
 0x679   : > { %v7607_v6 = vrot.slane %v7500_v37, 5 }
 0x67b   : > { %v7627_v16 = vsel %vm7614_vm4, %v7606_v10, %v7607_v6 }
 0x67c   : > { %v7628_v31 = vsel %vm7616_vm8, %v7626_v25, %v7627_v16 }
 0x68b   : > { %v7519_v48 = vpop.f32.mrf.mxu0 }
 0x68c   : > { %v7520_v52 = vadd.f32 %v7519_v48, %v7258_v63 }
 0x68e   : > { %v7608_v1 = vrot.slane %v7520_v52, 4 }
 0x690   : > { %v7539_v23 = vpop.f32.mrf.mxu1 }
 0x691   : > { %v7540_v7 = vadd.f32 %v7539_v23, %v7258_v63 }
 0x693   : > { %v7609_v46 = vrot.slane %v7540_v7, 3 }
 0x695   : > { %v7629_v4 = vsel %vm7618_vm5, %v7608_v1, %v7609_v46 }
 0x6b2   : > { %v7559_v40 = vpop.f32.mrf.mxu2 }
 0x6b3   : > { %v7560_v22 = vadd.f32 %v7559_v40, %v7258_v63 }
 0x6b4   : > { %v7579_v26 = vpop.f32.mrf.mxu3 }
 0x6b5   : > { %v7610_v42 = vrot.slane %v7560_v22, 2  ;;  %v7580_v0 = vadd.f32 %v7579_v26, %v7258_v63 }
 0x6b7   : > { %v7611_v18 = vrot.slane %v7580_v0, 1 }
 0x6b9   : > { %v7630_v11 = vsel %vm7620_vm3, %v7610_v42, %v7611_v18 }
 0x6ba   : > { %v7631_v30 = vsel %vm7622_vm6, %v7629_v4, %v7630_v11 }
 0x6bb   : > { %v7632_v29 = vsel %vm7624_vm9, %v7628_v31, %v7631_v30 }
 0x6bc   : > { %7636 = vst [vmem:[%s13807_s20 + $0x8] sm:$0xff] %v7632_v29 }
 0x6bd   : > { %8035 = shalt.err (!%p8032_p3)
}
 0x6be   : > { %7947 = dma.vmem_to_hbm [thread:$0]  (%p8156_p5), %s7651_s24, 256, %s7653_s25, %s7638_s18  }
 0x6bf PF: > { %p7953_p4 = scmp.ge.s32.totalorder %s8070_s10, 2  ;;  %s7664_s14 = sand.u32 1, %s8058_s29  }
 0x6c0   : > { %s7665_s20 = scalar_lea.sflag [#allocation4], %s7664_s14 }
 0x6c1   : > { %p7950_p7 = pnand %p7953_p4, %p8160_p6 }
 0x6c3   : > { %p7951_p8 = pneg %p7950_p7 }
 0x6c5   : > { %8053 = dma.done.wait (%p7951_p8), %s7665_s20, 256  }
 0x6c6   : > { %8055 = vsyncadd (%p7951_p8), %s7665_s20, 4294967040  ;;  %p20_p9 = scmp.ge.s32.totalorder %s8144_s12, 4   ;;  %s15172_s29 = smov %s8062_s30 }
 0x6c7   : > { %s15173_s30 = smov %s8066_s9  ;;  %s15174_s9 = smov %s8154_s15 }
 0x6c8   : > { %s15175_s10 = smov %s8144_s12  ;;  %22 = sbr.rel (!%p20_p9) target bundleno = 6 (0x6), region = 90 }
 0x6cd   :  { %7671 = vsyncpa [#allocation4], 1 }
 0x6ce   :  { %7673 = vsyncpa [#allocation4 + $0x1], 1 }

</bundles_post_ra>
